<compile_context>
chip_gen: v5e
topology: v5e:2x2
jax: 0.10.0
libtpu: 0.0.40
codegen_flags: <defaults>
</compile_context>

<pallas_src>
import numpy as np

import jax
import jax.numpy as jnp
from jax import lax
from jax.experimental import pallas as pl
from jax.experimental.pallas import tpu as pltpu

PB = 256            # parity-block lane width (multiple of 128); conv matmul N = 2*PB = 512
B_BLK = 8           # images per grid step (multiple of 8 -> all sublane slices stay aligned)
DROPOUT_RATE = 0.5  # nn.Dropout is identity at inference (see TODO in kernel).


# ----------------------- host-side weight / constant prep ---------------------- #

def _build_band_np(w_oihw, win, pb):
    """Banded conv weights: (3, win*CI, 2*pb).

    band[dh, wi*CI+ci, (w%2)*pb + (w//2)*O + o] = w[o, ci, dh, dw] with wi = w+dw-1.
    W-padding of the conv is implicit (out-of-range taps simply have no entry)."""
    O, CI, KH, KW = w_oihw.shape
    band = np.zeros((KH, win * CI, 2 * pb), np.float32)
    for dh in range(KH):
        for dw in range(KW):
            blk = w_oihw[:, :, dh, dw].T  # (CI, O)
            for w in range(win):
                wi = w + dw - 1
                if 0 <= wi < win:
                    col0 = (w % 2) * pb + (w // 2) * O
                    band[dh, wi * CI:(wi + 1) * CI, col0:col0 + O] = blk
    return band


def _build_bias_row_np(b, win, pb):
    O = b.shape[0]
    half = np.zeros((pb,), np.float32)
    half[:(win // 2) * O] = np.tile(b, win // 2)
    return np.concatenate([half, half])[None, :]  # (1, 2*pb)


def _build_selection_mats_np(b_blk):
    """Exact 0/1 matrices that implement (per 8-image block, all sublane-aligned):
       - pool1 H-pool + conv2 H-zero-padding: (b_blk*16, b_blk*28) even/odd row pickers,
         rows b*16+0 / b*16+15 are all-zero pad rows,
       - conv2 dh=0 / dh=2 H-tap row shifts inside each 16-row image block,
       - pool2 H-pool + batch-stacking of the 7 pooled spatial rows for fc1."""
    n1 = b_blk * 28   # conv1 row space (28 rows per image)
    n2 = b_blk * 16   # conv2 row space (16 rows per image, rows 0 and 15 are zero pads)
    selE1 = np.zeros((n2, n1), np.float32)
    selO1 = np.zeros((n2, n1), np.float32)
    for b in range(b_blk):
        for i in range(14):
            selE1[b * 16 + 1 + i, b * 28 + 2 * i] = 1.0
            selO1[b * 16 + 1 + i, b * 28 + 2 * i + 1] = 1.0
    shiftD = np.zeros((n2, n2), np.float32)   # row r <- row r-1  (conv2 dh=0 tap)
    shiftU = np.zeros((n2, n2), np.float32)   # row r <- row r+1  (conv2 dh=2 tap)
    for r in range(n2):
        if r % 16 != 0:
            shiftD[r, r - 1] = 1.0
        if r % 16 != 15:
            shiftU[r, r + 1] = 1.0
    nf = b_blk * 7
    selE2 = np.zeros((nf, n2), np.float32)
    selO2 = np.zeros((nf, n2), np.float32)
    for r in range(7):
        for b in range(b_blk):
            selE2[r * b_blk + b, b * 16 + 1 + 2 * r] = 1.0
            selO2[r * b_blk + b, b * 16 + 2 + 2 * r] = 1.0
    return selE1, selO1, shiftD, shiftU, selE2, selO2


def prepare_operands(params):
    """One-time (host numpy, exact) rearrangement of PyTorch-layout weights."""
    w1 = np.asarray(params["w1"], np.float32)      # (16, 1, 3, 3)
    b1 = np.asarray(params["b1"], np.float32)
    w2 = np.asarray(params["w2"], np.float32)      # (32, 16, 3, 3)
    b2 = np.asarray(params["b2"], np.float32)
    wfc1 = np.asarray(params["wfc1"], np.float32)  # (128, 1568)
    bfc1 = np.asarray(params["bfc1"], np.float32)
    wfc2 = np.asarray(params["wfc2"], np.float32)  # (10, 128)
    bfc2 = np.asarray(params["bfc2"], np.float32)

    # conv1: all three H-taps stacked along K (matches the host-side im2col-over-H input).
    w1full = _build_band_np(w1, 28, PB).reshape(3 * 28, 2 * PB)   # (84, 512)

    w2band_raw = _build_band_np(w2, 14, PB)                       # (3, 224, 512)
    w2band = np.zeros((3, PB, 2 * PB), np.float32)                # pad K rows to 256
    w2band[:, :w2band_raw.shape[1], :] = w2band_raw

    b1row = _build_bias_row_np(b1, 28, PB)                        # (1, 512)
    b2row = _build_bias_row_np(b2, 14, PB)                        # (1, 512)

    selE1, selO1, shiftD, shiftU, selE2, selO2 = _build_selection_mats_np(B_BLK)

    # fc1: torch flat index = c*49 + h*7 + w ; our pooled layout is row=h, col=w*32+c.
    wfc1_stack = np.zeros((7, PB, 128), np.float32)
    w_ = wfc1.reshape(128, 32, 7, 7).transpose(2, 3, 1, 0)        # (h, w, c, j)
    wfc1_stack[:, :7 * 32, :] = w_.reshape(7, 7 * 32, 128)

    wfc2pad = np.zeros((128, 128), np.float32)                    # lane-dense fc2 (pad N 10->128)
    wfc2pad[:, :10] = wfc2.T
    bfc2row = np.zeros((1, 128), np.float32)
    bfc2row[0, :10] = bfc2

    return dict(
        w1full=jnp.asarray(w1full), b1row=jnp.asarray(b1row),
        w2band=jnp.asarray(w2band), b2row=jnp.asarray(b2row),
        selE1=jnp.asarray(selE1), selO1=jnp.asarray(selO1),
        shiftD=jnp.asarray(shiftD), shiftU=jnp.asarray(shiftU),
        selE2=jnp.asarray(selE2), selO2=jnp.asarray(selO2),
        wfc1stack=jnp.asarray(wfc1_stack),
        bfc1row=jnp.asarray(bfc1.reshape(1, 128)),
        wfc2pad=jnp.asarray(wfc2pad), bfc2row=jnp.asarray(bfc2row),
    )


# --------------------------------- kernel ----------------------------------- #

def _fused_cnn_kernel(x_ref, w1_ref, b1_ref,
                      selE1_ref, selO1_ref, shiftD_ref, shiftU_ref,
                      w2_ref, b2_ref, selE2_ref, selO2_ref,
                      wfc1_ref, bfc1_ref, wfc2_ref, bfc2_ref,
                      out_ref):
    f32 = jnp.float32

    # conv1: ONE banded matmul (M = 8*28 = 224, K = 3*28 = 84, N = 512), bias + ReLU fused.
    a1 = jnp.dot(x_ref[...], w1_ref[...], preferred_element_type=f32) + b1_ref[...]
    a1 = jnp.maximum(a1, 0.0)                                   # (224, 512)

    # pool1: W-pool = max of the two 256-lane parity halves; H-pool + conv2 H-zero-pad via
    # exact 0/1 selection matmuls -> p1 has 16 rows per image (rows 0/15 are zero pads).
    mw1 = jnp.maximum(a1[:, :PB], a1[:, PB:])                   # (224, 256), cols = w*16 + c
    p1 = jnp.maximum(
        jnp.dot(selE1_ref[...], mw1, preferred_element_type=f32),
        jnp.dot(selO1_ref[...], mw1, preferred_element_type=f32))   # (128, 256)

    # conv2: 3 H-tap banded matmuls (M = 128, K = 256, N = 512). The dh = 0 / dh = 2 LHS row
    # shifts are exact 0/1 shift matmuls confined to each image's 16-row block (the zero pad
    # rows of p1 supply the conv's H padding). Accumulator starts from the dh=1 term + bias.
    a2 = jnp.dot(p1, w2_ref[1], preferred_element_type=f32) + b2_ref[...]
    a2 = a2 + jnp.dot(jnp.dot(shiftD_ref[...], p1, preferred_element_type=f32),
                      w2_ref[0], preferred_element_type=f32)
    a2 = a2 + jnp.dot(jnp.dot(shiftU_ref[...], p1, preferred_element_type=f32),
                      w2_ref[2], preferred_element_type=f32)
    a2 = jnp.maximum(a2, 0.0)                                   # (128, 512)

    # pool2 + batch-stacking of the 7 pooled spatial rows: row r*8+b of p2 is image b, row r.
    mw2 = jnp.maximum(a2[:, :PB], a2[:, PB:])                   # (128, 256), cols = w*32 + c
    p2 = jnp.maximum(
        jnp.dot(selE2_ref[...], mw2, preferred_element_type=f32),
        jnp.dot(selO2_ref[...], mw2, preferred_element_type=f32))   # (56, 256)

    # fc1 (+ReLU): 7 matmuls with a real M = B_BLK (8-row, sublane-aligned slices of p2).
    h = jnp.dot(p2[0:B_BLK, :], wfc1_ref[0], preferred_element_type=f32) + bfc1_ref[...]
    for r in range(1, 7):
        h = h + jnp.dot(p2[r * B_BLK:(r + 1) * B_BLK, :], wfc1_ref[r],
                        preferred_element_type=f32)
    h = jnp.maximum(h, 0.0)                                     # (8, 128)

    # TODO(synk): dropout is inference-mode identity; training-mode stochastic dropout
    # (pltpu.prng_seed / prng_random_bits) is not implemented.

    # fc2, output padded to 128 lanes (wrapper slices to 10).
    out_ref[...] = jnp.dot(h, wfc2_ref[...], preferred_element_type=f32) + bfc2_ref[...]


@jax.jit
def fused_forward(ops, x_nchw):
    B = x_nchw.shape[0]
    bpad = ((B + B_BLK - 1) // B_BLK) * B_BLK

    # Tiny host-side prep: pad batch to a multiple of B_BLK, im2col over H (K = 3*28 = 84,
    # still a single 128-lane tile in VMEM) and flatten images into the matmul M dimension.
    x0 = jnp.pad(x_nchw[:, 0, :, :].astype(jnp.float32), ((0, bpad - B), (1, 1), (0, 0)))
    xim = jnp.concatenate([x0[:, 0:28, :], x0[:, 1:29, :], x0[:, 2:30, :]], axis=2)
    xflat = xim.reshape(bpad * 28, 3 * 28)                      # (bpad*28, 84)

    out = pl.pallas_call(
        _fused_cnn_kernel,
        out_shape=jax.ShapeDtypeStruct((bpad, 128), jnp.float32),
        grid_spec=pltpu.PrefetchScalarGridSpec(
            num_scalar_prefetch=0,
            grid=(bpad // B_BLK,),
            in_specs=[
                pl.BlockSpec((B_BLK * 28, 3 * 28), lambda g: (g, 0)),        # packed input
                pl.BlockSpec((3 * 28, 2 * PB), lambda g: (0, 0)),            # conv1 band (K=84)
                pl.BlockSpec((1, 2 * PB), lambda g: (0, 0)),                 # conv1 bias row
                pl.BlockSpec((B_BLK * 16, B_BLK * 28), lambda g: (0, 0)),    # pool1 even sel
                pl.BlockSpec((B_BLK * 16, B_BLK * 28), lambda g: (0, 0)),    # pool1 odd  sel
                pl.BlockSpec((B_BLK * 16, B_BLK * 16), lambda g: (0, 0)),    # conv2 dh=0 shift
                pl.BlockSpec((B_BLK * 16, B_BLK * 16), lambda g: (0, 0)),    # conv2 dh=2 shift
                pl.BlockSpec((3, PB, 2 * PB), lambda g: (0, 0, 0)),          # conv2 band
                pl.BlockSpec((1, 2 * PB), lambda g: (0, 0)),                 # conv2 bias row
                pl.BlockSpec((7 * B_BLK, B_BLK * 16), lambda g: (0, 0)),     # pool2 even sel
                pl.BlockSpec((7 * B_BLK, B_BLK * 16), lambda g: (0, 0)),     # pool2 odd  sel
                pl.BlockSpec((7, PB, 128), lambda g: (0, 0, 0)),             # fc1 stack
                pl.BlockSpec((1, 128), lambda g: (0, 0)),                    # fc1 bias
                pl.BlockSpec((128, 128), lambda g: (0, 0)),                  # fc2 (padded)
                pl.BlockSpec((1, 128), lambda g: (0, 0)),                    # fc2 bias (padded)
            ],
            out_specs=pl.BlockSpec((B_BLK, 128), lambda g: (g, 0)),
        ),
        compiler_params=pltpu.CompilerParams(
            dimension_semantics=("parallel",)),
    )(xflat, ops["w1full"], ops["b1row"],
      ops["selE1"], ops["selO1"], ops["shiftD"], ops["shiftU"],
      ops["w2band"], ops["b2row"], ops["selE2"], ops["selO2"],
      ops["wfc1stack"], ops["bfc1row"], ops["wfc2pad"], ops["bfc2row"])

    return out[:B, :10]


def simple_cnn_forward(params, x_nchw):
    ops = prepare_operands(params)       # one-time host-side weight/constant prep
    return fused_forward(ops, x_nchw)


# --------------------------- pure-JAX reference ------------------------------ #

def reference_forward(params, x_nchw):
    y = lax.conv_general_dilated(x_nchw, params["w1"], (1, 1), ((1, 1), (1, 1)),
                                 dimension_numbers=("NCHW", "OIHW", "NCHW"))
    y = jnp.maximum(y + params["b1"][None, :, None, None], 0.0)
    y = lax.reduce_window(y, -jnp.inf, lax.max, (1, 1, 2, 2), (1, 1, 2, 2), "VALID")
    y = lax.conv_general_dilated(y, params["w2"], (1, 1), ((1, 1), (1, 1)),
                                 dimension_numbers=("NCHW", "OIHW", "NCHW"))
    y = jnp.maximum(y + params["b2"][None, :, None, None], 0.0)
    y = lax.reduce_window(y, -jnp.inf, lax.max, (1, 1, 2, 2), (1, 1, 2, 2), "VALID")
    y = y.reshape(y.shape[0], -1)
    y = jnp.maximum(y @ params["wfc1"].T + params["bfc1"], 0.0)
    y = y @ params["wfc2"].T + params["bfc2"]
    return y


# ----------------------------------- main ------------------------------------ #

if __name__ == "__main__":
    key = jax.random.PRNGKey(0)
    ks = jax.random.split(key, 9)
    # Parameters kept in PyTorch layouts (OIHW convs, (out, in) linears), synthetic init.
    params = {
        "w1": 0.10 * jax.random.normal(ks[0], (16, 1, 3, 3), jnp.float32),
        "b1": 0.10 * jax.random.normal(ks[1], (16,), jnp.float32),
        "w2": 0.05 * jax.random.normal(ks[2], (32, 16, 3, 3), jnp.float32),
        "b2": 0.05 * jax.random.normal(ks[3], (32,), jnp.float32),
        "wfc1": 0.02 * jax.random.normal(ks[4], (128, 32 * 7 * 7), jnp.float32),
        "bfc1": 0.02 * jax.random.normal(ks[5], (128,), jnp.float32),
        "wfc2": 0.05 * jax.random.normal(ks[6], (10, 128), jnp.float32),
        "bfc2": 0.05 * jax.random.normal(ks[7], (10,), jnp.float32),
    }
    # Spatial size 28 is implied by fc1 = 32*7*7 (28 -> 14 -> 7 after two pools).
    x = jax.random.normal(ks[8], (2, 1, 28, 28), jnp.float32)

    out = jax.block_until_ready(simple_cnn_forward(params, x))
    assert out.shape == (2, 10), out.shape

    ref = jax.block_until_ready(jax.jit(reference_forward)(params, x))
    assert jnp.allclose(out, ref, rtol=5e-4, atol=5e-4), (
        f"max abs err {jnp.max(jnp.abs(out - ref))}")

    print("KERNEL_OK")
</pallas_src>

<mosaic_0001>
module attributes {stable_mosaic.version = 11 : i64} {
  func.func @_fused_cnn_kernel(%arg0: i32, %arg1: memref<224x84xf32, #tpu.memory_space<vmem>>, %arg2: memref<84x512xf32, #tpu.memory_space<vmem>>, %arg3: memref<1x512xf32, #tpu.memory_space<vmem>>, %arg4: memref<128x224xf32, #tpu.memory_space<vmem>>, %arg5: memref<128x224xf32, #tpu.memory_space<vmem>>, %arg6: memref<128x128xf32, #tpu.memory_space<vmem>>, %arg7: memref<128x128xf32, #tpu.memory_space<vmem>>, %arg8: memref<3x256x512xf32, #tpu.memory_space<vmem>>, %arg9: memref<1x512xf32, #tpu.memory_space<vmem>>, %arg10: memref<56x128xf32, #tpu.memory_space<vmem>>, %arg11: memref<56x128xf32, #tpu.memory_space<vmem>>, %arg12: memref<7x256x128xf32, #tpu.memory_space<vmem>>, %arg13: memref<1x128xf32, #tpu.memory_space<vmem>>, %arg14: memref<128x128xf32, #tpu.memory_space<vmem>>, %arg15: memref<1x128xf32, #tpu.memory_space<vmem>>, %arg16: memref<8x128xf32, #tpu.memory_space<vmem>>) attributes {dimension_semantics = [#tpu.dimension_semantics<parallel>], iteration_bounds = array<i64: 1>, scalar_prefetch = 0 : i64, scratch_operands = 0 : i64, tpu.core_type = #tpu.core_type<tc>, window_params = [{transform_indices = @transform_0, window_bounds = array<i64: 224, 84>}, {pipeline_mode = #tpu.pipeline_mode<synchronous>, transform_indices = @transform_1, window_bounds = array<i64: 84, 512>}, {pipeline_mode = #tpu.pipeline_mode<synchronous>, transform_indices = @transform_2, window_bounds = array<i64: 1, 512>}, {pipeline_mode = #tpu.pipeline_mode<synchronous>, transform_indices = @transform_3, window_bounds = array<i64: 128, 224>}, {pipeline_mode = #tpu.pipeline_mode<synchronous>, transform_indices = @transform_4, window_bounds = array<i64: 128, 224>}, {pipeline_mode = #tpu.pipeline_mode<synchronous>, transform_indices = @transform_5, window_bounds = array<i64: 128, 128>}, {pipeline_mode = #tpu.pipeline_mode<synchronous>, transform_indices = @transform_6, window_bounds = array<i64: 128, 128>}, {pipeline_mode = #tpu.pipeline_mode<synchronous>, transform_indices = @transform_7, window_bounds = array<i64: 3, 256, 512>}, {pipeline_mode = #tpu.pipeline_mode<synchronous>, transform_indices = @transform_8, window_bounds = array<i64: 1, 512>}, {pipeline_mode = #tpu.pipeline_mode<synchronous>, transform_indices = @transform_9, window_bounds = array<i64: 56, 128>}, {pipeline_mode = #tpu.pipeline_mode<synchronous>, transform_indices = @transform_10, window_bounds = array<i64: 56, 128>}, {pipeline_mode = #tpu.pipeline_mode<synchronous>, transform_indices = @transform_11, window_bounds = array<i64: 7, 256, 128>}, {pipeline_mode = #tpu.pipeline_mode<synchronous>, transform_indices = @transform_12, window_bounds = array<i64: 1, 128>}, {pipeline_mode = #tpu.pipeline_mode<synchronous>, transform_indices = @transform_13, window_bounds = array<i64: 128, 128>}, {pipeline_mode = #tpu.pipeline_mode<synchronous>, transform_indices = @transform_14, window_bounds = array<i64: 1, 128>}, {transform_indices = @transform_15, window_bounds = array<i64: 8, 128>}]} {
    %c0 = arith.constant 0 : index
    %c0_0 = arith.constant 0 : index
    %0 = vector.load %arg1[%c0, %c0_0] : memref<224x84xf32, #tpu.memory_space<vmem>>, vector<224x84xf32>
    %c0_1 = arith.constant 0 : index
    %c0_2 = arith.constant 0 : index
    %1 = vector.load %arg2[%c0_1, %c0_2] : memref<84x512xf32, #tpu.memory_space<vmem>>, vector<84x512xf32>
    %cst = arith.constant dense<0.000000e+00> : vector<224x512xf32>
    %2 = tpu.matmul %0, %1, %cst {dimension_numbers = #tpu.dot_dimension_numbers<[1], [0], [0], [1], [0, 0, 1, 1], [], []>} : vector<224x84xf32>, vector<84x512xf32>, vector<224x512xf32> -> vector<224x512xf32>
    %c0_3 = arith.constant 0 : index
    %c0_4 = arith.constant 0 : index
    %3 = vector.load %arg3[%c0_3, %c0_4] : memref<1x512xf32, #tpu.memory_space<vmem>>, vector<1x512xf32>
    %4 = vector.broadcast %3 : vector<1x512xf32> to vector<224x512xf32>
    %5 = arith.addf %2, %4 : vector<224x512xf32>
    %cst_5 = arith.constant 0.000000e+00 : f32
    %6 = vector.broadcast %cst_5 : f32 to vector<224x512xf32>
    %7 = arith.maximumf %5, %6 : vector<224x512xf32>
    %8 = vector.extract_strided_slice %7 {offsets = [0, 0], sizes = [224, 256], strides = [1, 1]} : vector<224x512xf32> to vector<224x256xf32>
    %9 = vector.extract_strided_slice %7 {offsets = [0, 256], sizes = [224, 256], strides = [1, 1]} : vector<224x512xf32> to vector<224x256xf32>
    %10 = arith.maximumf %8, %9 : vector<224x256xf32>
    %c0_6 = arith.constant 0 : index
    %c0_7 = arith.constant 0 : index
    %11 = vector.load %arg4[%c0_6, %c0_7] : memref<128x224xf32, #tpu.memory_space<vmem>>, vector<128x224xf32>
    %cst_8 = arith.constant dense<0.000000e+00> : vector<128x256xf32>
    %12 = tpu.matmul %11, %10, %cst_8 {dimension_numbers = #tpu.dot_dimension_numbers<[1], [0], [0], [1], [0, 0, 1, 1], [], []>} : vector<128x224xf32>, vector<224x256xf32>, vector<128x256xf32> -> vector<128x256xf32>
    %c0_9 = arith.constant 0 : index
    %c0_10 = arith.constant 0 : index
    %13 = vector.load %arg5[%c0_9, %c0_10] : memref<128x224xf32, #tpu.memory_space<vmem>>, vector<128x224xf32>
    %cst_11 = arith.constant dense<0.000000e+00> : vector<128x256xf32>
    %14 = tpu.matmul %13, %10, %cst_11 {dimension_numbers = #tpu.dot_dimension_numbers<[1], [0], [0], [1], [0, 0, 1, 1], [], []>} : vector<128x224xf32>, vector<224x256xf32>, vector<128x256xf32> -> vector<128x256xf32>
    %15 = arith.maximumf %12, %14 : vector<128x256xf32>
    %c1 = arith.constant 1 : index
    %c0_12 = arith.constant 0 : index
    %c0_13 = arith.constant 0 : index
    %16 = vector.load %arg8[%c1, %c0_12, %c0_13] : memref<3x256x512xf32, #tpu.memory_space<vmem>>, vector<1x256x512xf32>
    %17 = vector.shape_cast %16 : vector<1x256x512xf32> to vector<256x512xf32>
    %cst_14 = arith.constant dense<0.000000e+00> : vector<128x512xf32>
    %18 = tpu.matmul %15, %17, %cst_14 {dimension_numbers = #tpu.dot_dimension_numbers<[1], [0], [0], [1], [0, 0, 1, 1], [], []>} : vector<128x256xf32>, vector<256x512xf32>, vector<128x512xf32> -> vector<128x512xf32>
    %c0_15 = arith.constant 0 : index
    %c0_16 = arith.constant 0 : index
    %19 = vector.load %arg9[%c0_15, %c0_16] : memref<1x512xf32, #tpu.memory_space<vmem>>, vector<1x512xf32>
    %20 = vector.broadcast %19 : vector<1x512xf32> to vector<128x512xf32>
    %21 = arith.addf %18, %20 : vector<128x512xf32>
    %c0_17 = arith.constant 0 : index
    %c0_18 = arith.constant 0 : index
    %22 = vector.load %arg6[%c0_17, %c0_18] : memref<128x128xf32, #tpu.memory_space<vmem>>, vector<128x128xf32>
    %cst_19 = arith.constant dense<0.000000e+00> : vector<128x256xf32>
    %23 = tpu.matmul %22, %15, %cst_19 {dimension_numbers = #tpu.dot_dimension_numbers<[1], [0], [0], [1], [0, 0, 1, 1], [], []>} : vector<128x128xf32>, vector<128x256xf32>, vector<128x256xf32> -> vector<128x256xf32>
    %c0_20 = arith.constant 0 : index
    %c0_21 = arith.constant 0 : index
    %c0_22 = arith.constant 0 : index
    %24 = vector.load %arg8[%c0_20, %c0_21, %c0_22] : memref<3x256x512xf32, #tpu.memory_space<vmem>>, vector<1x256x512xf32>
    %25 = vector.shape_cast %24 : vector<1x256x512xf32> to vector<256x512xf32>
    %cst_23 = arith.constant dense<0.000000e+00> : vector<128x512xf32>
    %26 = tpu.matmul %23, %25, %cst_23 {dimension_numbers = #tpu.dot_dimension_numbers<[1], [0], [0], [1], [0, 0, 1, 1], [], []>} : vector<128x256xf32>, vector<256x512xf32>, vector<128x512xf32> -> vector<128x512xf32>
    %27 = arith.addf %21, %26 : vector<128x512xf32>
    %c0_24 = arith.constant 0 : index
    %c0_25 = arith.constant 0 : index
    %28 = vector.load %arg7[%c0_24, %c0_25] : memref<128x128xf32, #tpu.memory_space<vmem>>, vector<128x128xf32>
    %cst_26 = arith.constant dense<0.000000e+00> : vector<128x256xf32>
    %29 = tpu.matmul %28, %15, %cst_26 {dimension_numbers = #tpu.dot_dimension_numbers<[1], [0], [0], [1], [0, 0, 1, 1], [], []>} : vector<128x128xf32>, vector<128x256xf32>, vector<128x256xf32> -> vector<128x256xf32>
    %c2 = arith.constant 2 : index
    %c0_27 = arith.constant 0 : index
    %c0_28 = arith.constant 0 : index
    %30 = vector.load %arg8[%c2, %c0_27, %c0_28] : memref<3x256x512xf32, #tpu.memory_space<vmem>>, vector<1x256x512xf32>
    %31 = vector.shape_cast %30 : vector<1x256x512xf32> to vector<256x512xf32>
    %cst_29 = arith.constant dense<0.000000e+00> : vector<128x512xf32>
    %32 = tpu.matmul %29, %31, %cst_29 {dimension_numbers = #tpu.dot_dimension_numbers<[1], [0], [0], [1], [0, 0, 1, 1], [], []>} : vector<128x256xf32>, vector<256x512xf32>, vector<128x512xf32> -> vector<128x512xf32>
    %33 = arith.addf %27, %32 : vector<128x512xf32>
    %cst_30 = arith.constant 0.000000e+00 : f32
    %34 = vector.broadcast %cst_30 : f32 to vector<128x512xf32>
    %35 = arith.maximumf %33, %34 : vector<128x512xf32>
    %36 = vector.extract_strided_slice %35 {offsets = [0, 0], sizes = [128, 256], strides = [1, 1]} : vector<128x512xf32> to vector<128x256xf32>
    %37 = vector.extract_strided_slice %35 {offsets = [0, 256], sizes = [128, 256], strides = [1, 1]} : vector<128x512xf32> to vector<128x256xf32>
    %38 = arith.maximumf %36, %37 : vector<128x256xf32>
    %c0_31 = arith.constant 0 : index
    %c0_32 = arith.constant 0 : index
    %39 = vector.load %arg10[%c0_31, %c0_32] : memref<56x128xf32, #tpu.memory_space<vmem>>, vector<56x128xf32>
    %cst_33 = arith.constant dense<0.000000e+00> : vector<56x256xf32>
    %40 = tpu.matmul %39, %38, %cst_33 {dimension_numbers = #tpu.dot_dimension_numbers<[1], [0], [0], [1], [0, 0, 1, 1], [], []>} : vector<56x128xf32>, vector<128x256xf32>, vector<56x256xf32> -> vector<56x256xf32>
    %c0_34 = arith.constant 0 : index
    %c0_35 = arith.constant 0 : index
    %41 = vector.load %arg11[%c0_34, %c0_35] : memref<56x128xf32, #tpu.memory_space<vmem>>, vector<56x128xf32>
    %cst_36 = arith.constant dense<0.000000e+00> : vector<56x256xf32>
    %42 = tpu.matmul %41, %38, %cst_36 {dimension_numbers = #tpu.dot_dimension_numbers<[1], [0], [0], [1], [0, 0, 1, 1], [], []>} : vector<56x128xf32>, vector<128x256xf32>, vector<56x256xf32> -> vector<56x256xf32>
    %43 = arith.maximumf %40, %42 : vector<56x256xf32>
    %44 = vector.extract_strided_slice %43 {offsets = [0, 0], sizes = [8, 256], strides = [1, 1]} : vector<56x256xf32> to vector<8x256xf32>
    %c0_37 = arith.constant 0 : index
    %c0_38 = arith.constant 0 : index
    %c0_39 = arith.constant 0 : index
    %45 = vector.load %arg12[%c0_37, %c0_38, %c0_39] : memref<7x256x128xf32, #tpu.memory_space<vmem>>, vector<1x256x128xf32>
    %46 = vector.shape_cast %45 : vector<1x256x128xf32> to vector<256x128xf32>
    %cst_40 = arith.constant dense<0.000000e+00> : vector<8x128xf32>
    %47 = tpu.matmul %44, %46, %cst_40 {dimension_numbers = #tpu.dot_dimension_numbers<[1], [0], [0], [1], [0, 0, 1, 1], [], []>} : vector<8x256xf32>, vector<256x128xf32>, vector<8x128xf32> -> vector<8x128xf32>
    %c0_41 = arith.constant 0 : index
    %c0_42 = arith.constant 0 : index
    %48 = vector.load %arg13[%c0_41, %c0_42] : memref<1x128xf32, #tpu.memory_space<vmem>>, vector<1x128xf32>
    %49 = vector.broadcast %48 : vector<1x128xf32> to vector<8x128xf32>
    %50 = arith.addf %47, %49 : vector<8x128xf32>
    %51 = vector.extract_strided_slice %43 {offsets = [8, 0], sizes = [8, 256], strides = [1, 1]} : vector<56x256xf32> to vector<8x256xf32>
    %c1_43 = arith.constant 1 : index
    %c0_44 = arith.constant 0 : index
    %c0_45 = arith.constant 0 : index
    %52 = vector.load %arg12[%c1_43, %c0_44, %c0_45] : memref<7x256x128xf32, #tpu.memory_space<vmem>>, vector<1x256x128xf32>
    %53 = vector.shape_cast %52 : vector<1x256x128xf32> to vector<256x128xf32>
    %cst_46 = arith.constant dense<0.000000e+00> : vector<8x128xf32>
    %54 = tpu.matmul %51, %53, %cst_46 {dimension_numbers = #tpu.dot_dimension_numbers<[1], [0], [0], [1], [0, 0, 1, 1], [], []>} : vector<8x256xf32>, vector<256x128xf32>, vector<8x128xf32> -> vector<8x128xf32>
    %55 = arith.addf %50, %54 : vector<8x128xf32>
    %56 = vector.extract_strided_slice %43 {offsets = [16, 0], sizes = [8, 256], strides = [1, 1]} : vector<56x256xf32> to vector<8x256xf32>
    %c2_47 = arith.constant 2 : index
    %c0_48 = arith.constant 0 : index
    %c0_49 = arith.constant 0 : index
    %57 = vector.load %arg12[%c2_47, %c0_48, %c0_49] : memref<7x256x128xf32, #tpu.memory_space<vmem>>, vector<1x256x128xf32>
    %58 = vector.shape_cast %57 : vector<1x256x128xf32> to vector<256x128xf32>
    %cst_50 = arith.constant dense<0.000000e+00> : vector<8x128xf32>
    %59 = tpu.matmul %56, %58, %cst_50 {dimension_numbers = #tpu.dot_dimension_numbers<[1], [0], [0], [1], [0, 0, 1, 1], [], []>} : vector<8x256xf32>, vector<256x128xf32>, vector<8x128xf32> -> vector<8x128xf32>
    %60 = arith.addf %55, %59 : vector<8x128xf32>
    %61 = vector.extract_strided_slice %43 {offsets = [24, 0], sizes = [8, 256], strides = [1, 1]} : vector<56x256xf32> to vector<8x256xf32>
    %c3 = arith.constant 3 : index
    %c0_51 = arith.constant 0 : index
    %c0_52 = arith.constant 0 : index
    %62 = vector.load %arg12[%c3, %c0_51, %c0_52] : memref<7x256x128xf32, #tpu.memory_space<vmem>>, vector<1x256x128xf32>
    %63 = vector.shape_cast %62 : vector<1x256x128xf32> to vector<256x128xf32>
    %cst_53 = arith.constant dense<0.000000e+00> : vector<8x128xf32>
    %64 = tpu.matmul %61, %63, %cst_53 {dimension_numbers = #tpu.dot_dimension_numbers<[1], [0], [0], [1], [0, 0, 1, 1], [], []>} : vector<8x256xf32>, vector<256x128xf32>, vector<8x128xf32> -> vector<8x128xf32>
    %65 = arith.addf %60, %64 : vector<8x128xf32>
    %66 = vector.extract_strided_slice %43 {offsets = [32, 0], sizes = [8, 256], strides = [1, 1]} : vector<56x256xf32> to vector<8x256xf32>
    %c4 = arith.constant 4 : index
    %c0_54 = arith.constant 0 : index
    %c0_55 = arith.constant 0 : index
    %67 = vector.load %arg12[%c4, %c0_54, %c0_55] : memref<7x256x128xf32, #tpu.memory_space<vmem>>, vector<1x256x128xf32>
    %68 = vector.shape_cast %67 : vector<1x256x128xf32> to vector<256x128xf32>
    %cst_56 = arith.constant dense<0.000000e+00> : vector<8x128xf32>
    %69 = tpu.matmul %66, %68, %cst_56 {dimension_numbers = #tpu.dot_dimension_numbers<[1], [0], [0], [1], [0, 0, 1, 1], [], []>} : vector<8x256xf32>, vector<256x128xf32>, vector<8x128xf32> -> vector<8x128xf32>
    %70 = arith.addf %65, %69 : vector<8x128xf32>
    %71 = vector.extract_strided_slice %43 {offsets = [40, 0], sizes = [8, 256], strides = [1, 1]} : vector<56x256xf32> to vector<8x256xf32>
    %c5 = arith.constant 5 : index
    %c0_57 = arith.constant 0 : index
    %c0_58 = arith.constant 0 : index
    %72 = vector.load %arg12[%c5, %c0_57, %c0_58] : memref<7x256x128xf32, #tpu.memory_space<vmem>>, vector<1x256x128xf32>
    %73 = vector.shape_cast %72 : vector<1x256x128xf32> to vector<256x128xf32>
    %cst_59 = arith.constant dense<0.000000e+00> : vector<8x128xf32>
    %74 = tpu.matmul %71, %73, %cst_59 {dimension_numbers = #tpu.dot_dimension_numbers<[1], [0], [0], [1], [0, 0, 1, 1], [], []>} : vector<8x256xf32>, vector<256x128xf32>, vector<8x128xf32> -> vector<8x128xf32>
    %75 = arith.addf %70, %74 : vector<8x128xf32>
    %76 = vector.extract_strided_slice %43 {offsets = [48, 0], sizes = [8, 256], strides = [1, 1]} : vector<56x256xf32> to vector<8x256xf32>
    %c6 = arith.constant 6 : index
    %c0_60 = arith.constant 0 : index
    %c0_61 = arith.constant 0 : index
    %77 = vector.load %arg12[%c6, %c0_60, %c0_61] : memref<7x256x128xf32, #tpu.memory_space<vmem>>, vector<1x256x128xf32>
    %78 = vector.shape_cast %77 : vector<1x256x128xf32> to vector<256x128xf32>
    %cst_62 = arith.constant dense<0.000000e+00> : vector<8x128xf32>
    %79 = tpu.matmul %76, %78, %cst_62 {dimension_numbers = #tpu.dot_dimension_numbers<[1], [0], [0], [1], [0, 0, 1, 1], [], []>} : vector<8x256xf32>, vector<256x128xf32>, vector<8x128xf32> -> vector<8x128xf32>
    %80 = arith.addf %75, %79 : vector<8x128xf32>
    %cst_63 = arith.constant 0.000000e+00 : f32
    %81 = vector.broadcast %cst_63 : f32 to vector<8x128xf32>
    %82 = arith.maximumf %80, %81 : vector<8x128xf32>
    %c0_64 = arith.constant 0 : index
    %c0_65 = arith.constant 0 : index
    %83 = vector.load %arg14[%c0_64, %c0_65] : memref<128x128xf32, #tpu.memory_space<vmem>>, vector<128x128xf32>
    %cst_66 = arith.constant dense<0.000000e+00> : vector<8x128xf32>
    %84 = tpu.matmul %82, %83, %cst_66 {dimension_numbers = #tpu.dot_dimension_numbers<[1], [0], [0], [1], [0, 0, 1, 1], [], []>} : vector<8x128xf32>, vector<128x128xf32>, vector<8x128xf32> -> vector<8x128xf32>
    %c0_67 = arith.constant 0 : index
    %c0_68 = arith.constant 0 : index
    %85 = vector.load %arg15[%c0_67, %c0_68] : memref<1x128xf32, #tpu.memory_space<vmem>>, vector<1x128xf32>
    %86 = vector.broadcast %85 : vector<1x128xf32> to vector<8x128xf32>
    %87 = arith.addf %84, %86 : vector<8x128xf32>
    %c0_69 = arith.constant 0 : index
    %c0_70 = arith.constant 0 : index
    %88 = vector.load %arg16[%c0_69, %c0_70] : memref<8x128xf32, #tpu.memory_space<vmem>>, vector<8x128xf32>
    tpu.vector_store %arg16[%c0_69, %c0_70], %87 {strides = array<i32>} : memref<8x128xf32, #tpu.memory_space<vmem>>, vector<8x128xf32>,
    return
  }
  func.func @transform_0(%arg0: i32) -> (i32, i32) {
    %c0_i32 = arith.constant 0 : i32
    %c0_i32_0 = arith.constant 0 : i32
    return %arg0, %c0_i32 : i32, i32
  }
  func.func @transform_1(%arg0: i32) -> (i32, i32) {
    %c0_i32 = arith.constant 0 : i32
    %c0_i32_0 = arith.constant 0 : i32
    %c0_i32_1 = arith.constant 0 : i32
    return %c0_i32, %c0_i32_0 : i32, i32
  }
  func.func @transform_2(%arg0: i32) -> (i32, i32) {
    %c0_i32 = arith.constant 0 : i32
    %c0_i32_0 = arith.constant 0 : i32
    %c0_i32_1 = arith.constant 0 : i32
    return %c0_i32, %c0_i32_0 : i32, i32
  }
  func.func @transform_3(%arg0: i32) -> (i32, i32) {
    %c0_i32 = arith.constant 0 : i32
    %c0_i32_0 = arith.constant 0 : i32
    %c0_i32_1 = arith.constant 0 : i32
    return %c0_i32, %c0_i32_0 : i32, i32
  }
  func.func @transform_4(%arg0: i32) -> (i32, i32) {
    %c0_i32 = arith.constant 0 : i32
    %c0_i32_0 = arith.constant 0 : i32
    %c0_i32_1 = arith.constant 0 : i32
    return %c0_i32, %c0_i32_0 : i32, i32
  }
  func.func @transform_5(%arg0: i32) -> (i32, i32) {
    %c0_i32 = arith.constant 0 : i32
    %c0_i32_0 = arith.constant 0 : i32
    %c0_i32_1 = arith.constant 0 : i32
    return %c0_i32, %c0_i32_0 : i32, i32
  }
  func.func @transform_6(%arg0: i32) -> (i32, i32) {
    %c0_i32 = arith.constant 0 : i32
    %c0_i32_0 = arith.constant 0 : i32
    %c0_i32_1 = arith.constant 0 : i32
    return %c0_i32, %c0_i32_0 : i32, i32
  }
  func.func @transform_7(%arg0: i32) -> (i32, i32, i32) {
    %c0_i32 = arith.constant 0 : i32
    %c0_i32_0 = arith.constant 0 : i32
    %c0_i32_1 = arith.constant 0 : i32
    %c0_i32_2 = arith.constant 0 : i32
    return %c0_i32, %c0_i32_0, %c0_i32_1 : i32, i32, i32
  }
  func.func @transform_8(%arg0: i32) -> (i32, i32) {
    %c0_i32 = arith.constant 0 : i32
    %c0_i32_0 = arith.constant 0 : i32
    %c0_i32_1 = arith.constant 0 : i32
    return %c0_i32, %c0_i32_0 : i32, i32
  }
  func.func @transform_9(%arg0: i32) -> (i32, i32) {
    %c0_i32 = arith.constant 0 : i32
    %c0_i32_0 = arith.constant 0 : i32
    %c0_i32_1 = arith.constant 0 : i32
    return %c0_i32, %c0_i32_0 : i32, i32
  }
  func.func @transform_10(%arg0: i32) -> (i32, i32) {
    %c0_i32 = arith.constant 0 : i32
    %c0_i32_0 = arith.constant 0 : i32
    %c0_i32_1 = arith.constant 0 : i32
    return %c0_i32, %c0_i32_0 : i32, i32
  }
  func.func @transform_11(%arg0: i32) -> (i32, i32, i32) {
    %c0_i32 = arith.constant 0 : i32
    %c0_i32_0 = arith.constant 0 : i32
    %c0_i32_1 = arith.constant 0 : i32
    %c0_i32_2 = arith.constant 0 : i32
    return %c0_i32, %c0_i32_0, %c0_i32_1 : i32, i32, i32
  }
  func.func @transform_12(%arg0: i32) -> (i32, i32) {
    %c0_i32 = arith.constant 0 : i32
    %c0_i32_0 = arith.constant 0 : i32
    %c0_i32_1 = arith.constant 0 : i32
    return %c0_i32, %c0_i32_0 : i32, i32
  }
  func.func @transform_13(%arg0: i32) -> (i32, i32) {
    %c0_i32 = arith.constant 0 : i32
    %c0_i32_0 = arith.constant 0 : i32
    %c0_i32_1 = arith.constant 0 : i32
    return %c0_i32, %c0_i32_0 : i32, i32
  }
  func.func @transform_14(%arg0: i32) -> (i32, i32) {
    %c0_i32 = arith.constant 0 : i32
    %c0_i32_0 = arith.constant 0 : i32
    %c0_i32_1 = arith.constant 0 : i32
    return %c0_i32, %c0_i32_0 : i32, i32
  }
  func.func @transform_15(%arg0: i32) -> (i32, i32) {
    %c0_i32 = arith.constant 0 : i32
    %c0_i32_0 = arith.constant 0 : i32
    return %arg0, %c0_i32 : i32, i32
  }
}

</mosaic_0001>

<bundles_post_ra>
// kernel: fused_forward.1
= control target key start
LH: loop header
LB: loop body
LE: loop exit
PB: predicated region body
PF: predicated region fallthrough
CT: control target
= control target key end

     0   :  { %20 = vsyncpa [#allocation3], 0  ;;  %s9752_s0 = inlined_call_operand.vmem [shape: f32[224,84], index: 0, kind: input, shape index: {}]   ;;  %s9753_s1 = inlined_call_operand.vmem [shape: f32[84,512], index: 1, kind: input, shape index: {}]   ;;  %s9754_s2 = inlined_call_operand.vmem [shape: f32[1,512], index: 2, kind: input, shape index: {}]   ;;  %s9755_s3 = inlined_call_operand.vmem [shape: f32[128,224], index: 3, kind: input, shape index: {}]   ;;  %s9756_s4 = inlined_call_operand.vmem [shape: f32[128,224], index: 4, kind: input, shape index: {}]   ;;  %s9757_s5 = inlined_call_operand.hbm [shape: f32[128,128], index: 5, kind: input, shape index: {}]   ;;  %s9758_s6 = inlined_call_operand.hbm [shape: f32[128,128], index: 6, kind: input, shape index: {}]   ;;  %s9759_s7 = inlined_call_operand.vmem [shape: f32[3,256,512], index: 7, kind: input, shape index: {}]   ;;  %s9760_s8 = inlined_call_operand.vmem [shape: f32[1,512], index: 8, kind: input, shape index: {}]   ;;  %s9761_s9 = inlined_call_operand.hbm [shape: f32[56,128], index: 9, kind: input, shape index: {}]   ;;  %s9762_s10 = inlined_call_operand.hbm [shape: f32[56,128], index: 10, kind: input, shape index: {}]   ;;  %s9763_s11 = inlined_call_operand.hbm [shape: f32[7,256,128], index: 11, kind: input, shape index: {}]   ;;  %s9764_s12 = inlined_call_operand.vmem [shape: f32[1,128], index: 12, kind: input, shape index: {}]   ;;  %s9765_s13 = inlined_call_operand.hbm [shape: f32[128,128], index: 13, kind: input, shape index: {}]   ;;  %s9766_s14 = inlined_call_operand.vmem [shape: f32[1,128], index: 14, kind: input, shape index: {}]   ;;  %s9767_s15 = inlined_call_operand.vmem [shape: f32[8,128], index: 15, kind: output, shape index: {}]  }
   0x1   :  { %21 = vsyncpa [#allocation5], 0 }
   0x2   :  { %22 = vsyncpa [#allocation8], 0 }
   0x3   :  { %23 = vsyncpa [#allocation11], 0  ;;  %s51_s20 = sshll.u32 %s9758_s6, 4  ;;  %s5430_s21 = smov [#allocation4]   ;;  %s52_s20 = int_to_ptr.hbm [resolvable:$true] %s51_s20 }
   0x4   :  { %s53_s22 = sshll.u32 %s5430_s21, 4  ;;  %s81_s25 = sshll.u32 %s9762_s10, 4  ;;  %s54_s22 = int_to_ptr.vmem [resolvable:$true] %s53_s22  ;;  %s82_s25 = int_to_ptr.hbm [resolvable:$true] %s81_s25 }
   0x5   :  { %s5431_s26 = smov 128   ;;  %s5432_s27 = smov 8  }
   0x6   :  { %59 = dma.hbm_to_vmem [thread:$0]  %s52_s20, 2048, %s54_s22, [#allocation5], %s5431_s26, %s5431_s26, %s5432_s27  }
   0x7   :  { %s5433_s28 = smov [#allocation7]   ;;  %s38_s6 = sshll.u32 %s9757_s5, 4  ;;  %s39_s6 = int_to_ptr.hbm [resolvable:$true] %s38_s6 }
   0x8   :  { %s83_s29 = sshll.u32 %s5433_s28, 4  ;;  %s68_s18 = sshll.u32 %s9761_s9, 4  ;;  %s84_s29 = int_to_ptr.vmem [resolvable:$true] %s83_s29  ;;  %s69_s18 = int_to_ptr.hbm [resolvable:$true] %s68_s18 }
   0x9   :  { %89 = dma.hbm_to_vmem [thread:$0]  %s82_s25, 896, %s84_s29, [#allocation8], %s5431_s26, %s5431_s26, %s5432_s27  }
   0xa   :  { %s5434_s19 = smov [#allocation2]   ;;  %s5435_s20 = smov [#allocation6]  }
   0xb   :  { %s40_s21 = sshll.u32 %s5434_s19, 4  ;;  %s70_s5 = sshll.u32 %s5435_s20, 4  ;;  %s41_s21 = int_to_ptr.vmem [resolvable:$true] %s40_s21  ;;  %s71_s5 = int_to_ptr.vmem [resolvable:$true] %s70_s5 }
   0xc   :  { %46 = dma.hbm_to_vmem [thread:$0]  %s39_s6, 2048, %s41_s21, [#allocation3], %s5431_s26, %s5431_s26, %s5432_s27  }
   0xd   :  { %s94_s24 = sshll.u32 %s9763_s11, 4  ;;  %s109_s28 = sshll.u32 %s9765_s13, 4  ;;  %s95_s24 = int_to_ptr.hbm [resolvable:$true] %s94_s24  ;;  %s110_s28 = int_to_ptr.hbm [resolvable:$true] %s109_s28 }
   0xe   :  { %76 = dma.hbm_to_vmem [thread:$0]  %s69_s18, 896, %s71_s5, [#allocation5], %s5431_s26, %s5431_s26, %s5432_s27  }
   0xf   :  { %s5436_s29 = smov [#allocation9]   ;;  %s5437_s16 = smov [#allocation10]  }
  0x10   :  { %s96_s30 = sshll.u32 %s5436_s29, 4  ;;  %s111_s11 = sshll.u32 %s5437_s16, 4  ;;  %s97_s30 = int_to_ptr.vmem [resolvable:$true] %s96_s30  ;;  %s112_s11 = int_to_ptr.vmem [resolvable:$true] %s111_s11 }
  0x11   :  { %102 = dma.hbm_to_vmem [thread:$0]  %s95_s24, 28672, %s97_s30, [#allocation8], %s5431_s26, %s5431_s26, %s5432_s27  }
  0x12   :  { %117 = dma.hbm_to_vmem [thread:$0]  %s110_s28, 2048, %s112_s11, [#allocation11], %s5431_s26, %s5431_s26, %s5432_s27  }
  0x13   :  { %5422 = dma.done.wait [#allocation3], 2048  }
  0x14   :  { %5423 = vsyncadd [#allocation3], 4294965248 }
  0x15   :  { %5424 = dma.done.wait [#allocation5], 2944  }
  0x16   :  { %5425 = vsyncadd [#allocation5], 4294964352 }
  0x17   :  { %5426 = dma.done.wait [#allocation8], 29568  }
  0x18   :  { %5427 = vsyncadd [#allocation8], 4294937728 }
  0x19   :  { %5428 = dma.done.wait [#allocation11], 2048  }
  0x1a   :  { %5429 = vsyncadd [#allocation11], 4294965248  ;;  %vm311_vm0 = vcmask 1043456   ;;  %v214_v0 = vld [vmem:[%s9753_s1 + $0x150] sm:$0xf]  ;;  %v211_v3 = vld [vmem:[%s9753_s1 + $0x138] sm:$0xff] }
  0x1b   :  { %v215_v1 = vld [vmem:[%s9753_s1 + $0x158] sm:$0xf]  ;;  %v210_v2 = vld [vmem:[%s9753_s1 + $0x130] sm:$0xff]  ;;  %4889 = vmatpush.msk.msra.mxu2 %vm311_vm0, %v214_v0  ;;  %v212_v6 = vld [vmem:[%s9753_s1 + $0x140] sm:$0xf]  ;;  %vm226_vm1 = vcmask 687104  }
  0x1c   :  { %4918 = vmatpush.msk.msra.mxu3 %vm311_vm0, %v215_v1  ;;  %v206_v4 = vld [vmem:[%s9753_s1 + $0x110] sm:$0xff]  ;;  %v207_v5 = vld [vmem:[%s9753_s1 + $0x118] sm:$0xff]  ;;  %v213_v7 = vld [vmem:[%s9753_s1 + $0x148] sm:$0xf]  ;;  %4831 = vmatpush.msk.msra.mxu0 %vm311_vm0, %v212_v6  ;;  %vm928_vm2 = vcmask 785408  }
  0x1d   :  { %532 = vmatpush.msra.mxu2 %v210_v2  ;;  %v208_v8 = vld [vmem:[%s9753_s1 + $0x120] sm:$0xff]  ;;  %v209_v9 = vld [vmem:[%s9753_s1 + $0x128] sm:$0xff]  ;;  %4860 = vmatpush.msk.msra.mxu1 %vm311_vm0, %v213_v7  ;;  %v202_v10 = vld [vmem:[%s9753_s1 + $0xf0] sm:$0xff] }
  0x1e   :  { %633 = vmatpush.msra.mxu3 %v211_v3  ;;  %v203_v11 = vld [vmem:[%s9753_s1 + $0xf8] sm:$0xff]  ;;  %v204_v12 = vld [vmem:[%s9753_s1 + $0x100] sm:$0xff]  ;;  %v205_v13 = vld [vmem:[%s9753_s1 + $0x108] sm:$0xff]  ;;  %330 = vmatpush.msra.mxu0 %v208_v8 }
  0x1f   :  { %533 = vmatpush.msra.mxu2 %v206_v4  ;;  %431 = vmatpush.msra.mxu1 %v209_v9  ;;  %v198_v14 = vld [vmem:[%s9753_s1 + $0xd0] sm:$0xff]  ;;  %v199_v15 = vld [vmem:[%s9753_s1 + $0xd8] sm:$0xff]  ;;  %v200_v16 = vld [vmem:[%s9753_s1 + $0xe0] sm:$0xff] }
  0x20   :  { %634 = vmatpush.msra.mxu3 %v207_v5  ;;  %v201_v17 = vld [vmem:[%s9753_s1 + $0xe8] sm:$0xff]  ;;  %331 = vmatpush.msra.mxu0 %v204_v12  ;;  %v194_v18 = vld [vmem:[%s9753_s1 + $0xb0] sm:$0xff]  ;;  %v195_v19 = vld [vmem:[%s9753_s1 + $0xb8] sm:$0xff] }
  0x21   :  { %534 = vmatpush.msra.mxu2 %v202_v10  ;;  %432 = vmatpush.msra.mxu1 %v205_v13  ;;  %v196_v20 = vld [vmem:[%s9753_s1 + $0xc0] sm:$0xff]  ;;  %v197_v21 = vld [vmem:[%s9753_s1 + $0xc8] sm:$0xff]  ;;  %v190_v22 = vld [vmem:[%s9753_s1 + $0x90] sm:$0xff] }
  0x22   :  { %635 = vmatpush.msra.mxu3 %v203_v11  ;;  %332 = vmatpush.msra.mxu0 %v200_v16  ;;  %v191_v23 = vld [vmem:[%s9753_s1 + $0x98] sm:$0xff]  ;;  %v192_v24 = vld [vmem:[%s9753_s1 + $0xa0] sm:$0xff]  ;;  %v193_v25 = vld [vmem:[%s9753_s1 + $0xa8] sm:$0xff] }
  0x23   :  { %535 = vmatpush.msra.mxu2 %v198_v14  ;;  %433 = vmatpush.msra.mxu1 %v201_v17  ;;  %v186_v26 = vld [vmem:[%s9753_s1 + $0x70] sm:$0xff]  ;;  %v187_v27 = vld [vmem:[%s9753_s1 + $0x78] sm:$0xff]  ;;  %v188_v28 = vld [vmem:[%s9753_s1 + $0x80] sm:$0xff] }
  0x24   :  { %636 = vmatpush.msra.mxu3 %v199_v15  ;;  %333 = vmatpush.msra.mxu0 %v196_v20  ;;  %v189_v29 = vld [vmem:[%s9753_s1 + $0x88] sm:$0xff]  ;;  %v182_v30 = vld [vmem:[%s9753_s1 + $0x50] sm:$0xff]  ;;  %v183_v31 = vld [vmem:[%s9753_s1 + $0x58] sm:$0xff] }
  0x25   :  { %536 = vmatpush.msra.mxu2 %v194_v18  ;;  %434 = vmatpush.msra.mxu1 %v197_v21  ;;  %v178_v32 = vld [vmem:[%s9753_s1 + $0x30] sm:$0xff]  ;;  %v184_v33 = vld [vmem:[%s9753_s1 + $0x60] sm:$0xff]  ;;  %v185_v34 = vld [vmem:[%s9753_s1 + $0x68] sm:$0xff] }
  0x26   :  { %637 = vmatpush.msra.mxu3 %v195_v19  ;;  %334 = vmatpush.msra.mxu0 %v192_v24  ;;  %v179_v35 = vld [vmem:[%s9753_s1 + $0x38] sm:$0xff]  ;;  %v180_v36 = vld [vmem:[%s9753_s1 + $0x40] sm:$0xff]  ;;  %v181_v37 = vld [vmem:[%s9753_s1 + $0x48] sm:$0xff] }
  0x27   :  { %537 = vmatpush.msra.mxu2 %v190_v22  ;;  %435 = vmatpush.msra.mxu1 %v193_v25  ;;  %v174_v38 = vld [vmem:[%s9753_s1 + $0x10] sm:$0xff]  ;;  %v175_v39 = vld [vmem:[%s9753_s1 + $0x18] sm:$0xff]  ;;  %v144_v40 = vld [vmem:[%s9752_s0] sm:$0xff] }
  0x28   :  { %638 = vmatpush.msra.mxu3 %v191_v23  ;;  %335 = vmatpush.msra.mxu0 %v188_v28  ;;  %v176_v41 = vld [vmem:[%s9753_s1 + $0x20] sm:$0xff]  ;;  %v177_v42 = vld [vmem:[%s9753_s1 + $0x28] sm:$0xff]  ;;  %v146_v46 = vld [vmem:[%s9752_s0 + $0x10] sm:$0xff] }
  0x29   :  { %538 = vmatpush.msra.mxu2 %v186_v26  ;;  %436 = vmatpush.msra.mxu1 %v189_v29  ;;  %v172_v43 = vld [vmem:[%s9753_s1] sm:$0xff]  ;;  %v173_v44 = vld [vmem:[%s9753_s1 + $0x8] sm:$0xff]  ;;  %v147_v47 = vld [vmem:[%s9752_s0 + $0x18] sm:$0xff] }
  0x2a   :  { %639 = vmatpush.msra.mxu3 %v187_v27  ;;  %336 = vmatpush.msra.mxu0 %v184_v33  ;;  %v145_v45 = vld [vmem:[%s9752_s0 + $0x8] sm:$0xff]  ;;  %v148_v48 = vld [vmem:[%s9752_s0 + $0x20] sm:$0xff]  ;;  %v150_v50 = vld [vmem:[%s9752_s0 + $0x30] sm:$0xff] }
  0x2b   :  { %539 = vmatpush.msra.mxu2 %v182_v30  ;;  %437 = vmatpush.msra.mxu1 %v185_v34  ;;  %v149_v49 = vld [vmem:[%s9752_s0 + $0x28] sm:$0xff]  ;;  %v151_v51 = vld [vmem:[%s9752_s0 + $0x38] sm:$0xff]  ;;  %v152_v52 = vld [vmem:[%s9752_s0 + $0x40] sm:$0xff] }
  0x2c   :  { %640 = vmatpush.msra.mxu3 %v183_v31  ;;  %337 = vmatpush.msra.mxu0 %v180_v36  ;;  %v153_v53 = vld [vmem:[%s9752_s0 + $0x48] sm:$0xff]  ;;  %v154_v54 = vld [vmem:[%s9752_s0 + $0x50] sm:$0xff]  ;;  %v155_v55 = vld [vmem:[%s9752_s0 + $0x58] sm:$0xff] }
  0x2d   :  { %540 = vmatpush.msra.mxu2 %v178_v32  ;;  %438 = vmatpush.msra.mxu1 %v181_v37  ;;  %v156_v56 = vld [vmem:[%s9752_s0 + $0x60] sm:$0xff]  ;;  %v157_v57 = vld [vmem:[%s9752_s0 + $0x68] sm:$0xff]  ;;  %v158_v58 = vld [vmem:[%s9752_s0 + $0x70] sm:$0xff] }
  0x2e   :  { %641 = vmatpush.msra.mxu3 %v179_v35  ;;  %338 = vmatpush.msra.mxu0 %v176_v41  ;;  %v159_v59 = vld [vmem:[%s9752_s0 + $0x78] sm:$0xff]  ;;  %v160_v60 = vld [vmem:[%s9752_s0 + $0x80] sm:$0xff]  ;;  %v161_v1 = vld [vmem:[%s9752_s0 + $0x88] sm:$0xff] }
  0x2f   :  { %541 = vmatpush.msra.mxu2 %v174_v38  ;;  %439 = vmatpush.msra.mxu1 %v177_v42  ;;  %v162_v6 = vld [vmem:[%s9752_s0 + $0x90] sm:$0xff]  ;;  %v163_v11 = vld [vmem:[%s9752_s0 + $0x98] sm:$0xff]  ;;  %v164_v16 = vld [vmem:[%s9752_s0 + $0xa0] sm:$0xff] }
  0x30   :  { %642 = vmatpush.msra.mxu3 %v175_v39  ;;  %4890 = vmatmul.msk.f32.vlgmr.msra.gmra.mxu2 %vm226_vm1, %v144_v40  ;;  %v165_v21 = vld [vmem:[%s9752_s0 + $0xa8] sm:$0xff]  ;;  %v166_v26 = vld [vmem:[%s9752_s0 + $0xb0] sm:$0xff]  ;;  %v167_v31 = vld [vmem:[%s9752_s0 + $0xb8] sm:$0xff] }
  0x31   :  { %4919 = vmatmul.msk.f32.vlgmr.msra.gmra.mxu3 %vm226_vm1, %v144_v40  ;;  %339 = vmatpush.msra.mxu0 %v172_v43  ;;  %v168_v36 = vld [vmem:[%s9752_s0 + $0xc0] sm:$0xff]  ;;  %v169_v41 = vld [vmem:[%s9752_s0 + $0xc8] sm:$0xff] }
  0x32   :  { %440 = vmatpush.msra.mxu1 %v173_v44  ;;  %4832 = vmatmul.msk.f32.vlgmr.msra.gmra.mxu0 %vm226_vm1, %v144_v40 }
  0x33   :  { %4861 = vmatmul.msk.f32.vlgmr.msra.gmra.mxu1 %vm226_vm1, %v144_v40 }
  0x38   :  { %4891 = vmatmul.msk.f32.gmra.mxu2 %vm226_vm1, %v145_v45 }
  0x39   :  { %4920 = vmatmul.msk.f32.gmra.mxu3 %vm226_vm1, %v145_v45 }
  0x3a   :  { %4833 = vmatmul.msk.f32.gmra.mxu0 %vm226_vm1, %v145_v45 }
  0x3b   :  { %4862 = vmatmul.msk.f32.gmra.mxu1 %vm226_vm1, %v145_v45 }
  0x40   :  { %4892 = vmatmul.msk.f32.gmra.mxu2 %vm226_vm1, %v146_v46 }
  0x41   :  { %4921 = vmatmul.msk.f32.gmra.mxu3 %vm226_vm1, %v146_v46 }
  0x42   :  { %4834 = vmatmul.msk.f32.gmra.mxu0 %vm226_vm1, %v146_v46 }
  0x43   :  { %4863 = vmatmul.msk.f32.gmra.mxu1 %vm226_vm1, %v146_v46  ;;  %v170_v46 = vld [vmem:[%s9752_s0 + $0xd0] sm:$0xff] }
  0x48   :  { %4893 = vmatmul.msk.f32.gmra.mxu2 %vm226_vm1, %v147_v47 }
  0x49   :  { %4922 = vmatmul.msk.f32.gmra.mxu3 %vm226_vm1, %v147_v47 }
  0x4a   :  { %4835 = vmatmul.msk.f32.gmra.mxu0 %vm226_vm1, %v147_v47 }
  0x4b   :  { %4864 = vmatmul.msk.f32.gmra.mxu1 %vm226_vm1, %v147_v47 }
  0x50   :  { %4894 = vmatmul.msk.f32.gmra.mxu2 %vm226_vm1, %v148_v48 }
  0x51   :  { %4923 = vmatmul.msk.f32.gmra.mxu3 %vm226_vm1, %v148_v48 }
  0x52   :  { %4836 = vmatmul.msk.f32.gmra.mxu0 %vm226_vm1, %v148_v48 }
  0x53   :  { %4865 = vmatmul.msk.f32.gmra.mxu1 %vm226_vm1, %v148_v48 }
  0x58   :  { %4895 = vmatmul.msk.f32.gmra.mxu2 %vm226_vm1, %v149_v49 }
  0x59   :  { %4924 = vmatmul.msk.f32.gmra.mxu3 %vm226_vm1, %v149_v49 }
  0x5a   :  { %4837 = vmatmul.msk.f32.gmra.mxu0 %vm226_vm1, %v149_v49 }
  0x5b   :  { %4866 = vmatmul.msk.f32.gmra.mxu1 %vm226_vm1, %v149_v49 }
  0x60   :  { %4896 = vmatmul.msk.f32.gmra.mxu2 %vm226_vm1, %v150_v50 }
  0x61   :  { %4925 = vmatmul.msk.f32.gmra.mxu3 %vm226_vm1, %v150_v50 }
  0x62   :  { %4838 = vmatmul.msk.f32.gmra.mxu0 %vm226_vm1, %v150_v50 }
  0x63   :  { %4867 = vmatmul.msk.f32.gmra.mxu1 %vm226_vm1, %v150_v50 }
  0x68   :  { %4897 = vmatmul.msk.f32.gmra.mxu2 %vm226_vm1, %v151_v51 }
  0x69   :  { %4926 = vmatmul.msk.f32.gmra.mxu3 %vm226_vm1, %v151_v51 }
  0x6a   :  { %4839 = vmatmul.msk.f32.gmra.mxu0 %vm226_vm1, %v151_v51 }
  0x6b   :  { %4868 = vmatmul.msk.f32.gmra.mxu1 %vm226_vm1, %v151_v51  ;;  %v171_v51 = vld [vmem:[%s9752_s0 + $0xd8] sm:$0xff] }
  0x70   :  { %4898 = vmatmul.msk.f32.gmra.mxu2 %vm226_vm1, %v152_v52 }
  0x71   :  { %4927 = vmatmul.msk.f32.gmra.mxu3 %vm226_vm1, %v152_v52 }
  0x72   :  { %4840 = vmatmul.msk.f32.gmra.mxu0 %vm226_vm1, %v152_v52 }
  0x73   :  { %4869 = vmatmul.msk.f32.gmra.mxu1 %vm226_vm1, %v152_v52 }
  0x78   :  { %4899 = vmatmul.msk.f32.gmra.mxu2 %vm226_vm1, %v153_v53 }
  0x79   :  { %4928 = vmatmul.msk.f32.gmra.mxu3 %vm226_vm1, %v153_v53 }
  0x7a   :  { %4841 = vmatmul.msk.f32.gmra.mxu0 %vm226_vm1, %v153_v53 }
  0x7b   :  { %4870 = vmatmul.msk.f32.gmra.mxu1 %vm226_vm1, %v153_v53 }
  0x80   :  { %4900 = vmatmul.msk.f32.gmra.mxu2 %vm226_vm1, %v154_v54 }
  0x81   :  { %4929 = vmatmul.msk.f32.gmra.mxu3 %vm226_vm1, %v154_v54 }
  0x82   :  { %4842 = vmatmul.msk.f32.gmra.mxu0 %vm226_vm1, %v154_v54 }
  0x83   :  { %4871 = vmatmul.msk.f32.gmra.mxu1 %vm226_vm1, %v154_v54 }
  0x88   :  { %4901 = vmatmul.msk.f32.gmra.mxu2 %vm226_vm1, %v155_v55 }
  0x89   :  { %4930 = vmatmul.msk.f32.gmra.mxu3 %vm226_vm1, %v155_v55 }
  0x8a   :  { %4843 = vmatmul.msk.f32.gmra.mxu0 %vm226_vm1, %v155_v55 }
  0x8b   :  { %4872 = vmatmul.msk.f32.gmra.mxu1 %vm226_vm1, %v155_v55 }
  0x90   :  { %4902 = vmatmul.msk.f32.gmra.mxu2 %vm226_vm1, %v156_v56 }
  0x91   :  { %4931 = vmatmul.msk.f32.gmra.mxu3 %vm226_vm1, %v156_v56 }
  0x92   :  { %4844 = vmatmul.msk.f32.gmra.mxu0 %vm226_vm1, %v156_v56 }
  0x93   :  { %4873 = vmatmul.msk.f32.gmra.mxu1 %vm226_vm1, %v156_v56 }
  0x98   :  { %4903 = vmatmul.msk.f32.gmra.mxu2 %vm226_vm1, %v157_v57 }
  0x99   :  { %4932 = vmatmul.msk.f32.gmra.mxu3 %vm226_vm1, %v157_v57 }
  0x9a   :  { %4845 = vmatmul.msk.f32.gmra.mxu0 %vm226_vm1, %v157_v57 }
  0x9b   :  { %4874 = vmatmul.msk.f32.gmra.mxu1 %vm226_vm1, %v157_v57 }
  0xa0   :  { %4904 = vmatmul.msk.f32.gmra.mxu2 %vm226_vm1, %v158_v58 }
  0xa1   :  { %4933 = vmatmul.msk.f32.gmra.mxu3 %vm226_vm1, %v158_v58 }
  0xa2   :  { %4846 = vmatmul.msk.f32.gmra.mxu0 %vm226_vm1, %v158_v58 }
  0xa3   :  { %4875 = vmatmul.msk.f32.gmra.mxu1 %vm226_vm1, %v158_v58 }
  0xa8   :  { %4905 = vmatmul.msk.f32.gmra.mxu2 %vm226_vm1, %v159_v59 }
  0xa9   :  { %4934 = vmatmul.msk.f32.gmra.mxu3 %vm226_vm1, %v159_v59 }
  0xaa   :  { %4847 = vmatmul.msk.f32.gmra.mxu0 %vm226_vm1, %v159_v59 }
  0xab   :  { %4876 = vmatmul.msk.f32.gmra.mxu1 %vm226_vm1, %v159_v59 }
  0xaf   :  { %v5807_v61 = vpop.f32.mrf.mxu0 }
  0xb0   :  { %4906 = vmatmul.msk.f32.gmra.mxu2 %vm226_vm1, %v160_v60  ;;  %v5809_v62 = vpop.f32.mrf.mxu1 }
  0xb1   :  { %4935 = vmatmul.msk.f32.gmra.mxu3 %vm226_vm1, %v160_v60 }
  0xb2   :  { %4848 = vmatmul.msk.f32.gmra.mxu0 %vm226_vm1, %v160_v60 }
  0xb3   :  { %v5811_v63 = vpop.f32.mrf.mxu2  ;;  %4877 = vmatmul.msk.f32.gmra.mxu1 %vm226_vm1, %v160_v60 }
  0xb4   :  { %9806 = vst [vmem:[#allocation16_spill] sm:$0xff] %v5811_v63  ;;  %v5813_v0 = vpop.f32.mrf.mxu3 }
  0xb5   :  { %9807 = vst [vmem:[#allocation17_spill] sm:$0xff] %v5813_v0 }
  0xb7   :  { %v5822_v2 = vpop.f32.mrf.mxu0 }
  0xb8   :  { %4907 = vmatmul.msk.f32.gmra.mxu2 %vm226_vm1, %v161_v1  ;;  %v5824_v3 = vpop.f32.mrf.mxu1 }
  0xb9   :  { %4936 = vmatmul.msk.f32.gmra.mxu3 %vm226_vm1, %v161_v1 }
  0xba   :  { %4849 = vmatmul.msk.f32.gmra.mxu0 %vm226_vm1, %v161_v1 }
  0xbb   :  { %v5826_v4 = vpop.f32.mrf.mxu2  ;;  %4878 = vmatmul.msk.f32.gmra.mxu1 %vm226_vm1, %v161_v1 }
  0xbc   :  { %9808 = vst [vmem:[#allocation18_spill] sm:$0xff] %v5826_v4  ;;  %v5828_v5 = vpop.f32.mrf.mxu3 }
  0xbd   :  { %9809 = vst [vmem:[#allocation19_spill] sm:$0xff] %v5828_v5 }
  0xbf   :  { %v5837_v7 = vpop.f32.mrf.mxu0 }
  0xc0   :  { %4908 = vmatmul.msk.f32.gmra.mxu2 %vm226_vm1, %v162_v6  ;;  %v5839_v8 = vpop.f32.mrf.mxu1 }
  0xc1   :  { %4937 = vmatmul.msk.f32.gmra.mxu3 %vm226_vm1, %v162_v6 }
  0xc2   :  { %4850 = vmatmul.msk.f32.gmra.mxu0 %vm226_vm1, %v162_v6 }
  0xc3   :  { %v5841_v9 = vpop.f32.mrf.mxu2  ;;  %4879 = vmatmul.msk.f32.gmra.mxu1 %vm226_vm1, %v162_v6 }
  0xc4   :  { %9810 = vst [vmem:[#allocation20_spill] sm:$0xff] %v5841_v9  ;;  %v5843_v10 = vpop.f32.mrf.mxu3 }
  0xc5   :  { %9811 = vst [vmem:[#allocation21_spill] sm:$0xff] %v5843_v10 }
  0xc7   :  { %v5852_v12 = vpop.f32.mrf.mxu0 }
  0xc8   :  { %4909 = vmatmul.msk.f32.gmra.mxu2 %vm226_vm1, %v163_v11  ;;  %v5854_v13 = vpop.f32.mrf.mxu1 }
  0xc9   :  { %4938 = vmatmul.msk.f32.gmra.mxu3 %vm226_vm1, %v163_v11 }
  0xca   :  { %4851 = vmatmul.msk.f32.gmra.mxu0 %vm226_vm1, %v163_v11 }
  0xcb   :  { %v5856_v14 = vpop.f32.mrf.mxu2  ;;  %4880 = vmatmul.msk.f32.gmra.mxu1 %vm226_vm1, %v163_v11 }
  0xcc   :  { %v5858_v15 = vpop.f32.mrf.mxu3 }
  0xcf   :  { %v5867_v17 = vpop.f32.mrf.mxu0 }
  0xd0   :  { %4910 = vmatmul.msk.f32.gmra.mxu2 %vm226_vm1, %v164_v16  ;;  %v5869_v18 = vpop.f32.mrf.mxu1 }
  0xd1   :  { %4939 = vmatmul.msk.f32.gmra.mxu3 %vm226_vm1, %v164_v16 }
  0xd2   :  { %4852 = vmatmul.msk.f32.gmra.mxu0 %vm226_vm1, %v164_v16 }
  0xd3   :  { %v5871_v19 = vpop.f32.mrf.mxu2  ;;  %4881 = vmatmul.msk.f32.gmra.mxu1 %vm226_vm1, %v164_v16  ;;  %v216_v16 = vld [vmem:[%s9754_s2] sm:$0xf] }
  0xd4   :  { %v5873_v20 = vpop.f32.mrf.mxu3 }
  0xd7   :  { %v5882_v22 = vpop.f32.mrf.mxu0 }
  0xd8   :  { %4911 = vmatmul.msk.f32.gmra.mxu2 %vm226_vm1, %v165_v21  ;;  %v5884_v23 = vpop.f32.mrf.mxu1 }
  0xd9   :  { %4940 = vmatmul.msk.f32.gmra.mxu3 %vm226_vm1, %v165_v21 }
  0xda   :  { %4853 = vmatmul.msk.f32.gmra.mxu0 %vm226_vm1, %v165_v21 }
  0xdb   :  { %v5886_v24 = vpop.f32.mrf.mxu2  ;;  %4882 = vmatmul.msk.f32.gmra.mxu1 %vm226_vm1, %v165_v21  ;;  %v5973_v21 = vperm.slane %v216_v16, 0 }
  0xdc   :  { %v5888_v25 = vpop.f32.mrf.mxu3 }
  0xdd   :  { %9812 = vst [vmem:[#allocation22_spill] sm:$0xff] %v5973_v21  ;;  %v5991_v63 = vadd.f32 %v5822_v2, %v5973_v21 }
  0xdf   :  { %v5897_v27 = vpop.f32.mrf.mxu0  ;;  %9816 = vst [vmem:[#allocation26_spill] sm:$0xff] %v5991_v63 }
  0xe0   :  { %4912 = vmatmul.msk.f32.gmra.mxu2 %vm226_vm1, %v166_v26  ;;  %v5899_v28 = vpop.f32.mrf.mxu1 }
  0xe1   :  { %4941 = vmatmul.msk.f32.gmra.mxu3 %vm226_vm1, %v166_v26 }
  0xe2   :  { %4854 = vmatmul.msk.f32.gmra.mxu0 %vm226_vm1, %v166_v26 }
  0xe3   :  { %v5901_v29 = vpop.f32.mrf.mxu2  ;;  %4883 = vmatmul.msk.f32.gmra.mxu1 %vm226_vm1, %v166_v26  ;;  %v5975_v26 = vperm.slane %v216_v16, 1 }
  0xe4   :  { %v5903_v30 = vpop.f32.mrf.mxu3 }
  0xe5   :  { %9813 = vst [vmem:[#allocation23_spill] sm:$0xff] %v5975_v26  ;;  %v5987_v0 = vadd.f32 %v5809_v62, %v5975_v26  ;;  %v5995_v5 = vadd.f32 %v5824_v3, %v5975_v26  ;;  %v6007_v62 = vadd.f32 %v5852_v12, %v5973_v21  ;;  %v6011_v2 = vadd.f32 %v5854_v13, %v5975_v26 }
  0xe6   :  { %v6015_v3 = vadd.f32 %v5867_v17, %v5973_v21  ;;  %v6027_v12 = vadd.f32 %v5884_v23, %v5975_v26  ;;  %v6031_v13 = vadd.f32 %v5897_v27, %v5973_v21  ;;  %v6035_v17 = vadd.f32 %v5899_v28, %v5975_v26 }
  0xe7   :  { %v5912_v32 = vpop.f32.mrf.mxu0  ;;  %9815 = vst [vmem:[#allocation25_spill] sm:$0xff] %v5987_v0 }
  0xe8   :  { %4913 = vmatmul.msk.f32.gmra.mxu2 %vm226_vm1, %v167_v31  ;;  %v5914_v33 = vpop.f32.mrf.mxu1  ;;  %9817 = vst [vmem:[#allocation27_spill] sm:$0xff] %v5995_v5 }
  0xe9   :  { %4942 = vmatmul.msk.f32.gmra.mxu3 %vm226_vm1, %v167_v31  ;;  %9820 = vst [vmem:[#allocation30_spill] sm:$0xff] %v6007_v62 }
  0xea   :  { %4855 = vmatmul.msk.f32.gmra.mxu0 %vm226_vm1, %v167_v31  ;;  %9821 = vst [vmem:[#allocation31_spill] sm:$0xff] %v6011_v2 }
  0xeb   :  { %v5916_v34 = vpop.f32.mrf.mxu2  ;;  %4884 = vmatmul.msk.f32.gmra.mxu1 %vm226_vm1, %v167_v31  ;;  %9822 = vst [vmem:[#allocation32_spill] sm:$0xff] %v6015_v3 }
  0xec   :  { %v5918_v35 = vpop.f32.mrf.mxu3  ;;  %9824 = vst [vmem:[#allocation34_spill] sm:$0xff] %v6027_v12 }
  0xef   :  { %v5927_v37 = vpop.f32.mrf.mxu0 }
  0xf0   :  { %4914 = vmatmul.msk.f32.gmra.mxu2 %vm226_vm1, %v168_v36  ;;  %v5929_v38 = vpop.f32.mrf.mxu1  ;;  %v6047_v23 = vadd.f32 %v5927_v37, %v5973_v21 }
  0xf1   :  { %4943 = vmatmul.msk.f32.gmra.mxu3 %vm226_vm1, %v168_v36  ;;  %v6051_v27 = vadd.f32 %v5929_v38, %v5975_v26 }
  0xf2   :  { %4856 = vmatmul.msk.f32.gmra.mxu0 %vm226_vm1, %v168_v36 }
  0xf3   :  { %v5931_v39 = vpop.f32.mrf.mxu2  ;;  %4885 = vmatmul.msk.f32.gmra.mxu1 %vm226_vm1, %v168_v36 }
  0xf4   :  { %v5933_v40 = vpop.f32.mrf.mxu3 }
  0xf7   :  { %v368_v42 = vpop.f32.mrf.mxu0 }
  0xf8   :  { %4915 = vmatmul.msk.f32.gmra.mxu2 %vm226_vm1, %v169_v41  ;;  %v469_v43 = vpop.f32.mrf.mxu1  ;;  %v6054_v0 = vadd.f32 %v368_v42, %v5973_v21 }
  0xf9   :  { %4944 = vmatmul.msk.f32.gmra.mxu3 %vm226_vm1, %v169_v41  ;;  %v6057_v28 = vadd.f32 %v469_v43, %v5975_v26 }
  0xfa   :  { %4857 = vmatmul.msk.f32.gmra.mxu0 %vm226_vm1, %v169_v41 }
  0xfb   :  { %v5942_v44 = vpop.f32.mrf.mxu2  ;;  %4886 = vmatmul.msk.f32.gmra.mxu1 %vm226_vm1, %v169_v41  ;;  %v5977_v41 = vperm.slane %v216_v16, 2 }
  0xfc   :  { %v5944_v45 = vpop.f32.mrf.mxu3 }
  0xff   :  { %v371_v47 = vpop.f32.mrf.mxu0 }
 0x100   :  { %4916 = vmatmul.msk.f32.gmra.mxu2 %vm226_vm1, %v170_v46  ;;  %v472_v48 = vpop.f32.mrf.mxu1 }
 0x101   :  { %4945 = vmatmul.msk.f32.gmra.mxu3 %vm226_vm1, %v170_v46 }
 0x102   :  { %4858 = vmatmul.msk.f32.gmra.mxu0 %vm226_vm1, %v170_v46 }
 0x103   :  { %v5953_v49 = vpop.f32.mrf.mxu2  ;;  %4887 = vmatmul.msk.f32.gmra.mxu1 %vm226_vm1, %v170_v46  ;;  %v5979_v46 = vperm.slane %v216_v16, 3  ;;  %v5999_v16 = vadd.f32 %v5837_v7, %v5973_v21  ;;  %v6019_v7 = vadd.f32 %v5869_v18, %v5975_v26  ;;  %v6039_v18 = vadd.f32 %v5912_v32, %v5973_v21 }
 0x104   :  { %v5955_v50 = vpop.f32.mrf.mxu3  ;;  %v6060_v32 = vadd.f32 %v371_v47, %v5973_v21 }
 0x105   :  { %9818 = vst [vmem:[#allocation28_spill] sm:$0xff] %v5999_v16 }
 0x106   :  { %9823 = vst [vmem:[#allocation33_spill] sm:$0xff] %v6019_v7 }
 0x107   :  { %v374_v52 = vpop.f32.mrf.mxu0 }
 0x108   :  { %4917 = vmatmul.msk.f32.gmra.mxu2 %vm226_vm1, %v171_v51  ;;  %v475_v53 = vpop.f32.mrf.mxu1 }
 0x109   :  { %4946 = vmatmul.msk.f32.gmra.mxu3 %vm226_vm1, %v171_v51  ;;  %v6069_v37 = vadd.f32 %v475_v53, %v5975_v26 }
 0x10a   :  { %4859 = vmatmul.msk.f32.gmra.mxu0 %vm226_vm1, %v171_v51 }
 0x10b   :  { %v5964_v54 = vpop.f32.mrf.mxu2  ;;  %4888 = vmatmul.msk.f32.gmra.mxu1 %vm226_vm1, %v171_v51  ;;  %v5983_v51 = vadd.f32 %v5807_v61, %v5973_v21  ;;  %v6003_v61 = vadd.f32 %v5839_v8, %v5975_v26  ;;  %v6023_v8 = vadd.f32 %v5882_v22, %v5973_v21  ;;  %v6043_v22 = vadd.f32 %v5914_v33, %v5975_v26 }
 0x10c   :  { %v5966_v55 = vpop.f32.mrf.mxu3  ;;  %v6063_v33 = vadd.f32 %v472_v48, %v5975_v26 }
 0x10d   :  { %9814 = vst [vmem:[#allocation24_spill] sm:$0xff] %v5983_v51  ;;  %v6066_v51 = vadd.f32 %v374_v52, %v5973_v21 }
 0x10e   :  { %9819 = vst [vmem:[#allocation29_spill] sm:$0xff] %v6003_v61 }
 0x10f   :  { %v377_v56 = vpop.f32.mrf.mxu0 }
 0x110   :  { %v478_v57 = vpop.f32.mrf.mxu1  ;;  %v6072_v38 = vadd.f32 %v377_v56, %v5973_v21 }
 0x111   :  { %v6075_v42 = vadd.f32 %v478_v57, %v5975_v26 }
 0x113   :  { %v579_v58 = vpop.f32.mrf.mxu2 }
 0x114   :  { %v680_v59 = vpop.f32.mrf.mxu3 }
 0x117   :  { %v380_v60 = vpop.f32.mrf.mxu0 }
 0x118   :  { %v481_v1 = vpop.f32.mrf.mxu1  ;;  %v381_v56 = vadd.f32 %v380_v60, %v5973_v21 }
 0x119   :  { %v482_v16 = vadd.f32 %v481_v1, %v5975_v26 }
 0x11b   :  { %v582_v6 = vpop.f32.mrf.mxu2 }
 0x11c   :  { %v683_v11 = vpop.f32.mrf.mxu3  ;;  %v583_v57 = vadd.f32 %v582_v6, %v5977_v41 }
 0x11e   :  { %v782_v9 = vmax.f32 %v583_v57, 0.0 }
 0x11f   :  { %v383_v31 = vpop.f32.mrf.mxu0 }
 0x120   :  { %v484_v36 = vpop.f32.mrf.mxu1  ;;  %v384_v43 = vadd.f32 %v383_v31, %v5973_v21  ;;  %v684_v31 = vadd.f32 %v683_v11, %v5979_v46  ;;  %v577_v11 = vadd.f32 %v5964_v54, %v5977_v41  ;;  %v777_v54 = vmax.f32 %v6075_v42, 0.0 }
 0x121   :  { %v485_v47 = vadd.f32 %v484_v36, %v5975_v26 }
 0x122   :  { %v784_v3 = vmax.f32 %v384_v43, 0.0  ;;  %v675_v43 = vadd.f32 %v5955_v50, %v5979_v46  ;;  %v571_v50 = vadd.f32 %v5942_v44, %v5977_v41  ;;  %v774_v57 = vmax.f32 %v577_v11, 0.0 }
 0x123   :  { %v585_v4 = vpop.f32.mrf.mxu2  ;;  %v785_v60 = vmax.f32 %v485_v47, 0.0  ;;  %v776_v47 = vmax.f32 %v6072_v38, 0.0  ;;  %v773_v38 = vmax.f32 %v6069_v37, 0.0  ;;  %v769_v37 = vmax.f32 %v6063_v33, 0.0 }
 0x124   :  { %v686_v10 = vpop.f32.mrf.mxu3  ;;  %v586_v48 = vadd.f32 %v585_v4, %v5977_v41  ;;  %v765_v33 = vmax.f32 %v6057_v28, 0.0  ;;  %v761_v28 = vmax.f32 %v6051_v27, 0.0  ;;  %v756_v27 = vmax.f32 %v6039_v18, 0.0 }
 0x125   :  { %v687_v52 = vadd.f32 %v686_v10, %v5979_v46  ;;  %v657_v18 = vadd.f32 %v5873_v20, %v5979_v46  ;;  %v654_v20 = vadd.f32 %v5858_v15, %v5979_v46 }
 0x127   :  { %v386_v5 = vpop.f32.mrf.mxu0  ;;  %v787_v1 = vmax.f32 %v687_v52, 0.0 }
 0x128   :  { %v487_v63 = vpop.f32.mrf.mxu1  ;;  %v387_v61 = vadd.f32 %v386_v5, %v5973_v21  ;;  %v580_v5 = vadd.f32 %v579_v58, %v5977_v41  ;;  %v786_v21 = vmax.f32 %v586_v48, 0.0 }
 0x129   :  { %v488_v53 = vadd.f32 %v487_v63, %v5975_v26  ;;  %v681_v63 = vadd.f32 %v680_v59, %v5979_v46  ;;  %v574_v59 = vadd.f32 %v5953_v49, %v5977_v41  ;;  %v6113_v49 = vmax.f32 %v785_v60, %v787_v1 }
 0x12a   :  { %v788_v62 = vmax.f32 %v387_v61, 0.0  ;;  %v678_v61 = vadd.f32 %v5966_v55, %v5979_v46 }
 0x12b   :  { %v588_v2 = vpop.f32.mrf.mxu2  ;;  %v789_v7 = vmax.f32 %v488_v53, 0.0  ;;  %v780_v53 = vmax.f32 %v381_v56, 0.0  ;;  %v779_v52 = vmax.f32 %v681_v63, 0.0  ;;  %v766_v63 = vmax.f32 %v571_v50, 0.0 }
 0x12c   :  { %v689_v36 = vpop.f32.mrf.mxu3  ;;  %v589_v4 = vadd.f32 %v588_v2, %v5977_v41  ;;  %v781_v2 = vmax.f32 %v482_v16, 0.0  ;;  %v778_v16 = vmax.f32 %v580_v5, 0.0  ;;  %v753_v50 = vmax.f32 %v6035_v17, 0.0 }
 0x12d   :  { %v690_v10 = vadd.f32 %v689_v36, %v5979_v46  ;;  %v783_v36 = vmax.f32 %v684_v31, 0.0  ;;  %v775_v31 = vmax.f32 %v678_v61, 0.0  ;;  %v6141_v5 = vmax.f32 %v777_v54, %v779_v52 }
 0x12e   :  { %v790_v26 = vmax.f32 %v589_v4, 0.0  ;;  %v770_v4 = vmax.f32 %v574_v59, 0.0  ;;  %v757_v59 = vmax.f32 %v6043_v22, 0.0  ;;  %v752_v22 = vmax.f32 %v6031_v13, 0.0 }
 0x12f   :  { %v791_v6 = vmax.f32 %v690_v10, 0.0  ;;  %v6105_v48 = vpop.f32.mrf.mxu0  ;;  %v6129_v44 = vmax.f32 %v781_v2, %v783_v36  ;;  %v771_v10 = vmax.f32 %v675_v43, 0.0  ;;  %v748_v13 = vmax.f32 %v6023_v8, 0.0 }
 0x130   :  { %v6095_v12 = vmax.f32 %v788_v62, %v790_v26  ;;  %v6107_v55 = vpop.f32.mrf.mxu1  ;;  %v6111_v26 = vmax.f32 %v784_v3, %v786_v21  ;;  %v672_v62 = vadd.f32 %v5944_v45, %v5979_v46  ;;  %v6127_v21 = vmax.f32 %v780_v53, %v782_v9 }
 0x131   :  { %v6097_v58 = vmax.f32 %v789_v7, %v791_v6  ;;  %v772_v7 = vmax.f32 %v6066_v51, 0.0  ;;  %v568_v45 = vadd.f32 %v5931_v39, %v5977_v41  ;;  %v669_v51 = vadd.f32 %v5933_v40, %v5979_v46 }
 0x132   :  { %977 = vmatpush.msrb.mxu0 %v6095_v12  ;;  %v768_v3 = vmax.f32 %v6060_v32, 0.0  ;;  %v6139_v9 = vmax.f32 %v776_v47, %v778_v16  ;;  %v565_v39 = vadd.f32 %v5916_v34, %v5977_v41  ;;  %v666_v40 = vadd.f32 %v5918_v35, %v5979_v46 }
 0x133   :  { %1107 = vmatpush.msrb.mxu2 %v6097_v58  ;;  %v6121_v42 = vpop.f32.mrf.mxu2  ;;  %v764_v32 = vmax.f32 %v6054_v0, 0.0  ;;  %v767_v60 = vmax.f32 %v672_v62, 0.0  ;;  %v6151_v1 = vmax.f32 %v772_v7, %v774_v57  ;;  %v6153_v6 = vmax.f32 %v773_v38, %v775_v31  ;;  %v9827_v31 = vld [vmem:[#allocation34_spill] sm:$0xff] }
 0x134   :  { %9825 = vst [vmem:[#allocation35_spill] sm:$0xff] %v6121_v42  ;;  %v6123_v56 = vpop.f32.mrf.mxu3  ;;  %978 = vmatpush.msrb.mxu0 %v6111_v26  ;;  %v562_v34 = vadd.f32 %v5901_v29, %v5977_v41  ;;  %v663_v35 = vadd.f32 %v5903_v30, %v5979_v46  ;;  %v760_v0 = vmax.f32 %v6047_v23, 0.0  ;;  %v762_v53 = vmax.f32 %v568_v45, 0.0 }
 0x135   :  { %9826 = vst [vmem:[#allocation36_spill] sm:$0xff] %v6123_v56  ;;  %1108 = vmatpush.msrb.mxu2 %v6113_v49  ;;  %v763_v2 = vmax.f32 %v669_v51, 0.0  ;;  %v6167_v36 = vmax.f32 %v768_v3, %v770_v4  ;;  %v6169_v29 = vmax.f32 %v769_v37, %v771_v10  ;;  %v559_v30 = vadd.f32 %v5886_v24, %v5977_v41  ;;  %v9828_v4 = vld [vmem:[#allocation20_spill] sm:$0xff]  ;;  %v9829_v10 = vld [vmem:[#allocation21_spill] sm:$0xff] }
 0x136   :  { %979 = vmatpush.msrb.mxu0 %v6127_v21  ;;  %v660_v23 = vadd.f32 %v5888_v25, %v5979_v46  ;;  %v758_v54 = vmax.f32 %v565_v39, 0.0  ;;  %v759_v16 = vmax.f32 %v666_v40, 0.0  ;;  %v6183_v52 = vmax.f32 %v764_v32, %v766_v63  ;;  %v9830_v39 = vld [vmem:[#allocation32_spill] sm:$0xff]  ;;  %v9831_v40 = vld [vmem:[#allocation33_spill] sm:$0xff] }
 0x137   :  { %1109 = vmatpush.msrb.mxu2 %v6129_v44  ;;  %v6161_v11 = vpop.f32.mrf.mxu0  ;;  %v6185_v24 = vmax.f32 %v765_v33, %v767_v60  ;;  %v556_v25 = vadd.f32 %v5871_v19, %v5977_v41  ;;  %v754_v62 = vmax.f32 %v562_v34, 0.0  ;;  %v755_v7 = vmax.f32 %v663_v35, 0.0  ;;  %v9843_v56 = vld [vmem:[#allocation25_spill] sm:$0xff] }
 0x138   :  { %980 = vmatpush.msrb.mxu0 %v6139_v9  ;;  %v6163_v61 = vpop.f32.mrf.mxu1  ;;  %v6195_v38 = vmax.f32 %v760_v0, %v762_v53  ;;  %v6197_v57 = vmax.f32 %v761_v28, %v763_v2  ;;  %v553_v19 = vadd.f32 %v5856_v14, %v5977_v41  ;;  %v749_v17 = vmax.f32 %v9827_v31, 0.0  ;;  %v9832_v28 = vld [vmem:[#allocation18_spill] sm:$0xff]  ;;  %v9833_v2 = vld [vmem:[#allocation19_spill] sm:$0xff] }
 0x139   :  { %1110 = vmatpush.msrb.mxu2 %v6141_v5  ;;  %v750_v45 = vmax.f32 %v559_v30, 0.0  ;;  %v751_v51 = vmax.f32 %v660_v23, 0.0  ;;  %v6207_v3 = vmax.f32 %v756_v27, %v758_v54  ;;  %v6209_v37 = vmax.f32 %v757_v59, %v759_v16  ;;  %v9834_v23 = vld [vmem:[#allocation30_spill] sm:$0xff]  ;;  %v9835_v59 = vld [vmem:[#allocation31_spill] sm:$0xff] }
 0x13a   :  { %981 = vmatpush.msrb.mxu0 %v6151_v1  ;;  %v550_v14 = vadd.f32 %v9828_v4, %v5977_v41  ;;  %v651_v15 = vadd.f32 %v9829_v10, %v5979_v46  ;;  %v744_v8 = vmax.f32 %v9830_v39, 0.0  ;;  %v745_v32 = vmax.f32 %v9831_v40, 0.0  ;;  %v9837_v4 = vld [vmem:[#allocation17_spill] sm:$0xff]  ;;  %v9838_v39 = vld [vmem:[#allocation28_spill] sm:$0xff] }
 0x13b   :  { %1111 = vmatpush.msrb.mxu2 %v6153_v6  ;;  %v6177_v43 = vpop.f32.mrf.mxu2  ;;  %v746_v60 = vmax.f32 %v556_v25, 0.0  ;;  %v747_v34 = vmax.f32 %v657_v18, 0.0  ;;  %v6223_v35 = vmax.f32 %v752_v22, %v754_v62  ;;  %v6225_v0 = vmax.f32 %v753_v50, %v755_v7  ;;  %v9836_v62 = vld [vmem:[#allocation16_spill] sm:$0xff] }
 0x13c   :  { %v6179_v47 = vpop.f32.mrf.mxu3  ;;  %982 = vmatpush.msrb.mxu0 %v6167_v36  ;;  %v547_v53 = vadd.f32 %v9832_v28, %v5977_v41  ;;  %v648_v30 = vadd.f32 %v9833_v2, %v5979_v46  ;;  %v740_v27 = vmax.f32 %v9834_v23, 0.0  ;;  %v741_v54 = vmax.f32 %v9835_v59, 0.0  ;;  %v9839_v28 = vld [vmem:[#allocation29_spill] sm:$0xff]  ;;  %v9841_v23 = vld [vmem:[#allocation27_spill] sm:$0xff] }
 0x13d   :  { %1112 = vmatpush.msrb.mxu2 %v6169_v29  ;;  %v742_v18 = vmax.f32 %v553_v19, 0.0  ;;  %v743_v31 = vmax.f32 %v654_v20, 0.0  ;;  %v6239_v22 = vmax.f32 %v748_v13, %v750_v45  ;;  %v6241_v50 = vmax.f32 %v749_v17, %v751_v51  ;;  %v9840_v45 = vld [vmem:[#allocation26_spill] sm:$0xff] }
 0x13e   :  { %983 = vmatpush.msrb.mxu0 %v6183_v52  ;;  %v544_v7 = vadd.f32 %v9836_v62, %v5977_v41  ;;  %v645_v10 = vadd.f32 %v9837_v4, %v5979_v46  ;;  %v736_v40 = vmax.f32 %v9838_v39, 0.0  ;;  %v737_v2 = vmax.f32 %v9839_v28, 0.0  ;;  %v9842_v39 = vld [vmem:[#allocation24_spill] sm:$0xff] }
 0x13f   :  { %1113 = vmatpush.msrb.mxu2 %v6185_v24  ;;  %v6217_v33 = vpop.f32.mrf.mxu0  ;;  %v738_v19 = vmax.f32 %v550_v14, 0.0  ;;  %v739_v20 = vmax.f32 %v651_v15, 0.0  ;;  %v6251_v13 = vmax.f32 %v744_v8, %v746_v60  ;;  %v6253_v17 = vmax.f32 %v745_v32, %v747_v34 }
 0x140   :  { %984 = vmatpush.msrb.mxu0 %v6195_v38  ;;  %v6219_v63 = vpop.f32.mrf.mxu1  ;;  %v732_v51 = vmax.f32 %v9840_v45, 0.0  ;;  %v733_v59 = vmax.f32 %v9841_v23, 0.0  ;;  %v734_v62 = vmax.f32 %v547_v53, 0.0  ;;  %v735_v4 = vmax.f32 %v648_v30, 0.0 }
 0x141   :  { %1114 = vmatpush.msrb.mxu2 %v6197_v57  ;;  %v846_v14 = vmax.f32 %v740_v27, %v742_v18  ;;  %v847_v15 = vmax.f32 %v741_v54, %v743_v31  ;;  %v728_v28 = vmax.f32 %v9842_v39, 0.0  ;;  %v729_v42 = vmax.f32 %v9843_v56, 0.0 }
 0x142   :  { %985 = vmatpush.msrb.mxu0 %v6207_v3  ;;  %v730_v60 = vmax.f32 %v544_v7, 0.0  ;;  %v731_v34 = vmax.f32 %v645_v10, 0.0  ;;  %v844_v53 = vmax.f32 %v736_v40, %v738_v19  ;;  %v845_v30 = vmax.f32 %v737_v2, %v739_v20  ;;  %v9844_v19 = vld [vmem:[#allocation22_spill] sm:$0xff] }
 0x143   :  { %1115 = vmatpush.msrb.mxu2 %v6209_v37  ;;  %v6233_v16 = vpop.f32.mrf.mxu2  ;;  %v842_v27 = vmax.f32 %v732_v51, %v734_v62  ;;  %v843_v54 = vmax.f32 %v733_v59, %v735_v4  ;;  %v6315_v20 = vadd.f32 %v6105_v48, %v9844_v19  ;;  %v6323_v51 = vadd.f32 %v6161_v11, %v9844_v19 }
 0x144   :  { %v6235_v25 = vpop.f32.mrf.mxu3  ;;  %986 = vmatpush.msrb.mxu0 %v6223_v35  ;;  %v840_v56 = vmax.f32 %v728_v28, %v730_v60  ;;  %v841_v18 = vmax.f32 %v729_v42, %v731_v34  ;;  %v6331_v62 = vadd.f32 %v6217_v33, %v9844_v19 }
 0x145   :  { %1116 = vmatpush.msrb.mxu2 %v6225_v0 }
 0x146   :  { %987 = vmatpush.msrb.mxu0 %v6239_v22 }
 0x147   :  { %1117 = vmatpush.msrb.mxu2 %v6241_v50  ;;  %v6261_v8 = vpop.f32.mrf.mxu0 }
 0x148   :  { %988 = vmatpush.msrb.mxu0 %v6251_v13  ;;  %v6263_v32 = vpop.f32.mrf.mxu1 }
 0x149   :  { %1118 = vmatpush.msrb.mxu2 %v6253_v17 }
 0x14a   :  { %989 = vmatpush.msrb.mxu0 %v846_v14 }
 0x14b   :  { %1119 = vmatpush.msrb.mxu2 %v847_v15  ;;  %v6265_v45 = vpop.f32.mrf.mxu2 }
 0x14c   :  { %v6267_v23 = vpop.f32.mrf.mxu3  ;;  %990 = vmatpush.msrb.mxu0 %v844_v53 }
 0x14d   :  { %1120 = vmatpush.msrb.mxu2 %v845_v30 }
 0x14e   :  { %991 = vmatpush.msrb.mxu0 %v842_v27 }
 0x14f   :  { %1121 = vmatpush.msrb.mxu2 %v843_v54  ;;  %v6271_v31 = vpop.f32.mrf.mxu0 }
 0x150   :  { %992 = vmatpush.msrb.mxu0 %v840_v56  ;;  %v6273_v7 = vpop.f32.mrf.mxu1 }
 0x151   :  { %1122 = vmatpush.msrb.mxu2 %v841_v18 }
 0x152   :  { %1317 = vmatpush.msra.mxu0 %v6095_v12 }
 0x153   :  { %1447 = vmatpush.msra.mxu2 %v6097_v58  ;;  %v6275_v10 = vpop.f32.mrf.mxu2 }
 0x154   :  { %v6277_v40 = vpop.f32.mrf.mxu3  ;;  %1318 = vmatpush.msra.mxu0 %v6111_v26 }
 0x155   :  { %1448 = vmatpush.msra.mxu2 %v6113_v49 }
 0x156   :  { %1319 = vmatpush.msra.mxu0 %v6127_v21 }
 0x157   :  { %1449 = vmatpush.msra.mxu2 %v6129_v44  ;;  %v404_v12 = vpop.f32.mrf.mxu0 }
 0x158   :  { %1320 = vmatpush.msra.mxu0 %v6139_v9  ;;  %v505_v58 = vpop.f32.mrf.mxu1  ;;  %v6354_v4 = vadd.f32 %v404_v12, %v9844_v19 }
 0x159   :  { %1450 = vmatpush.msra.mxu2 %v6141_v5 }
 0x15a   :  { %1321 = vmatpush.msra.mxu0 %v6151_v1 }
 0x15b   :  { %1451 = vmatpush.msra.mxu2 %v6153_v6  ;;  %v6287_v42 = vpop.f32.mrf.mxu2 }
 0x15c   :  { %v6289_v2 = vpop.f32.mrf.mxu3  ;;  %1322 = vmatpush.msra.mxu0 %v6167_v36 }
 0x15d   :  { %1452 = vmatpush.msra.mxu2 %v6169_v29 }
 0x15e   :  { %1323 = vmatpush.msra.mxu0 %v6183_v52 }
 0x15f   :  { %1453 = vmatpush.msra.mxu2 %v6185_v24  ;;  %v407_v26 = vpop.f32.mrf.mxu0 }
 0x160   :  { %1324 = vmatpush.msra.mxu0 %v6195_v38  ;;  %v508_v49 = vpop.f32.mrf.mxu1 }
 0x161   :  { %1454 = vmatpush.msra.mxu2 %v6197_v57 }
 0x162   :  { %1325 = vmatpush.msra.mxu0 %v6207_v3 }
 0x163   :  { %1455 = vmatpush.msra.mxu2 %v6209_v37  ;;  %v6299_v21 = vpop.f32.mrf.mxu2 }
 0x164   :  { %v6301_v44 = vpop.f32.mrf.mxu3  ;;  %1326 = vmatpush.msra.mxu0 %v6223_v35 }
 0x165   :  { %1456 = vmatpush.msra.mxu2 %v6225_v0 }
 0x166   :  { %1327 = vmatpush.msra.mxu0 %v6239_v22 }
 0x167   :  { %1457 = vmatpush.msra.mxu2 %v6241_v50  ;;  %v410_v9 = vpop.f32.mrf.mxu0 }
 0x168   :  { %1328 = vmatpush.msra.mxu0 %v6251_v13  ;;  %v511_v5 = vpop.f32.mrf.mxu1  ;;  %v9845_v13 = vld [vmem:[#allocation23_spill] sm:$0xff]  ;;  %v6366_v39 = vadd.f32 %v410_v9, %v9844_v19 }
 0x169   :  { %1458 = vmatpush.msra.mxu2 %v6253_v17  ;;  %v6319_v17 = vadd.f32 %v6107_v55, %v9845_v13  ;;  %v6327_v59 = vadd.f32 %v6163_v61, %v9845_v13  ;;  %v6335_v48 = vadd.f32 %v6219_v63, %v9845_v13  ;;  %v6339_v55 = vadd.f32 %v6261_v8, %v9844_v19 }
 0x16a   :  { %1329 = vmatpush.msra.mxu0 %v846_v14  ;;  %v6343_v11 = vadd.f32 %v6263_v32, %v9845_v13  ;;  %v6347_v61 = vadd.f32 %v6271_v31, %v9844_v19  ;;  %v6351_v33 = vadd.f32 %v6273_v7, %v9845_v13  ;;  %v6357_v63 = vadd.f32 %v505_v58, %v9845_v13  ;;  %v896_v32 = vld [vmem:[%s9755_s3] sm:$0xff] }
 0x16b   :  { %1459 = vmatpush.msra.mxu2 %v847_v15  ;;  %v6309_v1 = vpop.f32.mrf.mxu2  ;;  %v6360_v14 = vadd.f32 %v407_v26, %v9844_v19  ;;  %v6363_v15 = vadd.f32 %v508_v49, %v9845_v13  ;;  %v6369_v28 = vadd.f32 %v511_v5, %v9845_v13  ;;  %993 = vmatmul.f32.vlgmr.msrb.gmra.mxu0 %v896_v32 }
 0x16c   :  { %v6311_v6 = vpop.f32.mrf.mxu3  ;;  %1330 = vmatpush.msra.mxu0 %v844_v53  ;;  %1123 = vmatmul.f32.vlgmr.msrb.gmra.mxu2 %v896_v32 }
 0x16d   :  { %1460 = vmatpush.msra.mxu2 %v845_v30  ;;  %v714_v32 = vadd.f32 %v6311_v6, %v5979_v46 }
 0x16e   :  { %1331 = vmatpush.msra.mxu0 %v842_v27 }
 0x16f   :  { %1461 = vmatpush.msra.mxu2 %v843_v54  ;;  %v413_v36 = vpop.f32.mrf.mxu0 }
 0x170   :  { %1332 = vmatpush.msra.mxu0 %v840_v56  ;;  %v514_v29 = vpop.f32.mrf.mxu1  ;;  %v6372_v8 = vadd.f32 %v413_v36, %v9844_v19 }
 0x171   :  { %1462 = vmatpush.msra.mxu2 %v841_v18  ;;  %v6378_v60 = vadd.f32 %v514_v29, %v9845_v13 }
 0x172   :  { %v824_v6 = vmax.f32 %v6372_v8, 0.0  ;;  %v820_v8 = vmax.f32 %v6366_v39, 0.0  ;;  %v816_v39 = vmax.f32 %v6360_v14, 0.0  ;;  %v812_v14 = vmax.f32 %v6354_v4, 0.0 }
 0x173   :  { %v615_v52 = vpop.f32.mrf.mxu2  ;;  %v699_v4 = vadd.f32 %v6235_v25, %v5979_v46  ;;  %v696_v25 = vadd.f32 %v6179_v47, %v5979_v46 }
 0x174   :  { %v716_v24 = vpop.f32.mrf.mxu3 }
 0x177   :  { %v416_v38 = vpop.f32.mrf.mxu0 }
 0x178   :  { %v517_v57 = vpop.f32.mrf.mxu1  ;;  %v417_v7 = vadd.f32 %v416_v38, %v9844_v19 }
 0x179   :  { %v518_v12 = vadd.f32 %v517_v57, %v9845_v13 }
 0x17b   :  { %v618_v3 = vpop.f32.mrf.mxu2 }
 0x17c   :  { %v719_v37 = vpop.f32.mrf.mxu3  ;;  %v619_v58 = vadd.f32 %v618_v3, %v5977_v41 }
 0x17d   :  { %v720_v26 = vadd.f32 %v719_v37, %v5979_v46  ;;  %v613_v37 = vadd.f32 %v6309_v1, %v5977_v41  ;;  %v711_v1 = vadd.f32 %v6301_v44, %v5979_v46  ;;  %v708_v44 = vadd.f32 %v6289_v2, %v5979_v46 }
 0x17e   :  { %v705_v2 = vadd.f32 %v6277_v40, %v5979_v46  ;;  %v702_v40 = vadd.f32 %v6267_v23, %v5979_v46  ;;  %v598_v23 = vadd.f32 %v6233_v16, %v5977_v41  ;;  %v595_v16 = vadd.f32 %v6177_v43, %v5977_v41 }
 0x17f   :  { %v419_v35 = vpop.f32.mrf.mxu0 }
 0x180   :  { %v520_v0 = vpop.f32.mrf.mxu1  ;;  %v420_v34 = vadd.f32 %v419_v35, %v9844_v19 }
 0x181   :  { %v521_v53 = vadd.f32 %v520_v0, %v9845_v13  ;;  %v616_v0 = vadd.f32 %v615_v52, %v5977_v41 }
 0x183   :  { %v621_v22 = vpop.f32.mrf.mxu2  ;;  %v833_v38 = vmax.f32 %v521_v53, 0.0  ;;  %v825_v53 = vmax.f32 %v6378_v60, 0.0  ;;  %v821_v60 = vmax.f32 %v6369_v28, 0.0  ;;  %v817_v28 = vmax.f32 %v6363_v15, 0.0 }
 0x184   :  { %v722_v50 = vpop.f32.mrf.mxu3  ;;  %v622_v54 = vadd.f32 %v621_v22, %v5977_v41  ;;  %v717_v22 = vadd.f32 %v716_v24, %v5979_v46  ;;  %v898_v24 = vld [vmem:[%s9755_s3 + $0x10] sm:$0xff]  ;;  %v813_v15 = vmax.f32 %v6357_v63, 0.0  ;;  %v808_v63 = vmax.f32 %v6347_v61, 0.0 }
 0x185   :  { %v723_v56 = vadd.f32 %v722_v50, %v5979_v46  ;;  %v832_v50 = vmax.f32 %v420_v34, 0.0  ;;  %v610_v34 = vadd.f32 %v6299_v21, %v5977_v41  ;;  %996 = vmatmul.f32.gmra.mxu0 %v898_v24  ;;  %1126 = vmatmul.f32.gmra.mxu2 %v898_v24  ;;  %v607_v21 = vadd.f32 %v6287_v42, %v5977_v41  ;;  %v9846_v24 = vld [vmem:[#allocation35_spill] sm:$0xff] }
 0x186   :  { %v604_v42 = vadd.f32 %v6275_v10, %v5977_v41  ;;  %v601_v10 = vadd.f32 %v6265_v45, %v5977_v41  ;;  %v900_v45 = vld [vmem:[%s9755_s3 + $0x20] sm:$0xff]  ;;  %v804_v61 = vmax.f32 %v6339_v55, 0.0  ;;  %v592_v43 = vadd.f32 %v9846_v24, %v5977_v41 }
 0x187   :  { %v422_v30 = vpop.f32.mrf.mxu0  ;;  %v835_v57 = vmax.f32 %v723_v56, 0.0  ;;  %v827_v56 = vmax.f32 %v717_v22, 0.0  ;;  %v814_v22 = vmax.f32 %v607_v21, 0.0  ;;  %v800_v55 = vmax.f32 %v6331_v62, 0.0 }
 0x188   :  { %v523_v27 = vpop.f32.mrf.mxu1  ;;  %v423_v18 = vadd.f32 %v422_v30, %v9844_v19  ;;  %v834_v19 = vmax.f32 %v622_v54, 0.0  ;;  %v828_v30 = vmax.f32 %v417_v7, 0.0  ;;  %v826_v54 = vmax.f32 %v616_v0, 0.0 }
 0x189   :  { %v524_v31 = vadd.f32 %v523_v27, %v9845_v13  ;;  %v829_v27 = vmax.f32 %v518_v12, 0.0  ;;  %v6415_v12 = vmax.f32 %v833_v38, %v835_v57  ;;  %v6439_v0 = vmax.f32 %v825_v53, %v827_v56 }
 0x18a   :  { %v836_v5 = vmax.f32 %v423_v18, 0.0  ;;  %v830_v18 = vmax.f32 %v619_v58, 0.0  ;;  %v6413_v7 = vmax.f32 %v832_v50, %v834_v19  ;;  %v822_v58 = vmax.f32 %v613_v37, 0.0 }
 0x18b   :  { %v624_v49 = vpop.f32.mrf.mxu2  ;;  %v837_v36 = vmax.f32 %v524_v31, 0.0  ;;  %v831_v31 = vmax.f32 %v720_v26, 0.0  ;;  %v823_v26 = vmax.f32 %v714_v32, 0.0  ;;  %v815_v50 = vmax.f32 %v708_v44, 0.0 }
 0x18c   :  { %v725_v9 = vpop.f32.mrf.mxu3  ;;  %v625_v29 = vadd.f32 %v624_v49, %v5977_v41  ;;  %v6449_v38 = vmax.f32 %v820_v8, %v822_v58  ;;  %v809_v57 = vmax.f32 %v6351_v33, 0.0  ;;  %v805_v33 = vmax.f32 %v6343_v11, 0.0 }
 0x18d   :  { %v726_v35 = vadd.f32 %v725_v9, %v5979_v46  ;;  %v6425_v9 = vmax.f32 %v828_v30, %v830_v18  ;;  %v6451_v19 = vmax.f32 %v821_v60, %v823_v26  ;;  %999 = vmatmul.f32.gmra.mxu0 %v900_v45  ;;  %1129 = vmatmul.f32.gmra.mxu2 %v900_v45  ;;  %v806_v30 = vmax.f32 %v601_v10, 0.0  ;;  %v909_v10 = vld [vmem:[%s9755_s3 + $0x68] sm:$0xff] }
 0x18e   :  { %v838_v13 = vmax.f32 %v625_v29, 0.0  ;;  %v819_v29 = vmax.f32 %v711_v1, 0.0  ;;  %v6476_v18 = vmax.f32 %v812_v14, %v814_v22  ;;  %v801_v11 = vmax.f32 %v6335_v48, 0.0  ;;  %v902_v48 = vld [vmem:[%s9755_s3 + $0x30] sm:$0xff]  ;;  %v911_v14 = vld [vmem:[%s9755_s3 + $0x78] sm:$0xff]  ;;  %v913_v22 = vld [vmem:[%s9755_s3 + $0x88] sm:$0xff] }
 0x18f   :  { %v839_v3 = vmax.f32 %v726_v35, 0.0  ;;  %v6437_v35 = vmax.f32 %v824_v6, %v826_v54  ;;  %v802_v1 = vmax.f32 %v598_v23, 0.0  ;;  %v803_v6 = vmax.f32 %v699_v4, 0.0  ;;  %v917_v45 = vld [vmem:[%s9755_s3 + $0xa8] sm:$0xff]  ;;  %v924_v23 = vld [vmem:[%s9755_s3 + $0xe0] sm:$0xff]  ;;  %v919_v4 = vld [vmem:[%s9755_s3 + $0xb8] sm:$0xff] }
 0x190   :  { %v6398_v49 = vmax.f32 %v836_v5, %v838_v13  ;;  %v6427_v5 = vmax.f32 %v829_v27, %v831_v31  ;;  %v810_v13 = vmax.f32 %v604_v42, 0.0  ;;  %v6466_v32 = vmax.f32 %v817_v28, %v819_v29  ;;  %v912_v29 = vld [vmem:[%s9755_s3 + $0x80] sm:$0xff] }
 0x191   :  { %v6400_v52 = vmax.f32 %v837_v36, %v839_v3  ;;  %v818_v36 = vmax.f32 %v610_v34, 0.0  ;;  %v811_v3 = vmax.f32 %v705_v2, 0.0  ;;  %v807_v27 = vmax.f32 %v702_v40, 0.0  ;;  %v9847_v34 = vld [vmem:[#allocation36_spill] sm:$0xff]  ;;  %v916_v40 = vld [vmem:[%s9755_s3 + $0xa0] sm:$0xff] }
 0x192   :  { %1046 = vmatpush.msrb.mxu1 %v6398_v49  ;;  %v6478_v31 = vmax.f32 %v813_v15, %v815_v50  ;;  %v693_v47 = vadd.f32 %v9847_v34, %v5979_v46  ;;  %v880_v53 = vmax.f32 %v808_v63, %v810_v13  ;;  %v796_v56 = vmax.f32 %v6323_v51, 0.0  ;;  %v918_v15 = vld [vmem:[%s9755_s3 + $0xb0] sm:$0xff]  ;;  %v920_v50 = vld [vmem:[%s9755_s3 + $0xc0] sm:$0xff] }
 0x193   :  { %1176 = vmatpush.msrb.mxu3 %v6400_v52  ;;  %v6464_v37 = vmax.f32 %v816_v39, %v818_v36  ;;  %v881_v54 = vmax.f32 %v809_v57, %v811_v3  ;;  %v797_v21 = vmax.f32 %v6327_v59, 0.0  ;;  %v798_v41 = vmax.f32 %v595_v16, 0.0  ;;  %v899_v36 = vld [vmem:[%s9755_s3 + $0x18] sm:$0xff]  ;;  %v926_v63 = vld [vmem:[%s9755_s3 + $0xf0] sm:$0xff]  ;;  %v921_v57 = vld [vmem:[%s9755_s3 + $0xc8] sm:$0xff] }
 0x194   :  { %1047 = vmatpush.msrb.mxu1 %v6413_v7  ;;  %v799_v44 = vmax.f32 %v696_v25, 0.0  ;;  %v878_v46 = vmax.f32 %v804_v61, %v806_v30  ;;  %v879_v62 = vmax.f32 %v805_v33, %v807_v27  ;;  %v792_v8 = vmax.f32 %v6315_v20, 0.0  ;;  %v897_v20 = vld [vmem:[%s9755_s3 + $0x8] sm:$0xff]  ;;  %v1237_v3 = vld [vmem:[%s9756_s4] sm:$0xff]  ;;  %v1239_v25 = vld [vmem:[%s9756_s4 + $0x10] sm:$0xff] }
 0x195   :  { %1177 = vmatpush.msrb.mxu3 %v6415_v12  ;;  %v793_v60 = vmax.f32 %v6319_v17, 0.0  ;;  %1002 = vmatmul.f32.gmra.mxu0 %v902_v48  ;;  %v794_v58 = vmax.f32 %v592_v43, 0.0  ;;  %v795_v51 = vmax.f32 %v693_v47, 0.0  ;;  %v876_v59 = vmax.f32 %v800_v55, %v802_v1  ;;  %v904_v17 = vld [vmem:[%s9755_s3 + $0x40] sm:$0xff]  ;;  %v925_v33 = vld [vmem:[%s9755_s3 + $0xe8] sm:$0xff]  ;;  %v1243_v43 = vld [vmem:[%s9756_s4 + $0x30] sm:$0xff] }
 0x196   :  { %1048 = vmatpush.msrb.mxu1 %v6425_v9  ;;  %1132 = vmatmul.f32.gmra.mxu2 %v902_v48  ;;  %v877_v26 = vmax.f32 %v801_v11, %v803_v6  ;;  %v874_v42 = vmax.f32 %v796_v56, %v798_v41  ;;  %v875_v2 = vmax.f32 %v797_v21, %v799_v44  ;;  %v1241_v27 = vld [vmem:[%s9756_s4 + $0x20] sm:$0xff]  ;;  %v1238_v55 = vld [vmem:[%s9756_s4 + $0x8] sm:$0xff]  ;;  %v1240_v56 = vld [vmem:[%s9756_s4 + $0x18] sm:$0xff] }
 0x197   :  { %1178 = vmatpush.msrb.mxu3 %v6427_v5  ;;  %v872_v39 = vmax.f32 %v792_v8, %v794_v58  ;;  %v873_v28 = vmax.f32 %v793_v60, %v795_v51  ;;  %v1245_v1 = vld [vmem:[%s9756_s4 + $0x40] sm:$0xff]  ;;  %v1247_v44 = vld [vmem:[%s9756_s4 + $0x50] sm:$0xff]  ;;  %v1242_v8 = vld [vmem:[%s9756_s4 + $0x28] sm:$0xff] }
 0x198   :  { %1049 = vmatpush.msrb.mxu1 %v6437_v35  ;;  %v1249_v51 = vld [vmem:[%s9756_s4 + $0x60] sm:$0xff] }
 0x199   :  { %1179 = vmatpush.msrb.mxu3 %v6439_v0 }
 0x19a   :  { %1050 = vmatpush.msrb.mxu1 %v6449_v38 }
 0x19b   :  { %1180 = vmatpush.msrb.mxu3 %v6451_v19 }
 0x19c   :  { %1051 = vmatpush.msrb.mxu1 %v6464_v37 }
 0x19d   :  { %1181 = vmatpush.msrb.mxu3 %v6466_v32  ;;  %1005 = vmatmul.f32.gmra.mxu0 %v904_v17 }
 0x19e   :  { %1052 = vmatpush.msrb.mxu1 %v6476_v18  ;;  %1135 = vmatmul.f32.gmra.mxu2 %v904_v17 }
 0x19f   :  { %1182 = vmatpush.msrb.mxu3 %v6478_v31 }
 0x1a0   :  { %1053 = vmatpush.msrb.mxu1 %v880_v53 }
 0x1a1   :  { %1183 = vmatpush.msrb.mxu3 %v881_v54 }
 0x1a2   :  { %1054 = vmatpush.msrb.mxu1 %v878_v46 }
 0x1a3   :  { %1184 = vmatpush.msrb.mxu3 %v879_v62 }
 0x1a4   :  { %1055 = vmatpush.msrb.mxu1 %v876_v59 }
 0x1a5   :  { %1185 = vmatpush.msrb.mxu3 %v877_v26 }
 0x1a6   :  { %1056 = vmatpush.msrb.mxu1 %v874_v42 }
 0x1a7   :  { %1186 = vmatpush.msrb.mxu3 %v875_v2 }
 0x1a8   :  { %1057 = vmatpush.msrb.mxu1 %v872_v39 }
 0x1a9   :  { %1187 = vmatpush.msrb.mxu3 %v873_v28  ;;  %4947 = vmatmul.msk.f32.vlgmr.msrb.gmra.mxu1 %vm928_vm2, %v897_v20 }
 0x1aa   :  { %4963 = vmatmul.msk.f32.vlgmr.msrb.gmra.mxu3 %vm928_vm2, %v897_v20  ;;  %1386 = vmatpush.msra.mxu1 %v6398_v49  ;;  %v906_v49 = vld [vmem:[%s9755_s3 + $0x50] sm:$0xff] }
 0x1ab   :  { %1516 = vmatpush.msra.mxu3 %v6400_v52  ;;  %1008 = vmatmul.f32.gmra.mxu0 %v906_v49  ;;  %v901_v52 = vld [vmem:[%s9755_s3 + $0x28] sm:$0xff]  ;;  %v1251_v20 = vld [vmem:[%s9756_s4 + $0x70] sm:$0xff] }
 0x1ac   :  { %1387 = vmatpush.msra.mxu1 %v6413_v7  ;;  %1138 = vmatmul.f32.gmra.mxu2 %v906_v49  ;;  %v908_v7 = vld [vmem:[%s9755_s3 + $0x60] sm:$0xff] }
 0x1ad   :  { %1517 = vmatpush.msra.mxu3 %v6415_v12  ;;  %v903_v12 = vld [vmem:[%s9755_s3 + $0x38] sm:$0xff] }
 0x1ae   :  { %1388 = vmatpush.msra.mxu1 %v6425_v9  ;;  %v910_v9 = vld [vmem:[%s9755_s3 + $0x70] sm:$0xff] }
 0x1af   :  { %1518 = vmatpush.msra.mxu3 %v6427_v5  ;;  %v905_v5 = vld [vmem:[%s9755_s3 + $0x48] sm:$0xff] }
 0x1b0   :  { %1389 = vmatpush.msra.mxu1 %v6437_v35  ;;  %v907_v35 = vld [vmem:[%s9755_s3 + $0x58] sm:$0xff] }
 0x1b1   :  { %1519 = vmatpush.msra.mxu3 %v6439_v0  ;;  %4948 = vmatmul.msk.f32.gmra.mxu1 %vm928_vm2, %v899_v36  ;;  %v914_v0 = vld [vmem:[%s9755_s3 + $0x90] sm:$0xff] }
 0x1b2   :  { %4964 = vmatmul.msk.f32.gmra.mxu3 %vm928_vm2, %v899_v36  ;;  %1390 = vmatpush.msra.mxu1 %v6449_v38  ;;  %v915_v38 = vld [vmem:[%s9755_s3 + $0x98] sm:$0xff] }
 0x1b3   :  { %1520 = vmatpush.msra.mxu3 %v6451_v19  ;;  %1011 = vmatmul.f32.gmra.mxu0 %v908_v7  ;;  %v922_v19 = vld [vmem:[%s9755_s3 + $0xd0] sm:$0xff] }
 0x1b4   :  { %1391 = vmatpush.msra.mxu1 %v6464_v37  ;;  %1141 = vmatmul.f32.gmra.mxu2 %v908_v7 }
 0x1b5   :  { %1521 = vmatpush.msra.mxu3 %v6466_v32  ;;  %v923_v32 = vld [vmem:[%s9755_s3 + $0xd8] sm:$0xff] }
 0x1b6   :  { %1392 = vmatpush.msra.mxu1 %v6476_v18 }
 0x1b7   :  { %1522 = vmatpush.msra.mxu3 %v6478_v31  ;;  %v927_v31 = vld [vmem:[%s9755_s3 + $0xf8] sm:$0xff] }
 0x1b8   :  { %1393 = vmatpush.msra.mxu1 %v880_v53 }
 0x1b9   :  { %1523 = vmatpush.msra.mxu3 %v881_v54  ;;  %4949 = vmatmul.msk.f32.gmra.mxu1 %vm928_vm2, %v901_v52 }
 0x1ba   :  { %4965 = vmatmul.msk.f32.gmra.mxu3 %vm928_vm2, %v901_v52  ;;  %1394 = vmatpush.msra.mxu1 %v878_v46  ;;  %v1246_v52 = vld [vmem:[%s9756_s4 + $0x48] sm:$0xff] }
 0x1bb   :  { %1524 = vmatpush.msra.mxu3 %v879_v62  ;;  %1014 = vmatmul.f32.gmra.mxu0 %v910_v9 }
 0x1bc   :  { %1395 = vmatpush.msra.mxu1 %v876_v59  ;;  %1144 = vmatmul.f32.gmra.mxu2 %v910_v9  ;;  %v1253_v9 = vld [vmem:[%s9756_s4 + $0x80] sm:$0xff] }
 0x1bd   :  { %1525 = vmatpush.msra.mxu3 %v877_v26 }
 0x1be   :  { %1396 = vmatpush.msra.mxu1 %v874_v42 }
 0x1bf   :  { %1526 = vmatpush.msra.mxu3 %v875_v2  ;;  %v1244_v2 = vld [vmem:[%s9756_s4 + $0x38] sm:$0xff] }
 0x1c0   :  { %1397 = vmatpush.msra.mxu1 %v872_v39 }
 0x1c1   :  { %1527 = vmatpush.msra.mxu3 %v873_v28  ;;  %4950 = vmatmul.msk.f32.gmra.mxu1 %vm928_vm2, %v903_v12 }
 0x1c2   :  { %4966 = vmatmul.msk.f32.gmra.mxu3 %vm928_vm2, %v903_v12 }
 0x1c3   :  { %1017 = vmatmul.f32.gmra.mxu0 %v912_v29 }
 0x1c4   :  { %1147 = vmatmul.f32.gmra.mxu2 %v912_v29 }
 0x1c9   :  { %4951 = vmatmul.msk.f32.gmra.mxu1 %vm928_vm2, %v905_v5 }
 0x1ca   :  { %4967 = vmatmul.msk.f32.gmra.mxu3 %vm928_vm2, %v905_v5 }
 0x1cb   :  { %1020 = vmatmul.f32.gmra.mxu0 %v914_v0 }
 0x1cc   :  { %1150 = vmatmul.f32.gmra.mxu2 %v914_v0  ;;  %v1248_v0 = vld [vmem:[%s9756_s4 + $0x58] sm:$0xff] }
 0x1d1   :  { %4952 = vmatmul.msk.f32.gmra.mxu1 %vm928_vm2, %v907_v35 }
 0x1d2   :  { %4968 = vmatmul.msk.f32.gmra.mxu3 %vm928_vm2, %v907_v35 }
 0x1d3   :  { %1023 = vmatmul.f32.gmra.mxu0 %v916_v40 }
 0x1d4   :  { %1153 = vmatmul.f32.gmra.mxu2 %v916_v40 }
 0x1d9   :  { %4953 = vmatmul.msk.f32.gmra.mxu1 %vm928_vm2, %v909_v10 }
 0x1da   :  { %4969 = vmatmul.msk.f32.gmra.mxu3 %vm928_vm2, %v909_v10 }
 0x1db   :  { %1026 = vmatmul.f32.gmra.mxu0 %v918_v15 }
 0x1dc   :  { %1156 = vmatmul.f32.gmra.mxu2 %v918_v15 }
 0x1e1   :  { %4954 = vmatmul.msk.f32.gmra.mxu1 %vm928_vm2, %v911_v14 }
 0x1e2   :  { %4970 = vmatmul.msk.f32.gmra.mxu3 %vm928_vm2, %v911_v14  ;;  %v1255_v14 = vld [vmem:[%s9756_s4 + $0x90] sm:$0xff] }
 0x1e3   :  { %1029 = vmatmul.f32.gmra.mxu0 %v920_v50 }
 0x1e4   :  { %1159 = vmatmul.f32.gmra.mxu2 %v920_v50 }
 0x1e8   :  { %v6608_v13 = vpop.f32.mrf.mxu0 }
 0x1e9   :  { %4955 = vmatmul.msk.f32.gmra.mxu1 %vm928_vm2, %v913_v22 }
 0x1ea   :  { %4971 = vmatmul.msk.f32.gmra.mxu3 %vm928_vm2, %v913_v22 }
 0x1eb   :  { %1032 = vmatmul.f32.gmra.mxu0 %v922_v19 }
 0x1ec   :  { %1162 = vmatmul.f32.gmra.mxu2 %v922_v19 }
 0x1ef   :  { %v1124_v37 = vpop.f32.mrf.mxu2 }
 0x1f1   :  { %4956 = vmatmul.msk.f32.gmra.mxu1 %vm928_vm2, %v915_v38 }
 0x1f2   :  { %4972 = vmatmul.msk.f32.gmra.mxu3 %vm928_vm2, %v915_v38  ;;  %v1250_v38 = vld [vmem:[%s9756_s4 + $0x68] sm:$0xff] }
 0x1f3   :  { %1035 = vmatmul.f32.gmra.mxu0 %v924_v23 }
 0x1f4   :  { %1165 = vmatmul.f32.gmra.mxu2 %v924_v23  ;;  %v1257_v23 = vld [vmem:[%s9756_s4 + $0xa0] sm:$0xff] }
 0x1f9   :  { %4957 = vmatmul.msk.f32.gmra.mxu1 %vm928_vm2, %v917_v45 }
 0x1fa   :  { %4973 = vmatmul.msk.f32.gmra.mxu3 %vm928_vm2, %v917_v45 }
 0x1fb   :  { %1038 = vmatmul.f32.gmra.mxu0 %v926_v63 }
 0x1fc   :  { %1168 = vmatmul.f32.gmra.mxu2 %v926_v63 }
 0x201   :  { %4958 = vmatmul.msk.f32.gmra.mxu1 %vm928_vm2, %v919_v4 }
 0x202   :  { %4974 = vmatmul.msk.f32.gmra.mxu3 %vm928_vm2, %v919_v4  ;;  %v6618_v16 = vpop.f32.mrf.mxu0 }
 0x203   :  { %1333 = vmatmul.f32.vlgmr.msra.gmra.mxu0 %v1237_v3 }
 0x204   :  { %1463 = vmatmul.f32.vlgmr.msra.gmra.mxu2 %v1237_v3  ;;  %v1252_v3 = vld [vmem:[%s9756_s4 + $0x78] sm:$0xff] }
 0x208   :  { %v1127_v61 = vpop.f32.mrf.mxu2 }
 0x209   :  { %4959 = vmatmul.msk.f32.gmra.mxu1 %vm928_vm2, %v921_v57 }
 0x20a   :  { %4975 = vmatmul.msk.f32.gmra.mxu3 %vm928_vm2, %v921_v57  ;;  %v6628_v30 = vpop.f32.mrf.mxu0 }
 0x20b   :  { %1336 = vmatmul.f32.gmra.mxu0 %v1239_v25 }
 0x20c   :  { %1466 = vmatmul.f32.gmra.mxu2 %v1239_v25  ;;  %v1259_v25 = vld [vmem:[%s9756_s4 + $0xb0] sm:$0xff] }
 0x210   :  { %v1130_v18 = vpop.f32.mrf.mxu2 }
 0x211   :  { %4960 = vmatmul.msk.f32.gmra.mxu1 %vm928_vm2, %v923_v32 }
 0x212   :  { %4976 = vmatmul.msk.f32.gmra.mxu3 %vm928_vm2, %v923_v32  ;;  %v6638_v24 = vpop.f32.mrf.mxu0 }
 0x213   :  { %1339 = vmatmul.f32.gmra.mxu0 %v1241_v27 }
 0x214   :  { %1469 = vmatmul.f32.gmra.mxu2 %v1241_v27 }
 0x219   :  { %4961 = vmatmul.msk.f32.gmra.mxu1 %vm928_vm2, %v925_v33  ;;  %v1133_v34 = vpop.f32.mrf.mxu2 }
 0x21a   :  { %4977 = vmatmul.msk.f32.gmra.mxu3 %vm928_vm2, %v925_v33  ;;  %v6650_v11 = vpop.f32.mrf.mxu0 }
 0x21b   :  { %1342 = vmatmul.f32.gmra.mxu0 %v1243_v43 }
 0x21c   :  { %1472 = vmatmul.f32.gmra.mxu2 %v1243_v43 }
 0x221   :  { %4962 = vmatmul.msk.f32.gmra.mxu1 %vm928_vm2, %v927_v31  ;;  %v1136_v21 = vpop.f32.mrf.mxu2 }
 0x222   :  { %4978 = vmatmul.msk.f32.gmra.mxu3 %vm928_vm2, %v927_v31 }
 0x223   :  { %1345 = vmatmul.f32.gmra.mxu0 %v1245_v1 }
 0x224   :  { %1475 = vmatmul.f32.gmra.mxu2 %v1245_v1  ;;  %v5071_v1 = vld [vmem:[%s9759_s7 + $0x5e0] sm:$0xff] }
 0x225   :  { %1748 = vmatpush.msrb.mxu0 %v5071_v1  ;;  %v5123_v1 = vld [vmem:[%s9759_s7 + $0x780] sm:$0xff] }
 0x226   :  { %v6645_v47 = vpop.f32.mrf.mxu1 }
 0x228   :  { %v6664_v41 = vpop.f32.mrf.mxu0 }
 0x229   :  { %4979 = vmatmul.msk.f32.vlgmr.msra.gmra.mxu1 %vm928_vm2, %v1238_v55 }
 0x22a   :  { %4995 = vmatmul.msk.f32.vlgmr.msra.gmra.mxu3 %vm928_vm2, %v1238_v55 }
 0x22b   :  { %1348 = vmatmul.f32.gmra.mxu0 %v1247_v44 }
 0x22c   :  { %1478 = vmatmul.f32.gmra.mxu2 %v1247_v44 }
 0x22d   :  { %v1189_v6 = vpop.f32.mrf.mxu3 }
 0x22e   :  { %v6657_v53 = vadd.f32 %v1189_v6, %v1124_v37  ;;  %v6659_v54 = vpop.f32.mrf.mxu1  ;;  %v5072_v6 = vld [vmem:[%s9759_s7 + $0x5e8] sm:$0xff] }
 0x22f   :  { %v1139_v60 = vpop.f32.mrf.mxu2  ;;  %1878 = vmatpush.msrb.mxu2 %v5072_v6  ;;  %v5048_v6 = vld [vmem:[%s9759_s7 + $0x528] sm:$0xff] }
 0x230   :  { %v6678_v58 = vpop.f32.mrf.mxu0 }
 0x231   :  { %4980 = vmatmul.msk.f32.gmra.mxu1 %vm928_vm2, %v1240_v56 }
 0x232   :  { %4996 = vmatmul.msk.f32.gmra.mxu3 %vm928_vm2, %v1240_v56 }
 0x233   :  { %1351 = vmatmul.f32.gmra.mxu0 %v1249_v51 }
 0x234   :  { %1481 = vmatmul.f32.gmra.mxu2 %v1249_v51  ;;  %v5064_v51 = vld [vmem:[%s9759_s7 + $0x5a8] sm:$0xff] }
 0x235   :  { %v1192_v46 = vpop.f32.mrf.mxu3 }
 0x236   :  { %v6671_v62 = vadd.f32 %v1192_v46, %v1127_v61  ;;  %v6673_v48 = vpop.f32.mrf.mxu1  ;;  %v5067_v46 = vld [vmem:[%s9759_s7 + $0x5c0] sm:$0xff] }
 0x237   :  { %v1142_v39 = vpop.f32.mrf.mxu2  ;;  %1749 = vmatpush.msrb.mxu0 %v5067_v46  ;;  %v1265_v46 = vld [vmem:[%s9756_s4 + $0xe0] sm:$0xff] }
 0x238   :  { %v6692_v28 = vpop.f32.mrf.mxu0 }
 0x239   :  { %4981 = vmatmul.msk.f32.gmra.mxu1 %vm928_vm2, %v1242_v8 }
 0x23a   :  { %4997 = vmatmul.msk.f32.gmra.mxu3 %vm928_vm2, %v1242_v8  ;;  %v5068_v8 = vld [vmem:[%s9759_s7 + $0x5c8] sm:$0xff] }
 0x23b   :  { %1354 = vmatmul.f32.gmra.mxu0 %v1251_v20  ;;  %1879 = vmatpush.msrb.mxu2 %v5068_v8  ;;  %v5043_v8 = vld [vmem:[%s9759_s7 + $0x500] sm:$0xff] }
 0x23c   :  { %1484 = vmatmul.f32.gmra.mxu2 %v1251_v20  ;;  %v5135_v20 = vld [vmem:[%s9759_s7 + $0x7e0] sm:$0xff] }
 0x23d   :  { %v1195_v59 = vpop.f32.mrf.mxu3  ;;  %1880 = vmatpush.msrb.mxu2 %v5064_v51  ;;  %1813 = vmatpush.msrb.mxu1 %v5135_v20  ;;  %v5039_v20 = vld [vmem:[%s9759_s7 + $0x4e0] sm:$0xff] }
 0x23e   :  { %v6685_v26 = vadd.f32 %v1195_v59, %v1130_v18  ;;  %v6687_v42 = vpop.f32.mrf.mxu1  ;;  %v1254_v18 = vld [vmem:[%s9756_s4 + $0x88] sm:$0xff] }
 0x23f   :  { %v1145_v7 = vpop.f32.mrf.mxu2 }
 0x240   :  { %v6706_v12 = vpop.f32.mrf.mxu0 }
 0x241   :  { %4982 = vmatmul.msk.f32.gmra.mxu1 %vm928_vm2, %v1244_v2 }
 0x242   :  { %4998 = vmatmul.msk.f32.gmra.mxu3 %vm928_vm2, %v1244_v2  ;;  %v1263_v2 = vld [vmem:[%s9756_s4 + $0xd0] sm:$0xff] }
 0x243   :  { %1357 = vmatmul.f32.gmra.mxu0 %v1253_v9 }
 0x244   :  { %1487 = vmatmul.f32.gmra.mxu2 %v1253_v9  ;;  %v5055_v9 = vld [vmem:[%s9759_s7 + $0x560] sm:$0xff] }
 0x245   :  { %v1198_v17 = vpop.f32.mrf.mxu3 }
 0x246   :  { %v6699_v36 = vadd.f32 %v1198_v17, %v1133_v34  ;;  %v6701_v49 = vpop.f32.mrf.mxu1  ;;  %v1261_v34 = vld [vmem:[%s9756_s4 + $0xc0] sm:$0xff]  ;;  %v5060_v17 = vld [vmem:[%s9759_s7 + $0x588] sm:$0xff] }
 0x247   :  { %v6720_v10 = vpop.f32.mrf.mxu2  ;;  %1881 = vmatpush.msrb.mxu2 %v5060_v17  ;;  %v5115_v17 = vld [vmem:[%s9759_s7 + $0x740] sm:$0xff] }
 0x248   :  { %v6722_v40 = vpop.f32.mrf.mxu0 }
 0x249   :  { %4983 = vmatmul.msk.f32.gmra.mxu1 %vm928_vm2, %v1246_v52 }
 0x24a   :  { %4999 = vmatmul.msk.f32.gmra.mxu3 %vm928_vm2, %v1246_v52  ;;  %v5136_v52 = vld [vmem:[%s9759_s7 + $0x7e8] sm:$0xff] }
 0x24b   :  { %1360 = vmatmul.f32.gmra.mxu0 %v1255_v14  ;;  %1943 = vmatpush.msrb.mxu3 %v5136_v52 }
 0x24c   :  { %1490 = vmatmul.f32.gmra.mxu2 %v1255_v14  ;;  %v5132_v14 = vld [vmem:[%s9759_s7 + $0x7c8] sm:$0xff] }
 0x24d   :  { %v1201_v5 = vpop.f32.mrf.mxu3  ;;  %1944 = vmatpush.msrb.mxu3 %v5132_v14  ;;  %v5116_v14 = vld [vmem:[%s9759_s7 + $0x748] sm:$0xff] }
 0x24e   :  { %v6713_v29 = vadd.f32 %v1201_v5, %v1136_v21  ;;  %v6715_v35 = vpop.f32.mrf.mxu1  ;;  %v1256_v21 = vld [vmem:[%s9756_s4 + $0x98] sm:$0xff]  ;;  %v5131_v5 = vld [vmem:[%s9759_s7 + $0x7c0] sm:$0xff] }
 0x24f   :  { %v6736_v19 = vpop.f32.mrf.mxu2  ;;  %1814 = vmatpush.msrb.mxu1 %v5131_v5 }
 0x250   :  { %v6738_v45 = vpop.f32.mrf.mxu0 }
 0x251   :  { %4984 = vmatmul.msk.f32.gmra.mxu1 %vm928_vm2, %v1248_v0 }
 0x252   :  { %5000 = vmatmul.msk.f32.gmra.mxu3 %vm928_vm2, %v1248_v0  ;;  %v5056_v0 = vld [vmem:[%s9759_s7 + $0x568] sm:$0xff] }
 0x253   :  { %1363 = vmatmul.f32.gmra.mxu0 %v1257_v23  ;;  %1882 = vmatpush.msrb.mxu2 %v5056_v0  ;;  %v5040_v0 = vld [vmem:[%s9759_s7 + $0x4e8] sm:$0xff] }
 0x254   :  { %1493 = vmatmul.f32.gmra.mxu2 %v1257_v23 }
 0x255   :  { %v1204_v15 = vpop.f32.mrf.mxu3 }
 0x256   :  { %v6729_v22 = vadd.f32 %v1204_v15, %v1139_v60  ;;  %v6731_v50 = vpop.f32.mrf.mxu1  ;;  %v5063_v60 = vld [vmem:[%s9759_s7 + $0x5a0] sm:$0xff] }
 0x257   :  { %v6752_v37 = vpop.f32.mrf.mxu2  ;;  %1750 = vmatpush.msrb.mxu0 %v5063_v60  ;;  %v5119_v60 = vld [vmem:[%s9759_s7 + $0x760] sm:$0xff] }
 0x258   :  { %v6754_v32 = vpop.f32.mrf.mxu0 }
 0x259   :  { %4985 = vmatmul.msk.f32.gmra.mxu1 %vm928_vm2, %v1250_v38 }
 0x25a   :  { %5001 = vmatmul.msk.f32.gmra.mxu3 %vm928_vm2, %v1250_v38  ;;  %v1258_v38 = vld [vmem:[%s9756_s4 + $0xa8] sm:$0xff] }
 0x25b   :  { %1366 = vmatmul.f32.gmra.mxu0 %v1259_v25 }
 0x25c   :  { %1496 = vmatmul.f32.gmra.mxu2 %v1259_v25  ;;  %v5052_v25 = vld [vmem:[%s9759_s7 + $0x548] sm:$0xff] }
 0x25d   :  { %v1207_v4 = vpop.f32.mrf.mxu3  ;;  %1883 = vmatpush.msrb.mxu2 %v5052_v25  ;;  %v5036_v25 = vld [vmem:[%s9759_s7 + $0x4c8] sm:$0xff] }
 0x25e   :  { %v6745_v63 = vadd.f32 %v1207_v4, %v1142_v39  ;;  %v6747_v57 = vpop.f32.mrf.mxu1  ;;  %v5059_v39 = vld [vmem:[%s9759_s7 + $0x580] sm:$0xff] }
 0x25f   :  { %v6768_v31 = vpop.f32.mrf.mxu2  ;;  %1751 = vmatpush.msrb.mxu0 %v5059_v39  ;;  %v5051_v4 = vld [vmem:[%s9759_s7 + $0x540] sm:$0xff]  ;;  %1884 = vmatpush.msrb.mxu2 %v5048_v6  ;;  %v5120_v39 = vld [vmem:[%s9759_s7 + $0x768] sm:$0xff] }
 0x260   :  { %v6770_v43 = vpop.f32.mrf.mxu0  ;;  %v5032_v6 = vld [vmem:[%s9759_s7 + $0x4a8] sm:$0xff] }
 0x261   :  { %4986 = vmatmul.msk.f32.gmra.mxu1 %vm928_vm2, %v1252_v3  ;;  %1752 = vmatpush.msrb.mxu0 %v5055_v9  ;;  %v1260_v9 = vld [vmem:[%s9756_s4 + $0xb8] sm:$0xff] }
 0x262   :  { %5002 = vmatmul.msk.f32.gmra.mxu3 %vm928_vm2, %v1252_v3  ;;  %v5127_v3 = vld [vmem:[%s9759_s7 + $0x7a0] sm:$0xff] }
 0x263   :  { %1369 = vmatmul.f32.gmra.mxu0 %v1261_v34  ;;  %1815 = vmatpush.msrb.mxu1 %v5127_v3  ;;  %v5111_v3 = vld [vmem:[%s9759_s7 + $0x720] sm:$0xff] }
 0x264   :  { %1499 = vmatmul.f32.gmra.mxu2 %v1261_v34  ;;  %1753 = vmatpush.msrb.mxu0 %v5051_v4  ;;  %v5047_v34 = vld [vmem:[%s9759_s7 + $0x520] sm:$0xff] }
 0x265   :  { %v1210_v61 = vpop.f32.mrf.mxu3  ;;  %1816 = vmatpush.msrb.mxu1 %v5123_v1  ;;  %v5035_v4 = vld [vmem:[%s9759_s7 + $0x4c0] sm:$0xff] }
 0x266   :  { %v6761_v33 = vadd.f32 %v1210_v61, %v1145_v7  ;;  %v6763_v27 = vpop.f32.mrf.mxu1  ;;  %v5128_v61 = vld [vmem:[%s9759_s7 + $0x7a8] sm:$0xff]  ;;  %1754 = vmatpush.msrb.mxu0 %v5047_v34  ;;  %v5031_v34 = vld [vmem:[%s9759_s7 + $0x4a0] sm:$0xff] }
 0x267   :  { %v6790_v44 = vpop.f32.mrf.mxu2  ;;  %1945 = vmatpush.msrb.mxu3 %v5128_v61  ;;  %1817 = vmatpush.msrb.mxu1 %v5119_v60  ;;  %v5112_v61 = vld [vmem:[%s9759_s7 + $0x728] sm:$0xff]  ;;  %v5107_v1 = vld [vmem:[%s9759_s7 + $0x700] sm:$0xff] }
 0x268   :  { %v6804_v59 = vpop.f32.mrf.mxu0  ;;  %1755 = vmatpush.msrb.mxu0 %v5043_v8  ;;  %v1267_v8 = vld [vmem:[%s9756_s4 + $0xf0] sm:$0xff]  ;;  %v5027_v60 = vld [vmem:[%s9759_s7 + $0x480] sm:$0xff] }
 0x269   :  { %4987 = vmatmul.msk.f32.gmra.mxu1 %vm928_vm2, %v1254_v18 }
 0x26a   :  { %5003 = vmatmul.msk.f32.gmra.mxu3 %vm928_vm2, %v1254_v18  ;;  %1756 = vmatpush.msrb.mxu0 %v5039_v20  ;;  %v1262_v20 = vld [vmem:[%s9756_s4 + $0xc8] sm:$0xff] }
 0x26b   :  { %1372 = vmatmul.f32.gmra.mxu0 %v1263_v2  ;;  %1818 = vmatpush.msrb.mxu1 %v5115_v17 }
 0x26c   :  { %1502 = vmatmul.f32.gmra.mxu2 %v1263_v2  ;;  %v5044_v2 = vld [vmem:[%s9759_s7 + $0x508] sm:$0xff]  ;;  %1757 = vmatpush.msrb.mxu0 %v5035_v4  ;;  %v5099_v4 = vld [vmem:[%s9759_s7 + $0x6c0] sm:$0xff] }
 0x26d   :  { %v6777_v55 = vpop.f32.mrf.mxu3  ;;  %1885 = vmatpush.msrb.mxu2 %v5044_v2  ;;  %1819 = vmatpush.msrb.mxu1 %v5111_v3  ;;  %v5103_v2 = vld [vmem:[%s9759_s7 + $0x6e0] sm:$0xff] }
 0x26e   :  { %v6785_v56 = vpop.f32.mrf.mxu1  ;;  %1758 = vmatpush.msrb.mxu0 %v5031_v34  ;;  %v5019_v34 = vld [vmem:[%s9759_s7 + $0x440] sm:$0xff] }
 0x26f   :  { %v6842_v23 = vpop.f32.mrf.mxu2  ;;  %1886 = vmatpush.msrb.mxu2 %v5040_v0  ;;  %1820 = vmatpush.msrb.mxu1 %v5107_v1  ;;  %v5104_v0 = vld [vmem:[%s9759_s7 + $0x6e8] sm:$0xff]  ;;  %v5095_v1 = vld [vmem:[%s9759_s7 + $0x6a0] sm:$0xff] }
 0x270   :  { %9848 = vst [vmem:[#allocation34_spill] sm:$0xff] %v6842_v23  ;;  %v6856_v18 = vpop.f32.mrf.mxu0  ;;  %1759 = vmatpush.msrb.mxu0 %v5027_v60  ;;  %v5015_v60 = vld [vmem:[%s9759_s7 + $0x420] sm:$0xff] }
 0x271   :  { %4988 = vmatmul.msk.f32.gmra.mxu1 %vm928_vm2, %v1256_v21  ;;  %9849 = vst [vmem:[#allocation20_spill] sm:$0xff] %v6856_v18  ;;  %1887 = vmatpush.msrb.mxu2 %v5036_v25  ;;  %v5024_v25 = vld [vmem:[%s9759_s7 + $0x468] sm:$0xff] }
 0x272   :  { %5004 = vmatmul.msk.f32.gmra.mxu3 %vm928_vm2, %v1256_v21  ;;  %v5124_v21 = vld [vmem:[%s9759_s7 + $0x788] sm:$0xff]  ;;  %1821 = vmatpush.msrb.mxu1 %v5103_v2  ;;  %v5091_v2 = vld [vmem:[%s9759_s7 + $0x680] sm:$0xff] }
 0x273   :  { %1946 = vmatpush.msrb.mxu3 %v5124_v21  ;;  %1375 = vmatmul.f32.gmra.mxu0 %v1265_v46  ;;  %v5108_v21 = vld [vmem:[%s9759_s7 + $0x708] sm:$0xff] }
 0x274   :  { %1505 = vmatmul.f32.gmra.mxu2 %v1265_v46  ;;  %1822 = vmatpush.msrb.mxu1 %v5099_v4 }
 0x275   :  { %v6823_v7 = vpop.f32.mrf.mxu3  ;;  %1947 = vmatpush.msrb.mxu3 %v5120_v39  ;;  %1888 = vmatpush.msrb.mxu2 %v5032_v6  ;;  %v5020_v6 = vld [vmem:[%s9759_s7 + $0x448] sm:$0xff] }
 0x276   :  { %v6837_v15 = vpop.f32.mrf.mxu1  ;;  %1823 = vmatpush.msrb.mxu1 %v5095_v1  ;;  %v5088_v1 = vld [vmem:[%s9759_s7 + $0x668] sm:$0xff] }
 0x277   :  { %v6900_v5 = vpop.f32.mrf.mxu2  ;;  %1948 = vmatpush.msrb.mxu3 %v5116_v14  ;;  %v5023_v14 = vld [vmem:[%s9759_s7 + $0x460] sm:$0xff] }
 0x278   :  { %9850 = vst [vmem:[#allocation21_spill] sm:$0xff] %v6900_v5  ;;  %1760 = vmatpush.msrb.mxu0 %v5023_v14  ;;  %v1264_v14 = vld [vmem:[%s9756_s4 + $0xd8] sm:$0xff]  ;;  %1824 = vmatpush.msrb.mxu1 %v5091_v2  ;;  %v5079_v2 = vld [vmem:[%s9759_s7 + $0x620] sm:$0xff] }
 0x279   :  { %4989 = vmatmul.msk.f32.gmra.mxu1 %vm928_vm2, %v1258_v38  ;;  %1949 = vmatpush.msrb.mxu3 %v5112_v61  ;;  %v5100_v61 = vld [vmem:[%s9759_s7 + $0x6c8] sm:$0xff] }
 0x27a   :  { %5005 = vmatmul.msk.f32.gmra.mxu3 %vm928_vm2, %v1258_v38  ;;  %v6908_v38 = vpop.f32.mrf.mxu0  ;;  %1761 = vmatpush.msrb.mxu0 %v5019_v34  ;;  %v5012_v34 = vld [vmem:[%s9759_s7 + $0x408] sm:$0xff] }
 0x27b   :  { %9851 = vst [vmem:[#allocation32_spill] sm:$0xff] %v6908_v38  ;;  %1950 = vmatpush.msrb.mxu3 %v5108_v21  ;;  %1378 = vmatmul.f32.gmra.mxu0 %v1267_v8  ;;  %v5096_v21 = vld [vmem:[%s9759_s7 + $0x6a8] sm:$0xff] }
 0x27c   :  { %1508 = vmatmul.f32.gmra.mxu2 %v1267_v8  ;;  %1762 = vmatpush.msrb.mxu0 %v5015_v60  ;;  %v5084_v60 = vld [vmem:[%s9759_s7 + $0x648] sm:$0xff] }
 0x27d   :  { %v6881_v51 = vpop.f32.mrf.mxu3  ;;  %1951 = vmatpush.msrb.mxu3 %v5104_v0 }
 0x27e   :  { %v6895_v52 = vpop.f32.mrf.mxu1 }
 0x27f   :  { %v6952_v17 = vpop.f32.mrf.mxu2  ;;  %1952 = vmatpush.msrb.mxu3 %v5100_v61  ;;  %v5087_v61 = vld [vmem:[%s9759_s7 + $0x660] sm:$0xff] }
 0x280   :  { %9852 = vst [vmem:[#allocation33_spill] sm:$0xff] %v6952_v17  ;;  %1825 = vmatpush.msrb.mxu1 %v5087_v61  ;;  %v1266_v61 = vld [vmem:[%s9756_s4 + $0xe8] sm:$0xff] }
 0x281   :  { %4990 = vmatmul.msk.f32.gmra.mxu1 %vm928_vm2, %v1260_v9  ;;  %1953 = vmatpush.msrb.mxu3 %v5096_v21  ;;  %v5083_v21 = vld [vmem:[%s9759_s7 + $0x640] sm:$0xff] }
 0x282   :  { %5006 = vmatmul.msk.f32.gmra.mxu3 %vm928_vm2, %v1260_v9  ;;  %v5028_v9 = vld [vmem:[%s9759_s7 + $0x488] sm:$0xff]  ;;  %v6966_v3 = vpop.f32.mrf.mxu0  ;;  %1826 = vmatpush.msrb.mxu1 %v5083_v21 }
 0x283   :  { %1889 = vmatpush.msrb.mxu2 %v5028_v9  ;;  %v5092_v9 = vld [vmem:[%s9759_s7 + $0x688] sm:$0xff] }
 0x284   :  { %1954 = vmatpush.msrb.mxu3 %v5092_v9  ;;  %v5080_v9 = vld [vmem:[%s9759_s7 + $0x628] sm:$0xff]  ;;  %1827 = vmatpush.msrb.mxu1 %v5079_v2  ;;  %v1268_v2 = vld [vmem:[%s9756_s4 + $0xf8] sm:$0xff] }
 0x285   :  { %v6936_v46 = vpop.f32.mrf.mxu3  ;;  %1890 = vmatpush.msrb.mxu2 %v5024_v25  ;;  %v5011_v25 = vld [vmem:[%s9759_s7 + $0x400] sm:$0xff] }
 0x286   :  { %v6947_v39 = vpop.f32.mrf.mxu1  ;;  %1763 = vmatpush.msrb.mxu0 %v5011_v25  ;;  %1955 = vmatpush.msrb.mxu3 %v5088_v1  ;;  %v5076_v1 = vld [vmem:[%s9759_s7 + $0x608] sm:$0xff] }
 0x287   :  { %1891 = vmatpush.msrb.mxu2 %v5020_v6  ;;  %v1464_v4 = vpop.f32.mrf.mxu2 }
 0x288   :  { %1956 = vmatpush.msrb.mxu3 %v5084_v60 }
 0x289   :  { %4991 = vmatmul.msk.f32.gmra.mxu1 %vm928_vm2, %v1262_v20 }
 0x28a   :  { %5007 = vmatmul.msk.f32.gmra.mxu3 %vm928_vm2, %v1262_v20  ;;  %v5016_v20 = vld [vmem:[%s9759_s7 + $0x428] sm:$0xff]  ;;  %v1337_v6 = vpop.f32.mrf.mxu0 }
 0x28b   :  { %1892 = vmatpush.msrb.mxu2 %v5016_v20  ;;  %1957 = vmatpush.msrb.mxu3 %v5080_v9 }
 0x28d   :  { %v6988_v8 = vpop.f32.mrf.mxu3  ;;  %1893 = vmatpush.msrb.mxu2 %v5012_v34  ;;  %1958 = vmatpush.msrb.mxu3 %v5076_v1 }
 0x28e   :  { %v7002_v0 = vpop.f32.mrf.mxu1 }
 0x28f   :  { %v1467_v34 = vpop.f32.mrf.mxu2 }
 0x291   :  { %4992 = vmatmul.msk.f32.gmra.mxu1 %vm928_vm2, %v1264_v14 }
 0x292   :  { %5008 = vmatmul.msk.f32.gmra.mxu3 %vm928_vm2, %v1264_v14  ;;  %v5075_v14 = vld [vmem:[%s9759_s7 + $0x600] sm:$0xff]  ;;  %v1340_v21 = vpop.f32.mrf.mxu0 }
 0x293   :  { %1828 = vmatpush.msrb.mxu1 %v5075_v14 }
 0x295   :  { %v7030_v20 = vpop.f32.mrf.mxu3 }
 0x296   :  { %9853 = vst [vmem:[#allocation18_spill] sm:$0xff] %v7030_v20  ;;  %v7038_v25 = vpop.f32.mrf.mxu1 }
 0x297   :  { %9854 = vst [vmem:[#allocation19_spill] sm:$0xff] %v7038_v25  ;;  %v1470_v9 = vpop.f32.mrf.mxu2 }
 0x299   :  { %4993 = vmatmul.msk.f32.gmra.mxu1 %vm928_vm2, %v1266_v61 }
 0x29a   :  { %5009 = vmatmul.msk.f32.gmra.mxu3 %vm928_vm2, %v1266_v61  ;;  %v1343_v38 = vpop.f32.mrf.mxu0  ;;  %v1060_v61 = vadd.f32 %v6645_v47, %v6608_v13 }
 0x29d   :  { %v7048_v60 = vpop.f32.mrf.mxu3 }
 0x29e   :  { %9855 = vst [vmem:[#allocation30_spill] sm:$0xff] %v7048_v60  ;;  %v7050_v17 = vpop.f32.mrf.mxu1 }
 0x29f   :  { %9856 = vst [vmem:[#allocation31_spill] sm:$0xff] %v7050_v17  ;;  %v1473_v17 = vpop.f32.mrf.mxu2 }
 0x2a1   :  { %4994 = vmatmul.msk.f32.gmra.mxu1 %vm928_vm2, %v1268_v2 }
 0x2a2   :  { %5010 = vmatmul.msk.f32.gmra.mxu3 %vm928_vm2, %v1268_v2  ;;  %v1346_v2 = vpop.f32.mrf.mxu0 }
 0x2a5   :  { %v7057_v14 = vpop.f32.mrf.mxu3 }
 0x2a6   :  { %9857 = vst [vmem:[#allocation16_spill] sm:$0xff] %v7057_v14  ;;  %v1399_v5 = vpop.f32.mrf.mxu1  ;;  %v1063_v14 = vadd.f32 %v6659_v54, %v6618_v16  ;;  %v1066_v16 = vadd.f32 %v6673_v48, %v6628_v30  ;;  %v1069_v30 = vadd.f32 %v6687_v42, %v6638_v24  ;;  %v1072_v24 = vadd.f32 %v6701_v49, %v6650_v11 }
 0x2a7   :  { %v1400_v1 = vadd.f32 %v1399_v5, %v6966_v3  ;;  %v1476_v3 = vpop.f32.mrf.mxu2  ;;  %v1075_v11 = vadd.f32 %v6715_v35, %v6664_v41  ;;  %v1078_v41 = vadd.f32 %v6731_v50, %v6678_v58  ;;  %v1081_v58 = vadd.f32 %v6747_v57, %v6692_v28  ;;  %v5073_v28 = vld [vmem:[%s9759_s7 + $0x5f0] sm:$0xff] }
 0x2a8   :  { %2008 = vmatpush.msra.mxu0 %v5073_v28  ;;  %v5138_v28 = vld [vmem:[%s9759_s7 + $0x7f8] sm:$0xff] }
 0x2a9   :  { %v7062_v60 = vmax.f32 %v1060_v61, %v1400_v1  ;;  %2203 = vmatpush.msra.mxu3 %v5138_v28 }
 0x2ab   :  { %1764 = vmatmul.f32.vlgmr.msrb.gmra.mxu0 %v7062_v60  ;;  %1894 = vmatmul.f32.vlgmr.msrb.gmra.mxu2 %v7062_v60 }
 0x2ad   :  { %v1529_v25 = vpop.f32.mrf.mxu3 }
 0x2ae   :  { %v1530_v18 = vadd.f32 %v1529_v25, %v1464_v4  ;;  %v1402_v20 = vpop.f32.mrf.mxu1 }
 0x2af   :  { %v1403_v13 = vadd.f32 %v1402_v20, %v1337_v6  ;;  %v1479_v61 = vpop.f32.mrf.mxu2 }
 0x2b0   :  { %v7069_v23 = vmax.f32 %v6657_v53, %v1530_v18  ;;  %v1349_v18 = vpop.f32.mrf.mxu0 }
 0x2b1   :  { %v7071_v47 = vmax.f32 %v1063_v14, %v1403_v13 }
 0x2b2   :  { %1829 = vmatmul.f32.vlgmr.msrb.gmra.mxu1 %v7069_v23  ;;  %1959 = vmatmul.f32.vlgmr.msrb.gmra.mxu3 %v7069_v23 }
 0x2b3   :  { %1767 = vmatmul.f32.gmra.mxu0 %v7071_v47  ;;  %1897 = vmatmul.f32.gmra.mxu2 %v7071_v47 }
 0x2b5   :  { %v1532_v5 = vpop.f32.mrf.mxu3 }
 0x2b6   :  { %v1533_v4 = vadd.f32 %v1532_v5, %v1467_v34  ;;  %v1405_v25 = vpop.f32.mrf.mxu1 }
 0x2b7   :  { %v1406_v54 = vadd.f32 %v1405_v25, %v1340_v21 }
 0x2b8   :  { %v7080_v53 = vmax.f32 %v6671_v62, %v1533_v4  ;;  %v1352_v1 = vpop.f32.mrf.mxu0 }
 0x2b9   :  { %v7082_v6 = vmax.f32 %v1066_v16, %v1406_v54 }
 0x2ba   :  { %1832 = vmatmul.f32.gmra.mxu1 %v7080_v53  ;;  %1962 = vmatmul.f32.gmra.mxu3 %v7080_v53 }
 0x2bb   :  { %1770 = vmatmul.f32.gmra.mxu0 %v7082_v6  ;;  %1900 = vmatmul.f32.gmra.mxu2 %v7082_v6 }
 0x2bd   :  { %v1535_v20 = vpop.f32.mrf.mxu3 }
 0x2be   :  { %v1536_v34 = vadd.f32 %v1535_v20, %v1470_v9  ;;  %v1408_v14 = vpop.f32.mrf.mxu1 }
 0x2bf   :  { %v1409_v48 = vadd.f32 %v1408_v14, %v1343_v38  ;;  %v1482_v38 = vpop.f32.mrf.mxu2 }
 0x2c0   :  { %v7091_v62 = vmax.f32 %v6685_v26, %v1536_v34  ;;  %v1355_v25 = vpop.f32.mrf.mxu0 }
 0x2c1   :  { %v7093_v21 = vmax.f32 %v1069_v30, %v1409_v48 }
 0x2c2   :  { %1835 = vmatmul.f32.gmra.mxu1 %v7091_v62  ;;  %1965 = vmatmul.f32.gmra.mxu3 %v7091_v62 }
 0x2c3   :  { %1773 = vmatmul.f32.gmra.mxu0 %v7093_v21  ;;  %1903 = vmatmul.f32.gmra.mxu2 %v7093_v21 }
 0x2c5   :  { %v1538_v9 = vpop.f32.mrf.mxu3 }
 0x2c6   :  { %v1539_v13 = vadd.f32 %v1538_v9, %v1473_v17  ;;  %v1411_v5 = vpop.f32.mrf.mxu1 }
 0x2c7   :  { %v1412_v42 = vadd.f32 %v1411_v5, %v1346_v2  ;;  %v1485_v20 = vpop.f32.mrf.mxu2 }
 0x2c8   :  { %v7102_v26 = vmax.f32 %v6699_v36, %v1539_v13  ;;  %v1358_v30 = vpop.f32.mrf.mxu0 }
 0x2c9   :  { %v7104_v4 = vmax.f32 %v1072_v24, %v1412_v42 }
 0x2ca   :  { %1838 = vmatmul.f32.gmra.mxu1 %v7102_v26  ;;  %1968 = vmatmul.f32.gmra.mxu3 %v7102_v26 }
 0x2cb   :  { %1776 = vmatmul.f32.gmra.mxu0 %v7104_v4  ;;  %1906 = vmatmul.f32.gmra.mxu2 %v7104_v4 }
 0x2cd   :  { %v1541_v17 = vpop.f32.mrf.mxu3 }
 0x2ce   :  { %v1542_v16 = vadd.f32 %v1541_v17, %v1476_v3  ;;  %v1414_v54 = vpop.f32.mrf.mxu1  ;;  %v1084_v17 = vadd.f32 %v6763_v27, %v6706_v12  ;;  %v5137_v12 = vld [vmem:[%s9759_s7 + $0x7f0] sm:$0xff] }
 0x2cf   :  { %v1415_v49 = vadd.f32 %v1414_v54, %v1349_v18  ;;  %v1488_v48 = vpop.f32.mrf.mxu2  ;;  %v5065_v54 = vld [vmem:[%s9759_s7 + $0x5b0] sm:$0xff]  ;;  %2073 = vmatpush.msra.mxu1 %v5137_v12  ;;  %v5058_v12 = vld [vmem:[%s9759_s7 + $0x578] sm:$0xff] }
 0x2d0   :  { %v7113_v36 = vmax.f32 %v6713_v29, %v1542_v16 }
 0x2d1   :  { %v7115_v2 = vmax.f32 %v1075_v11, %v1415_v49  ;;  %v5061_v49 = vld [vmem:[%s9759_s7 + $0x590] sm:$0xff] }
 0x2d2   :  { %1841 = vmatmul.f32.gmra.mxu1 %v7113_v36  ;;  %1971 = vmatmul.f32.gmra.mxu3 %v7113_v36 }
 0x2d3   :  { %1779 = vmatmul.f32.gmra.mxu0 %v7115_v2  ;;  %1909 = vmatmul.f32.gmra.mxu2 %v7115_v2 }
 0x2d5   :  { %v1544_v3 = vpop.f32.mrf.mxu3 }
 0x2d6   :  { %v1545_v34 = vadd.f32 %v1544_v3, %v1479_v61  ;;  %v1417_v14 = vpop.f32.mrf.mxu1  ;;  %v5133_v3 = vld [vmem:[%s9759_s7 + $0x7d0] sm:$0xff] }
 0x2d7   :  { %v1418_v35 = vadd.f32 %v1417_v14, %v1352_v1  ;;  %v1361_v1 = vpop.f32.mrf.mxu0  ;;  %v1491_v42 = vpop.f32.mrf.mxu2  ;;  %v1214_v14 = vadd.f32 %v6777_v55, %v6720_v10  ;;  %2074 = vmatpush.msra.mxu1 %v5133_v3  ;;  %v1087_v10 = vadd.f32 %v6785_v56, %v6722_v40  ;;  %v5066_v40 = vld [vmem:[%s9759_s7 + $0x5b8] sm:$0xff]  ;;  %v5045_v56 = vld [vmem:[%s9759_s7 + $0x510] sm:$0xff] }
 0x2d8   :  { %v7124_v29 = vmax.f32 %v6729_v22, %v1545_v34  ;;  %v5074_v34 = vld [vmem:[%s9759_s7 + $0x5f8] sm:$0xff]  ;;  %v5037_v3 = vld [vmem:[%s9759_s7 + $0x4d0] sm:$0xff] }
 0x2d9   :  { %v7126_v18 = vmax.f32 %v1078_v41, %v1418_v35  ;;  %2138 = vmatpush.msra.mxu2 %v5074_v34  ;;  %v5053_v35 = vld [vmem:[%s9759_s7 + $0x550] sm:$0xff] }
 0x2da   :  { %1844 = vmatmul.f32.gmra.mxu1 %v7124_v29  ;;  %1974 = vmatmul.f32.gmra.mxu3 %v7124_v29  ;;  %v5113_v34 = vld [vmem:[%s9759_s7 + $0x730] sm:$0xff] }
 0x2db   :  { %1782 = vmatmul.f32.gmra.mxu0 %v7126_v18  ;;  %1912 = vmatmul.f32.gmra.mxu2 %v7126_v18 }
 0x2dd   :  { %v1547_v61 = vpop.f32.mrf.mxu3 }
 0x2de   :  { %v1548_v9 = vadd.f32 %v1547_v61, %v1482_v38  ;;  %v1420_v13 = vpop.f32.mrf.mxu1  ;;  %v5069_v38 = vld [vmem:[%s9759_s7 + $0x5d0] sm:$0xff] }
 0x2df   :  { %v1421_v50 = vadd.f32 %v1420_v13, %v1355_v25  ;;  %2009 = vmatpush.msra.mxu0 %v5069_v38  ;;  %v5129_v61 = vld [vmem:[%s9759_s7 + $0x7b0] sm:$0xff]  ;;  %v1494_v13 = vpop.f32.mrf.mxu2 }
 0x2e0   :  { %v7135_v22 = vmax.f32 %v6745_v63, %v1548_v9  ;;  %v5070_v9 = vld [vmem:[%s9759_s7 + $0x5d8] sm:$0xff]  ;;  %2075 = vmatpush.msra.mxu1 %v5129_v61 }
 0x2e1   :  { %v7137_v5 = vmax.f32 %v1081_v58, %v1421_v50  ;;  %2010 = vmatpush.msra.mxu0 %v5065_v54  ;;  %2139 = vmatpush.msra.mxu2 %v5070_v9  ;;  %v5049_v58 = vld [vmem:[%s9759_s7 + $0x530] sm:$0xff]  ;;  %v1217_v54 = vadd.f32 %v6823_v7, %v6736_v19  ;;  %v1090_v19 = vadd.f32 %v6837_v15, %v6738_v45  ;;  %v5130_v45 = vld [vmem:[%s9759_s7 + $0x7b8] sm:$0xff] }
 0x2e2   :  { %1847 = vmatmul.f32.gmra.mxu1 %v7135_v22  ;;  %1977 = vmatmul.f32.gmra.mxu3 %v7135_v22  ;;  %v5125_v50 = vld [vmem:[%s9759_s7 + $0x790] sm:$0xff]  ;;  %v5126_v61 = vld [vmem:[%s9759_s7 + $0x798] sm:$0xff] }
 0x2e3   :  { %1785 = vmatmul.f32.gmra.mxu0 %v7137_v5  ;;  %1915 = vmatmul.f32.gmra.mxu2 %v7137_v5  ;;  %v5033_v15 = vld [vmem:[%s9759_s7 + $0x4b0] sm:$0xff] }
 0x2e4   :  { %2011 = vmatpush.msra.mxu0 %v5061_v49  ;;  %2076 = vmatpush.msra.mxu1 %v5125_v50  ;;  %v5029_v9 = vld [vmem:[%s9759_s7 + $0x490] sm:$0xff]  ;;  %v1220_v50 = vadd.f32 %v6881_v51, %v6752_v37 }
 0x2e5   :  { %v1550_v24 = vpop.f32.mrf.mxu3  ;;  %2140 = vmatpush.msra.mxu2 %v5066_v40  ;;  %v5101_v51 = vld [vmem:[%s9759_s7 + $0x6d0] sm:$0xff] }
 0x2e6   :  { %v1551_v57 = vadd.f32 %v1550_v24, %v1485_v20  ;;  %v1423_v63 = vpop.f32.mrf.mxu1  ;;  %v5057_v20 = vld [vmem:[%s9759_s7 + $0x570] sm:$0xff] }
 0x2e7   :  { %v1424_v16 = vadd.f32 %v1423_v63, %v1358_v30  ;;  %2012 = vmatpush.msra.mxu0 %v5057_v20 }
 0x2e8   :  { %v7152_v25 = vmax.f32 %v6761_v33, %v1551_v57  ;;  %v1364_v33 = vpop.f32.mrf.mxu0  ;;  %v5062_v57 = vld [vmem:[%s9759_s7 + $0x598] sm:$0xff] }
 0x2e9   :  { %v7157_v11 = vmax.f32 %v1084_v17, %v1424_v16  ;;  %2013 = vmatpush.msra.mxu0 %v5053_v35  ;;  %v5041_v17 = vld [vmem:[%s9759_s7 + $0x4f0] sm:$0xff]  ;;  %2141 = vmatpush.msra.mxu2 %v5062_v57  ;;  %v5050_v35 = vld [vmem:[%s9759_s7 + $0x538] sm:$0xff] }
 0x2ea   :  { %1850 = vmatmul.f32.gmra.mxu1 %v7152_v25  ;;  %1980 = vmatmul.f32.gmra.mxu3 %v7152_v25  ;;  %v5117_v16 = vld [vmem:[%s9759_s7 + $0x750] sm:$0xff] }
 0x2eb   :  { %1788 = vmatmul.f32.gmra.mxu0 %v7157_v11  ;;  %1918 = vmatmul.f32.gmra.mxu2 %v7157_v11 }
 0x2ec   :  { %2014 = vmatpush.msra.mxu0 %v5049_v58  ;;  %2142 = vmatpush.msra.mxu2 %v5058_v12  ;;  %v5046_v58 = vld [vmem:[%s9759_s7 + $0x518] sm:$0xff]  ;;  %v5017_v12 = vld [vmem:[%s9759_s7 + $0x430] sm:$0xff] }
 0x2ed   :  { %v1553_v27 = vpop.f32.mrf.mxu3 }
 0x2ee   :  { %v1554_v30 = vadd.f32 %v1553_v27, %v1488_v48  ;;  %v1426_v41 = vpop.f32.mrf.mxu1  ;;  %2015 = vmatpush.msra.mxu0 %v5045_v56  ;;  %v5134_v27 = vld [vmem:[%s9759_s7 + $0x7d8] sm:$0xff] }
 0x2ef   :  { %v1427_v48 = vadd.f32 %v1426_v41, %v1361_v1  ;;  %v5121_v1 = vld [vmem:[%s9759_s7 + $0x770] sm:$0xff]  ;;  %2204 = vmatpush.msra.mxu3 %v5134_v27  ;;  %v5122_v56 = vld [vmem:[%s9759_s7 + $0x778] sm:$0xff] }
 0x2f0   :  { %v7191_v55 = vmax.f32 %v1214_v14, %v1554_v30  ;;  %v1367_v38 = vpop.f32.mrf.mxu0  ;;  %2077 = vmatpush.msra.mxu1 %v5121_v1  ;;  %2016 = vmatpush.msra.mxu0 %v5041_v17  ;;  %v5054_v14 = vld [vmem:[%s9759_s7 + $0x558] sm:$0xff]  ;;  %v5109_v41 = vld [vmem:[%s9759_s7 + $0x710] sm:$0xff] }
 0x2f1   :  { %v7199_v24 = vmax.f32 %v1087_v10, %v1427_v48  ;;  %2143 = vmatpush.msra.mxu2 %v5054_v14  ;;  %2205 = vmatpush.msra.mxu3 %v5130_v45  ;;  %v5105_v48 = vld [vmem:[%s9759_s7 + $0x6f0] sm:$0xff]  ;;  %v5110_v14 = vld [vmem:[%s9759_s7 + $0x718] sm:$0xff] }
 0x2f2   :  { %1853 = vmatmul.f32.gmra.mxu1 %v7191_v55  ;;  %1983 = vmatmul.f32.gmra.mxu3 %v7191_v55  ;;  %v5025_v1 = vld [vmem:[%s9759_s7 + $0x470] sm:$0xff] }
 0x2f3   :  { %1791 = vmatmul.f32.gmra.mxu0 %v7199_v24  ;;  %1921 = vmatmul.f32.gmra.mxu2 %v7199_v24  ;;  %v5013_v45 = vld [vmem:[%s9759_s7 + $0x410] sm:$0xff] }
 0x2f4   :  { %2078 = vmatpush.msra.mxu1 %v5117_v16  ;;  %2017 = vmatpush.msra.mxu0 %v5037_v3  ;;  %v5093_v3 = vld [vmem:[%s9759_s7 + $0x690] sm:$0xff] }
 0x2f5   :  { %v1556_v63 = vpop.f32.mrf.mxu3  ;;  %2144 = vmatpush.msra.mxu2 %v5050_v35  ;;  %2206 = vmatpush.msra.mxu3 %v5126_v61 }
 0x2f6   :  { %v1557_v49 = vadd.f32 %v1556_v63, %v1491_v42  ;;  %v1429_v20 = vpop.f32.mrf.mxu1  ;;  %2079 = vmatpush.msra.mxu1 %v5113_v34  ;;  %2018 = vmatpush.msra.mxu0 %v5033_v15  ;;  %v1093_v63 = vadd.f32 %v6895_v52, %v6754_v32  ;;  %v5118_v32 = vld [vmem:[%s9759_s7 + $0x758] sm:$0xff]  ;;  %v5021_v52 = vld [vmem:[%s9759_s7 + $0x450] sm:$0xff] }
 0x2f7   :  { %v1430_v42 = vadd.f32 %v1429_v20, %v1364_v33  ;;  %v1497_v33 = vpop.f32.mrf.mxu2  ;;  %2145 = vmatpush.msra.mxu2 %v5046_v58  ;;  %2207 = vmatpush.msra.mxu3 %v5122_v56  ;;  %v5081_v58 = vld [vmem:[%s9759_s7 + $0x630] sm:$0xff]  ;;  %v1226_v56 = vadd.f32 %v6988_v8, %v6790_v44  ;;  %v5018_v8 = vld [vmem:[%s9759_s7 + $0x438] sm:$0xff] }
 0x2f8   :  { %v7239_v7 = vmax.f32 %v1217_v54, %v1557_v49  ;;  %2080 = vmatpush.msra.mxu1 %v5109_v41  ;;  %v1370_v57 = vpop.f32.mrf.mxu0  ;;  %2019 = vmatpush.msra.mxu0 %v5029_v9  ;;  %v5038_v54 = vld [vmem:[%s9759_s7 + $0x4d8] sm:$0xff]  ;;  %v1096_v41 = vadd.f32 %v6947_v39, %v6770_v43  ;;  %v5085_v39 = vld [vmem:[%s9759_s7 + $0x650] sm:$0xff] }
 0x2f9   :  { %v7247_v30 = vmax.f32 %v1090_v19, %v1430_v42  ;;  %v5114_v49 = vld [vmem:[%s9759_s7 + $0x738] sm:$0xff]  ;;  %2208 = vmatpush.msra.mxu3 %v5118_v32  ;;  %v1223_v42 = vadd.f32 %v6936_v46, %v6768_v31  ;;  %v5089_v46 = vld [vmem:[%s9759_s7 + $0x670] sm:$0xff] }
 0x2fa   :  { %1856 = vmatmul.f32.gmra.mxu1 %v7239_v7  ;;  %1986 = vmatmul.f32.gmra.mxu3 %v7239_v7  ;;  %v5034_v19 = vld [vmem:[%s9759_s7 + $0x4b8] sm:$0xff] }
 0x2fb   :  { %1794 = vmatmul.f32.gmra.mxu0 %v7247_v30  ;;  %1924 = vmatmul.f32.gmra.mxu2 %v7247_v30  ;;  %v5106_v43 = vld [vmem:[%s9759_s7 + $0x6f8] sm:$0xff] }
 0x2fc   :  { %2081 = vmatpush.msra.mxu1 %v5105_v48  ;;  %2020 = vmatpush.msra.mxu0 %v5025_v1  ;;  %v5102_v48 = vld [vmem:[%s9759_s7 + $0x6d8] sm:$0xff] }
 0x2fd   :  { %v1559_v10 = vpop.f32.mrf.mxu3  ;;  %2209 = vmatpush.msra.mxu3 %v5114_v49  ;;  %v5094_v32 = vld [vmem:[%s9759_s7 + $0x698] sm:$0xff] }
 0x2fe   :  { %v1560_v40 = vadd.f32 %v1559_v10, %v1494_v13  ;;  %v1432_v28 = vpop.f32.mrf.mxu1  ;;  %v5042_v13 = vld [vmem:[%s9759_s7 + $0x4f8] sm:$0xff]  ;;  %2082 = vmatpush.msra.mxu1 %v5101_v51  ;;  %2021 = vmatpush.msra.mxu0 %v5021_v52  ;;  %v1099_v51 = vadd.f32 %v7002_v0, %v6804_v59 }
 0x2ff   :  { %v1433_v37 = vadd.f32 %v1432_v28, %v1367_v38  ;;  %2146 = vmatpush.msra.mxu2 %v5042_v13  ;;  %v5097_v38 = vld [vmem:[%s9759_s7 + $0x6b0] sm:$0xff]  ;;  %v1500_v20 = vpop.f32.mrf.mxu2  ;;  %2210 = vmatpush.msra.mxu3 %v5110_v14  ;;  %v5026_v10 = vld [vmem:[%s9759_s7 + $0x478] sm:$0xff]  ;;  %v9861_v14 = vld [vmem:[#allocation19_spill] sm:$0xff] }
 0x300   :  { %v7287_v17 = vmax.f32 %v1220_v50, %v1560_v40  ;;  %2083 = vmatpush.msra.mxu1 %v5097_v38  ;;  %2022 = vmatpush.msra.mxu0 %v5017_v12  ;;  %v1373_v61 = vpop.f32.mrf.mxu0  ;;  %v5022_v40 = vld [vmem:[%s9759_s7 + $0x458] sm:$0xff]  ;;  %v9858_v12 = vld [vmem:[#allocation34_spill] sm:$0xff] }
 0x301   :  { %v7295_v16 = vmax.f32 %v1093_v63, %v1433_v37  ;;  %2147 = vmatpush.msra.mxu2 %v5038_v54  ;;  %2211 = vmatpush.msra.mxu3 %v5106_v43  ;;  %v5098_v28 = vld [vmem:[%s9759_s7 + $0x6b8] sm:$0xff] }
 0x302   :  { %1859 = vmatmul.f32.gmra.mxu1 %v7287_v17  ;;  %1989 = vmatmul.f32.gmra.mxu3 %v7287_v17  ;;  %v5014_v59 = vld [vmem:[%s9759_s7 + $0x418] sm:$0xff] }
 0x303   :  { %1797 = vmatmul.f32.gmra.mxu0 %v7295_v16  ;;  %1927 = vmatmul.f32.gmra.mxu2 %v7295_v16  ;;  %v5090_v0 = vld [vmem:[%s9759_s7 + $0x678] sm:$0xff] }
 0x304   :  { %2084 = vmatpush.msra.mxu1 %v5093_v3  ;;  %2148 = vmatpush.msra.mxu2 %v5034_v19  ;;  %v5086_v54 = vld [vmem:[%s9759_s7 + $0x658] sm:$0xff] }
 0x305   :  { %v1562_v27 = vpop.f32.mrf.mxu3  ;;  %2023 = vmatpush.msra.mxu0 %v5013_v45  ;;  %2212 = vmatpush.msra.mxu3 %v5102_v48  ;;  %v5082_v19 = vld [vmem:[%s9759_s7 + $0x638] sm:$0xff] }
 0x306   :  { %v1563_v34 = vadd.f32 %v1562_v27, %v1497_v33  ;;  %v1435_v15 = vpop.f32.mrf.mxu1  ;;  %v5030_v33 = vld [vmem:[%s9759_s7 + $0x498] sm:$0xff]  ;;  %2085 = vmatpush.msra.mxu1 %v5089_v46  ;;  %v9859_v27 = vld [vmem:[#allocation18_spill] sm:$0xff] }
 0x307   :  { %v1436_v31 = vadd.f32 %v1435_v15, %v1370_v57  ;;  %2149 = vmatpush.msra.mxu2 %v5030_v33  ;;  %v5077_v57 = vld [vmem:[%s9759_s7 + $0x610] sm:$0xff]  ;;  %v1503_v37 = vpop.f32.mrf.mxu2  ;;  %2213 = vmatpush.msra.mxu3 %v5098_v28 }
 0x308   :  { %v7335_v35 = vmax.f32 %v1223_v42, %v1563_v34  ;;  %2086 = vmatpush.msra.mxu1 %v5085_v39  ;;  %v1376_v38 = vpop.f32.mrf.mxu0  ;;  %v9860_v34 = vld [vmem:[#allocation20_spill] sm:$0xff]  ;;  %v9862_v39 = vld [vmem:[#allocation21_spill] sm:$0xff] }
 0x309   :  { %v7343_v9 = vmax.f32 %v1096_v41, %v1436_v31  ;;  %2150 = vmatpush.msra.mxu2 %v5026_v10  ;;  %2214 = vmatpush.msra.mxu3 %v5094_v32  ;;  %v1102_v45 = vadd.f32 %v9861_v14, %v9860_v34  ;;  %v5078_v31 = vld [vmem:[%s9759_s7 + $0x618] sm:$0xff]  ;;  %v9863_v10 = vld [vmem:[#allocation30_spill] sm:$0xff] }
 0x30a   :  { %1862 = vmatmul.f32.gmra.mxu1 %v7335_v35  ;;  %1992 = vmatmul.f32.gmra.mxu3 %v7335_v35  ;;  %v1232_v48 = vadd.f32 %v9863_v10, %v9862_v39 }
 0x30b   :  { %1800 = vmatmul.f32.gmra.mxu0 %v7343_v9  ;;  %1930 = vmatmul.f32.gmra.mxu2 %v7343_v9 }
 0x30c   :  { %2087 = vmatpush.msra.mxu1 %v5081_v58  ;;  %2151 = vmatpush.msra.mxu2 %v5022_v40  ;;  %v9864_v40 = vld [vmem:[#allocation32_spill] sm:$0xff] }
 0x30d   :  { %v1565_v50 = vpop.f32.mrf.mxu3  ;;  %2215 = vmatpush.msra.mxu3 %v5090_v0 }
 0x30e   :  { %v1566_v1 = vadd.f32 %v1565_v50, %v1500_v20  ;;  %v1438_v63 = vpop.f32.mrf.mxu1  ;;  %2088 = vmatpush.msra.mxu1 %v5077_v57  ;;  %2152 = vmatpush.msra.mxu2 %v5018_v8  ;;  %v1229_v20 = vadd.f32 %v9859_v27, %v9858_v12  ;;  %v9867_v8 = vld [vmem:[#allocation16_spill] sm:$0xff] }
 0x30f   :  { %v1439_v44 = vadd.f32 %v1438_v63, %v1373_v61  ;;  %2216 = vmatpush.msra.mxu3 %v5086_v54  ;;  %v1506_v46 = vpop.f32.mrf.mxu2  ;;  %v1738_v54 = vld [vmem:[%s9760_s8] sm:$0xf] }
 0x310   :  { %v7377_v13 = vmax.f32 %v1226_v56, %v1566_v1  ;;  %2153 = vmatpush.msra.mxu2 %v5014_v59  ;;  %v1379_v43 = vpop.f32.mrf.mxu0  ;;  %v9865_v56 = vld [vmem:[#allocation31_spill] sm:$0xff]  ;;  %v7454_v27 = vperm.slane %v1738_v54, 1 }
 0x311   :  { %v7385_v52 = vmax.f32 %v1099_v51, %v1439_v44  ;;  %2217 = vmatpush.msra.mxu3 %v5082_v19  ;;  %v1105_v1 = vadd.f32 %v9865_v56, %v9864_v40  ;;  %v9866_v44 = vld [vmem:[#allocation33_spill] sm:$0xff] }
 0x312   :  { %1865 = vmatmul.f32.gmra.mxu1 %v7377_v13  ;;  %1995 = vmatmul.f32.gmra.mxu3 %v7377_v13  ;;  %v1235_v32 = vadd.f32 %v9867_v8, %v9866_v44  ;;  %9868 = vst [vmem:[#allocation17_spill] sm:$0xff] %v7454_v27 }
 0x313   :  { %1803 = vmatmul.f32.gmra.mxu0 %v7385_v52  ;;  %1933 = vmatmul.f32.gmra.mxu2 %v7385_v52 }
 0x314   :  { %2218 = vmatpush.msra.mxu3 %v5078_v31 }
 0x315   :  { %v1568_v49 = vpop.f32.mrf.mxu3 }
 0x316   :  { %v1569_v3 = vadd.f32 %v1568_v49, %v1503_v37  ;;  %v1441_v42 = vpop.f32.mrf.mxu1 }
 0x317   :  { %v1442_v41 = vadd.f32 %v1441_v42, %v1376_v38  ;;  %v1509_v37 = vpop.f32.mrf.mxu2 }
 0x318   :  { %v7407_v15 = vmax.f32 %v1229_v20, %v1569_v3 }
 0x319   :  { %v7412_v33 = vmax.f32 %v1102_v45, %v1442_v41 }
 0x31a   :  { %1868 = vmatmul.f32.gmra.mxu1 %v7407_v15  ;;  %1998 = vmatmul.f32.gmra.mxu3 %v7407_v15 }
 0x31b   :  { %1806 = vmatmul.f32.gmra.mxu0 %v7412_v33  ;;  %1936 = vmatmul.f32.gmra.mxu2 %v7412_v33 }
 0x31d   :  { %v1571_v61 = vpop.f32.mrf.mxu3 }
 0x31e   :  { %v1572_v58 = vadd.f32 %v1571_v61, %v1506_v46  ;;  %v1444_v50 = vpop.f32.mrf.mxu1 }
 0x31f   :  { %v1445_v57 = vadd.f32 %v1444_v50, %v1379_v43 }
 0x320   :  { %v7422_v28 = vmax.f32 %v1232_v48, %v1572_v58 }
 0x321   :  { %v7424_v63 = vmax.f32 %v1105_v1, %v1445_v57 }
 0x322   :  { %1871 = vmatmul.f32.gmra.mxu1 %v7422_v28  ;;  %2001 = vmatmul.f32.gmra.mxu3 %v7422_v28 }
 0x323   :  { %1809 = vmatmul.f32.gmra.mxu0 %v7424_v63  ;;  %1939 = vmatmul.f32.gmra.mxu2 %v7424_v63 }
 0x324   :  { %2284 = vmatpush.msrb.mxu0 %v7424_v63 }
 0x325   :  { %v1574_v51 = vpop.f32.mrf.mxu3 }
 0x326   :  { %v1575_v59 = vadd.f32 %v1574_v51, %v1509_v37  ;;  %2285 = vmatpush.msrb.mxu0 %v7412_v33 }
 0x328   :  { %v7434_v0 = vmax.f32 %v1235_v32, %v1575_v59  ;;  %2286 = vmatpush.msrb.mxu0 %v7385_v52  ;;  %v7437_v38 = vpop.f32.mrf.mxu0 }
 0x32a   :  { %1874 = vmatmul.f32.gmra.mxu1 %v7434_v0  ;;  %2004 = vmatmul.f32.gmra.mxu3 %v7434_v0 }
 0x32b   :  { %2287 = vmatpush.msrb.mxu0 %v7343_v9  ;;  %2349 = vmatpush.msrb.mxu1 %v7434_v0 }
 0x32c   :  { %2024 = vmatmul.f32.vlgmr.msra.gmra.mxu0 %v7062_v60  ;;  %2154 = vmatmul.f32.vlgmr.msra.gmra.mxu2 %v7062_v60 }
 0x32d   :  { %2288 = vmatpush.msrb.mxu0 %v7295_v16  ;;  %2350 = vmatpush.msrb.mxu1 %v7422_v28 }
 0x32e   :  { %v1895_v12 = vpop.f32.mrf.mxu2 }
 0x32f   :  { %2289 = vmatpush.msrb.mxu0 %v7247_v30  ;;  %2351 = vmatpush.msrb.mxu1 %v7407_v15  ;;  %v7452_v49 = vpop.f32.mrf.mxu1  ;;  %v1896_v3 = vadd.f32 %v1895_v12, %v7454_v27 }
 0x330   :  { %v7458_v20 = vpop.f32.mrf.mxu0 }
 0x331   :  { %2290 = vmatpush.msrb.mxu0 %v7199_v24  ;;  %2352 = vmatpush.msrb.mxu1 %v7377_v13 }
 0x332   :  { %2089 = vmatmul.f32.vlgmr.msra.gmra.mxu1 %v7069_v23  ;;  %2219 = vmatmul.f32.vlgmr.msra.gmra.mxu3 %v7069_v23 }
 0x333   :  { %2291 = vmatpush.msrb.mxu0 %v7157_v11  ;;  %2353 = vmatpush.msrb.mxu1 %v7335_v35 }
 0x334   :  { %2027 = vmatmul.f32.gmra.mxu0 %v7071_v47  ;;  %2157 = vmatmul.f32.gmra.mxu2 %v7071_v47 }
 0x335   :  { %2292 = vmatpush.msrb.mxu0 %v7137_v5  ;;  %2354 = vmatpush.msrb.mxu1 %v7287_v17  ;;  %v1960_v19 = vpop.f32.mrf.mxu3 }
 0x336   :  { %v7469_v42 = vadd.f32 %v1960_v19, %v1896_v3  ;;  %v1898_v14 = vpop.f32.mrf.mxu2 }
 0x337   :  { %2293 = vmatpush.msrb.mxu0 %v7126_v18  ;;  %2355 = vmatpush.msrb.mxu1 %v7239_v7  ;;  %v7473_v34 = vpop.f32.mrf.mxu1  ;;  %v1899_v41 = vadd.f32 %v1898_v14, %v7454_v27 }
 0x338   :  { %v7477_v45 = vpop.f32.mrf.mxu0 }
 0x339   :  { %2294 = vmatpush.msrb.mxu0 %v7115_v2  ;;  %2356 = vmatpush.msrb.mxu1 %v7191_v55 }
 0x33a   :  { %2092 = vmatmul.f32.gmra.mxu1 %v7080_v53  ;;  %2222 = vmatmul.f32.gmra.mxu3 %v7080_v53 }
 0x33b   :  { %2295 = vmatpush.msrb.mxu0 %v7104_v4  ;;  %2357 = vmatpush.msrb.mxu1 %v7152_v25 }
 0x33c   :  { %2030 = vmatmul.f32.gmra.mxu0 %v7082_v6  ;;  %2160 = vmatmul.f32.gmra.mxu2 %v7082_v6 }
 0x33d   :  { %2296 = vmatpush.msrb.mxu0 %v7093_v21  ;;  %2358 = vmatpush.msrb.mxu1 %v7135_v22  ;;  %v1963_v31 = vpop.f32.mrf.mxu3 }
 0x33e   :  { %v7488_v46 = vadd.f32 %v1963_v31, %v1899_v41  ;;  %v1901_v43 = vpop.f32.mrf.mxu2 }
 0x33f   :  { %2297 = vmatpush.msrb.mxu0 %v7082_v6  ;;  %2359 = vmatpush.msrb.mxu1 %v7124_v29  ;;  %v7492_v61 = vpop.f32.mrf.mxu1  ;;  %v1902_v10 = vadd.f32 %v1901_v43, %v7454_v27 }
 0x340   :  { %v7496_v39 = vpop.f32.mrf.mxu0 }
 0x341   :  { %2298 = vmatpush.msrb.mxu0 %v7071_v47  ;;  %2360 = vmatpush.msrb.mxu1 %v7113_v36 }
 0x342   :  { %2095 = vmatmul.f32.gmra.mxu1 %v7091_v62  ;;  %2225 = vmatmul.f32.gmra.mxu3 %v7091_v62 }
 0x343   :  { %2299 = vmatpush.msrb.mxu0 %v7062_v60  ;;  %2361 = vmatpush.msrb.mxu1 %v7102_v26 }
 0x344   :  { %2033 = vmatmul.f32.gmra.mxu0 %v7093_v21  ;;  %2163 = vmatmul.f32.gmra.mxu2 %v7093_v21 }
 0x345   :  { %2362 = vmatpush.msrb.mxu1 %v7091_v62  ;;  %v1966_v48 = vpop.f32.mrf.mxu3 }
 0x346   :  { %v7506_v58 = vadd.f32 %v1966_v48, %v1902_v10  ;;  %v1904_v40 = vpop.f32.mrf.mxu2 }
 0x347   :  { %2363 = vmatpush.msrb.mxu1 %v7080_v53  ;;  %v7509_v50 = vpop.f32.mrf.mxu1  ;;  %v1905_v1 = vadd.f32 %v1904_v40, %v7454_v27 }
 0x348   :  { %v7512_v56 = vpop.f32.mrf.mxu0 }
 0x349   :  { %2364 = vmatpush.msrb.mxu1 %v7069_v23 }
 0x34a   :  { %2098 = vmatmul.f32.gmra.mxu1 %v7102_v26  ;;  %2228 = vmatmul.f32.gmra.mxu3 %v7102_v26 }
 0x34c   :  { %2036 = vmatmul.f32.gmra.mxu0 %v7104_v4  ;;  %2166 = vmatmul.f32.gmra.mxu2 %v7104_v4 }
 0x34d   :  { %v1969_v57 = vpop.f32.mrf.mxu3 }
 0x34e   :  { %v7519_v37 = vadd.f32 %v1969_v57, %v1905_v1  ;;  %v1907_v44 = vpop.f32.mrf.mxu2 }
 0x34f   :  { %v7521_v51 = vpop.f32.mrf.mxu1  ;;  %v1908_v32 = vadd.f32 %v1907_v44, %v7454_v27 }
 0x350   :  { %v7523_v8 = vpop.f32.mrf.mxu0 }
 0x352   :  { %2101 = vmatmul.f32.gmra.mxu1 %v7113_v36  ;;  %2231 = vmatmul.f32.gmra.mxu3 %v7113_v36 }
 0x354   :  { %2039 = vmatmul.f32.gmra.mxu0 %v7115_v2  ;;  %2169 = vmatmul.f32.gmra.mxu2 %v7115_v2 }
 0x355   :  { %v1972_v59 = vpop.f32.mrf.mxu3 }
 0x356   :  { %v7530_v54 = vadd.f32 %v1972_v59, %v1908_v32  ;;  %v1910_v3 = vpop.f32.mrf.mxu2 }
 0x357   :  { %v7532_v12 = vpop.f32.mrf.mxu1  ;;  %v1911_v14 = vadd.f32 %v1910_v3, %v7454_v27 }
 0x358   :  { %9869 = vst [vmem:[#allocation28_spill] sm:$0xff] %v7532_v12  ;;  %v7534_v19 = vpop.f32.mrf.mxu0  ;;  %v2280_v12 = vld [vmem:[#allocation2 + $0x60] sm:$0xff] }
 0x359   :  { %9870 = vst [vmem:[#allocation29_spill] sm:$0xff] %v7534_v19  ;;  %v2511_v19 = vld [vmem:[%s9759_s7 + $0x308] sm:$0xff] }
 0x35a   :  { %2104 = vmatmul.f32.gmra.mxu1 %v7124_v29  ;;  %2234 = vmatmul.f32.gmra.mxu3 %v7124_v29 }
 0x35c   :  { %2042 = vmatmul.f32.gmra.mxu0 %v7126_v18  ;;  %2172 = vmatmul.f32.gmra.mxu2 %v7126_v18 }
 0x35d   :  { %v1975_v41 = vpop.f32.mrf.mxu3 }
 0x35e   :  { %v7541_v31 = vadd.f32 %v1975_v41, %v1911_v14  ;;  %v1913_v10 = vpop.f32.mrf.mxu2 }
 0x35f   :  { %v7543_v43 = vpop.f32.mrf.mxu1  ;;  %v1914_v40 = vadd.f32 %v1913_v10, %v7454_v27 }
 0x360   :  { %9871 = vst [vmem:[#allocation26_spill] sm:$0xff] %v7543_v43  ;;  %v7545_v48 = vpop.f32.mrf.mxu0  ;;  %v2271_v43 = vld [vmem:[#allocation2 + $0x18] sm:$0xff] }
 0x361   :  { %9872 = vst [vmem:[#allocation27_spill] sm:$0xff] %v7545_v48 }
 0x362   :  { %2107 = vmatmul.f32.gmra.mxu1 %v7135_v22  ;;  %2237 = vmatmul.f32.gmra.mxu3 %v7135_v22 }
 0x364   :  { %2045 = vmatmul.f32.gmra.mxu0 %v7137_v5  ;;  %2175 = vmatmul.f32.gmra.mxu2 %v7137_v5 }
 0x365   :  { %v1978_v1 = vpop.f32.mrf.mxu3 }
 0x366   :  { %v7552_v57 = vadd.f32 %v1978_v1, %v1914_v40  ;;  %v1916_v32 = vpop.f32.mrf.mxu2 }
 0x367   :  { %v7554_v44 = vpop.f32.mrf.mxu1  ;;  %v1917_v3 = vadd.f32 %v1916_v32, %v7454_v27 }
 0x368   :  { %9873 = vst [vmem:[#allocation24_spill] sm:$0xff] %v7554_v44  ;;  %v7556_v59 = vpop.f32.mrf.mxu0 }
 0x369   :  { %9874 = vst [vmem:[#allocation25_spill] sm:$0xff] %v7556_v59 }
 0x36a   :  { %2110 = vmatmul.f32.gmra.mxu1 %v7152_v25  ;;  %2240 = vmatmul.f32.gmra.mxu3 %v7152_v25 }
 0x36c   :  { %2048 = vmatmul.f32.gmra.mxu0 %v7157_v11  ;;  %2178 = vmatmul.f32.gmra.mxu2 %v7157_v11 }
 0x36d   :  { %v1981_v14 = vpop.f32.mrf.mxu3 }
 0x36e   :  { %v7563_v41 = vadd.f32 %v1981_v14, %v1917_v3 }
 0x36f   :  { %v7565_v10 = vpop.f32.mrf.mxu1 }
 0x370   :  { %9875 = vst [vmem:[#allocation22_spill] sm:$0xff] %v7565_v10  ;;  %v7567_v40 = vpop.f32.mrf.mxu0 }
 0x371   :  { %9876 = vst [vmem:[#allocation23_spill] sm:$0xff] %v7567_v40  ;;  %v2269_v40 = vld [vmem:[#allocation2 + $0x8] sm:$0xff] }
 0x372   :  { %2113 = vmatmul.f32.gmra.mxu1 %v7191_v55  ;;  %2243 = vmatmul.f32.gmra.mxu3 %v7191_v55 }
 0x374   :  { %2051 = vmatmul.f32.gmra.mxu0 %v7199_v24  ;;  %2181 = vmatmul.f32.gmra.mxu2 %v7199_v24 }
 0x377   :  { %v7573_v1 = vpop.f32.mrf.mxu1 }
 0x378   :  { %9877 = vst [vmem:[#allocation35_spill] sm:$0xff] %v7573_v1  ;;  %v7575_v32 = vpop.f32.mrf.mxu0  ;;  %v2268_v1 = vld [vmem:[#allocation2] sm:$0xff] }
 0x379   :  { %9878 = vst [vmem:[#allocation36_spill] sm:$0xff] %v7575_v32 }
 0x37a   :  { %2116 = vmatmul.f32.gmra.mxu1 %v7239_v7  ;;  %2246 = vmatmul.f32.gmra.mxu3 %v7239_v7 }
 0x37c   :  { %2054 = vmatmul.f32.gmra.mxu0 %v7247_v30  ;;  %2184 = vmatmul.f32.gmra.mxu2 %v7247_v30 }
 0x37f   :  { %v7581_v3 = vpop.f32.mrf.mxu1 }
 0x380   :  { %9879 = vst [vmem:[#allocation34_spill] sm:$0xff] %v7581_v3  ;;  %v7583_v14 = vpop.f32.mrf.mxu0 }
 0x381   :  { %9880 = vst [vmem:[#allocation18_spill] sm:$0xff] %v7583_v14 }
 0x382   :  { %2119 = vmatmul.f32.gmra.mxu1 %v7287_v17  ;;  %2249 = vmatmul.f32.gmra.mxu3 %v7287_v17 }
 0x384   :  { %2057 = vmatmul.f32.gmra.mxu0 %v7295_v16  ;;  %2187 = vmatmul.f32.gmra.mxu2 %v7295_v16 }
 0x387   :  { %v7589_v27 = vpop.f32.mrf.mxu1 }
 0x388   :  { %9881 = vst [vmem:[#allocation20_spill] sm:$0xff] %v7589_v27  ;;  %v7591_v32 = vpop.f32.mrf.mxu0 }
 0x389   :  { %9882 = vst [vmem:[#allocation19_spill] sm:$0xff] %v7591_v32 }
 0x38a   :  { %2122 = vmatmul.f32.gmra.mxu1 %v7335_v35  ;;  %2252 = vmatmul.f32.gmra.mxu3 %v7335_v35 }
 0x38c   :  { %2060 = vmatmul.f32.gmra.mxu0 %v7343_v9  ;;  %2190 = vmatmul.f32.gmra.mxu2 %v7343_v9 }
 0x38f   :  { %v7597_v14 = vpop.f32.mrf.mxu1 }
 0x390   :  { %9883 = vst [vmem:[#allocation21_spill] sm:$0xff] %v7597_v14  ;;  %v7599_v3 = vpop.f32.mrf.mxu0 }
 0x391   :  { %9884 = vst [vmem:[#allocation30_spill] sm:$0xff] %v7599_v3 }
 0x392   :  { %2125 = vmatmul.f32.gmra.mxu1 %v7377_v13  ;;  %2255 = vmatmul.f32.gmra.mxu3 %v7377_v13 }
 0x394   :  { %2063 = vmatmul.f32.gmra.mxu0 %v7385_v52  ;;  %2193 = vmatmul.f32.gmra.mxu2 %v7385_v52 }
 0x397   :  { %v7605_v32 = vpop.f32.mrf.mxu1 }
 0x398   :  { %9885 = vst [vmem:[#allocation32_spill] sm:$0xff] %v7605_v32  ;;  %v7607_v27 = vpop.f32.mrf.mxu0 }
 0x399   :  { %9886 = vst [vmem:[#allocation31_spill] sm:$0xff] %v7607_v27 }
 0x39a   :  { %2128 = vmatmul.f32.gmra.mxu1 %v7407_v15  ;;  %2258 = vmatmul.f32.gmra.mxu3 %v7407_v15 }
 0x39c   :  { %2066 = vmatmul.f32.gmra.mxu0 %v7412_v33  ;;  %2196 = vmatmul.f32.gmra.mxu2 %v7412_v33 }
 0x39f   :  { %v7613_v3 = vpop.f32.mrf.mxu1 }
 0x3a0   :  { %9887 = vst [vmem:[#allocation33_spill] sm:$0xff] %v7613_v3  ;;  %v7615_v14 = vpop.f32.mrf.mxu0 }
 0x3a1   :  { %9888 = vst [vmem:[#allocation16_spill] sm:$0xff] %v7615_v14 }
 0x3a2   :  { %2131 = vmatmul.f32.gmra.mxu1 %v7422_v28  ;;  %2261 = vmatmul.f32.gmra.mxu3 %v7422_v28 }
 0x3a4   :  { %2069 = vmatmul.f32.gmra.mxu0 %v7424_v63  ;;  %2199 = vmatmul.f32.gmra.mxu2 %v7424_v63 }
 0x3a7   :  { %v7621_v27 = vpop.f32.mrf.mxu1 }
 0x3a8   :  { %9889 = vst [vmem:[#allocation37_spill] sm:$0xff] %v7621_v27  ;;  %v2270_v27 = vld [vmem:[#allocation2 + $0x10] sm:$0xff] }
 0x3a9   :  { %v7623_v32 = vpop.f32.mrf.mxu0 }
 0x3aa   :  { %9890 = vst [vmem:[#allocation38_spill] sm:$0xff] %v7623_v32  ;;  %2134 = vmatmul.f32.gmra.mxu1 %v7434_v0  ;;  %2264 = vmatmul.f32.gmra.mxu3 %v7434_v0  ;;  %v7635_v32 = vpop.f32.mrf.mxu2 }
 0x3ab   :  { %9895 = vst [vmem:[#allocation43_spill] sm:$0xff] %v7635_v32 }
 0x3ac   :  { %2300 = vmatmul.f32.vlgmr.msrb.gmra.mxu0 %v2268_v1 }
 0x3af   :  { %v7627_v3 = vpop.f32.mrf.mxu1 }
 0x3b0   :  { %9891 = vst [vmem:[#allocation39_spill] sm:$0xff] %v7627_v3 }
 0x3b1   :  { %v7629_v14 = vpop.f32.mrf.mxu0 }
 0x3b2   :  { %9892 = vst [vmem:[#allocation40_spill] sm:$0xff] %v7629_v14  ;;  %2365 = vmatmul.f32.vlgmr.msrb.gmra.mxu1 %v2268_v1  ;;  %v7641_v14 = vpop.f32.mrf.mxu3  ;;  %v7645_v3 = vpop.f32.mrf.mxu2 }
 0x3b3   :  { %9898 = vst [vmem:[#allocation46_spill] sm:$0xff] %v7641_v14 }
 0x3b4   :  { %2303 = vmatmul.f32.gmra.mxu0 %v2269_v40  ;;  %9900 = vst [vmem:[#allocation48_spill] sm:$0xff] %v7645_v3  ;;  %v2466_v3 = vld [vmem:[%s9759_s7 + $0x1a0] sm:$0xff] }
 0x3b7   :  { %v7631_v10 = vpop.f32.mrf.mxu1 }
 0x3b8   :  { %9893 = vst [vmem:[#allocation41_spill] sm:$0xff] %v7631_v10 }
 0x3b9   :  { %v7633_v59 = vpop.f32.mrf.mxu0 }
 0x3ba   :  { %9894 = vst [vmem:[#allocation42_spill] sm:$0xff] %v7633_v59  ;;  %2368 = vmatmul.f32.gmra.mxu1 %v2269_v40  ;;  %v2272_v59 = vld [vmem:[#allocation2 + $0x20] sm:$0xff]  ;;  %v7655_v32 = vpop.f32.mrf.mxu3 }
 0x3bb   :  { %v2474_v40 = vld [vmem:[%s9759_s7 + $0x1e0] sm:$0xff]  ;;  %9902 = vst [vmem:[#allocation50_spill] sm:$0xff] %v7655_v32 }
 0x3bc   :  { %2306 = vmatmul.f32.gmra.mxu0 %v2270_v27  ;;  %2542 = vmatpush.msrb.mxu2 %v2474_v40  ;;  %v2462_v40 = vld [vmem:[%s9759_s7 + $0x180] sm:$0xff] }
 0x3bd   :  { %v2538_v32 = vld [vmem:[%s9759_s7 + $0x3e0] sm:$0xff] }
 0x3be   :  { %2607 = vmatpush.msrb.mxu3 %v2538_v32 }
 0x3bf   :  { %v7637_v44 = vpop.f32.mrf.mxu1 }
 0x3c0   :  { %9896 = vst [vmem:[#allocation44_spill] sm:$0xff] %v7637_v44  ;;  %v2436_v44 = vld [vmem:[%s9759_s7 + $0xb0] sm:$0xff] }
 0x3c1   :  { %v7639_v48 = vpop.f32.mrf.mxu0 }
 0x3c2   :  { %9897 = vst [vmem:[#allocation45_spill] sm:$0xff] %v7639_v48  ;;  %2371 = vmatmul.f32.gmra.mxu1 %v2270_v27  ;;  %v2470_v27 = vld [vmem:[%s9759_s7 + $0x1c0] sm:$0xff]  ;;  %v2531_v48 = vld [vmem:[%s9759_s7 + $0x3a8] sm:$0xff] }
 0x3c3   :  { %2543 = vmatpush.msrb.mxu2 %v2470_v27  ;;  %v2458_v27 = vld [vmem:[%s9759_s7 + $0x160] sm:$0xff] }
 0x3c4   :  { %2309 = vmatmul.f32.gmra.mxu0 %v2271_v43 }
 0x3c5   :  { %2544 = vmatpush.msrb.mxu2 %v2466_v3  ;;  %v2454_v3 = vld [vmem:[%s9759_s7 + $0x140] sm:$0xff] }
 0x3c7   :  { %v7643_v1 = vpop.f32.mrf.mxu1  ;;  %2545 = vmatpush.msrb.mxu2 %v2462_v40  ;;  %v2530_v40 = vld [vmem:[%s9759_s7 + $0x3a0] sm:$0xff] }
 0x3c8   :  { %9899 = vst [vmem:[#allocation47_spill] sm:$0xff] %v7643_v1  ;;  %v7670_v1 = vpop.f32.mrf.mxu2 }
 0x3c9   :  { %v7647_v10 = vpop.f32.mrf.mxu0  ;;  %9905 = vst [vmem:[#allocation53_spill] sm:$0xff] %v7670_v1  ;;  %2546 = vmatpush.msrb.mxu2 %v2458_v27  ;;  %v2450_v1 = vld [vmem:[%s9759_s7 + $0x120] sm:$0xff] }
 0x3ca   :  { %9901 = vst [vmem:[#allocation49_spill] sm:$0xff] %v7647_v10  ;;  %2374 = vmatmul.f32.gmra.mxu1 %v2271_v43  ;;  %v2273_v10 = vld [vmem:[#allocation2 + $0x28] sm:$0xff]  ;;  %v2526_v27 = vld [vmem:[%s9759_s7 + $0x380] sm:$0xff] }
 0x3cb   :  { %2547 = vmatpush.msrb.mxu2 %v2454_v3  ;;  %v2446_v3 = vld [vmem:[%s9759_s7 + $0x100] sm:$0xff] }
 0x3cc   :  { %2312 = vmatmul.f32.gmra.mxu0 %v2272_v59 }
 0x3cd   :  { %2548 = vmatpush.msrb.mxu2 %v2450_v1  ;;  %v2518_v1 = vld [vmem:[%s9759_s7 + $0x340] sm:$0xff] }
 0x3cf   :  { %v7657_v14 = vpop.f32.mrf.mxu1  ;;  %2549 = vmatpush.msrb.mxu2 %v2446_v3  ;;  %v2514_v3 = vld [vmem:[%s9759_s7 + $0x320] sm:$0xff] }
 0x3d0   :  { %9903 = vst [vmem:[#allocation51_spill] sm:$0xff] %v7657_v14  ;;  %v2274_v14 = vld [vmem:[#allocation2 + $0x30] sm:$0xff] }
 0x3d1   :  { %v7662_v43 = vpop.f32.mrf.mxu0 }
 0x3d2   :  { %9904 = vst [vmem:[#allocation52_spill] sm:$0xff] %v7662_v43  ;;  %2377 = vmatmul.f32.gmra.mxu1 %v2272_v59  ;;  %v2534_v59 = vld [vmem:[%s9759_s7 + $0x3c0] sm:$0xff] }
 0x3d3   :  { %2608 = vmatpush.msrb.mxu3 %v2534_v59  ;;  %v7692_v59 = vpop.f32.mrf.mxu3 }
 0x3d4   :  { %2315 = vmatmul.f32.gmra.mxu0 %v2273_v10  ;;  %9907 = vst [vmem:[#allocation55_spill] sm:$0xff] %v7692_v59  ;;  %v2442_v59 = vld [vmem:[%s9759_s7 + $0xe0] sm:$0xff] }
 0x3d5   :  { %2609 = vmatpush.msrb.mxu3 %v2530_v40  ;;  %v2522_v40 = vld [vmem:[%s9759_s7 + $0x360] sm:$0xff]  ;;  %2550 = vmatpush.msrb.mxu2 %v2442_v59 }
 0x3d6   :  { %v2510_v59 = vld [vmem:[%s9759_s7 + $0x300] sm:$0xff] }
 0x3d7   :  { %v7684_v32 = vpop.f32.mrf.mxu1  ;;  %2610 = vmatpush.msrb.mxu3 %v2526_v27  ;;  %v2438_v27 = vld [vmem:[%s9759_s7 + $0xc0] sm:$0xff] }
 0x3d8   :  { %9906 = vst [vmem:[#allocation54_spill] sm:$0xff] %v7684_v32  ;;  %2551 = vmatpush.msrb.mxu2 %v2438_v27  ;;  %v2506_v27 = vld [vmem:[%s9759_s7 + $0x2e0] sm:$0xff] }
 0x3d9   :  { %v7694_v43 = vpop.f32.mrf.mxu0  ;;  %2611 = vmatpush.msrb.mxu3 %v2522_v40  ;;  %v2276_v32 = vld [vmem:[#allocation2 + $0x40] sm:$0xff] }
 0x3da   :  { %9908 = vst [vmem:[#allocation56_spill] sm:$0xff] %v7694_v43  ;;  %2380 = vmatmul.f32.gmra.mxu1 %v2273_v10  ;;  %v7708_v10 = vpop.f32.mrf.mxu2  ;;  %v2434_v43 = vld [vmem:[%s9759_s7 + $0xa0] sm:$0xff] }
 0x3db   :  { %9909 = vst [vmem:[#allocation57_spill] sm:$0xff] %v7708_v10  ;;  %2612 = vmatpush.msrb.mxu3 %v2518_v1  ;;  %v2275_v10 = vld [vmem:[#allocation2 + $0x38] sm:$0xff]  ;;  %2552 = vmatpush.msrb.mxu2 %v2434_v43  ;;  %v2422_v43 = vld [vmem:[%s9759_s7 + $0x40] sm:$0xff] }
 0x3dc   :  { %2318 = vmatmul.f32.gmra.mxu0 %v2274_v14 }
 0x3dd   :  { %2613 = vmatpush.msrb.mxu3 %v2514_v3  ;;  %v7732_v3 = vpop.f32.mrf.mxu3 }
 0x3de   :  { %9912 = vst [vmem:[#allocation60_spill] sm:$0xff] %v7732_v3  ;;  %v2418_v3 = vld [vmem:[%s9759_s7 + $0x20] sm:$0xff] }
 0x3df   :  { %v7716_v40 = vpop.f32.mrf.mxu1  ;;  %2614 = vmatpush.msrb.mxu3 %v2510_v59 }
 0x3e0   :  { %9910 = vst [vmem:[#allocation58_spill] sm:$0xff] %v7716_v40  ;;  %v2430_v40 = vld [vmem:[%s9759_s7 + $0x80] sm:$0xff] }
 0x3e1   :  { %v7724_v1 = vpop.f32.mrf.mxu0  ;;  %2553 = vmatpush.msrb.mxu2 %v2430_v40  ;;  %2615 = vmatpush.msrb.mxu3 %v2506_v27  ;;  %v2498_v40 = vld [vmem:[%s9759_s7 + $0x2a0] sm:$0xff] }
 0x3e2   :  { %9911 = vst [vmem:[#allocation59_spill] sm:$0xff] %v7724_v1  ;;  %2383 = vmatmul.f32.gmra.mxu1 %v2274_v14  ;;  %v2426_v1 = vld [vmem:[%s9759_s7 + $0x60] sm:$0xff]  ;;  %v7746_v59 = vpop.f32.mrf.mxu2 }
 0x3e3   :  { %v2502_v14 = vld [vmem:[%s9759_s7 + $0x2c0] sm:$0xff]  ;;  %2554 = vmatpush.msrb.mxu2 %v2426_v1  ;;  %9913 = vst [vmem:[#allocation61_spill] sm:$0xff] %v7746_v59 }
 0x3e4   :  { %2321 = vmatmul.f32.gmra.mxu0 %v2275_v10  ;;  %2616 = vmatpush.msrb.mxu3 %v2502_v14  ;;  %v2494_v1 = vld [vmem:[%s9759_s7 + $0x280] sm:$0xff] }
 0x3e5   :  { %2555 = vmatpush.msrb.mxu2 %v2422_v43  ;;  %v2414_v59 = vld [vmem:[%s9759_s7] sm:$0xff] }
 0x3e6   :  { %2617 = vmatpush.msrb.mxu3 %v2498_v40  ;;  %v2490_v43 = vld [vmem:[%s9759_s7 + $0x260] sm:$0xff]  ;;  %v2476_v40 = vld [vmem:[%s9759_s7 + $0x1f0] sm:$0xff] }
 0x3e7   :  { %v7748_v27 = vpop.f32.mrf.mxu1  ;;  %2556 = vmatpush.msrb.mxu2 %v2418_v3  ;;  %v7770_v3 = vpop.f32.mrf.mxu3 }
 0x3e8   :  { %9914 = vst [vmem:[#allocation62_spill] sm:$0xff] %v7748_v27  ;;  %2618 = vmatpush.msrb.mxu3 %v2494_v1  ;;  %v2475_v1 = vld [vmem:[%s9759_s7 + $0x1e8] sm:$0xff] }
 0x3e9   :  { %v7756_v14 = vpop.f32.mrf.mxu0  ;;  %2557 = vmatpush.msrb.mxu2 %v2414_v59  ;;  %9916 = vst [vmem:[#allocation64_spill] sm:$0xff] %v7770_v3  ;;  %2672 = vmatpush.msra.mxu0 %v2475_v1  ;;  %v2482_v59 = vld [vmem:[%s9759_s7 + $0x220] sm:$0xff]  ;;  %v2277_v3 = vld [vmem:[#allocation2 + $0x48] sm:$0xff] }
 0x3ea   :  { %9915 = vst [vmem:[#allocation63_spill] sm:$0xff] %v7756_v14  ;;  %2386 = vmatmul.f32.gmra.mxu1 %v2275_v10  ;;  %2619 = vmatpush.msrb.mxu3 %v2490_v43  ;;  %v2486_v10 = vld [vmem:[%s9759_s7 + $0x240] sm:$0xff]  ;;  %v2472_v14 = vld [vmem:[%s9759_s7 + $0x1d0] sm:$0xff]  ;;  %v7792_v1 = vpop.f32.mrf.mxu2 }
 0x3eb   :  { %2802 = vmatpush.msra.mxu2 %v2476_v40  ;;  %v2471_v40 = vld [vmem:[%s9759_s7 + $0x1c8] sm:$0xff]  ;;  %9918 = vst [vmem:[#allocation66_spill] sm:$0xff] %v7792_v1  ;;  %v2460_v1 = vld [vmem:[%s9759_s7 + $0x170] sm:$0xff] }
 0x3ec   :  { %2324 = vmatmul.f32.gmra.mxu0 %v2276_v32  ;;  %2620 = vmatpush.msrb.mxu3 %v2486_v10  ;;  %v2468_v10 = vld [vmem:[%s9759_s7 + $0x1b0] sm:$0xff] }
 0x3ed   :  { %2803 = vmatpush.msra.mxu2 %v2472_v14  ;;  %2673 = vmatpush.msra.mxu0 %v2471_v40  ;;  %v2478_v14 = vld [vmem:[%s9759_s7 + $0x200] sm:$0xff]  ;;  %v2540_v40 = vld [vmem:[%s9759_s7 + $0x3f0] sm:$0xff] }
 0x3ee   :  { %2621 = vmatpush.msrb.mxu3 %v2482_v59  ;;  %v2467_v59 = vld [vmem:[%s9759_s7 + $0x1a8] sm:$0xff] }
 0x3ef   :  { %v7781_v43 = vpop.f32.mrf.mxu1  ;;  %2804 = vmatpush.msra.mxu2 %v2468_v10  ;;  %2674 = vmatpush.msra.mxu0 %v2467_v59  ;;  %v2463_v10 = vld [vmem:[%s9759_s7 + $0x188] sm:$0xff] }
 0x3f0   :  { %9917 = vst [vmem:[#allocation65_spill] sm:$0xff] %v7781_v43  ;;  %2622 = vmatpush.msrb.mxu3 %v2478_v14  ;;  %v2464_v43 = vld [vmem:[%s9759_s7 + $0x190] sm:$0xff]  ;;  %v2539_v14 = vld [vmem:[%s9759_s7 + $0x3e8] sm:$0xff] }
 0x3f1   :  { %v7794_v27 = vpop.f32.mrf.mxu0  ;;  %2805 = vmatpush.msra.mxu2 %v2464_v43  ;;  %2737 = vmatpush.msra.mxu1 %v2539_v14  ;;  %v2535_v59 = vld [vmem:[%s9759_s7 + $0x3c8] sm:$0xff]  ;;  %v2456_v43 = vld [vmem:[%s9759_s7 + $0x150] sm:$0xff] }
 0x3f2   :  { %9919 = vst [vmem:[#allocation67_spill] sm:$0xff] %v7794_v27  ;;  %2389 = vmatmul.f32.gmra.mxu1 %v2276_v32  ;;  %2867 = vmatpush.msra.mxu3 %v2540_v40  ;;  %v2536_v27 = vld [vmem:[%s9759_s7 + $0x3d0] sm:$0xff]  ;;  %v2459_v32 = vld [vmem:[%s9759_s7 + $0x168] sm:$0xff] }
 0x3f3   :  { %2675 = vmatpush.msra.mxu0 %v2463_v10  ;;  %2806 = vmatpush.msra.mxu2 %v2460_v1  ;;  %v2532_v40 = vld [vmem:[%s9759_s7 + $0x3b0] sm:$0xff]  ;;  %v7829_v10 = vpop.f32.mrf.mxu3  ;;  %v2455_v14 = vld [vmem:[%s9759_s7 + $0x148] sm:$0xff] }
 0x3f4   :  { %2327 = vmatmul.f32.gmra.mxu0 %v2277_v3  ;;  %2868 = vmatpush.msra.mxu3 %v2536_v27  ;;  %9920 = vst [vmem:[#allocation68_spill] sm:$0xff] %v7829_v10  ;;  %v2452_v27 = vld [vmem:[%s9759_s7 + $0x130] sm:$0xff]  ;;  %v2451_v10 = vld [vmem:[%s9759_s7 + $0x128] sm:$0xff] }
 0x3f5   :  { %2738 = vmatpush.msra.mxu1 %v2535_v59  ;;  %2676 = vmatpush.msra.mxu0 %v2459_v32  ;;  %v2278_v59 = vld [vmem:[#allocation2 + $0x50] sm:$0xff] }
 0x3f6   :  { %2807 = vmatpush.msra.mxu2 %v2456_v43  ;;  %2869 = vmatpush.msra.mxu3 %v2532_v40  ;;  %v2528_v32 = vld [vmem:[%s9759_s7 + $0x390] sm:$0xff] }
 0x3f7   :  { %v7831_v1 = vpop.f32.mrf.mxu1  ;;  %2739 = vmatpush.msra.mxu1 %v2531_v48  ;;  %2677 = vmatpush.msra.mxu0 %v2455_v14  ;;  %v2448_v48 = vld [vmem:[%s9759_s7 + $0x110] sm:$0xff]  ;;  %v2447_v14 = vld [vmem:[%s9759_s7 + $0x108] sm:$0xff] }
 0x3f8   :  { %9921 = vst [vmem:[#allocation69_spill] sm:$0xff] %v7831_v1  ;;  %2808 = vmatpush.msra.mxu2 %v2452_v27  ;;  %v2527_v1 = vld [vmem:[%s9759_s7 + $0x388] sm:$0xff]  ;;  %2870 = vmatpush.msra.mxu3 %v2528_v32  ;;  %v2524_v40 = vld [vmem:[%s9759_s7 + $0x370] sm:$0xff]  ;;  %v7862_v27 = vpop.f32.mrf.mxu2 }
 0x3f9   :  { %v7845_v43 = vpop.f32.mrf.mxu0  ;;  %9923 = vst [vmem:[#allocation71_spill] sm:$0xff] %v7862_v27  ;;  %2678 = vmatpush.msra.mxu0 %v2451_v10  ;;  %2740 = vmatpush.msra.mxu1 %v2527_v1  ;;  %v2520_v32 = vld [vmem:[%s9759_s7 + $0x350] sm:$0xff]  ;;  %v2443_v10 = vld [vmem:[%s9759_s7 + $0xe8] sm:$0xff] }
 0x3fa   :  { %9922 = vst [vmem:[#allocation70_spill] sm:$0xff] %v7845_v43  ;;  %2392 = vmatmul.f32.gmra.mxu1 %v2277_v3  ;;  %v2523_v43 = vld [vmem:[%s9759_s7 + $0x368] sm:$0xff]  ;;  %v2444_v3 = vld [vmem:[%s9759_s7 + $0xf0] sm:$0xff]  ;;  %2809 = vmatpush.msra.mxu2 %v2448_v48 }
 0x3fb   :  { %2871 = vmatpush.msra.mxu3 %v2524_v40  ;;  %2679 = vmatpush.msra.mxu0 %v2447_v14  ;;  %v2519_v1 = vld [vmem:[%s9759_s7 + $0x348] sm:$0xff]  ;;  %v2440_v27 = vld [vmem:[%s9759_s7 + $0xd0] sm:$0xff] }
 0x3fc   :  { %2330 = vmatmul.f32.gmra.mxu0 %v2278_v59  ;;  %2741 = vmatpush.msra.mxu1 %v2523_v43  ;;  %v2516_v48 = vld [vmem:[%s9759_s7 + $0x330] sm:$0xff]  ;;  %v2439_v14 = vld [vmem:[%s9759_s7 + $0xc8] sm:$0xff] }
 0x3fd   :  { %2810 = vmatpush.msra.mxu2 %v2444_v3  ;;  %2872 = vmatpush.msra.mxu3 %v2520_v32  ;;  %v2515_v43 = vld [vmem:[%s9759_s7 + $0x328] sm:$0xff]  ;;  %v2512_v3 = vld [vmem:[%s9759_s7 + $0x310] sm:$0xff]  ;;  %v7899_v32 = vpop.f32.mrf.mxu3 }
 0x3fe   :  { %2680 = vmatpush.msra.mxu0 %v2443_v10  ;;  %2742 = vmatpush.msra.mxu1 %v2519_v1  ;;  %9925 = vst [vmem:[#allocation73_spill] sm:$0xff] %v7899_v32  ;;  %v2432_v1 = vld [vmem:[%s9759_s7 + $0x90] sm:$0xff]  ;;  %v2427_v32 = vld [vmem:[%s9759_s7 + $0x68] sm:$0xff] }
 0x3ff   :  { %v7885_v40 = vpop.f32.mrf.mxu1  ;;  %2811 = vmatpush.msra.mxu2 %v2440_v27  ;;  %2873 = vmatpush.msra.mxu3 %v2516_v48  ;;  %v2435_v27 = vld [vmem:[%s9759_s7 + $0xa8] sm:$0xff]  ;;  %v2508_v48 = vld [vmem:[%s9759_s7 + $0x2f0] sm:$0xff] }
 0x400   :  { %9924 = vst [vmem:[#allocation72_spill] sm:$0xff] %v7885_v40  ;;  %v2279_v40 = vld [vmem:[#allocation2 + $0x58] sm:$0xff]  ;;  %2681 = vmatpush.msra.mxu0 %v2439_v14  ;;  %2743 = vmatpush.msra.mxu1 %v2515_v43  ;;  %v2428_v14 = vld [vmem:[%s9759_s7 + $0x70] sm:$0xff]  ;;  %v7924_v43 = vpop.f32.mrf.mxu2 }
 0x401   :  { %v7901_v10 = vpop.f32.mrf.mxu0  ;;  %2812 = vmatpush.msra.mxu2 %v2436_v44  ;;  %2874 = vmatpush.msra.mxu3 %v2512_v3  ;;  %v2431_v44 = vld [vmem:[%s9759_s7 + $0x88] sm:$0xff]  ;;  %9927 = vst [vmem:[#allocation75_spill] sm:$0xff] %v7924_v43  ;;  %v2504_v3 = vld [vmem:[%s9759_s7 + $0x2d0] sm:$0xff] }
 0x402   :  { %9926 = vst [vmem:[#allocation74_spill] sm:$0xff] %v7901_v10  ;;  %2395 = vmatmul.f32.gmra.mxu1 %v2278_v59  ;;  %v2507_v59 = vld [vmem:[%s9759_s7 + $0x2e8] sm:$0xff]  ;;  %2682 = vmatpush.msra.mxu0 %v2435_v27 }
 0x403   :  { %2813 = vmatpush.msra.mxu2 %v2432_v1  ;;  %2744 = vmatpush.msra.mxu1 %v2511_v19  ;;  %v2424_v1 = vld [vmem:[%s9759_s7 + $0x50] sm:$0xff]  ;;  %v2503_v43 = vld [vmem:[%s9759_s7 + $0x2c8] sm:$0xff] }
 0x404   :  { %2333 = vmatmul.f32.gmra.mxu0 %v2279_v40  ;;  %2875 = vmatpush.msra.mxu3 %v2508_v48  ;;  %v2500_v19 = vld [vmem:[%s9759_s7 + $0x2b0] sm:$0xff]  ;;  %v2423_v48 = vld [vmem:[%s9759_s7 + $0x48] sm:$0xff] }
 0x405   :  { %2814 = vmatpush.msra.mxu2 %v2428_v14  ;;  %2683 = vmatpush.msra.mxu0 %v2431_v44  ;;  %v2499_v14 = vld [vmem:[%s9759_s7 + $0x2a8] sm:$0xff]  ;;  %v2420_v44 = vld [vmem:[%s9759_s7 + $0x30] sm:$0xff] }
 0x406   :  { %2745 = vmatpush.msra.mxu1 %v2507_v59  ;;  %2876 = vmatpush.msra.mxu3 %v2504_v3  ;;  %v2496_v59 = vld [vmem:[%s9759_s7 + $0x290] sm:$0xff]  ;;  %v2419_v3 = vld [vmem:[%s9759_s7 + $0x28] sm:$0xff] }
 0x407   :  { %v7938_v27 = vpop.f32.mrf.mxu1  ;;  %2815 = vmatpush.msra.mxu2 %v2424_v1  ;;  %2684 = vmatpush.msra.mxu0 %v2427_v32  ;;  %v7960_v1 = vpop.f32.mrf.mxu3  ;;  %v2495_v32 = vld [vmem:[%s9759_s7 + $0x288] sm:$0xff] }
 0x408   :  { %9928 = vst [vmem:[#allocation76_spill] sm:$0xff] %v7938_v27  ;;  %2746 = vmatpush.msra.mxu1 %v2503_v43  ;;  %2877 = vmatpush.msra.mxu3 %v2500_v19  ;;  %v2492_v43 = vld [vmem:[%s9759_s7 + $0x270] sm:$0xff]  ;;  %v2415_v19 = vld [vmem:[%s9759_s7 + $0x8] sm:$0xff]  ;;  %v2283_v27 = vld [vmem:[#allocation2 + $0x78] sm:$0xff] }
 0x409   :  { %v7949_v10 = vpop.f32.mrf.mxu0  ;;  %9930 = vst [vmem:[#allocation78_spill] sm:$0xff] %v7960_v1  ;;  %2685 = vmatpush.msra.mxu0 %v2423_v48  ;;  %2816 = vmatpush.msra.mxu2 %v2420_v44  ;;  %v2491_v48 = vld [vmem:[%s9759_s7 + $0x268] sm:$0xff]  ;;  %v7980_v44 = vpop.f32.mrf.mxu2 }
 0x40a   :  { %9929 = vst [vmem:[#allocation77_spill] sm:$0xff] %v7949_v10  ;;  %2398 = vmatmul.f32.gmra.mxu1 %v2279_v40  ;;  %v2416_v40 = vld [vmem:[%s9759_s7 + $0x10] sm:$0xff]  ;;  %2878 = vmatpush.msra.mxu3 %v2496_v59  ;;  %v2487_v59 = vld [vmem:[%s9759_s7 + $0x248] sm:$0xff] }
 0x40b   :  { %2747 = vmatpush.msra.mxu1 %v2499_v14  ;;  %2686 = vmatpush.msra.mxu0 %v2419_v3  ;;  %v2488_v14 = vld [vmem:[%s9759_s7 + $0x250] sm:$0xff]  ;;  %9931 = vst [vmem:[#allocation79_spill] sm:$0xff] %v7980_v44  ;;  %v2483_v44 = vld [vmem:[%s9759_s7 + $0x228] sm:$0xff] }
 0x40c   :  { %2336 = vmatmul.f32.gmra.mxu0 %v2280_v12  ;;  %2817 = vmatpush.msra.mxu2 %v2416_v40  ;;  %v2484_v3 = vld [vmem:[%s9759_s7 + $0x230] sm:$0xff]  ;;  %v2281_v40 = vld [vmem:[#allocation2 + $0x68] sm:$0xff] }
 0x40d   :  { %2748 = vmatpush.msra.mxu1 %v2495_v32  ;;  %2879 = vmatpush.msra.mxu3 %v2492_v43  ;;  %v2480_v43 = vld [vmem:[%s9759_s7 + $0x210] sm:$0xff] }
 0x40e   :  { %2687 = vmatpush.msra.mxu0 %v2415_v19  ;;  %v2479_v19 = vld [vmem:[%s9759_s7 + $0x208] sm:$0xff] }
 0x40f   :  { %v7982_v1 = vpop.f32.mrf.mxu1  ;;  %2749 = vmatpush.msra.mxu1 %v2491_v48  ;;  %2880 = vmatpush.msra.mxu3 %v2488_v14  ;;  %v8001_v48 = vpop.f32.mrf.mxu3 }
 0x410   :  { %9932 = vst [vmem:[#allocation80_spill] sm:$0xff] %v7982_v1  ;;  %v2282_v1 = vld [vmem:[#allocation2 + $0x70] sm:$0xff] }
 0x411   :  { %v7990_v32 = vpop.f32.mrf.mxu0  ;;  %2750 = vmatpush.msra.mxu1 %v2487_v59  ;;  %2881 = vmatpush.msra.mxu3 %v2484_v3  ;;  %9934 = vst [vmem:[#allocation82_spill] sm:$0xff] %v8001_v48  ;;  %v8005_v14 = vpop.f32.mrf.mxu2 }
 0x412   :  { %9933 = vst [vmem:[#allocation81_spill] sm:$0xff] %v7990_v32  ;;  %2401 = vmatmul.f32.gmra.mxu1 %v2280_v12 }
 0x413   :  { %2751 = vmatpush.msra.mxu1 %v2483_v44  ;;  %2882 = vmatpush.msra.mxu3 %v2480_v43  ;;  %9936 = vst [vmem:[#allocation84_spill] sm:$0xff] %v8005_v14 }
 0x414   :  { %2339 = vmatmul.f32.gmra.mxu0 %v2281_v40 }
 0x415   :  { %2752 = vmatpush.msra.mxu1 %v2479_v19 }
 0x417   :  { %v8003_v12 = vpop.f32.mrf.mxu1  ;;  %v8009_v59 = vpop.f32.mrf.mxu3 }
 0x418   :  { %9935 = vst [vmem:[#allocation83_spill] sm:$0xff] %v8003_v12  ;;  %v2485_v12 = vld [vmem:[%s9759_s7 + $0x238] sm:$0xff] }
 0x419   :  { %v8007_v32 = vpop.f32.mrf.mxu0  ;;  %9938 = vst [vmem:[#allocation86_spill] sm:$0xff] %v8009_v59  ;;  %v8015_v44 = vpop.f32.mrf.mxu2  ;;  %v2541_v59 = vld [vmem:[%s9759_s7 + $0x3f8] sm:$0xff] }
 0x41a   :  { %9937 = vst [vmem:[#allocation85_spill] sm:$0xff] %v8007_v32  ;;  %2404 = vmatmul.f32.gmra.mxu1 %v2281_v40 }
 0x41b   :  { %9941 = vst [vmem:[#allocation89_spill] sm:$0xff] %v8015_v44  ;;  %2997 = vmatpush.msrb.mxu1 %v2541_v59  ;;  %v2533_v59 = vld [vmem:[%s9759_s7 + $0x3b8] sm:$0xff] }
 0x41c   :  { %2342 = vmatmul.f32.gmra.mxu0 %v2282_v1  ;;  %v5226_v44 = vld [vmem:[%s9759_s7 + $0xab8] sm:$0xff] }
 0x41f   :  { %v8011_v3 = vpop.f32.mrf.mxu1  ;;  %v8019_v19 = vpop.f32.mrf.mxu3 }
 0x420   :  { %9939 = vst [vmem:[#allocation87_spill] sm:$0xff] %v8011_v3 }
 0x421   :  { %v8013_v10 = vpop.f32.mrf.mxu0  ;;  %9943 = vst [vmem:[#allocation91_spill] sm:$0xff] %v8019_v19  ;;  %v8026_v40 = vpop.f32.mrf.mxu2  ;;  %v5245_v19 = vld [vmem:[%s9759_s7 + $0xb50] sm:$0xff] }
 0x422   :  { %9940 = vst [vmem:[#allocation88_spill] sm:$0xff] %v8013_v10  ;;  %2407 = vmatmul.f32.gmra.mxu1 %v2282_v1 }
 0x423   :  { %9944 = vst [vmem:[#allocation92_spill] sm:$0xff] %v8026_v40  ;;  %v5181_v40 = vld [vmem:[%s9759_s7 + $0x950] sm:$0xff] }
 0x424   :  { %2345 = vmatmul.f32.gmra.mxu0 %v2283_v27 }
 0x427   :  { %v8017_v43 = vpop.f32.mrf.mxu1 }
 0x428   :  { %9942 = vst [vmem:[#allocation90_spill] sm:$0xff] %v8017_v43  ;;  %v2537_v43 = vld [vmem:[%s9759_s7 + $0x3d8] sm:$0xff] }
 0x429   :  { %v8021_v48 = vpop.f32.mrf.mxu0  ;;  %2998 = vmatpush.msrb.mxu1 %v2537_v43  ;;  %v2453_v43 = vld [vmem:[%s9759_s7 + $0x138] sm:$0xff] }
 0x42a   :  { %2410 = vmatmul.f32.gmra.mxu1 %v2283_v27  ;;  %2558 = vmatmul.f32.vlgmr.msrb.gmra.mxu2 %v8021_v48 }
 0x42b   :  { %3142 = vmatpush.msrb.mxu2 %v7424_v63  ;;  %v8039_v63 = vpop.f32.mrf.mxu3  ;;  %2999 = vmatpush.msrb.mxu1 %v2533_v59  ;;  %v2445_v59 = vld [vmem:[%s9759_s7 + $0xf8] sm:$0xff] }
 0x42c   :  { %2688 = vmatmul.f32.vlgmr.msra.gmra.mxu0 %v8021_v48  ;;  %9945 = vst [vmem:[#allocation93_spill] sm:$0xff] %v8039_v63 }
 0x42d   :  { %3143 = vmatpush.msrb.mxu2 %v7412_v33  ;;  %v2473_v33 = vld [vmem:[%s9759_s7 + $0x1d8] sm:$0xff] }
 0x42f   :  { %3144 = vmatpush.msrb.mxu2 %v7385_v52  ;;  %v8030_v1 = vpop.f32.mrf.mxu1 }
 0x430   :  { %2623 = vmatmul.f32.vlgmr.msrb.gmra.mxu3 %v8030_v1 }
 0x431   :  { %3145 = vmatpush.msrb.mxu2 %v7343_v9  ;;  %3207 = vmatpush.msrb.mxu3 %v7434_v0  ;;  %v8035_v27 = vpop.f32.mrf.mxu0  ;;  %v8046_v9 = vpop.f32.mrf.mxu2  ;;  %v2469_v0 = vld [vmem:[%s9759_s7 + $0x1b8] sm:$0xff] }
 0x432   :  { %2561 = vmatmul.f32.gmra.mxu2 %v8035_v27  ;;  %2753 = vmatmul.f32.vlgmr.msra.gmra.mxu1 %v8030_v1  ;;  %9946 = vst [vmem:[#allocation94_spill] sm:$0xff] %v8046_v9 }
 0x433   :  { %3146 = vmatpush.msrb.mxu2 %v7295_v16  ;;  %3208 = vmatpush.msrb.mxu3 %v7422_v28 }
 0x434   :  { %2691 = vmatmul.f32.gmra.mxu0 %v8035_v27 }
 0x435   :  { %3147 = vmatpush.msrb.mxu2 %v7247_v30  ;;  %3209 = vmatpush.msrb.mxu3 %v7407_v15 }
 0x437   :  { %3148 = vmatpush.msrb.mxu2 %v7199_v24  ;;  %3210 = vmatpush.msrb.mxu3 %v7377_v13  ;;  %v8050_v52 = vpop.f32.mrf.mxu1  ;;  %v8062_v24 = vpop.f32.mrf.mxu3 }
 0x438   :  { %2626 = vmatmul.f32.gmra.mxu3 %v8050_v52  ;;  %9947 = vst [vmem:[#allocation95_spill] sm:$0xff] %v8062_v24 }
 0x439   :  { %3149 = vmatpush.msrb.mxu2 %v7157_v11  ;;  %3211 = vmatpush.msrb.mxu3 %v7335_v35  ;;  %v8055_v16 = vpop.f32.mrf.mxu0  ;;  %v8071_v30 = vpop.f32.mrf.mxu2  ;;  %v2477_v35 = vld [vmem:[%s9759_s7 + $0x1f8] sm:$0xff] }
 0x43a   :  { %2564 = vmatmul.f32.gmra.mxu2 %v8055_v16  ;;  %2756 = vmatmul.f32.gmra.mxu1 %v8050_v52  ;;  %9948 = vst [vmem:[#allocation96_spill] sm:$0xff] %v8071_v30 }
 0x43b   :  { %3150 = vmatpush.msrb.mxu2 %v7137_v5  ;;  %3212 = vmatpush.msrb.mxu3 %v7287_v17 }
 0x43c   :  { %2694 = vmatmul.f32.gmra.mxu0 %v8055_v16 }
 0x43d   :  { %3151 = vmatpush.msrb.mxu2 %v7126_v18  ;;  %3213 = vmatpush.msrb.mxu3 %v7239_v7 }
 0x43e   :  { %2932 = vmatpush.msrb.mxu0 %v2477_v35  ;;  %v2465_v35 = vld [vmem:[%s9759_s7 + $0x198] sm:$0xff] }
 0x43f   :  { %3152 = vmatpush.msrb.mxu2 %v7115_v2  ;;  %3214 = vmatpush.msrb.mxu3 %v7191_v55  ;;  %v8068_v11 = vpop.f32.mrf.mxu1  ;;  %v8084_v2 = vpop.f32.mrf.mxu3 }
 0x440   :  { %2629 = vmatmul.f32.gmra.mxu3 %v8068_v11  ;;  %9949 = vst [vmem:[#allocation97_spill] sm:$0xff] %v8084_v2  ;;  %2933 = vmatpush.msrb.mxu0 %v2473_v33  ;;  %v2461_v33 = vld [vmem:[%s9759_s7 + $0x178] sm:$0xff] }
 0x441   :  { %3153 = vmatpush.msrb.mxu2 %v7104_v4  ;;  %3215 = vmatpush.msrb.mxu3 %v7152_v25  ;;  %v8075_v5 = vpop.f32.mrf.mxu0 }
 0x442   :  { %2567 = vmatmul.f32.gmra.mxu2 %v8075_v5  ;;  %2759 = vmatmul.f32.gmra.mxu1 %v8068_v11 }
 0x443   :  { %3154 = vmatpush.msrb.mxu2 %v7093_v21  ;;  %3216 = vmatpush.msrb.mxu3 %v7135_v22 }
 0x444   :  { %2697 = vmatmul.f32.gmra.mxu0 %v8075_v5 }
 0x445   :  { %3155 = vmatpush.msrb.mxu2 %v7082_v6  ;;  %3217 = vmatpush.msrb.mxu3 %v7124_v29  ;;  %v8097_v6 = vpop.f32.mrf.mxu2 }
 0x446   :  { %9950 = vst [vmem:[#allocation98_spill] sm:$0xff] %v8097_v6  ;;  %2934 = vmatpush.msrb.mxu0 %v2469_v0  ;;  %v2457_v0 = vld [vmem:[%s9759_s7 + $0x158] sm:$0xff] }
 0x447   :  { %3156 = vmatpush.msrb.mxu2 %v7071_v47  ;;  %3218 = vmatpush.msrb.mxu3 %v7113_v36  ;;  %v8088_v4 = vpop.f32.mrf.mxu1 }
 0x448   :  { %2632 = vmatmul.f32.gmra.mxu3 %v8088_v4  ;;  %2935 = vmatpush.msrb.mxu0 %v2465_v35  ;;  %v2529_v35 = vld [vmem:[%s9759_s7 + $0x398] sm:$0xff] }
 0x449   :  { %3157 = vmatpush.msrb.mxu2 %v7062_v60  ;;  %3219 = vmatpush.msrb.mxu3 %v7102_v26  ;;  %v8093_v21 = vpop.f32.mrf.mxu0  ;;  %v8106_v60 = vpop.f32.mrf.mxu3 }
 0x44a   :  { %2570 = vmatmul.f32.gmra.mxu2 %v8093_v21  ;;  %2762 = vmatmul.f32.gmra.mxu1 %v8088_v4  ;;  %9951 = vst [vmem:[#allocation99_spill] sm:$0xff] %v8106_v60 }
 0x44b   :  { %3220 = vmatpush.msrb.mxu3 %v7091_v62  ;;  %2936 = vmatpush.msrb.mxu0 %v2461_v33  ;;  %v2449_v33 = vld [vmem:[%s9759_s7 + $0x118] sm:$0xff] }
 0x44c   :  { %2700 = vmatmul.f32.gmra.mxu0 %v8093_v21  ;;  %3000 = vmatpush.msrb.mxu1 %v2529_v35  ;;  %v2517_v35 = vld [vmem:[%s9759_s7 + $0x338] sm:$0xff] }
 0x44d   :  { %3221 = vmatpush.msrb.mxu3 %v7080_v53  ;;  %v8113_v62 = vpop.f32.mrf.mxu2  ;;  %2937 = vmatpush.msrb.mxu0 %v2457_v0  ;;  %v2525_v0 = vld [vmem:[%s9759_s7 + $0x378] sm:$0xff] }
 0x44e   :  { %9952 = vst [vmem:[#allocation100_spill] sm:$0xff] %v8113_v62  ;;  %3001 = vmatpush.msrb.mxu1 %v2525_v0  ;;  %v2433_v0 = vld [vmem:[%s9759_s7 + $0x98] sm:$0xff] }
 0x44f   :  { %3222 = vmatpush.msrb.mxu3 %v7069_v23  ;;  %v8103_v47 = vpop.f32.mrf.mxu1  ;;  %2938 = vmatpush.msrb.mxu0 %v2453_v43  ;;  %v2441_v43 = vld [vmem:[%s9759_s7 + $0xd8] sm:$0xff] }
 0x450   :  { %2635 = vmatmul.f32.gmra.mxu3 %v8103_v47 }
 0x451   :  { %v8108_v26 = vpop.f32.mrf.mxu0  ;;  %v8122_v53 = vpop.f32.mrf.mxu3  ;;  %2939 = vmatpush.msrb.mxu0 %v2449_v33  ;;  %v2437_v33 = vld [vmem:[%s9759_s7 + $0xb8] sm:$0xff] }
 0x452   :  { %2573 = vmatmul.f32.gmra.mxu2 %v8108_v26  ;;  %2765 = vmatmul.f32.gmra.mxu1 %v8103_v47  ;;  %9953 = vst [vmem:[#allocation101_spill] sm:$0xff] %v8122_v53 }
 0x453   :  { %2940 = vmatpush.msrb.mxu0 %v2445_v59  ;;  %v2509_v59 = vld [vmem:[%s9759_s7 + $0x2f8] sm:$0xff] }
 0x454   :  { %2703 = vmatmul.f32.gmra.mxu0 %v8108_v26 }
 0x455   :  { %v8125_v29 = vpop.f32.mrf.mxu2  ;;  %2941 = vmatpush.msrb.mxu0 %v2441_v43 }
 0x456   :  { %9954 = vst [vmem:[#allocation102_spill] sm:$0xff] %v8125_v29 }
 0x457   :  { %v8115_v36 = vpop.f32.mrf.mxu1  ;;  %2942 = vmatpush.msrb.mxu0 %v2437_v33  ;;  %v2425_v33 = vld [vmem:[%s9759_s7 + $0x58] sm:$0xff] }
 0x458   :  { %2638 = vmatmul.f32.gmra.mxu3 %v8115_v36 }
 0x459   :  { %v8118_v23 = vpop.f32.mrf.mxu0  ;;  %v8135_v25 = vpop.f32.mrf.mxu3  ;;  %2943 = vmatpush.msrb.mxu0 %v2433_v0  ;;  %v2421_v0 = vld [vmem:[%s9759_s7 + $0x38] sm:$0xff] }
 0x45a   :  { %2576 = vmatmul.f32.gmra.mxu2 %v8118_v23  ;;  %2768 = vmatmul.f32.gmra.mxu1 %v8115_v36  ;;  %9955 = vst [vmem:[#allocation103_spill] sm:$0xff] %v8135_v25 }
 0x45c   :  { %2706 = vmatmul.f32.gmra.mxu0 %v8118_v23 }
 0x45d   :  { %v8140_v7 = vpop.f32.mrf.mxu2 }
 0x45e   :  { %9956 = vst [vmem:[#allocation104_spill] sm:$0xff] %v8140_v7 }
 0x45f   :  { %v8127_v18 = vpop.f32.mrf.mxu1 }
 0x460   :  { %2641 = vmatmul.f32.gmra.mxu3 %v8127_v18 }
 0x461   :  { %v8130_v22 = vpop.f32.mrf.mxu0  ;;  %v8150_v13 = vpop.f32.mrf.mxu3 }
 0x462   :  { %2579 = vmatmul.f32.gmra.mxu2 %v8130_v22  ;;  %2771 = vmatmul.f32.gmra.mxu1 %v8127_v18  ;;  %9957 = vst [vmem:[#allocation105_spill] sm:$0xff] %v8150_v13 }
 0x464   :  { %2709 = vmatmul.f32.gmra.mxu0 %v8130_v22 }
 0x465   :  { %v8171_v14 = vpop.f32.mrf.mxu2 }
 0x466   :  { %9958 = vst [vmem:[#allocation106_spill] sm:$0xff] %v8171_v14 }
 0x467   :  { %v8137_v55 = vpop.f32.mrf.mxu1 }
 0x468   :  { %2644 = vmatmul.f32.gmra.mxu3 %v8137_v55 }
 0x469   :  { %v8142_v17 = vpop.f32.mrf.mxu0  ;;  %v8189_v13 = vpop.f32.mrf.mxu3 }
 0x46a   :  { %2582 = vmatmul.f32.gmra.mxu2 %v8142_v17  ;;  %2774 = vmatmul.f32.gmra.mxu1 %v8137_v55  ;;  %9959 = vst [vmem:[#allocation107_spill] sm:$0xff] %v8189_v13  ;;  %v2521_v13 = vld [vmem:[%s9759_s7 + $0x358] sm:$0xff] }
 0x46b   :  { %3002 = vmatpush.msrb.mxu1 %v2521_v13  ;;  %v2513_v13 = vld [vmem:[%s9759_s7 + $0x318] sm:$0xff] }
 0x46c   :  { %2712 = vmatmul.f32.gmra.mxu0 %v8142_v17 }
 0x46d   :  { %v8214_v3 = vpop.f32.mrf.mxu2  ;;  %3003 = vmatpush.msrb.mxu1 %v2517_v35  ;;  %v2429_v35 = vld [vmem:[%s9759_s7 + $0x78] sm:$0xff] }
 0x46e   :  { %9960 = vst [vmem:[#allocation108_spill] sm:$0xff] %v8214_v3  ;;  %v2505_v3 = vld [vmem:[%s9759_s7 + $0x2d8] sm:$0xff]  ;;  %2944 = vmatpush.msrb.mxu0 %v2429_v35 }
 0x46f   :  { %v8152_v15 = vpop.f32.mrf.mxu1  ;;  %3004 = vmatpush.msrb.mxu1 %v2513_v13  ;;  %v2501_v13 = vld [vmem:[%s9759_s7 + $0x2b8] sm:$0xff] }
 0x470   :  { %2647 = vmatmul.f32.gmra.mxu3 %v8152_v15  ;;  %2945 = vmatpush.msrb.mxu0 %v2425_v33  ;;  %v2493_v35 = vld [vmem:[%s9759_s7 + $0x278] sm:$0xff] }
 0x471   :  { %v8158_v28 = vpop.f32.mrf.mxu0  ;;  %v8241_v43 = vpop.f32.mrf.mxu3  ;;  %3005 = vmatpush.msrb.mxu1 %v2509_v59  ;;  %v2417_v59 = vld [vmem:[%s9759_s7 + $0x18] sm:$0xff] }
 0x472   :  { %2585 = vmatmul.f32.gmra.mxu2 %v8158_v28  ;;  %2777 = vmatmul.f32.gmra.mxu1 %v8152_v15  ;;  %9961 = vst [vmem:[#allocation109_spill] sm:$0xff] %v8241_v43 }
 0x473   :  { %3006 = vmatpush.msrb.mxu1 %v2505_v3  ;;  %v2497_v3 = vld [vmem:[%s9759_s7 + $0x298] sm:$0xff]  ;;  %2946 = vmatpush.msrb.mxu0 %v2421_v0 }
 0x474   :  { %2715 = vmatmul.f32.gmra.mxu0 %v8158_v28 }
 0x475   :  { %v8250_v32 = vpop.f32.mrf.mxu2  ;;  %3007 = vmatpush.msrb.mxu1 %v2501_v13  ;;  %2947 = vmatpush.msrb.mxu0 %v2417_v59  ;;  %v2489_v13 = vld [vmem:[%s9759_s7 + $0x258] sm:$0xff] }
 0x476   :  { %9962 = vst [vmem:[#allocation110_spill] sm:$0xff] %v8250_v32  ;;  %v2481_v59 = vld [vmem:[%s9759_s7 + $0x218] sm:$0xff] }
 0x477   :  { %v8180_v10 = vpop.f32.mrf.mxu1  ;;  %3008 = vmatpush.msrb.mxu1 %v2497_v3 }
 0x478   :  { %2650 = vmatmul.f32.gmra.mxu3 %v8180_v10 }
 0x479   :  { %v8191_v14 = vpop.f32.mrf.mxu0  ;;  %v8278_v33 = vpop.f32.mrf.mxu3  ;;  %3009 = vmatpush.msrb.mxu1 %v2493_v35 }
 0x47a   :  { %2588 = vmatmul.f32.gmra.mxu2 %v8191_v14  ;;  %2780 = vmatmul.f32.gmra.mxu1 %v8180_v10  ;;  %9963 = vst [vmem:[#allocation111_spill] sm:$0xff] %v8278_v33 }
 0x47b   :  { %3010 = vmatpush.msrb.mxu1 %v2489_v13 }
 0x47c   :  { %2718 = vmatmul.f32.gmra.mxu0 %v8191_v14 }
 0x47d   :  { %v8289_v0 = vpop.f32.mrf.mxu2  ;;  %3011 = vmatpush.msrb.mxu1 %v2485_v12 }
 0x47e   :  { %9964 = vst [vmem:[#allocation112_spill] sm:$0xff] %v8289_v0 }
 0x47f   :  { %v8216_v7 = vpop.f32.mrf.mxu1  ;;  %3012 = vmatpush.msrb.mxu1 %v2481_v59 }
 0x480   :  { %2653 = vmatmul.f32.gmra.mxu3 %v8216_v7 }
 0x481   :  { %v8225_v25 = vpop.f32.mrf.mxu0  ;;  %v8299_v35 = vpop.f32.mrf.mxu3 }
 0x482   :  { %2591 = vmatmul.f32.gmra.mxu2 %v8225_v25  ;;  %2783 = vmatmul.f32.gmra.mxu1 %v8216_v7  ;;  %9965 = vst [vmem:[#allocation113_spill] sm:$0xff] %v8299_v35 }
 0x484   :  { %2721 = vmatmul.f32.gmra.mxu0 %v8225_v25 }
 0x485   :  { %v8308_v12 = vpop.f32.mrf.mxu2 }
 0x486   :  { %9966 = vst [vmem:[#allocation114_spill] sm:$0xff] %v8308_v12 }
 0x487   :  { %v8252_v29 = vpop.f32.mrf.mxu1 }
 0x488   :  { %2656 = vmatmul.f32.gmra.mxu3 %v8252_v29 }
 0x489   :  { %v8261_v43 = vpop.f32.mrf.mxu0  ;;  %v8314_v59 = vpop.f32.mrf.mxu3 }
 0x48a   :  { %2594 = vmatmul.f32.gmra.mxu2 %v8261_v43  ;;  %2786 = vmatmul.f32.gmra.mxu1 %v8252_v29  ;;  %9967 = vst [vmem:[#allocation115_spill] sm:$0xff] %v8314_v59 }
 0x48c   :  { %2724 = vmatmul.f32.gmra.mxu0 %v8261_v43 }
 0x48d   :  { %v8321_v53 = vpop.f32.mrf.mxu2 }
 0x48e   :  { %9968 = vst [vmem:[#allocation116_spill] sm:$0xff] %v8321_v53 }
 0x48f   :  { %v8283_v32 = vpop.f32.mrf.mxu1 }
 0x490   :  { %2659 = vmatmul.f32.gmra.mxu3 %v8283_v32 }
 0x491   :  { %v8291_v3 = vpop.f32.mrf.mxu0  ;;  %v8328_v59 = vpop.f32.mrf.mxu3 }
 0x492   :  { %2597 = vmatmul.f32.gmra.mxu2 %v8291_v3  ;;  %2789 = vmatmul.f32.gmra.mxu1 %v8283_v32  ;;  %9969 = vst [vmem:[#allocation117_spill] sm:$0xff] %v8328_v59 }
 0x494   :  { %2727 = vmatmul.f32.gmra.mxu0 %v8291_v3 }
 0x497   :  { %v8301_v13 = vpop.f32.mrf.mxu1 }
 0x498   :  { %2662 = vmatmul.f32.gmra.mxu3 %v8301_v13 }
 0x499   :  { %v8304_v33 = vpop.f32.mrf.mxu0 }
 0x49a   :  { %2600 = vmatmul.f32.gmra.mxu2 %v8304_v33  ;;  %2792 = vmatmul.f32.gmra.mxu1 %v8301_v13 }
 0x49c   :  { %2730 = vmatmul.f32.gmra.mxu0 %v8304_v33 }
 0x49f   :  { %v8311_v0 = vpop.f32.mrf.mxu1 }
 0x4a0   :  { %2665 = vmatmul.f32.gmra.mxu3 %v8311_v0 }
 0x4a1   :  { %v8316_v35 = vpop.f32.mrf.mxu0 }
 0x4a2   :  { %2603 = vmatmul.f32.gmra.mxu2 %v8316_v35  ;;  %2795 = vmatmul.f32.gmra.mxu1 %v8311_v0 }
 0x4a4   :  { %2733 = vmatmul.f32.gmra.mxu0 %v8316_v35 }
 0x4a7   :  { %v8323_v62 = vpop.f32.mrf.mxu1 }
 0x4a8   :  { %2668 = vmatmul.f32.gmra.mxu3 %v8323_v62 }
 0x4a9   :  { %v2689_v12 = vpop.f32.mrf.mxu0 }
 0x4aa   :  { %2798 = vmatmul.f32.gmra.mxu1 %v8323_v62  ;;  %2818 = vmatmul.f32.vlgmr.msra.gmra.mxu2 %v8021_v48 }
 0x4ac   :  { %2948 = vmatmul.f32.vlgmr.msrb.gmra.mxu0 %v8021_v48 }
 0x4ad   :  { %v2559_v60 = vpop.f32.mrf.mxu2 }
 0x4af   :  { %v2754_v6 = vpop.f32.mrf.mxu1 }
 0x4b0   :  { %v2755_v2 = vadd.f32 %v2754_v6, %v2689_v12  ;;  %2883 = vmatmul.f32.vlgmr.msra.gmra.mxu3 %v8030_v1 }
 0x4b1   :  { %v2692_v30 = vpop.f32.mrf.mxu0 }
 0x4b2   :  { %v8333_v53 = vadd.f32 %v2755_v2, %v7469_v42  ;;  %2821 = vmatmul.f32.gmra.mxu2 %v8035_v27  ;;  %3013 = vmatmul.f32.vlgmr.msrb.gmra.mxu1 %v8030_v1 }
 0x4b3   :  { %v2624_v24 = vpop.f32.mrf.mxu3 }
 0x4b4   :  { %v8337_v9 = vadd.f32 %v2624_v24, %v2559_v60  ;;  %2951 = vmatmul.f32.gmra.mxu0 %v8035_v27 }
 0x4b5   :  { %v2562_v59 = vpop.f32.mrf.mxu2 }
 0x4b7   :  { %v2757_v48 = vpop.f32.mrf.mxu1 }
 0x4b8   :  { %v2758_v63 = vadd.f32 %v2757_v48, %v2692_v30  ;;  %2886 = vmatmul.f32.gmra.mxu3 %v8050_v52 }
 0x4b9   :  { %v2695_v6 = vpop.f32.mrf.mxu0 }
 0x4ba   :  { %v8342_v12 = vadd.f32 %v2758_v63, %v7488_v46  ;;  %2824 = vmatmul.f32.gmra.mxu2 %v8055_v16  ;;  %3016 = vmatmul.f32.gmra.mxu1 %v8050_v52 }
 0x4bb   :  { %v2627_v42 = vpop.f32.mrf.mxu3 }
 0x4bc   :  { %v8346_v1 = vadd.f32 %v2627_v42, %v2562_v59  ;;  %2954 = vmatmul.f32.gmra.mxu0 %v8055_v16 }
 0x4bd   :  { %v2565_v24 = vpop.f32.mrf.mxu2 }
 0x4bf   :  { %v2760_v27 = vpop.f32.mrf.mxu1 }
 0x4c0   :  { %v2761_v2 = vadd.f32 %v2760_v27, %v2695_v6  ;;  %2889 = vmatmul.f32.gmra.mxu3 %v8068_v11 }
 0x4c1   :  { %v2698_v30 = vpop.f32.mrf.mxu0 }
 0x4c2   :  { %v8351_v60 = vadd.f32 %v2761_v2, %v7506_v58  ;;  %2827 = vmatmul.f32.gmra.mxu2 %v8075_v5  ;;  %3019 = vmatmul.f32.gmra.mxu1 %v8068_v11 }
 0x4c3   :  { %v2630_v46 = vpop.f32.mrf.mxu3 }
 0x4c4   :  { %v8355_v63 = vadd.f32 %v2630_v46, %v2565_v24  ;;  %2957 = vmatmul.f32.gmra.mxu0 %v8075_v5 }
 0x4c5   :  { %v2568_v52 = vpop.f32.mrf.mxu2 }
 0x4c7   :  { %v2763_v16 = vpop.f32.mrf.mxu1 }
 0x4c8   :  { %v2764_v59 = vadd.f32 %v2763_v16, %v2698_v30  ;;  %2892 = vmatmul.f32.gmra.mxu3 %v8088_v4 }
 0x4c9   :  { %v2701_v48 = vpop.f32.mrf.mxu0 }
 0x4ca   :  { %v8360_v6 = vadd.f32 %v2764_v59, %v7519_v37  ;;  %2830 = vmatmul.f32.gmra.mxu2 %v8093_v21  ;;  %3022 = vmatmul.f32.gmra.mxu1 %v8088_v4 }
 0x4cb   :  { %v2633_v58 = vpop.f32.mrf.mxu3 }
 0x4cc   :  { %v8364_v11 = vadd.f32 %v2633_v58, %v2568_v52  ;;  %2960 = vmatmul.f32.gmra.mxu0 %v8093_v21 }
 0x4cd   :  { %v2571_v42 = vpop.f32.mrf.mxu2 }
 0x4cf   :  { %v2766_v5 = vpop.f32.mrf.mxu1 }
 0x4d0   :  { %v2767_v24 = vadd.f32 %v2766_v5, %v2701_v48  ;;  %2895 = vmatmul.f32.gmra.mxu3 %v8103_v47 }
 0x4d1   :  { %v2704_v37 = vpop.f32.mrf.mxu0 }
 0x4d2   :  { %v8369_v27 = vadd.f32 %v2767_v24, %v7530_v54  ;;  %2833 = vmatmul.f32.gmra.mxu2 %v8108_v26  ;;  %3025 = vmatmul.f32.gmra.mxu1 %v8103_v47 }
 0x4d3   :  { %v2636_v2 = vpop.f32.mrf.mxu3 }
 0x4d4   :  { %v8373_v4 = vadd.f32 %v2636_v2, %v2571_v42  ;;  %2963 = vmatmul.f32.gmra.mxu0 %v8108_v26 }
 0x4d5   :  { %v2574_v30 = vpop.f32.mrf.mxu2 }
 0x4d7   :  { %v2769_v21 = vpop.f32.mrf.mxu1 }
 0x4d8   :  { %v2770_v46 = vadd.f32 %v2769_v21, %v2704_v37  ;;  %2898 = vmatmul.f32.gmra.mxu3 %v8115_v36 }
 0x4d9   :  { %v2707_v16 = vpop.f32.mrf.mxu0 }
 0x4da   :  { %v8378_v52 = vadd.f32 %v2770_v46, %v7541_v31  ;;  %2836 = vmatmul.f32.gmra.mxu2 %v8118_v23  ;;  %3028 = vmatmul.f32.gmra.mxu1 %v8115_v36 }
 0x4db   :  { %v2639_v54 = vpop.f32.mrf.mxu3 }
 0x4dc   :  { %v8382_v47 = vadd.f32 %v2639_v54, %v2574_v30  ;;  %2966 = vmatmul.f32.gmra.mxu0 %v8118_v23 }
 0x4dd   :  { %v2577_v59 = vpop.f32.mrf.mxu2 }
 0x4df   :  { %v2772_v26 = vpop.f32.mrf.mxu1 }
 0x4e0   :  { %v2773_v48 = vadd.f32 %v2772_v26, %v2707_v16  ;;  %2901 = vmatmul.f32.gmra.mxu3 %v8127_v18 }
 0x4e1   :  { %v2710_v23 = vpop.f32.mrf.mxu0 }
 0x4e2   :  { %v8387_v58 = vadd.f32 %v2773_v48, %v7552_v57  ;;  %2839 = vmatmul.f32.gmra.mxu2 %v8130_v22  ;;  %3031 = vmatmul.f32.gmra.mxu1 %v8127_v18  ;;  %v3126_v48 = vld [vmem:[#allocation4] sm:$0xff] }
 0x4e3   :  { %v2642_v31 = vpop.f32.mrf.mxu3 }
 0x4e4   :  { %v8391_v36 = vadd.f32 %v2642_v31, %v2577_v59  ;;  %2969 = vmatmul.f32.gmra.mxu0 %v8130_v22 }
 0x4e5   :  { %v2580_v42 = vpop.f32.mrf.mxu2 }
 0x4e7   :  { %v2775_v5 = vpop.f32.mrf.mxu1 }
 0x4e8   :  { %v2776_v24 = vadd.f32 %v2775_v5, %v2710_v23  ;;  %2904 = vmatmul.f32.gmra.mxu3 %v8137_v55 }
 0x4ea   :  { %v8396_v37 = vadd.f32 %v2776_v24, %v7563_v41  ;;  %2842 = vmatmul.f32.gmra.mxu2 %v8142_v17  ;;  %3034 = vmatmul.f32.gmra.mxu1 %v8137_v55  ;;  %v3128_v24 = vld [vmem:[#allocation4 + $0x10] sm:$0xff] }
 0x4eb   :  { %v2645_v57 = vpop.f32.mrf.mxu3 }
 0x4ec   :  { %v8400_v18 = vadd.f32 %v2645_v57, %v2580_v42  ;;  %2972 = vmatmul.f32.gmra.mxu0 %v8142_v17  ;;  %v3127_v42 = vld [vmem:[#allocation4 + $0x8] sm:$0xff] }
 0x4ed   :  { %v2583_v2 = vpop.f32.mrf.mxu2 }
 0x4f0   :  { %2907 = vmatmul.f32.gmra.mxu3 %v8152_v15 }
 0x4f2   :  { %2845 = vmatmul.f32.gmra.mxu2 %v8158_v28  ;;  %3037 = vmatmul.f32.gmra.mxu1 %v8152_v15 }
 0x4f3   :  { %v2648_v22 = vpop.f32.mrf.mxu3 }
 0x4f4   :  { %v8406_v30 = vadd.f32 %v2648_v22, %v2583_v2  ;;  %2975 = vmatmul.f32.gmra.mxu0 %v8158_v28  ;;  %v8453_v2 = vpop.f32.mrf.mxu0  ;;  %v3129_v22 = vld [vmem:[#allocation4 + $0x18] sm:$0xff] }
 0x4f5   :  { %v2586_v41 = vpop.f32.mrf.mxu2  ;;  %9980 = vst [vmem:[#allocation128_spill] sm:$0xff] %v8453_v2  ;;  %v3136_v2 = vld [vmem:[#allocation4 + $0x50] sm:$0xff] }
 0x4f6   :  { %9970 = vst [vmem:[#allocation118_spill] sm:$0xff] %v8406_v30 }
 0x4f8   :  { %2910 = vmatmul.f32.gmra.mxu3 %v8180_v10 }
 0x4fa   :  { %2848 = vmatmul.f32.gmra.mxu2 %v8191_v14  ;;  %3040 = vmatmul.f32.gmra.mxu1 %v8180_v10 }
 0x4fb   :  { %v2651_v55 = vpop.f32.mrf.mxu3 }
 0x4fc   :  { %v8412_v17 = vadd.f32 %v2651_v55, %v2586_v41  ;;  %2978 = vmatmul.f32.gmra.mxu0 %v8191_v14  ;;  %v8455_v41 = vpop.f32.mrf.mxu1 }
 0x4fd   :  { %v2589_v21 = vpop.f32.mrf.mxu2  ;;  %9981 = vst [vmem:[#allocation129_spill] sm:$0xff] %v8455_v41  ;;  %v5188_v41 = vld [vmem:[%s9759_s7 + $0x988] sm:$0xff] }
 0x4fe   :  { %9971 = vst [vmem:[#allocation119_spill] sm:$0xff] %v8412_v17 }
 0x500   :  { %2913 = vmatmul.f32.gmra.mxu3 %v8216_v7 }
 0x502   :  { %2851 = vmatmul.f32.gmra.mxu2 %v8225_v25  ;;  %3043 = vmatmul.f32.gmra.mxu1 %v8216_v7 }
 0x503   :  { %v2654_v15 = vpop.f32.mrf.mxu3 }
 0x504   :  { %v8418_v28 = vadd.f32 %v2654_v15, %v2589_v21  ;;  %2981 = vmatmul.f32.gmra.mxu0 %v8225_v25 }
 0x505   :  { %v2592_v46 = vpop.f32.mrf.mxu2 }
 0x506   :  { %9972 = vst [vmem:[#allocation120_spill] sm:$0xff] %v8418_v28 }
 0x508   :  { %2916 = vmatmul.f32.gmra.mxu3 %v8252_v29 }
 0x50a   :  { %2854 = vmatmul.f32.gmra.mxu2 %v8261_v43  ;;  %3046 = vmatmul.f32.gmra.mxu1 %v8252_v29 }
 0x50b   :  { %v2657_v10 = vpop.f32.mrf.mxu3 }
 0x50c   :  { %v8424_v14 = vadd.f32 %v2657_v10, %v2592_v46  ;;  %2984 = vmatmul.f32.gmra.mxu0 %v8261_v43  ;;  %v8459_v46 = vpop.f32.mrf.mxu0  ;;  %v3130_v10 = vld [vmem:[#allocation4 + $0x20] sm:$0xff] }
 0x50d   :  { %v2595_v54 = vpop.f32.mrf.mxu2  ;;  %9983 = vst [vmem:[#allocation131_spill] sm:$0xff] %v8459_v46 }
 0x50e   :  { %9973 = vst [vmem:[#allocation121_spill] sm:$0xff] %v8424_v14 }
 0x510   :  { %2919 = vmatmul.f32.gmra.mxu3 %v8283_v32 }
 0x512   :  { %2857 = vmatmul.f32.gmra.mxu2 %v8291_v3  ;;  %3049 = vmatmul.f32.gmra.mxu1 %v8283_v32 }
 0x513   :  { %v2660_v25 = vpop.f32.mrf.mxu3 }
 0x514   :  { %v8430_v7 = vadd.f32 %v2660_v25, %v2595_v54  ;;  %2987 = vmatmul.f32.gmra.mxu0 %v8291_v3 }
 0x515   :  { %v2598_v16 = vpop.f32.mrf.mxu2 }
 0x516   :  { %9974 = vst [vmem:[#allocation122_spill] sm:$0xff] %v8430_v7 }
 0x518   :  { %2922 = vmatmul.f32.gmra.mxu3 %v8301_v13 }
 0x51a   :  { %2860 = vmatmul.f32.gmra.mxu2 %v8304_v33  ;;  %3052 = vmatmul.f32.gmra.mxu1 %v8301_v13 }
 0x51b   :  { %v2663_v29 = vpop.f32.mrf.mxu3 }
 0x51c   :  { %v8436_v43 = vadd.f32 %v2663_v29, %v2598_v16  ;;  %2990 = vmatmul.f32.gmra.mxu0 %v8304_v33  ;;  %v8463_v16 = vpop.f32.mrf.mxu1 }
 0x51d   :  { %v2601_v59 = vpop.f32.mrf.mxu2  ;;  %9985 = vst [vmem:[#allocation133_spill] sm:$0xff] %v8463_v16  ;;  %v3141_v16 = vld [vmem:[#allocation4 + $0x78] sm:$0xff] }
 0x51e   :  { %9975 = vst [vmem:[#allocation123_spill] sm:$0xff] %v8436_v43 }
 0x520   :  { %2925 = vmatmul.f32.gmra.mxu3 %v8311_v0 }
 0x522   :  { %2863 = vmatmul.f32.gmra.mxu2 %v8316_v35  ;;  %3055 = vmatmul.f32.gmra.mxu1 %v8311_v0 }
 0x523   :  { %v2666_v32 = vpop.f32.mrf.mxu3 }
 0x524   :  { %v8442_v3 = vadd.f32 %v2666_v32, %v2601_v59  ;;  %2993 = vmatmul.f32.gmra.mxu0 %v8316_v35  ;;  %v3131_v59 = vld [vmem:[#allocation4 + $0x28] sm:$0xff]  ;;  %v8465_v32 = vpop.f32.mrf.mxu0 }
 0x525   :  { %v2604_v26 = vpop.f32.mrf.mxu2  ;;  %9986 = vst [vmem:[#allocation134_spill] sm:$0xff] %v8465_v32  ;;  %v5191_v32 = vld [vmem:[%s9759_s7 + $0x9a0] sm:$0xff] }
 0x526   :  { %9976 = vst [vmem:[#allocation124_spill] sm:$0xff] %v8442_v3 }
 0x528   :  { %2928 = vmatmul.f32.gmra.mxu3 %v8323_v62 }
 0x52a   :  { %3058 = vmatmul.f32.gmra.mxu1 %v8323_v62  ;;  %3158 = vmatmul.f32.vlgmr.msrb.gmra.mxu2 %v3126_v48 }
 0x52b   :  { %v2669_v33 = vpop.f32.mrf.mxu3 }
 0x52c   :  { %v8447_v13 = vadd.f32 %v2669_v33, %v2604_v26 }
 0x52d   :  { %v2819_v31 = vpop.f32.mrf.mxu2 }
 0x52e   :  { %9977 = vst [vmem:[#allocation125_spill] sm:$0xff] %v8447_v13 }
 0x530   :  { %3223 = vmatmul.f32.vlgmr.msrb.gmra.mxu3 %v3126_v48 }
 0x532   :  { %3161 = vmatmul.f32.gmra.mxu2 %v3127_v42 }
 0x533   :  { %v2884_v0 = vpop.f32.mrf.mxu3 }
 0x534   :  { %v8449_v23 = vadd.f32 %v2884_v0, %v2819_v31  ;;  %v8469_v31 = vpop.f32.mrf.mxu1  ;;  %v8471_v0 = vpop.f32.mrf.mxu0 }
 0x535   :  { %v2822_v5 = vpop.f32.mrf.mxu2  ;;  %9988 = vst [vmem:[#allocation136_spill] sm:$0xff] %v8469_v31 }
 0x536   :  { %9978 = vst [vmem:[#allocation126_spill] sm:$0xff] %v8449_v23 }
 0x537   :  { %9989 = vst [vmem:[#allocation137_spill] sm:$0xff] %v8471_v0 }
 0x538   :  { %3226 = vmatmul.f32.gmra.mxu3 %v3127_v42  ;;  %v3132_v42 = vld [vmem:[#allocation4 + $0x30] sm:$0xff] }
 0x53a   :  { %3164 = vmatmul.f32.gmra.mxu2 %v3128_v24 }
 0x53b   :  { %v2887_v35 = vpop.f32.mrf.mxu3 }
 0x53c   :  { %v8451_v57 = vadd.f32 %v2887_v35, %v2822_v5 }
 0x53d   :  { %v2825_v62 = vpop.f32.mrf.mxu2 }
 0x53e   :  { %9979 = vst [vmem:[#allocation127_spill] sm:$0xff] %v8451_v57  ;;  %v5210_v57 = vld [vmem:[%s9759_s7 + $0xa38] sm:$0xff] }
 0x540   :  { %3229 = vmatmul.f32.gmra.mxu3 %v3128_v24 }
 0x542   :  { %3167 = vmatmul.f32.gmra.mxu2 %v3129_v22 }
 0x543   :  { %v2890_v55 = vpop.f32.mrf.mxu3 }
 0x544   :  { %v8457_v21 = vadd.f32 %v2890_v55, %v2825_v62  ;;  %v3133_v62 = vld [vmem:[#allocation4 + $0x38] sm:$0xff] }
 0x545   :  { %v2828_v15 = vpop.f32.mrf.mxu2 }
 0x546   :  { %9982 = vst [vmem:[#allocation130_spill] sm:$0xff] %v8457_v21  ;;  %v5145_v21 = vld [vmem:[%s9759_s7 + $0x830] sm:$0xff] }
 0x548   :  { %3232 = vmatmul.f32.gmra.mxu3 %v3129_v22  ;;  %v8475_v22 = vpop.f32.mrf.mxu1 }
 0x549   :  { %9991 = vst [vmem:[#allocation139_spill] sm:$0xff] %v8475_v22  ;;  %v5160_v22 = vld [vmem:[%s9759_s7 + $0x8a8] sm:$0xff] }
 0x54a   :  { %3170 = vmatmul.f32.gmra.mxu2 %v3130_v10 }
 0x54b   :  { %v2893_v54 = vpop.f32.mrf.mxu3 }
 0x54c   :  { %v8461_v25 = vadd.f32 %v2893_v54, %v2828_v15 }
 0x54d   :  { %v2831_v29 = vpop.f32.mrf.mxu2 }
 0x54e   :  { %9984 = vst [vmem:[#allocation132_spill] sm:$0xff] %v8461_v25  ;;  %v5169_v25 = vld [vmem:[%s9759_s7 + $0x8f0] sm:$0xff] }
 0x550   :  { %3235 = vmatmul.f32.gmra.mxu3 %v3130_v10  ;;  %v8479_v10 = vpop.f32.mrf.mxu0 }
 0x551   :  { %9993 = vst [vmem:[#allocation141_spill] sm:$0xff] %v8479_v10 }
 0x552   :  { %3173 = vmatmul.f32.gmra.mxu2 %v3131_v59 }
 0x553   :  { %v2896_v26 = vpop.f32.mrf.mxu3 }
 0x554   :  { %v8467_v48 = vadd.f32 %v2896_v26, %v2831_v29  ;;  %v3134_v29 = vld [vmem:[#allocation4 + $0x40] sm:$0xff] }
 0x555   :  { %v2834_v33 = vpop.f32.mrf.mxu2 }
 0x556   :  { %9987 = vst [vmem:[#allocation135_spill] sm:$0xff] %v8467_v48 }
 0x558   :  { %3238 = vmatmul.f32.gmra.mxu3 %v3131_v59  ;;  %v8481_v59 = vpop.f32.mrf.mxu1  ;;  %v8485_v31 = vpop.f32.mrf.mxu0 }
 0x559   :  { %9994 = vst [vmem:[#allocation142_spill] sm:$0xff] %v8481_v59  ;;  %v5247_v59 = vld [vmem:[%s9759_s7 + $0xb60] sm:$0xff] }
 0x55a   :  { %3176 = vmatmul.f32.gmra.mxu2 %v3132_v42  ;;  %9996 = vst [vmem:[#allocation144_spill] sm:$0xff] %v8485_v31  ;;  %v5171_v31 = vld [vmem:[%s9759_s7 + $0x900] sm:$0xff] }
 0x55b   :  { %v2899_v5 = vpop.f32.mrf.mxu3 }
 0x55c   :  { %v8473_v24 = vadd.f32 %v2899_v5, %v2834_v33 }
 0x55d   :  { %v2837_v35 = vpop.f32.mrf.mxu2 }
 0x55e   :  { %9990 = vst [vmem:[#allocation138_spill] sm:$0xff] %v8473_v24 }
 0x560   :  { %3241 = vmatmul.f32.gmra.mxu3 %v3132_v42  ;;  %v3135_v42 = vld [vmem:[#allocation4 + $0x48] sm:$0xff] }
 0x562   :  { %3179 = vmatmul.f32.gmra.mxu2 %v3133_v62 }
 0x563   :  { %v2902_v55 = vpop.f32.mrf.mxu3 }
 0x564   :  { %v8477_v15 = vadd.f32 %v2902_v55, %v2837_v35  ;;  %v5199_v35 = vld [vmem:[%s9759_s7 + $0x9e0] sm:$0xff]  ;;  %v5200_v55 = vld [vmem:[%s9759_s7 + $0x9e8] sm:$0xff] }
 0x565   :  { %v2840_v54 = vpop.f32.mrf.mxu2  ;;  %3401 = vmatpush.msra.mxu0 %v5199_v35  ;;  %3531 = vmatpush.msra.mxu2 %v5200_v55  ;;  %v8507_v55 = vpop.f32.mrf.mxu1 }
 0x566   :  { %9992 = vst [vmem:[#allocation140_spill] sm:$0xff] %v8477_v15  ;;  %v5201_v15 = vld [vmem:[%s9759_s7 + $0x9f0] sm:$0xff] }
 0x567   :  { %9998 = vst [vmem:[#allocation146_spill] sm:$0xff] %v8507_v55  ;;  %v5176_v55 = vld [vmem:[%s9759_s7 + $0x928] sm:$0xff] }
 0x568   :  { %3244 = vmatmul.f32.gmra.mxu3 %v3133_v62  ;;  %v5195_v62 = vld [vmem:[%s9759_s7 + $0x9c0] sm:$0xff] }
 0x569   :  { %3402 = vmatpush.msra.mxu0 %v5195_v62  ;;  %v5187_v62 = vld [vmem:[%s9759_s7 + $0x980] sm:$0xff] }
 0x56a   :  { %3182 = vmatmul.f32.gmra.mxu2 %v3134_v29 }
 0x56b   :  { %v2905_v26 = vpop.f32.mrf.mxu3  ;;  %3403 = vmatpush.msra.mxu0 %v5191_v32  ;;  %v5264_v32 = vld [vmem:[%s9759_s7 + $0xbe8] sm:$0xff] }
 0x56c   :  { %v8483_v33 = vadd.f32 %v2905_v26, %v2840_v54  ;;  %v5196_v54 = vld [vmem:[%s9759_s7 + $0x9c8] sm:$0xff]  ;;  %3596 = vmatpush.msra.mxu3 %v5264_v32  ;;  %v5255_v32 = vld [vmem:[%s9759_s7 + $0xba0] sm:$0xff] }
 0x56d   :  { %v2843_v5 = vpop.f32.mrf.mxu2  ;;  %3532 = vmatpush.msra.mxu2 %v5196_v54  ;;  %v5263_v54 = vld [vmem:[%s9759_s7 + $0xbe0] sm:$0xff]  ;;  %3404 = vmatpush.msra.mxu0 %v5187_v62  ;;  %v5260_v62 = vld [vmem:[%s9759_s7 + $0xbc8] sm:$0xff] }
 0x56e   :  { %9995 = vst [vmem:[#allocation143_spill] sm:$0xff] %v8483_v33  ;;  %3466 = vmatpush.msra.mxu1 %v5263_v54  ;;  %v5179_v54 = vld [vmem:[%s9759_s7 + $0x940] sm:$0xff]  ;;  %3597 = vmatpush.msra.mxu3 %v5260_v62 }
 0x570   :  { %3247 = vmatmul.f32.gmra.mxu3 %v3134_v29  ;;  %v5192_v29 = vld [vmem:[%s9759_s7 + $0x9a8] sm:$0xff] }
 0x571   :  { %3533 = vmatpush.msra.mxu2 %v5192_v29  ;;  %v5184_v29 = vld [vmem:[%s9759_s7 + $0x968] sm:$0xff] }
 0x572   :  { %3185 = vmatmul.f32.gmra.mxu2 %v3135_v42 }
 0x573   :  { %v2908_v26 = vpop.f32.mrf.mxu3  ;;  %3534 = vmatpush.msra.mxu2 %v5188_v41  ;;  %v8533_v41 = vpop.f32.mrf.mxu0 }
 0x574   :  { %v8505_v35 = vadd.f32 %v2908_v26, %v2843_v5  ;;  %v5183_v5 = vld [vmem:[%s9759_s7 + $0x960] sm:$0xff]  ;;  %9999 = vst [vmem:[#allocation147_spill] sm:$0xff] %v8533_v41 }
 0x575   :  { %v2846_v13 = vpop.f32.mrf.mxu2  ;;  %v5259_v26 = vld [vmem:[%s9759_s7 + $0xbc0] sm:$0xff]  ;;  %3405 = vmatpush.msra.mxu0 %v5183_v5  ;;  %3535 = vmatpush.msra.mxu2 %v5184_v29  ;;  %v5256_v5 = vld [vmem:[%s9759_s7 + $0xba8] sm:$0xff] }
 0x576   :  { %9997 = vst [vmem:[#allocation145_spill] sm:$0xff] %v8505_v35  ;;  %3467 = vmatpush.msra.mxu1 %v5259_v26  ;;  %v5175_v29 = vld [vmem:[%s9759_s7 + $0x920] sm:$0xff]  ;;  %3598 = vmatpush.msra.mxu3 %v5256_v5  ;;  %v8573_v5 = vpop.f32.mrf.mxu1 }
 0x577   :  { %3406 = vmatpush.msra.mxu0 %v5179_v54  ;;  %v5251_v41 = vld [vmem:[%s9759_s7 + $0xb80] sm:$0xff]  ;;  %v5252_v54 = vld [vmem:[%s9759_s7 + $0xb88] sm:$0xff]  ;;  %10001 = vst [vmem:[#allocation149_spill] sm:$0xff] %v8573_v5 }
 0x578   :  { %3250 = vmatmul.f32.gmra.mxu3 %v3135_v42  ;;  %v5180_v42 = vld [vmem:[%s9759_s7 + $0x948] sm:$0xff]  ;;  %3468 = vmatpush.msra.mxu1 %v5255_v32  ;;  %v5159_v5 = vld [vmem:[%s9759_s7 + $0x8a0] sm:$0xff] }
 0x579   :  { %3536 = vmatpush.msra.mxu2 %v5180_v42  ;;  %3407 = vmatpush.msra.mxu0 %v5175_v29  ;;  %v5248_v42 = vld [vmem:[%s9759_s7 + $0xb68] sm:$0xff]  ;;  %v5243_v29 = vld [vmem:[%s9759_s7 + $0xb40] sm:$0xff] }
 0x57a   :  { %3188 = vmatmul.f32.gmra.mxu2 %v3136_v2  ;;  %3469 = vmatpush.msra.mxu1 %v5251_v41  ;;  %v3137_v41 = vld [vmem:[#allocation4 + $0x58] sm:$0xff] }
 0x57b   :  { %v2911_v26 = vpop.f32.mrf.mxu3  ;;  %3537 = vmatpush.msra.mxu2 %v5176_v55  ;;  %3599 = vmatpush.msra.mxu3 %v5252_v54  ;;  %v5168_v55 = vld [vmem:[%s9759_s7 + $0x8e8] sm:$0xff] }
 0x57c   :  { %v8556_v62 = vadd.f32 %v2911_v26, %v2846_v13  ;;  %v5172_v13 = vld [vmem:[%s9759_s7 + $0x908] sm:$0xff]  ;;  %3408 = vmatpush.msra.mxu0 %v5171_v31  ;;  %3470 = vmatpush.msra.mxu1 %v5247_v59  ;;  %v5167_v26 = vld [vmem:[%s9759_s7 + $0x8e0] sm:$0xff] }
 0x57d   :  { %v2849_v32 = vpop.f32.mrf.mxu2  ;;  %3538 = vmatpush.msra.mxu2 %v5172_v13  ;;  %v5244_v54 = vld [vmem:[%s9759_s7 + $0xb48] sm:$0xff]  ;;  %3600 = vmatpush.msra.mxu3 %v5248_v42  ;;  %v5163_v31 = vld [vmem:[%s9759_s7 + $0x8c0] sm:$0xff]  ;;  %v8599_v42 = vpop.f32.mrf.mxu0 }
 0x57e   :  { %10000 = vst [vmem:[#allocation148_spill] sm:$0xff] %v8556_v62  ;;  %3409 = vmatpush.msra.mxu0 %v5167_v26  ;;  %v5239_v59 = vld [vmem:[%s9759_s7 + $0xb20] sm:$0xff]  ;;  %3471 = vmatpush.msra.mxu1 %v5243_v29  ;;  %v5240_v13 = vld [vmem:[%s9759_s7 + $0xb28] sm:$0xff] }
 0x57f   :  { %10002 = vst [vmem:[#allocation150_spill] sm:$0xff] %v8599_v42  ;;  %3539 = vmatpush.msra.mxu2 %v5168_v55  ;;  %3601 = vmatpush.msra.mxu3 %v5244_v54  ;;  %v5235_v29 = vld [vmem:[%s9759_s7 + $0xb00] sm:$0xff]  ;;  %v5236_v55 = vld [vmem:[%s9759_s7 + $0xb08] sm:$0xff] }
 0x580   :  { %3253 = vmatmul.f32.gmra.mxu3 %v3136_v2  ;;  %v5164_v2 = vld [vmem:[%s9759_s7 + $0x8c8] sm:$0xff]  ;;  %3410 = vmatpush.msra.mxu0 %v5163_v31  ;;  %v5155_v42 = vld [vmem:[%s9759_s7 + $0x880] sm:$0xff] }
 0x581   :  { %3472 = vmatpush.msra.mxu1 %v5239_v59  ;;  %3540 = vmatpush.msra.mxu2 %v5164_v2  ;;  %v5156_v31 = vld [vmem:[%s9759_s7 + $0x888] sm:$0xff]  ;;  %v3138_v59 = vld [vmem:[#allocation4 + $0x60] sm:$0xff] }
 0x582   :  { %3191 = vmatmul.f32.gmra.mxu2 %v3137_v41  ;;  %3602 = vmatpush.msra.mxu3 %v5240_v13  ;;  %v5232_v2 = vld [vmem:[%s9759_s7 + $0xae8] sm:$0xff]  ;;  %v5227_v13 = vld [vmem:[%s9759_s7 + $0xac0] sm:$0xff] }
 0x583   :  { %v2914_v26 = vpop.f32.mrf.mxu3  ;;  %3411 = vmatpush.msra.mxu0 %v5159_v5  ;;  %3473 = vmatpush.msra.mxu1 %v5235_v29  ;;  %v5151_v5 = vld [vmem:[%s9759_s7 + $0x860] sm:$0xff] }
 0x584   :  { %v8607_v10 = vadd.f32 %v2914_v26, %v2849_v32  ;;  %v5231_v32 = vld [vmem:[%s9759_s7 + $0xae0] sm:$0xff]  ;;  %3541 = vmatpush.msra.mxu2 %v5160_v22  ;;  %3603 = vmatpush.msra.mxu3 %v5236_v55  ;;  %v8633_v26 = vpop.f32.mrf.mxu1  ;;  %v5152_v22 = vld [vmem:[%s9759_s7 + $0x868] sm:$0xff] }
 0x585   :  { %v2852_v54 = vpop.f32.mrf.mxu2  ;;  %3412 = vmatpush.msra.mxu0 %v5155_v42  ;;  %10004 = vst [vmem:[#allocation152_spill] sm:$0xff] %v8633_v26  ;;  %3474 = vmatpush.msra.mxu1 %v5231_v32  ;;  %v5147_v42 = vld [vmem:[%s9759_s7 + $0x840] sm:$0xff]  ;;  %v5148_v32 = vld [vmem:[%s9759_s7 + $0x848] sm:$0xff] }
 0x586   :  { %10003 = vst [vmem:[#allocation151_spill] sm:$0xff] %v8607_v10  ;;  %3542 = vmatpush.msra.mxu2 %v5156_v31  ;;  %3604 = vmatpush.msra.mxu3 %v5232_v2  ;;  %v5223_v29 = vld [vmem:[%s9759_s7 + $0xaa0] sm:$0xff]  ;;  %v5224_v31 = vld [vmem:[%s9759_s7 + $0xaa8] sm:$0xff] }
 0x587   :  { %3413 = vmatpush.msra.mxu0 %v5151_v5  ;;  %3475 = vmatpush.msra.mxu1 %v5227_v13  ;;  %v5143_v26 = vld [vmem:[%s9759_s7 + $0x820] sm:$0xff]  ;;  %v8661_v13 = vpop.f32.mrf.mxu0 }
 0x588   :  { %3256 = vmatmul.f32.gmra.mxu3 %v3137_v41  ;;  %v5228_v41 = vld [vmem:[%s9759_s7 + $0xac8] sm:$0xff]  ;;  %3543 = vmatpush.msra.mxu2 %v5152_v22  ;;  %v5219_v5 = vld [vmem:[%s9759_s7 + $0xa80] sm:$0xff]  ;;  %10006 = vst [vmem:[#allocation154_spill] sm:$0xff] %v8661_v13 }
 0x589   :  { %3605 = vmatpush.msra.mxu3 %v5228_v41  ;;  %3414 = vmatpush.msra.mxu0 %v5147_v42  ;;  %v5220_v22 = vld [vmem:[%s9759_s7 + $0xa88] sm:$0xff]  ;;  %v5139_v41 = vld [vmem:[%s9759_s7 + $0x800] sm:$0xff] }
 0x58a   :  { %3194 = vmatmul.f32.gmra.mxu2 %v3138_v59  ;;  %3476 = vmatpush.msra.mxu1 %v5223_v29  ;;  %v5215_v42 = vld [vmem:[%s9759_s7 + $0xa60] sm:$0xff]  ;;  %v5140_v29 = vld [vmem:[%s9759_s7 + $0x808] sm:$0xff] }
 0x58b   :  { %v2917_v55 = vpop.f32.mrf.mxu3  ;;  %3544 = vmatpush.msra.mxu2 %v5148_v32  ;;  %3606 = vmatpush.msra.mxu3 %v5224_v31  ;;  %v5216_v32 = vld [vmem:[%s9759_s7 + $0xa68] sm:$0xff] }
 0x58c   :  { %v8653_v2 = vadd.f32 %v2917_v55, %v2852_v54  ;;  %v5144_v54 = vld [vmem:[%s9759_s7 + $0x828] sm:$0xff]  ;;  %3415 = vmatpush.msra.mxu0 %v5143_v26  ;;  %3477 = vmatpush.msra.mxu1 %v5219_v5  ;;  %v5211_v26 = vld [vmem:[%s9759_s7 + $0xa40] sm:$0xff]  ;;  %v8687_v31 = vpop.f32.mrf.mxu1 }
 0x58d   :  { %v2855_v0 = vpop.f32.mrf.mxu2  ;;  %v3139_v55 = vld [vmem:[#allocation4 + $0x68] sm:$0xff]  ;;  %3545 = vmatpush.msra.mxu2 %v5144_v54  ;;  %3607 = vmatpush.msra.mxu3 %v5220_v22  ;;  %10007 = vst [vmem:[#allocation155_spill] sm:$0xff] %v8687_v31  ;;  %v5207_v54 = vld [vmem:[%s9759_s7 + $0xa20] sm:$0xff] }
 0x58e   :  { %10005 = vst [vmem:[#allocation153_spill] sm:$0xff] %v8653_v2  ;;  %3416 = vmatpush.msra.mxu0 %v5139_v41  ;;  %3478 = vmatpush.msra.mxu1 %v5215_v42  ;;  %v5208_v41 = vld [vmem:[%s9759_s7 + $0xa28] sm:$0xff]  ;;  %v5203_v31 = vld [vmem:[%s9759_s7 + $0xa00] sm:$0xff] }
 0x58f   :  { %3546 = vmatpush.msra.mxu2 %v5140_v29  ;;  %3608 = vmatpush.msra.mxu3 %v5216_v32  ;;  %v5204_v29 = vld [vmem:[%s9759_s7 + $0xa08] sm:$0xff]  ;;  %v8703_v32 = vpop.f32.mrf.mxu0 }
 0x590   :  { %3259 = vmatmul.f32.gmra.mxu3 %v3138_v59  ;;  %v5212_v59 = vld [vmem:[%s9759_s7 + $0xa48] sm:$0xff]  ;;  %3479 = vmatpush.msra.mxu1 %v5211_v26  ;;  %10009 = vst [vmem:[#allocation157_spill] sm:$0xff] %v8703_v32 }
 0x591   :  { %3609 = vmatpush.msra.mxu3 %v5212_v59  ;;  %3661 = vmatpush.msrb.mxu0 %v5201_v15 }
 0x592   :  { %3197 = vmatmul.f32.gmra.mxu2 %v3139_v55  ;;  %3480 = vmatpush.msra.mxu1 %v5207_v54 }
 0x593   :  { %v2920_v5 = vpop.f32.mrf.mxu3  ;;  %3610 = vmatpush.msra.mxu3 %v5208_v41 }
 0x594   :  { %v8692_v22 = vadd.f32 %v2920_v5, %v2855_v0  ;;  %v3140_v0 = vld [vmem:[#allocation4 + $0x70] sm:$0xff]  ;;  %3481 = vmatpush.msra.mxu1 %v5203_v31  ;;  %v8707_v59 = vpop.f32.mrf.mxu1 }
 0x595   :  { %v2858_v42 = vpop.f32.mrf.mxu2  ;;  %3611 = vmatpush.msra.mxu3 %v5204_v29  ;;  %10011 = vst [vmem:[#allocation159_spill] sm:$0xff] %v8707_v59 }
 0x596   :  { %10008 = vst [vmem:[#allocation156_spill] sm:$0xff] %v8692_v22 }
 0x597   :  { %v8709_v54 = vpop.f32.mrf.mxu0 }
 0x598   :  { %3262 = vmatmul.f32.gmra.mxu3 %v3139_v55  ;;  %10012 = vst [vmem:[#allocation160_spill] sm:$0xff] %v8709_v54  ;;  %v5233_v54 = vld [vmem:[%s9759_s7 + $0xaf0] sm:$0xff] }
 0x59a   :  { %3200 = vmatmul.f32.gmra.mxu2 %v3140_v0 }
 0x59b   :  { %v2923_v26 = vpop.f32.mrf.mxu3 }
 0x59c   :  { %v8705_v5 = vadd.f32 %v2923_v26, %v2858_v42  ;;  %v8713_v41 = vpop.f32.mrf.mxu1 }
 0x59d   :  { %v2861_v13 = vpop.f32.mrf.mxu2  ;;  %10014 = vst [vmem:[#allocation162_spill] sm:$0xff] %v8713_v41  ;;  %v5157_v41 = vld [vmem:[%s9759_s7 + $0x890] sm:$0xff] }
 0x59e   :  { %10010 = vst [vmem:[#allocation158_spill] sm:$0xff] %v8705_v5 }
 0x59f   :  { %v8715_v55 = vpop.f32.mrf.mxu0 }
 0x5a0   :  { %3265 = vmatmul.f32.gmra.mxu3 %v3140_v0  ;;  %10015 = vst [vmem:[#allocation163_spill] sm:$0xff] %v8715_v55  ;;  %v5262_v55 = vld [vmem:[%s9759_s7 + $0xbd8] sm:$0xff] }
 0x5a2   :  { %3203 = vmatmul.f32.gmra.mxu2 %v3141_v16 }
 0x5a3   :  { %v2926_v46 = vpop.f32.mrf.mxu3 }
 0x5a4   :  { %v8711_v3 = vadd.f32 %v2926_v46, %v2861_v13  ;;  %v8723_v0 = vpop.f32.mrf.mxu1 }
 0x5a5   :  { %v2864_v32 = vpop.f32.mrf.mxu2  ;;  %10017 = vst [vmem:[#allocation165_spill] sm:$0xff] %v8723_v0  ;;  %v5186_v0 = vld [vmem:[%s9759_s7 + $0x978] sm:$0xff] }
 0x5a6   :  { %10013 = vst [vmem:[#allocation161_spill] sm:$0xff] %v8711_v3 }
 0x5a7   :  { %v8729_v46 = vpop.f32.mrf.mxu0 }
 0x5a8   :  { %3268 = vmatmul.f32.gmra.mxu3 %v3141_v16  ;;  %10018 = vst [vmem:[#allocation166_spill] sm:$0xff] %v8729_v46  ;;  %v5194_v46 = vld [vmem:[%s9759_s7 + $0x9b8] sm:$0xff] }
 0x5ab   :  { %v2929_v31 = vpop.f32.mrf.mxu3 }
 0x5ac   :  { %v8717_v42 = vadd.f32 %v2929_v31, %v2864_v32  ;;  %v8735_v13 = vpop.f32.mrf.mxu1 }
 0x5ad   :  { %v8719_v29 = vpop.f32.mrf.mxu2  ;;  %10019 = vst [vmem:[#allocation167_spill] sm:$0xff] %v8735_v13  ;;  %v5193_v13 = vld [vmem:[%s9759_s7 + $0x9b0] sm:$0xff] }
 0x5ae   :  { %10016 = vst [vmem:[#allocation164_spill] sm:$0xff] %v8717_v42  ;;  %3417 = vmatmul.f32.vlgmr.msra.gmra.mxu0 %v8719_v29  ;;  %3547 = vmatmul.f32.vlgmr.msra.gmra.mxu2 %v8719_v29 }
 0x5af   :  { %v8745_v59 = vpop.f32.mrf.mxu0 }
 0x5b0   :  { %10020 = vst [vmem:[#allocation168_spill] sm:$0xff] %v8745_v59 }
 0x5b3   :  { %v8725_v26 = vpop.f32.mrf.mxu3 }
 0x5b4   :  { %3482 = vmatmul.f32.vlgmr.msra.gmra.mxu1 %v8725_v26  ;;  %3612 = vmatmul.f32.vlgmr.msra.gmra.mxu3 %v8725_v26  ;;  %v8751_v3 = vpop.f32.mrf.mxu1 }
 0x5b5   :  { %v8731_v16 = vpop.f32.mrf.mxu2  ;;  %10021 = vst [vmem:[#allocation169_spill] sm:$0xff] %v8751_v3  ;;  %v5197_v3 = vld [vmem:[%s9759_s7 + $0x9d0] sm:$0xff] }
 0x5b6   :  { %3420 = vmatmul.f32.gmra.mxu0 %v8731_v16  ;;  %3550 = vmatmul.f32.gmra.mxu2 %v8731_v16 }
 0x5b7   :  { %v8757_v43 = vpop.f32.mrf.mxu0  ;;  %3662 = vmatpush.msrb.mxu0 %v5197_v3  ;;  %v5265_v3 = vld [vmem:[%s9759_s7 + $0xbf0] sm:$0xff] }
 0x5b8   :  { %10022 = vst [vmem:[#allocation170_spill] sm:$0xff] %v8757_v43  ;;  %3726 = vmatpush.msrb.mxu1 %v5265_v3  ;;  %v5258_v3 = vld [vmem:[%s9759_s7 + $0xbb8] sm:$0xff] }
 0x5b9   :  { %3663 = vmatpush.msrb.mxu0 %v5193_v13  ;;  %v5185_v13 = vld [vmem:[%s9759_s7 + $0x970] sm:$0xff] }
 0x5bb   :  { %v8737_v32 = vpop.f32.mrf.mxu3 }
 0x5bc   :  { %3485 = vmatmul.f32.gmra.mxu1 %v8737_v32  ;;  %3615 = vmatmul.f32.gmra.mxu3 %v8737_v32  ;;  %v8767_v2 = vpop.f32.mrf.mxu1 }
 0x5bd   :  { %v8741_v31 = vpop.f32.mrf.mxu2  ;;  %10023 = vst [vmem:[#allocation171_spill] sm:$0xff] %v8767_v2 }
 0x5be   :  { %3423 = vmatmul.f32.gmra.mxu0 %v8741_v31  ;;  %3553 = vmatmul.f32.gmra.mxu2 %v8741_v31 }
 0x5bf   :  { %v8769_v14 = vpop.f32.mrf.mxu0 }
 0x5c0   :  { %10024 = vst [vmem:[#allocation172_spill] sm:$0xff] %v8769_v14 }
 0x5c3   :  { %v8747_v42 = vpop.f32.mrf.mxu3 }
 0x5c4   :  { %3488 = vmatmul.f32.gmra.mxu1 %v8747_v42  ;;  %3618 = vmatmul.f32.gmra.mxu3 %v8747_v42  ;;  %v8779_v62 = vpop.f32.mrf.mxu1 }
 0x5c5   :  { %v8753_v5 = vpop.f32.mrf.mxu2  ;;  %10025 = vst [vmem:[#allocation173_spill] sm:$0xff] %v8779_v62 }
 0x5c6   :  { %3426 = vmatmul.f32.gmra.mxu0 %v8753_v5  ;;  %3556 = vmatmul.f32.gmra.mxu2 %v8753_v5 }
 0x5c7   :  { %v8785_v35 = vpop.f32.mrf.mxu0 }
 0x5c8   :  { %10026 = vst [vmem:[#allocation174_spill] sm:$0xff] %v8785_v35 }
 0x5cb   :  { %v8759_v22 = vpop.f32.mrf.mxu3 }
 0x5cc   :  { %3491 = vmatmul.f32.gmra.mxu1 %v8759_v22  ;;  %3621 = vmatmul.f32.gmra.mxu3 %v8759_v22  ;;  %v8791_v14 = vpop.f32.mrf.mxu1 }
 0x5cd   :  { %v8763_v7 = vpop.f32.mrf.mxu2  ;;  %10027 = vst [vmem:[#allocation175_spill] sm:$0xff] %v8791_v14 }
 0x5ce   :  { %3429 = vmatmul.f32.gmra.mxu0 %v8763_v7  ;;  %3559 = vmatmul.f32.gmra.mxu2 %v8763_v7 }
 0x5cf   :  { %v8801_v35 = vpop.f32.mrf.mxu0 }
 0x5d0   :  { %10028 = vst [vmem:[#allocation176_spill] sm:$0xff] %v8801_v35  ;;  %v5202_v35 = vld [vmem:[%s9759_s7 + $0x9f8] sm:$0xff] }
 0x5d1   :  { %3791 = vmatpush.msrb.mxu2 %v5202_v35  ;;  %v5190_v35 = vld [vmem:[%s9759_s7 + $0x998] sm:$0xff] }
 0x5d3   :  { %v8771_v10 = vpop.f32.mrf.mxu3 }
 0x5d4   :  { %3494 = vmatmul.f32.gmra.mxu1 %v8771_v10  ;;  %3624 = vmatmul.f32.gmra.mxu3 %v8771_v10  ;;  %v8807_v14 = vpop.f32.mrf.mxu1 }
 0x5d5   :  { %v8775_v28 = vpop.f32.mrf.mxu2  ;;  %10029 = vst [vmem:[#allocation177_spill] sm:$0xff] %v8807_v14  ;;  %v5198_v14 = vld [vmem:[%s9759_s7 + $0x9d8] sm:$0xff] }
 0x5d6   :  { %3432 = vmatmul.f32.gmra.mxu0 %v8775_v28  ;;  %3562 = vmatmul.f32.gmra.mxu2 %v8775_v28 }
 0x5d7   :  { %v8825_v59 = vpop.f32.mrf.mxu0  ;;  %3792 = vmatpush.msrb.mxu2 %v5198_v14  ;;  %v5189_v14 = vld [vmem:[%s9759_s7 + $0x990] sm:$0xff] }
 0x5d8   :  { %10030 = vst [vmem:[#allocation178_spill] sm:$0xff] %v8825_v59  ;;  %v5261_v59 = vld [vmem:[%s9759_s7 + $0xbd0] sm:$0xff]  ;;  %3664 = vmatpush.msrb.mxu0 %v5189_v14  ;;  %v5182_v14 = vld [vmem:[%s9759_s7 + $0x958] sm:$0xff] }
 0x5d9   :  { %3793 = vmatpush.msrb.mxu2 %v5194_v46  ;;  %v5266_v46 = vld [vmem:[%s9759_s7 + $0xbf8] sm:$0xff]  ;;  %3727 = vmatpush.msrb.mxu1 %v5261_v59  ;;  %v5177_v59 = vld [vmem:[%s9759_s7 + $0x930] sm:$0xff] }
 0x5da   :  { %3856 = vmatpush.msrb.mxu3 %v5266_v46  ;;  %3665 = vmatpush.msrb.mxu0 %v5185_v13  ;;  %v5173_v13 = vld [vmem:[%s9759_s7 + $0x910] sm:$0xff] }
 0x5db   :  { %v8781_v17 = vpop.f32.mrf.mxu3  ;;  %3794 = vmatpush.msrb.mxu2 %v5190_v35 }
 0x5dc   :  { %3497 = vmatmul.f32.gmra.mxu1 %v8781_v17  ;;  %3627 = vmatmul.f32.gmra.mxu3 %v8781_v17  ;;  %v8859_v48 = vpop.f32.mrf.mxu1 }
 0x5dd   :  { %v8787_v30 = vpop.f32.mrf.mxu2  ;;  %10031 = vst [vmem:[#allocation179_spill] sm:$0xff] %v8859_v48  ;;  %v5257_v48 = vld [vmem:[%s9759_s7 + $0xbb0] sm:$0xff]  ;;  %3795 = vmatpush.msrb.mxu2 %v5186_v0  ;;  %3857 = vmatpush.msrb.mxu3 %v5262_v55 }
 0x5de   :  { %3435 = vmatmul.f32.gmra.mxu0 %v8787_v30  ;;  %3565 = vmatmul.f32.gmra.mxu2 %v8787_v30  ;;  %v5253_v55 = vld [vmem:[%s9759_s7 + $0xb90] sm:$0xff] }
 0x5df   :  { %v8879_v35 = vpop.f32.mrf.mxu0  ;;  %3666 = vmatpush.msrb.mxu0 %v5181_v40  ;;  %3728 = vmatpush.msrb.mxu1 %v5257_v48  ;;  %v5178_v40 = vld [vmem:[%s9759_s7 + $0x938] sm:$0xff] }
 0x5e0   :  { %10032 = vst [vmem:[#allocation180_spill] sm:$0xff] %v8879_v35  ;;  %3796 = vmatpush.msrb.mxu2 %v5182_v14  ;;  %3858 = vmatpush.msrb.mxu3 %v5258_v3  ;;  %v5254_v48 = vld [vmem:[%s9759_s7 + $0xb98] sm:$0xff]  ;;  %v5249_v14 = vld [vmem:[%s9759_s7 + $0xb70] sm:$0xff] }
 0x5e1   :  { %3667 = vmatpush.msrb.mxu0 %v5177_v59  ;;  %3729 = vmatpush.msrb.mxu1 %v5253_v55  ;;  %v5174_v3 = vld [vmem:[%s9759_s7 + $0x918] sm:$0xff] }
 0x5e2   :  { %v5250_v35 = vld [vmem:[%s9759_s7 + $0xb78] sm:$0xff]  ;;  %3797 = vmatpush.msrb.mxu2 %v5178_v40  ;;  %3859 = vmatpush.msrb.mxu3 %v5254_v48 }
 0x5e3   :  { %v8793_v33 = vpop.f32.mrf.mxu3  ;;  %3668 = vmatpush.msrb.mxu0 %v5173_v13  ;;  %3730 = vmatpush.msrb.mxu1 %v5249_v14  ;;  %v5170_v55 = vld [vmem:[%s9759_s7 + $0x8f8] sm:$0xff]  ;;  %v5241_v13 = vld [vmem:[%s9759_s7 + $0xb30] sm:$0xff] }
 0x5e4   :  { %3500 = vmatmul.f32.gmra.mxu1 %v8793_v33  ;;  %3630 = vmatmul.f32.gmra.mxu3 %v8793_v33  ;;  %v8919_v59 = vpop.f32.mrf.mxu1  ;;  %v5246_v40 = vld [vmem:[%s9759_s7 + $0xb58] sm:$0xff] }
 0x5e5   :  { %v8797_v62 = vpop.f32.mrf.mxu2  ;;  %10033 = vst [vmem:[#allocation181_spill] sm:$0xff] %v8919_v59  ;;  %3798 = vmatpush.msrb.mxu2 %v5174_v3  ;;  %3860 = vmatpush.msrb.mxu3 %v5250_v35  ;;  %v5165_v35 = vld [vmem:[%s9759_s7 + $0x8d0] sm:$0xff]  ;;  %v5238_v59 = vld [vmem:[%s9759_s7 + $0xb18] sm:$0xff] }
 0x5e6   :  { %3438 = vmatmul.f32.gmra.mxu0 %v8797_v62  ;;  %3568 = vmatmul.f32.gmra.mxu2 %v8797_v62 }
 0x5e7   :  { %3669 = vmatpush.msrb.mxu0 %v5169_v25  ;;  %3731 = vmatpush.msrb.mxu1 %v5245_v19  ;;  %v8937_v14 = vpop.f32.mrf.mxu0  ;;  %v5166_v19 = vld [vmem:[%s9759_s7 + $0x8d8] sm:$0xff] }
 0x5e8   :  { %10034 = vst [vmem:[#allocation182_spill] sm:$0xff] %v8937_v14  ;;  %3799 = vmatpush.msrb.mxu2 %v5170_v55  ;;  %3861 = vmatpush.msrb.mxu3 %v5246_v40  ;;  %v5242_v25 = vld [vmem:[%s9759_s7 + $0xb38] sm:$0xff]  ;;  %v5161_v14 = vld [vmem:[%s9759_s7 + $0x8b0] sm:$0xff] }
 0x5e9   :  { %v5237_v55 = vld [vmem:[%s9759_s7 + $0xb10] sm:$0xff]  ;;  %3670 = vmatpush.msrb.mxu0 %v5165_v35  ;;  %3732 = vmatpush.msrb.mxu1 %v5241_v13  ;;  %v5162_v40 = vld [vmem:[%s9759_s7 + $0x8b8] sm:$0xff] }
 0x5ea   :  { %3800 = vmatpush.msrb.mxu2 %v5166_v19  ;;  %3862 = vmatpush.msrb.mxu3 %v5242_v25  ;;  %v5158_v35 = vld [vmem:[%s9759_s7 + $0x898] sm:$0xff] }
 0x5eb   :  { %v8803_v2 = vpop.f32.mrf.mxu3  ;;  %3671 = vmatpush.msrb.mxu0 %v5161_v14  ;;  %3733 = vmatpush.msrb.mxu1 %v5237_v55  ;;  %v5234_v13 = vld [vmem:[%s9759_s7 + $0xaf8] sm:$0xff]  ;;  %v5229_v14 = vld [vmem:[%s9759_s7 + $0xad0] sm:$0xff] }
 0x5ec   :  { %3503 = vmatmul.f32.gmra.mxu1 %v8803_v2  ;;  %3633 = vmatmul.f32.gmra.mxu3 %v8803_v2  ;;  %v8973_v19 = vpop.f32.mrf.mxu1 }
 0x5ed   :  { %v8809_v43 = vpop.f32.mrf.mxu2  ;;  %3801 = vmatpush.msrb.mxu2 %v5162_v40  ;;  %3863 = vmatpush.msrb.mxu3 %v5238_v59  ;;  %10035 = vst [vmem:[#allocation183_spill] sm:$0xff] %v8973_v19  ;;  %v5153_v59 = vld [vmem:[%s9759_s7 + $0x870] sm:$0xff]  ;;  %v5150_v19 = vld [vmem:[%s9759_s7 + $0x858] sm:$0xff] }
 0x5ee   :  { %3441 = vmatmul.f32.gmra.mxu0 %v8809_v43  ;;  %3571 = vmatmul.f32.gmra.mxu2 %v8809_v43  ;;  %v5149_v40 = vld [vmem:[%s9759_s7 + $0x850] sm:$0xff] }
 0x5ef   :  { %3672 = vmatpush.msrb.mxu0 %v5157_v41  ;;  %3734 = vmatpush.msrb.mxu1 %v5233_v54  ;;  %v5154_v54 = vld [vmem:[%s9759_s7 + $0x878] sm:$0xff] }
 0x5f0   :  { %3802 = vmatpush.msrb.mxu2 %v5158_v35  ;;  %3864 = vmatpush.msrb.mxu3 %v5234_v13  ;;  %v5230_v41 = vld [vmem:[%s9759_s7 + $0xad8] sm:$0xff]  ;;  %v5225_v35 = vld [vmem:[%s9759_s7 + $0xab0] sm:$0xff]  ;;  %v9001_v13 = vpop.f32.mrf.mxu0 }
 0x5f1   :  { %10036 = vst [vmem:[#allocation184_spill] sm:$0xff] %v9001_v13  ;;  %3673 = vmatpush.msrb.mxu0 %v5153_v59  ;;  %3735 = vmatpush.msrb.mxu1 %v5229_v14  ;;  %v5221_v13 = vld [vmem:[%s9759_s7 + $0xa90] sm:$0xff]  ;;  %v5146_v59 = vld [vmem:[%s9759_s7 + $0x838] sm:$0xff] }
 0x5f2   :  { %3803 = vmatpush.msrb.mxu2 %v5154_v54  ;;  %3865 = vmatpush.msrb.mxu3 %v5230_v41  ;;  %v5222_v14 = vld [vmem:[%s9759_s7 + $0xa98] sm:$0xff] }
 0x5f3   :  { %v8827_v24 = vpop.f32.mrf.mxu3  ;;  %3674 = vmatpush.msrb.mxu0 %v5149_v40  ;;  %3736 = vmatpush.msrb.mxu1 %v5225_v35  ;;  %v5218_v35 = vld [vmem:[%s9759_s7 + $0xa78] sm:$0xff] }
 0x5f4   :  { %3506 = vmatmul.f32.gmra.mxu1 %v8827_v24  ;;  %3636 = vmatmul.f32.gmra.mxu3 %v8827_v24  ;;  %v9031_v41 = vpop.f32.mrf.mxu1 }
 0x5f5   :  { %v8837_v15 = vpop.f32.mrf.mxu2  ;;  %3804 = vmatpush.msrb.mxu2 %v5150_v19  ;;  %3866 = vmatpush.msrb.mxu3 %v5226_v44  ;;  %v5141_v44 = vld [vmem:[%s9759_s7 + $0x810] sm:$0xff]  ;;  %10037 = vst [vmem:[#allocation185_spill] sm:$0xff] %v9031_v41 }
 0x5f6   :  { %3444 = vmatmul.f32.gmra.mxu0 %v8837_v15  ;;  %3574 = vmatmul.f32.gmra.mxu2 %v8837_v15  ;;  %v5217_v19 = vld [vmem:[%s9759_s7 + $0xa70] sm:$0xff] }
 0x5f7   :  { %3675 = vmatpush.msrb.mxu0 %v5145_v21  ;;  %3737 = vmatpush.msrb.mxu1 %v5221_v13  ;;  %v5142_v21 = vld [vmem:[%s9759_s7 + $0x818] sm:$0xff]  ;;  %v5213_v13 = vld [vmem:[%s9759_s7 + $0xa50] sm:$0xff] }
 0x5f8   :  { %3805 = vmatpush.msrb.mxu2 %v5146_v59  ;;  %3867 = vmatpush.msrb.mxu3 %v5222_v14  ;;  %v5214_v59 = vld [vmem:[%s9759_s7 + $0xa58] sm:$0xff]  ;;  %v5209_v14 = vld [vmem:[%s9759_s7 + $0xa30] sm:$0xff]  ;;  %v9052_v41 = vpop.f32.mrf.mxu0 }
 0x5f9   :  { %3676 = vmatpush.msrb.mxu0 %v5141_v44  ;;  %3738 = vmatpush.msrb.mxu1 %v5217_v19  ;;  %10039 = vst [vmem:[#allocation187_spill] sm:$0xff] %v9052_v41  ;;  %v5205_v44 = vld [vmem:[%s9759_s7 + $0xa10] sm:$0xff] }
 0x5fa   :  { %3806 = vmatpush.msrb.mxu2 %v5142_v21  ;;  %3868 = vmatpush.msrb.mxu3 %v5218_v35  ;;  %v5206_v21 = vld [vmem:[%s9759_s7 + $0xa18] sm:$0xff] }
 0x5fb   :  { %v8881_v46 = vpop.f32.mrf.mxu3  ;;  %3739 = vmatpush.msrb.mxu1 %v5213_v13 }
 0x5fc   :  { %3509 = vmatmul.f32.gmra.mxu1 %v8881_v46  ;;  %3639 = vmatmul.f32.gmra.mxu3 %v8881_v46  ;;  %v9071_v13 = vpop.f32.mrf.mxu1 }
 0x5fd   :  { %v8891_v0 = vpop.f32.mrf.mxu2  ;;  %3869 = vmatpush.msrb.mxu3 %v5214_v59  ;;  %3740 = vmatpush.msrb.mxu1 %v5209_v14  ;;  %10042 = vst [vmem:[#allocation190_spill] sm:$0xff] %v9071_v13 }
 0x5fe   :  { %3447 = vmatmul.f32.gmra.mxu0 %v8891_v0  ;;  %3577 = vmatmul.f32.gmra.mxu2 %v8891_v0 }
 0x5ff   :  { %3870 = vmatpush.msrb.mxu3 %v5210_v57  ;;  %3741 = vmatpush.msrb.mxu1 %v5205_v44  ;;  %v9088_v44 = vld [vmem:[%s9760_s8] sm:$0xf] }
 0x600   :  { %v9073_v59 = vpop.f32.mrf.mxu0  ;;  %10047 = vst [vmem:[#allocation195_spill] sm:$0xff] %v9088_v44 }
 0x601   :  { %3871 = vmatpush.msrb.mxu3 %v5206_v21  ;;  %10043 = vst [vmem:[#allocation191_spill] sm:$0xff] %v9073_v59  ;;  %v9091_v21 = vperm.slane %v9088_v44, 0 }
 0x603   :  { %v8927_v48 = vpop.f32.mrf.mxu3  ;;  %v1766_v23 = vadd.f32 %v7437_v38, %v9091_v21  ;;  %v1769_v38 = vadd.f32 %v7458_v20, %v9091_v21  ;;  %v1772_v20 = vadd.f32 %v7477_v45, %v9091_v21  ;;  %v1775_v45 = vadd.f32 %v7496_v39, %v9091_v21 }
 0x604   :  { %3512 = vmatmul.f32.gmra.mxu1 %v8927_v48  ;;  %3642 = vmatmul.f32.gmra.mxu3 %v8927_v48  ;;  %v9083_v57 = vpop.f32.mrf.mxu1  ;;  %v1778_v39 = vadd.f32 %v7512_v56, %v9091_v21  ;;  %v1781_v56 = vadd.f32 %v7523_v8, %v9091_v21  ;;  %v10051_v8 = vld [vmem:[#allocation29_spill] sm:$0xff] }
 0x605   :  { %v8939_v3 = vpop.f32.mrf.mxu2  ;;  %10046 = vst [vmem:[#allocation194_spill] sm:$0xff] %v9083_v57  ;;  %v1831_v57 = vadd.f32 %v7452_v49, %v1766_v23  ;;  %v1834_v23 = vadd.f32 %v7473_v34, %v1769_v38 }
 0x606   :  { %3450 = vmatmul.f32.gmra.mxu0 %v8939_v3  ;;  %3580 = vmatmul.f32.gmra.mxu2 %v8939_v3 }
 0x607   :  { %v3062_v44 = vadd.f32 %v8337_v9, %v1831_v57 }
 0x60b   :  { %v8975_v25 = vpop.f32.mrf.mxu3 }
 0x60c   :  { %3515 = vmatmul.f32.gmra.mxu1 %v8975_v25  ;;  %3645 = vmatmul.f32.gmra.mxu3 %v8975_v25 }
 0x60d   :  { %v8985_v55 = vpop.f32.mrf.mxu2 }
 0x60e   :  { %3453 = vmatmul.f32.gmra.mxu0 %v8985_v55  ;;  %3583 = vmatmul.f32.gmra.mxu2 %v8985_v55 }
 0x613   :  { %v9021_v54 = vpop.f32.mrf.mxu3 }
 0x614   :  { %3518 = vmatmul.f32.gmra.mxu1 %v9021_v54  ;;  %3648 = vmatmul.f32.gmra.mxu3 %v9021_v54 }
 0x615   :  { %v9033_v40 = vpop.f32.mrf.mxu2 }
 0x616   :  { %10038 = vst [vmem:[#allocation186_spill] sm:$0xff] %v9033_v40  ;;  %3456 = vmatmul.f32.gmra.mxu0 %v9033_v40  ;;  %3586 = vmatmul.f32.gmra.mxu2 %v9033_v40 }
 0x61b   :  { %v9060_v19 = vpop.f32.mrf.mxu3 }
 0x61c   :  { %10040 = vst [vmem:[#allocation188_spill] sm:$0xff] %v9060_v19  ;;  %3521 = vmatmul.f32.gmra.mxu1 %v9060_v19  ;;  %3651 = vmatmul.f32.gmra.mxu3 %v9060_v19 }
 0x61d   :  { %v9067_v35 = vpop.f32.mrf.mxu2 }
 0x61e   :  { %10041 = vst [vmem:[#allocation189_spill] sm:$0xff] %v9067_v35  ;;  %3459 = vmatmul.f32.gmra.mxu0 %v9067_v35  ;;  %3589 = vmatmul.f32.gmra.mxu2 %v9067_v35 }
 0x623   :  { %v9075_v14 = vpop.f32.mrf.mxu3 }
 0x624   :  { %10044 = vst [vmem:[#allocation192_spill] sm:$0xff] %v9075_v14  ;;  %3524 = vmatmul.f32.gmra.mxu1 %v9075_v14  ;;  %3654 = vmatmul.f32.gmra.mxu3 %v9075_v14 }
 0x625   :  { %v9079_v41 = vpop.f32.mrf.mxu2 }
 0x626   :  { %10045 = vst [vmem:[#allocation193_spill] sm:$0xff] %v9079_v41  ;;  %3462 = vmatmul.f32.gmra.mxu0 %v9079_v41  ;;  %3592 = vmatmul.f32.gmra.mxu2 %v9079_v41 }
 0x62b   :  { %v9093_v59 = vpop.f32.mrf.mxu3  ;;  %v3418_v13 = vpop.f32.mrf.mxu0 }
 0x62c   :  { %3527 = vmatmul.f32.gmra.mxu1 %v9093_v59  ;;  %3657 = vmatmul.f32.gmra.mxu3 %v9093_v59 }
 0x62e   :  { %3677 = vmatmul.f32.vlgmr.msrb.gmra.mxu0 %v8719_v29  ;;  %3807 = vmatmul.f32.vlgmr.msrb.gmra.mxu2 %v8719_v29 }
 0x631   :  { %v3483_v41 = vpop.f32.mrf.mxu1  ;;  %v3548_v14 = vpop.f32.mrf.mxu2 }
 0x632   :  { %v3484_v35 = vadd.f32 %v3483_v41, %v3418_v13 }
 0x633   :  { %v3421_v19 = vpop.f32.mrf.mxu0 }
 0x634   :  { %v9103_v40 = vadd.f32 %v3484_v35, %v3062_v44  ;;  %3742 = vmatmul.f32.vlgmr.msrb.gmra.mxu1 %v8725_v26  ;;  %3872 = vmatmul.f32.vlgmr.msrb.gmra.mxu3 %v8725_v26  ;;  %v3066_v35 = vadd.f32 %v8346_v1, %v1834_v23  ;;  %v1837_v1 = vadd.f32 %v7492_v61, %v1772_v20 }
 0x636   :  { %3680 = vmatmul.f32.gmra.mxu0 %v8731_v16  ;;  %3810 = vmatmul.f32.gmra.mxu2 %v8731_v16 }
 0x637   :  { %v3613_v49 = vpop.f32.mrf.mxu3 }
 0x638   :  { %v3614_v29 = vadd.f32 %v3613_v49, %v3548_v14  ;;  %v3070_v14 = vadd.f32 %v8355_v63, %v1837_v1  ;;  %v1840_v63 = vadd.f32 %v7509_v50, %v1775_v45 }
 0x639   :  { %v3486_v9 = vpop.f32.mrf.mxu1  ;;  %v3551_v41 = vpop.f32.mrf.mxu2 }
 0x63a   :  { %v9114_v13 = vadd.f32 %v3614_v29, %v8333_v53  ;;  %v3487_v57 = vadd.f32 %v3486_v9, %v3421_v19  ;;  %v3074_v9 = vadd.f32 %v8364_v11, %v1840_v63  ;;  %v1843_v11 = vadd.f32 %v7521_v51, %v1778_v39 }
 0x63b   :  { %v3424_v26 = vpop.f32.mrf.mxu0 }
 0x63c   :  { %10048 = vst [vmem:[#allocation196_spill] sm:$0xff] %v9114_v13  ;;  %v9116_v44 = vadd.f32 %v3487_v57, %v3066_v35  ;;  %3745 = vmatmul.f32.gmra.mxu1 %v8737_v32  ;;  %3875 = vmatmul.f32.gmra.mxu3 %v8737_v32  ;;  %v3078_v20 = vadd.f32 %v8373_v4, %v1843_v11  ;;  %v10050_v4 = vld [vmem:[#allocation28_spill] sm:$0xff] }
 0x63d   :  { %v10073_v13 = vld [vmem:[#allocation40_spill] sm:$0xff] }
 0x63e   :  { %3683 = vmatmul.f32.gmra.mxu0 %v8741_v31  ;;  %3813 = vmatmul.f32.gmra.mxu2 %v8741_v31 }
 0x63f   :  { %v3616_v34 = vpop.f32.mrf.mxu3 }
 0x640   :  { %v3617_v53 = vadd.f32 %v3616_v34, %v3551_v41 }
 0x641   :  { %v3489_v16 = vpop.f32.mrf.mxu1  ;;  %v3554_v19 = vpop.f32.mrf.mxu2 }
 0x642   :  { %v9127_v38 = vadd.f32 %v3617_v53, %v8342_v12  ;;  %v3490_v49 = vadd.f32 %v3489_v16, %v3424_v26 }
 0x643   :  { %v3427_v32 = vpop.f32.mrf.mxu0 }
 0x644   :  { %10049 = vst [vmem:[#allocation197_spill] sm:$0xff] %v9127_v38  ;;  %v9129_v23 = vadd.f32 %v3490_v49, %v3070_v14  ;;  %3748 = vmatmul.f32.gmra.mxu1 %v8747_v42  ;;  %3878 = vmatmul.f32.gmra.mxu3 %v8747_v42 }
 0x646   :  { %3686 = vmatmul.f32.gmra.mxu0 %v8753_v5  ;;  %3816 = vmatmul.f32.gmra.mxu2 %v8753_v5 }
 0x647   :  { %v3619_v61 = vpop.f32.mrf.mxu3 }
 0x648   :  { %v3620_v12 = vadd.f32 %v3619_v61, %v3554_v19 }
 0x649   :  { %v3492_v31 = vpop.f32.mrf.mxu1  ;;  %v3557_v29 = vpop.f32.mrf.mxu2 }
 0x64a   :  { %v9140_v41 = vadd.f32 %v3620_v12, %v8351_v60  ;;  %v3493_v35 = vadd.f32 %v3492_v31, %v3427_v32 }
 0x64b   :  { %v3430_v42 = vpop.f32.mrf.mxu0 }
 0x64c   :  { %v9142_v57 = vadd.f32 %v3493_v35, %v3074_v9  ;;  %3751 = vmatmul.f32.gmra.mxu1 %v8759_v22  ;;  %3881 = vmatmul.f32.gmra.mxu3 %v8759_v22 }
 0x64e   :  { %3689 = vmatmul.f32.gmra.mxu0 %v8763_v7  ;;  %3819 = vmatmul.f32.gmra.mxu2 %v8763_v7  ;;  %v1846_v7 = vadd.f32 %v10050_v4, %v1781_v56 }
 0x64f   :  { %v3622_v50 = vpop.f32.mrf.mxu3 }
 0x650   :  { %v3623_v60 = vadd.f32 %v3622_v50, %v3557_v29  ;;  %v3082_v14 = vadd.f32 %v8382_v47, %v1846_v7  ;;  %v10052_v47 = vld [vmem:[#allocation26_spill] sm:$0xff] }
 0x651   :  { %v3495_v5 = vpop.f32.mrf.mxu1  ;;  %v3560_v26 = vpop.f32.mrf.mxu2 }
 0x652   :  { %v9153_v34 = vadd.f32 %v3623_v60, %v8360_v6  ;;  %v3496_v1 = vadd.f32 %v3495_v5, %v3430_v42 }
 0x653   :  { %v3433_v22 = vpop.f32.mrf.mxu0 }
 0x654   :  { %v9155_v53 = vadd.f32 %v3496_v1, %v3078_v20  ;;  %3754 = vmatmul.f32.gmra.mxu1 %v8771_v10  ;;  %3884 = vmatmul.f32.gmra.mxu3 %v8771_v10 }
 0x656   :  { %3692 = vmatmul.f32.gmra.mxu0 %v8775_v28  ;;  %3822 = vmatmul.f32.gmra.mxu2 %v8775_v28  ;;  %v1784_v28 = vadd.f32 %v10051_v8, %v9091_v21  ;;  %v10063_v8 = vld [vmem:[#allocation186_spill] sm:$0xff] }
 0x657   :  { %v3625_v51 = vpop.f32.mrf.mxu3 }
 0x658   :  { %v3626_v6 = vadd.f32 %v3625_v51, %v3560_v26  ;;  %v1849_v63 = vadd.f32 %v10052_v47, %v1784_v28  ;;  %v10064_v47 = vld [vmem:[#allocation188_spill] sm:$0xff] }
 0x659   :  { %v3498_v16 = vpop.f32.mrf.mxu1  ;;  %v3563_v19 = vpop.f32.mrf.mxu2 }
 0x65a   :  { %v9166_v49 = vadd.f32 %v3626_v6, %v8369_v27  ;;  %v3499_v32 = vadd.f32 %v3498_v16, %v3433_v22  ;;  %v3086_v29 = vadd.f32 %v8391_v36, %v1849_v63  ;;  %v10054_v36 = vld [vmem:[#allocation24_spill] sm:$0xff]  ;;  %v10065_v63 = vld [vmem:[#allocation189_spill] sm:$0xff] }
 0x65b   :  { %v3436_v10 = vpop.f32.mrf.mxu0 }
 0x65c   :  { %v9168_v45 = vadd.f32 %v3499_v32, %v3082_v14  ;;  %3757 = vmatmul.f32.gmra.mxu1 %v8781_v17  ;;  %3887 = vmatmul.f32.gmra.mxu3 %v8781_v17 }
 0x65e   :  { %3695 = vmatmul.f32.gmra.mxu0 %v8787_v30  ;;  %3825 = vmatmul.f32.gmra.mxu2 %v8787_v30  ;;  %v10053_v30 = vld [vmem:[#allocation27_spill] sm:$0xff] }
 0x65f   :  { %v3628_v61 = vpop.f32.mrf.mxu3  ;;  %v1787_v39 = vadd.f32 %v10053_v30, %v9091_v21 }
 0x660   :  { %v3629_v27 = vadd.f32 %v3628_v61, %v3563_v19 }
 0x661   :  { %v3501_v12 = vpop.f32.mrf.mxu1  ;;  %v3566_v31 = vpop.f32.mrf.mxu2  ;;  %v1852_v11 = vadd.f32 %v10054_v36, %v1787_v39 }
 0x662   :  { %v9179_v9 = vadd.f32 %v3629_v27, %v8378_v52  ;;  %v3502_v35 = vadd.f32 %v3501_v12, %v3436_v10 }
 0x663   :  { %v3439_v17 = vpop.f32.mrf.mxu0  ;;  %v3090_v26 = vadd.f32 %v8400_v18, %v1852_v11 }
 0x664   :  { %v9181_v42 = vadd.f32 %v3502_v35, %v3086_v29  ;;  %3760 = vmatmul.f32.gmra.mxu1 %v8793_v33  ;;  %3890 = vmatmul.f32.gmra.mxu3 %v8793_v33  ;;  %v10066_v29 = vld [vmem:[#allocation192_spill] sm:$0xff]  ;;  %v10067_v35 = vld [vmem:[#allocation193_spill] sm:$0xff] }
 0x666   :  { %3698 = vmatmul.f32.gmra.mxu0 %v8797_v62  ;;  %3828 = vmatmul.f32.gmra.mxu2 %v8797_v62 }
 0x667   :  { %v3631_v50 = vpop.f32.mrf.mxu3 }
 0x668   :  { %v3632_v52 = vadd.f32 %v3631_v50, %v3566_v31  ;;  %v10068_v50 = vld [vmem:[#allocation195_spill] sm:$0xff] }
 0x669   :  { %v3504_v60 = vpop.f32.mrf.mxu1  ;;  %v3569_v5 = vpop.f32.mrf.mxu2  ;;  %v9294_v36 = vperm.slane %v10068_v50, 2 }
 0x66a   :  { %v9192_v20 = vadd.f32 %v3632_v52, %v8387_v58  ;;  %v3505_v1 = vadd.f32 %v3504_v60, %v3439_v17  ;;  %v10069_v52 = vld [vmem:[#allocation38_spill] sm:$0xff] }
 0x66b   :  { %v9194_v33 = vpop.f32.mrf.mxu0  ;;  %v2026_v60 = vadd.f32 %v10069_v52, %v9294_v36  ;;  %v2029_v38 = vadd.f32 %v10073_v13, %v9294_v36  ;;  %v10075_v52 = vld [vmem:[#allocation41_spill] sm:$0xff] }
 0x66c   :  { %v9196_v22 = vadd.f32 %v3505_v1, %v3090_v26  ;;  %3763 = vmatmul.f32.gmra.mxu1 %v8803_v2  ;;  %3893 = vmatmul.f32.gmra.mxu3 %v8803_v2  ;;  %v10070_v26 = vld [vmem:[#allocation39_spill] sm:$0xff] }
 0x66d   :  { %v2091_v1 = vadd.f32 %v10070_v26, %v2026_v60 }
 0x66e   :  { %3701 = vmatmul.f32.gmra.mxu0 %v8809_v43  ;;  %3831 = vmatmul.f32.gmra.mxu2 %v8809_v43 }
 0x66f   :  { %v3634_v62 = vpop.f32.mrf.mxu3 }
 0x670   :  { %v3635_v56 = vadd.f32 %v3634_v62, %v3569_v5 }
 0x671   :  { %v9202_v51 = vpop.f32.mrf.mxu1  ;;  %v9204_v18 = vpop.f32.mrf.mxu2 }
 0x672   :  { %10055 = vst [vmem:[#allocation28_spill] sm:$0xff] %v9204_v18  ;;  %v9207_v58 = vadd.f32 %v3635_v56, %v8396_v37 }
 0x673   :  { %v9209_v4 = vpop.f32.mrf.mxu0 }
 0x674   :  { %3766 = vmatmul.f32.gmra.mxu1 %v8827_v24  ;;  %3896 = vmatmul.f32.gmra.mxu3 %v8827_v24 }
 0x676   :  { %3704 = vmatmul.f32.gmra.mxu0 %v8837_v15  ;;  %3834 = vmatmul.f32.gmra.mxu2 %v8837_v15 }
 0x677   :  { %v9215_v43 = vpop.f32.mrf.mxu3 }
 0x678   :  { %10056 = vst [vmem:[#allocation29_spill] sm:$0xff] %v9215_v43 }
 0x679   :  { %v9217_v2 = vpop.f32.mrf.mxu1  ;;  %v9219_v7 = vpop.f32.mrf.mxu2 }
 0x67a   :  { %10057 = vst [vmem:[#allocation26_spill] sm:$0xff] %v9219_v7 }
 0x67b   :  { %v9221_v6 = vpop.f32.mrf.mxu0 }
 0x67c   :  { %3769 = vmatmul.f32.gmra.mxu1 %v8881_v46  ;;  %3899 = vmatmul.f32.gmra.mxu3 %v8881_v46 }
 0x67e   :  { %3707 = vmatmul.f32.gmra.mxu0 %v8891_v0  ;;  %3837 = vmatmul.f32.gmra.mxu2 %v8891_v0 }
 0x67f   :  { %v9227_v37 = vpop.f32.mrf.mxu3 }
 0x680   :  { %10058 = vst [vmem:[#allocation27_spill] sm:$0xff] %v9227_v37  ;;  %v2094_v37 = vadd.f32 %v10075_v52, %v2029_v38 }
 0x681   :  { %v9229_v24 = vpop.f32.mrf.mxu1  ;;  %v9231_v15 = vpop.f32.mrf.mxu2 }
 0x682   :  { %10059 = vst [vmem:[#allocation24_spill] sm:$0xff] %v9231_v15 }
 0x683   :  { %v9233_v16 = vpop.f32.mrf.mxu0 }
 0x684   :  { %3772 = vmatmul.f32.gmra.mxu1 %v8927_v48  ;;  %3902 = vmatmul.f32.gmra.mxu3 %v8927_v48 }
 0x686   :  { %3710 = vmatmul.f32.gmra.mxu0 %v8939_v3  ;;  %3840 = vmatmul.f32.gmra.mxu2 %v8939_v3 }
 0x687   :  { %v9239_v46 = vpop.f32.mrf.mxu3 }
 0x688   :  { %10060 = vst [vmem:[#allocation198_spill] sm:$0xff] %v9239_v46  ;;  %v10090_v46 = vld [vmem:[#allocation47_spill] sm:$0xff] }
 0x689   :  { %v9241_v19 = vpop.f32.mrf.mxu1  ;;  %v9243_v0 = vpop.f32.mrf.mxu2 }
 0x68a   :  { %10061 = vst [vmem:[#allocation199_spill] sm:$0xff] %v9243_v0  ;;  %v3994_v0 = vmax.f32 %v9140_v41, 0.0 }
 0x68b   :  { %v9245_v14 = vpop.f32.mrf.mxu0 }
 0x68c   :  { %3775 = vmatmul.f32.gmra.mxu1 %v8975_v25  ;;  %3905 = vmatmul.f32.gmra.mxu3 %v8975_v25 }
 0x68e   :  { %3713 = vmatmul.f32.gmra.mxu0 %v8985_v55  ;;  %3843 = vmatmul.f32.gmra.mxu2 %v8985_v55 }
 0x68f   :  { %v9251_v48 = vpop.f32.mrf.mxu3 }
 0x690   :  { %10062 = vst [vmem:[#allocation200_spill] sm:$0xff] %v9251_v48  ;;  %v10092_v48 = vld [vmem:[#allocation132_spill] sm:$0xff] }
 0x691   :  { %v9253_v32 = vpop.f32.mrf.mxu1  ;;  %v9255_v3 = vpop.f32.mrf.mxu2 }
 0x693   :  { %v9257_v10 = vpop.f32.mrf.mxu0 }
 0x694   :  { %3778 = vmatmul.f32.gmra.mxu1 %v9021_v54  ;;  %3908 = vmatmul.f32.gmra.mxu3 %v9021_v54 }
 0x696   :  { %3716 = vmatmul.f32.gmra.mxu0 %v10063_v8  ;;  %3846 = vmatmul.f32.gmra.mxu2 %v10063_v8  ;;  %v10072_v8 = vld [vmem:[#allocation126_spill] sm:$0xff] }
 0x697   :  { %v9263_v25 = vpop.f32.mrf.mxu3 }
 0x699   :  { %v9265_v28 = vpop.f32.mrf.mxu1  ;;  %v9267_v55 = vpop.f32.mrf.mxu2 }
 0x69b   :  { %v9269_v61 = vpop.f32.mrf.mxu0 }
 0x69c   :  { %3781 = vmatmul.f32.gmra.mxu1 %v10064_v47  ;;  %3911 = vmatmul.f32.gmra.mxu3 %v10064_v47  ;;  %v3064_v47 = vadd.f32 %v10072_v8, %v2091_v1 }
 0x69e   :  { %3719 = vmatmul.f32.gmra.mxu0 %v10065_v63  ;;  %3849 = vmatmul.f32.gmra.mxu2 %v10065_v63 }
 0x69f   :  { %v9275_v54 = vpop.f32.mrf.mxu3 }
 0x6a1   :  { %v9277_v27 = vpop.f32.mrf.mxu1  ;;  %v9279_v12 = vpop.f32.mrf.mxu2 }
 0x6a3   :  { %v9281_v31 = vpop.f32.mrf.mxu0 }
 0x6a4   :  { %3784 = vmatmul.f32.gmra.mxu1 %v10066_v29  ;;  %3914 = vmatmul.f32.gmra.mxu3 %v10066_v29 }
 0x6a6   :  { %3722 = vmatmul.f32.gmra.mxu0 %v10067_v35  ;;  %3852 = vmatmul.f32.gmra.mxu2 %v10067_v35 }
 0x6a7   :  { %v9287_v17 = vpop.f32.mrf.mxu3 }
 0x6a9   :  { %v9289_v30 = vpop.f32.mrf.mxu1  ;;  %v9291_v39 = vpop.f32.mrf.mxu2 }
 0x6ab   :  { %v3678_v11 = vpop.f32.mrf.mxu0 }
 0x6ac   :  { %3787 = vmatmul.f32.gmra.mxu1 %v9093_v59  ;;  %3917 = vmatmul.f32.gmra.mxu3 %v9093_v59  ;;  %v3985_v59 = vmax.f32 %v9103_v40, 0.0  ;;  %v3989_v40 = vmax.f32 %v9116_v44, 0.0  ;;  %v10086_v44 = vld [vmem:[#allocation160_spill] sm:$0xff] }
 0x6af   :  { %v9300_v5 = vpop.f32.mrf.mxu3 }
 0x6b1   :  { %v3743_v62 = vpop.f32.mrf.mxu1  ;;  %v9303_v56 = vpop.f32.mrf.mxu2 }
 0x6b2   :  { %10071 = vst [vmem:[#allocation186_spill] sm:$0xff] %v9303_v56  ;;  %v3744_v63 = vadd.f32 %v3743_v62, %v3678_v11  ;;  %v10078_v56 = vld [vmem:[#allocation127_spill] sm:$0xff] }
 0x6b3   :  { %v3681_v29 = vpop.f32.mrf.mxu0  ;;  %v3068_v1 = vadd.f32 %v10078_v56, %v2094_v37  ;;  %v10084_v37 = vld [vmem:[#allocation130_spill] sm:$0xff] }
 0x6b4   :  { %v3923_v35 = vadd.f32 %v3744_v63, %v3064_v47  ;;  %v10079_v47 = vld [vmem:[#allocation42_spill] sm:$0xff] }
 0x6b5   :  { %v2032_v13 = vadd.f32 %v10079_v47, %v9294_v36 }
 0x6b6   :  { %v3987_v43 = vmax.f32 %v3923_v35, 0.0 }
 0x6b7   :  { %v9309_v18 = vpop.f32.mrf.mxu3 }
 0x6b8   :  { %10074 = vst [vmem:[#allocation188_spill] sm:$0xff] %v9309_v18  ;;  %v9312_v7 = vmax.f32 %v3985_v59, %v3987_v43  ;;  %v10081_v18 = vld [vmem:[#allocation44_spill] sm:$0xff] }
 0x6b9   :  { %v3746_v60 = vpop.f32.mrf.mxu1  ;;  %v9314_v26 = vpop.f32.mrf.mxu2  ;;  %v2097_v38 = vadd.f32 %v10081_v18, %v2032_v13  ;;  %v10088_v18 = vld [vmem:[#allocation45_spill] sm:$0xff] }
 0x6ba   :  { %10076 = vst [vmem:[#allocation189_spill] sm:$0xff] %v9312_v7  ;;  %v3747_v11 = vadd.f32 %v3746_v60, %v3681_v29  ;;  %v9326_v7 = vperm.slane %v10068_v50, 3  ;;  %v2035_v13 = vadd.f32 %v10088_v18, %v9294_v36 }
 0x6bb   :  { %10077 = vst [vmem:[#allocation192_spill] sm:$0xff] %v9314_v26  ;;  %v3684_v62 = vpop.f32.mrf.mxu0  ;;  %v3072_v56 = vadd.f32 %v10084_v37, %v2097_v38 }
 0x6bc   :  { %v3927_v8 = vadd.f32 %v3747_v11, %v3068_v1  ;;  %10083 = vst [vmem:[#allocation38_spill] sm:$0xff] %v9326_v7  ;;  %v10085_v1 = vld [vmem:[#allocation89_spill] sm:$0xff]  ;;  %v2100_v38 = vadd.f32 %v10090_v46, %v2035_v13 }
 0x6bd   :  { %v2162_v11 = vadd.f32 %v10085_v1, %v9326_v7 }
 0x6be   :  { %v3991_v63 = vmax.f32 %v3927_v8, 0.0  ;;  %v10087_v8 = vld [vmem:[#allocation162_spill] sm:$0xff] }
 0x6bf   :  { %v9320_v35 = vpop.f32.mrf.mxu3  ;;  %v3021_v47 = vadd.f32 %v10087_v8, %v10086_v44  ;;  %v3076_v44 = vadd.f32 %v10092_v48, %v2100_v38  ;;  %v10093_v8 = vld [vmem:[#allocation92_spill] sm:$0xff]  ;;  %v3997_v48 = vmax.f32 %v9142_v57, 0.0  ;;  %v10099_v38 = vld [vmem:[#allocation51_spill] sm:$0xff] }
 0x6c0   :  { %10080 = vst [vmem:[#allocation193_spill] sm:$0xff] %v9320_v35  ;;  %v9323_v43 = vmax.f32 %v3989_v40, %v3991_v63  ;;  %v10089_v40 = vld [vmem:[#allocation91_spill] sm:$0xff]  ;;  %v2165_v18 = vadd.f32 %v10093_v8, %v9326_v7 }
 0x6c1   :  { %v3749_v59 = vpop.f32.mrf.mxu1  ;;  %v3814_v52 = vpop.f32.mrf.mxu2  ;;  %v2227_v63 = vadd.f32 %v10089_v40, %v2162_v11  ;;  %v10094_v40 = vld [vmem:[#allocation163_spill] sm:$0xff] }
 0x6c2   :  { %10082 = vst [vmem:[#allocation195_spill] sm:$0xff] %v9323_v43  ;;  %v3750_v29 = vadd.f32 %v3749_v59, %v3684_v62  ;;  %v3993_v43 = vmax.f32 %v9129_v23, 0.0  ;;  %v10095_v23 = vld [vmem:[#allocation165_spill] sm:$0xff] }
 0x6c3   :  { %v3687_v60 = vpop.f32.mrf.mxu0  ;;  %v3073_v62 = vadd.f32 %v3021_v47, %v2227_v63 }
 0x6c4   :  { %v3931_v35 = vadd.f32 %v3750_v29, %v3072_v56 }
 0x6c6   :  { %v3995_v50 = vmax.f32 %v3931_v35, 0.0  ;;  %v3024_v35 = vadd.f32 %v10095_v23, %v10094_v40 }
 0x6c7   :  { %v3879_v26 = vpop.f32.mrf.mxu3 }
 0x6c8   :  { %v3880_v59 = vadd.f32 %v3879_v26, %v3814_v52  ;;  %v9338_v37 = vmax.f32 %v3993_v43, %v3995_v50  ;;  %v10096_v26 = vld [vmem:[#allocation49_spill] sm:$0xff] }
 0x6c9   :  { %v3752_v1 = vpop.f32.mrf.mxu1  ;;  %v3817_v15 = vpop.f32.mrf.mxu2  ;;  %v2038_v43 = vadd.f32 %v10096_v26, %v9294_v36  ;;  %v10097_v52 = vld [vmem:[#allocation93_spill] sm:$0xff] }
 0x6ca   :  { %10091 = vst [vmem:[#allocation39_spill] sm:$0xff] %v9338_v37  ;;  %v3932_v56 = vadd.f32 %v3880_v59, %v3073_v62  ;;  %v3753_v29 = vadd.f32 %v3752_v1, %v3687_v60  ;;  %v2230_v13 = vadd.f32 %v10097_v52, %v2165_v18  ;;  %v10102_v18 = vld [vmem:[#allocation94_spill] sm:$0xff]  ;;  %v3998_v52 = vmax.f32 %v9153_v34, 0.0 }
 0x6cb   :  { %v3690_v11 = vpop.f32.mrf.mxu0  ;;  %v2103_v62 = vadd.f32 %v10099_v38, %v2038_v43  ;;  %v2168_v26 = vadd.f32 %v10102_v18, %v9326_v7 }
 0x6cc   :  { %v3996_v46 = vmax.f32 %v3932_v56, 0.0  ;;  %v3935_v47 = vadd.f32 %v3753_v29, %v3076_v44  ;;  %v3077_v59 = vadd.f32 %v3024_v35, %v2230_v13  ;;  %v10101_v44 = vld [vmem:[#allocation135_spill] sm:$0xff] }
 0x6cd   :  { %v3080_v29 = vadd.f32 %v10101_v44, %v2103_v62 }
 0x6ce   :  { %v3999_v63 = vmax.f32 %v3935_v47, 0.0  ;;  %v9350_v60 = vmax.f32 %v3994_v0, %v3996_v46  ;;  %v10103_v47 = vld [vmem:[#allocation166_spill] sm:$0xff]  ;;  %v10104_v0 = vld [vmem:[#allocation167_spill] sm:$0xff] }
 0x6cf   :  { %v3882_v50 = vpop.f32.mrf.mxu3  ;;  %v3027_v46 = vadd.f32 %v10104_v0, %v10103_v47 }
 0x6d0   :  { %10098 = vst [vmem:[#allocation126_spill] sm:$0xff] %v9350_v60  ;;  %v3883_v1 = vadd.f32 %v3882_v50, %v3817_v15  ;;  %v9353_v8 = vmax.f32 %v3997_v48, %v3999_v63  ;;  %v10105_v15 = vld [vmem:[#allocation52_spill] sm:$0xff]  ;;  %v10106_v48 = vld [vmem:[#allocation95_spill] sm:$0xff]  ;;  %v4001_v50 = vmax.f32 %v9155_v53, 0.0 }
 0x6d1   :  { %v3755_v41 = vpop.f32.mrf.mxu1  ;;  %v3820_v56 = vpop.f32.mrf.mxu2  ;;  %v2041_v13 = vadd.f32 %v10105_v15, %v9294_v36  ;;  %v2233_v63 = vadd.f32 %v10106_v48, %v2168_v26  ;;  %v10111_v26 = vld [vmem:[#allocation96_spill] sm:$0xff]  ;;  %v4002_v48 = vmax.f32 %v9166_v49, 0.0 }
 0x6d2   :  { %10100 = vst [vmem:[#allocation40_spill] sm:$0xff] %v9353_v8  ;;  %v3936_v40 = vadd.f32 %v3883_v1, %v3077_v59  ;;  %v3756_v23 = vadd.f32 %v3755_v41, %v3690_v11  ;;  %v10108_v59 = vld [vmem:[#allocation54_spill] sm:$0xff]  ;;  %v2171_v15 = vadd.f32 %v10111_v26, %v9326_v7  ;;  %v10191_v8 = vld [vmem:[#allocation68_spill] sm:$0xff] }
 0x6d3   :  { %v3693_v57 = vpop.f32.mrf.mxu0  ;;  %v2106_v1 = vadd.f32 %v10108_v59, %v2041_v13  ;;  %v3081_v41 = vadd.f32 %v3027_v46, %v2233_v63 }
 0x6d4   :  { %v4000_v43 = vmax.f32 %v3936_v40, 0.0  ;;  %v3939_v35 = vadd.f32 %v3756_v23, %v3080_v29  ;;  %v10110_v29 = vld [vmem:[#allocation138_spill] sm:$0xff] }
 0x6d5   :  { %v3084_v23 = vadd.f32 %v10110_v29, %v2106_v1 }
 0x6d6   :  { %v4003_v38 = vmax.f32 %v3939_v35, 0.0  ;;  %v9365_v11 = vmax.f32 %v3998_v52, %v4000_v43  ;;  %v10112_v35 = vld [vmem:[#allocation168_spill] sm:$0xff]  ;;  %v10113_v52 = vld [vmem:[#allocation169_spill] sm:$0xff] }
 0x6d7   :  { %v3885_v62 = vpop.f32.mrf.mxu3  ;;  %v3030_v43 = vadd.f32 %v10113_v52, %v10112_v35 }
 0x6d8   :  { %10107 = vst [vmem:[#allocation41_spill] sm:$0xff] %v9365_v11  ;;  %v3886_v44 = vadd.f32 %v3885_v62, %v3820_v56  ;;  %v9368_v18 = vmax.f32 %v4001_v50, %v4003_v38  ;;  %v10114_v56 = vld [vmem:[#allocation56_spill] sm:$0xff]  ;;  %v10115_v50 = vld [vmem:[#allocation97_spill] sm:$0xff]  ;;  %v4005_v62 = vmax.f32 %v9168_v45, 0.0 }
 0x6d9   :  { %v3758_v34 = vpop.f32.mrf.mxu1  ;;  %v3823_v40 = vpop.f32.mrf.mxu2  ;;  %v2044_v63 = vadd.f32 %v10114_v56, %v9294_v36  ;;  %v2236_v38 = vadd.f32 %v10115_v50, %v2171_v15  ;;  %v10120_v15 = vld [vmem:[#allocation98_spill] sm:$0xff]  ;;  %v4006_v50 = vmax.f32 %v9179_v9, 0.0 }
 0x6da   :  { %10109 = vst [vmem:[#allocation127_spill] sm:$0xff] %v9368_v18  ;;  %v3940_v47 = vadd.f32 %v3886_v44, %v3081_v41  ;;  %v3759_v0 = vadd.f32 %v3758_v34, %v3693_v57  ;;  %v10117_v41 = vld [vmem:[#allocation58_spill] sm:$0xff]  ;;  %v2174_v56 = vadd.f32 %v10120_v15, %v9326_v7 }
 0x6db   :  { %v3696_v53 = vpop.f32.mrf.mxu0  ;;  %v2109_v44 = vadd.f32 %v10117_v41, %v2044_v63  ;;  %v3085_v34 = vadd.f32 %v3030_v43, %v2236_v38 }
 0x6dc   :  { %v4004_v13 = vmax.f32 %v3940_v47, 0.0  ;;  %v3943_v46 = vadd.f32 %v3759_v0, %v3084_v23  ;;  %v10119_v23 = vld [vmem:[#allocation140_spill] sm:$0xff] }
 0x6dd   :  { %v3088_v0 = vadd.f32 %v10119_v23, %v2109_v44 }
 0x6de   :  { %v4007_v59 = vmax.f32 %v3943_v46, 0.0  ;;  %v9380_v57 = vmax.f32 %v4002_v48, %v4004_v13  ;;  %v10121_v46 = vld [vmem:[#allocation170_spill] sm:$0xff]  ;;  %v10122_v48 = vld [vmem:[#allocation171_spill] sm:$0xff] }
 0x6df   :  { %v3888_v1 = vpop.f32.mrf.mxu3  ;;  %v3033_v13 = vadd.f32 %v10122_v48, %v10121_v46 }
 0x6e0   :  { %10116 = vst [vmem:[#allocation42_spill] sm:$0xff] %v9380_v57  ;;  %v3889_v29 = vadd.f32 %v3888_v1, %v3823_v40  ;;  %v9383_v26 = vmax.f32 %v4005_v62, %v4007_v59  ;;  %v10123_v40 = vld [vmem:[#allocation59_spill] sm:$0xff]  ;;  %v4009_v1 = vmax.f32 %v9181_v42, 0.0  ;;  %v10130_v42 = vld [vmem:[#allocation100_spill] sm:$0xff] }
 0x6e1   :  { %v3761_v49 = vpop.f32.mrf.mxu1  ;;  %v3826_v47 = vpop.f32.mrf.mxu2  ;;  %v2047_v38 = vadd.f32 %v10123_v40, %v9294_v36  ;;  %v10124_v62 = vld [vmem:[#allocation99_spill] sm:$0xff] }
 0x6e2   :  { %10118 = vst [vmem:[#allocation44_spill] sm:$0xff] %v9383_v26  ;;  %v3944_v35 = vadd.f32 %v3889_v29, %v3085_v34  ;;  %v3762_v52 = vadd.f32 %v3761_v49, %v3696_v53  ;;  %v2239_v59 = vadd.f32 %v10124_v62, %v2174_v56  ;;  %v10126_v34 = vld [vmem:[#allocation62_spill] sm:$0xff]  ;;  %v10129_v56 = vld [vmem:[#allocation25_spill] sm:$0xff] }
 0x6e3   :  { %v3699_v45 = vpop.f32.mrf.mxu0  ;;  %v2112_v29 = vadd.f32 %v10126_v34, %v2047_v38  ;;  %v1790_v40 = vadd.f32 %v10129_v56, %v9091_v21  ;;  %v10132_v62 = vld [vmem:[#allocation173_spill] sm:$0xff] }
 0x6e4   :  { %v4008_v63 = vmax.f32 %v3944_v35, 0.0  ;;  %v3947_v43 = vadd.f32 %v3762_v52, %v3088_v0  ;;  %v3089_v49 = vadd.f32 %v3033_v13, %v2239_v59  ;;  %v10128_v0 = vld [vmem:[#allocation143_spill] sm:$0xff]  ;;  %v10137_v56 = vld [vmem:[#allocation65_spill] sm:$0xff] }
 0x6e5   :  { %v3092_v52 = vadd.f32 %v10128_v0, %v2112_v29 }
 0x6e6   :  { %v4011_v41 = vmax.f32 %v3947_v43, 0.0  ;;  %v9395_v53 = vmax.f32 %v4006_v50, %v4008_v63  ;;  %v2177_v50 = vadd.f32 %v10130_v42, %v9326_v7  ;;  %v10131_v43 = vld [vmem:[#allocation172_spill] sm:$0xff] }
 0x6e7   :  { %v3891_v44 = vpop.f32.mrf.mxu3  ;;  %v3036_v38 = vadd.f32 %v10132_v62, %v10131_v43 }
 0x6e8   :  { %10125 = vst [vmem:[#allocation130_spill] sm:$0xff] %v9395_v53  ;;  %v3892_v23 = vadd.f32 %v3891_v44, %v3826_v47  ;;  %v9398_v15 = vmax.f32 %v4009_v1, %v4011_v41  ;;  %v4010_v47 = vmax.f32 %v9192_v20, 0.0  ;;  %v10133_v1 = vld [vmem:[#allocation22_spill] sm:$0xff]  ;;  %v10134_v44 = vld [vmem:[#allocation63_spill] sm:$0xff] }
 0x6e9   :  { %v3764_v9 = vpop.f32.mrf.mxu1  ;;  %v3829_v35 = vpop.f32.mrf.mxu2  ;;  %v1855_v41 = vadd.f32 %v10133_v1, %v1790_v40  ;;  %v2050_v34 = vadd.f32 %v10134_v44, %v9294_v36 }
 0x6ea   :  { %10127 = vst [vmem:[#allocation89_spill] sm:$0xff] %v9398_v15  ;;  %v3948_v46 = vadd.f32 %v3892_v23, %v3089_v49  ;;  %v3765_v48 = vadd.f32 %v3764_v9, %v3699_v45  ;;  %v10135_v45 = vld [vmem:[#allocation101_spill] sm:$0xff]  ;;  %v4013_v49 = vmax.f32 %v9196_v22, 0.0  ;;  %v3508_v23 = vadd.f32 %v9202_v51, %v9194_v33  ;;  %v10141_v33 = vld [vmem:[#allocation23_spill] sm:$0xff] }
 0x6eb   :  { %v3702_v63 = vpop.f32.mrf.mxu0  ;;  %v2242_v29 = vadd.f32 %v10135_v45, %v2177_v50  ;;  %v2115_v42 = vadd.f32 %v10137_v56, %v2050_v34  ;;  %v10140_v50 = vld [vmem:[#allocation145_spill] sm:$0xff]  ;;  %v1793_v51 = vadd.f32 %v10141_v33, %v9091_v21 }
 0x6ec   :  { %v4012_v13 = vmax.f32 %v3948_v46, 0.0  ;;  %v3951_v59 = vadd.f32 %v3765_v48, %v3092_v52  ;;  %v10138_v46 = vld [vmem:[#allocation118_spill] sm:$0xff] }
 0x6ed   :  { %v3094_v52 = vadd.f32 %v10138_v46, %v1855_v41  ;;  %v3093_v48 = vadd.f32 %v3036_v38, %v2242_v29  ;;  %v3096_v44 = vadd.f32 %v10140_v50, %v2115_v42  ;;  %v10142_v41 = vld [vmem:[#allocation35_spill] sm:$0xff]  ;;  %v10145_v42 = vld [vmem:[#allocation69_spill] sm:$0xff] }
 0x6ee   :  { %v4015_v9 = vmax.f32 %v3951_v59, 0.0  ;;  %v9415_v0 = vmax.f32 %v4010_v47, %v4012_v13  ;;  %v4014_v13 = vmax.f32 %v9207_v58, 0.0  ;;  %v1858_v38 = vadd.f32 %v10142_v41, %v1793_v51  ;;  %v10146_v46 = vld [vmem:[#allocation119_spill] sm:$0xff]  ;;  %v10151_v51 = vld [vmem:[#allocation34_spill] sm:$0xff] }
 0x6ef   :  { %v3894_v20 = vpop.f32.mrf.mxu3  ;;  %v3953_v22 = vadd.f32 %v3508_v23, %v3094_v52  ;;  %v3514_v41 = vadd.f32 %v9229_v24, %v9221_v6 }
 0x6f0   :  { %10136 = vst [vmem:[#allocation160_spill] sm:$0xff] %v9415_v0  ;;  %v3895_v40 = vadd.f32 %v3894_v20, %v3829_v35  ;;  %v9419_v43 = vmax.f32 %v4013_v49, %v4015_v9  ;;  %v10143_v35 = vld [vmem:[#allocation67_spill] sm:$0xff]  ;;  %v3511_v9 = vadd.f32 %v9217_v2, %v9209_v4  ;;  %v3098_v52 = vadd.f32 %v10146_v46, %v1858_v38  ;;  %v10150_v4 = vld [vmem:[#allocation36_spill] sm:$0xff] }
 0x6f1   :  { %v3767_v62 = vpop.f32.mrf.mxu1  ;;  %v3832_v1 = vpop.f32.mrf.mxu2  ;;  %v2053_v29 = vadd.f32 %v10143_v35, %v9294_v36  ;;  %v4017_v49 = vmax.f32 %v3953_v22, 0.0  ;;  %v1796_v2 = vadd.f32 %v10150_v4, %v9091_v21  ;;  %v10159_v4 = vld [vmem:[#allocation74_spill] sm:$0xff] }
 0x6f2   :  { %10139 = vst [vmem:[#allocation162_spill] sm:$0xff] %v9419_v43  ;;  %v3952_v45 = vadd.f32 %v3895_v40, %v3093_v48  ;;  %v3768_v60 = vadd.f32 %v3767_v62, %v3702_v63  ;;  %v10149_v62 = vld [vmem:[#allocation148_spill] sm:$0xff] }
 0x6f3   :  { %v3705_v47 = vpop.f32.mrf.mxu0  ;;  %v2118_v20 = vadd.f32 %v10145_v42, %v2053_v29  ;;  %v10153_v29 = vld [vmem:[#allocation72_spill] sm:$0xff] }
 0x6f4   :  { %v4016_v59 = vmax.f32 %v3952_v45, 0.0  ;;  %v3955_v34 = vadd.f32 %v3768_v60, %v3096_v44  ;;  %v3957_v44 = vadd.f32 %v3511_v9, %v3098_v52 }
 0x6f5   :  { %v3100_v50 = vadd.f32 %v10149_v62, %v2118_v20  ;;  %v10156_v20 = vld [vmem:[#allocation151_spill] sm:$0xff]  ;;  %v10157_v62 = vld [vmem:[#allocation18_spill] sm:$0xff] }
 0x6f6   :  { %v4019_v23 = vmax.f32 %v3955_v34, 0.0  ;;  %v9430_v56 = vmax.f32 %v4014_v13, %v4016_v59  ;;  %v1861_v13 = vadd.f32 %v10151_v51, %v1796_v2  ;;  %v10152_v59 = vld [vmem:[#allocation70_spill] sm:$0xff]  ;;  %v4021_v34 = vmax.f32 %v3957_v44, 0.0  ;;  %v10158_v44 = vld [vmem:[#allocation20_spill] sm:$0xff] }
 0x6f7   :  { %v3897_v63 = vpop.f32.mrf.mxu3  ;;  %v2059_v2 = vadd.f32 %v10159_v4, %v9294_v36  ;;  %v3517_v51 = vadd.f32 %v9241_v19, %v9233_v16 }
 0x6f8   :  { %10144 = vst [vmem:[#allocation45_spill] sm:$0xff] %v9430_v56  ;;  %v9434_v58 = vadd.f32 %v3897_v63, %v3832_v1  ;;  %v9436_v60 = vmax.f32 %v4017_v49, %v4019_v23  ;;  %v2056_v1 = vadd.f32 %v10152_v59, %v9294_v36  ;;  %v10192_v56 = vld [vmem:[#allocation33_spill] sm:$0xff] }
 0x6f9   :  { %v3770_v48 = vpop.f32.mrf.mxu1  ;;  %v9438_v40 = vpop.f32.mrf.mxu2 }
 0x6fa   :  { %10147 = vst [vmem:[#allocation91_spill] sm:$0xff] %v9434_v58  ;;  %v3771_v22 = vadd.f32 %v3770_v48, %v3705_v47  ;;  %v2121_v49 = vadd.f32 %v10153_v29, %v2056_v1  ;;  %v10154_v47 = vld [vmem:[#allocation120_spill] sm:$0xff] }
 0x6fb   :  { %10148 = vst [vmem:[#allocation47_spill] sm:$0xff] %v9436_v60  ;;  %v3708_v45 = vpop.f32.mrf.mxu0  ;;  %v3102_v9 = vadd.f32 %v10154_v47, %v1861_v13  ;;  %v10160_v1 = vld [vmem:[#allocation76_spill] sm:$0xff]  ;;  %v10163_v47 = vld [vmem:[#allocation153_spill] sm:$0xff] }
 0x6fc   :  { %v3959_v33 = vadd.f32 %v3771_v22, %v3100_v50  ;;  %v3104_v46 = vadd.f32 %v10156_v20, %v2121_v49  ;;  %v1799_v50 = vadd.f32 %v10157_v62, %v9091_v21 }
 0x6fd   :  { %v3961_v52 = vadd.f32 %v3514_v41, %v3102_v9 }
 0x6fe   :  { %v4023_v38 = vmax.f32 %v3959_v33, 0.0  ;;  %v1864_v22 = vadd.f32 %v10158_v44, %v1799_v50  ;;  %v10166_v50 = vld [vmem:[#allocation77_spill] sm:$0xff] }
 0x6ff   :  { %v9448_v35 = vpop.f32.mrf.mxu3  ;;  %v4025_v33 = vmax.f32 %v3961_v52, 0.0 }
 0x700   :  { %v9452_v23 = vmax.f32 %v4021_v34, %v4023_v38  ;;  %v2124_v34 = vadd.f32 %v10160_v1, %v2059_v2 }
 0x701   :  { %v3773_v63 = vpop.f32.mrf.mxu1  ;;  %v9454_v42 = vpop.f32.mrf.mxu2 }
 0x702   :  { %10155 = vst [vmem:[#allocation132_spill] sm:$0xff] %v9452_v23  ;;  %v3774_v48 = vadd.f32 %v3773_v63, %v3708_v45  ;;  %v10161_v45 = vld [vmem:[#allocation121_spill] sm:$0xff]  ;;  %v3108_v9 = vadd.f32 %v10163_v47, %v2124_v34  ;;  %v10218_v23 = vld [vmem:[#allocation131_spill] sm:$0xff] }
 0x703   :  { %v3711_v6 = vpop.f32.mrf.mxu0  ;;  %v3106_v41 = vadd.f32 %v10161_v45, %v1864_v22  ;;  %v3520_v22 = vadd.f32 %v9253_v32, %v9245_v14  ;;  %v10172_v32 = vld [vmem:[#allocation32_spill] sm:$0xff] }
 0x704   :  { %v3963_v24 = vadd.f32 %v3774_v48, %v3104_v46  ;;  %v10164_v46 = vld [vmem:[#allocation19_spill] sm:$0xff]  ;;  %v10165_v48 = vld [vmem:[#allocation21_spill] sm:$0xff] }
 0x705   :  { %v3965_v63 = vadd.f32 %v3517_v51, %v3106_v41  ;;  %v1802_v52 = vadd.f32 %v10164_v46, %v9091_v21  ;;  %v10170_v41 = vld [vmem:[#allocation156_spill] sm:$0xff] }
 0x706   :  { %v4027_v13 = vmax.f32 %v3963_v24, 0.0  ;;  %v2062_v24 = vadd.f32 %v10166_v50, %v9294_v36  ;;  %v3523_v50 = vadd.f32 %v9265_v28, %v9257_v10  ;;  %v10180_v10 = vld [vmem:[#allocation57_spill] sm:$0xff] }
 0x707   :  { %v9464_v59 = vpop.f32.mrf.mxu3  ;;  %v1867_v62 = vadd.f32 %v10165_v48, %v1802_v52  ;;  %v4029_v44 = vmax.f32 %v3965_v63, 0.0  ;;  %v10171_v63 = vld [vmem:[#allocation30_spill] sm:$0xff] }
 0x708   :  { %v9468_v38 = vmax.f32 %v4025_v33, %v4027_v13  ;;  %v10167_v33 = vld [vmem:[#allocation80_spill] sm:$0xff] }
 0x709   :  { %v3776_v29 = vpop.f32.mrf.mxu1  ;;  %v9470_v49 = vpop.f32.mrf.mxu2  ;;  %v2127_v51 = vadd.f32 %v10167_v33, %v2062_v24 }
 0x70a   :  { %10162 = vst [vmem:[#allocation92_spill] sm:$0xff] %v9468_v38  ;;  %v3777_v20 = vadd.f32 %v3776_v29, %v3711_v6  ;;  %v10168_v6 = vld [vmem:[#allocation122_spill] sm:$0xff]  ;;  %v10227_v38 = vld [vmem:[#allocation115_spill] sm:$0xff] }
 0x70b   :  { %v3714_v16 = vpop.f32.mrf.mxu0  ;;  %v3110_v13 = vadd.f32 %v10168_v6, %v1867_v62  ;;  %v3112_v29 = vadd.f32 %v10170_v41, %v2127_v51  ;;  %v10177_v6 = vld [vmem:[#allocation83_spill] sm:$0xff] }
 0x70c   :  { %v3967_v19 = vadd.f32 %v3777_v20, %v3108_v9  ;;  %v1805_v20 = vadd.f32 %v10171_v63, %v9091_v21  ;;  %v10181_v63 = vld [vmem:[#allocation61_spill] sm:$0xff] }
 0x70d   :  { %v3969_v47 = vadd.f32 %v3520_v22, %v3110_v13 }
 0x70e   :  { %v4031_v4 = vmax.f32 %v3967_v19, 0.0  ;;  %v1870_v46 = vadd.f32 %v10172_v32, %v1805_v20  ;;  %v10173_v19 = vld [vmem:[#allocation81_spill] sm:$0xff] }
 0x70f   :  { %v9480_v2 = vpop.f32.mrf.mxu3  ;;  %v2065_v48 = vadd.f32 %v10173_v19, %v9294_v36  ;;  %v4033_v62 = vmax.f32 %v3969_v47, 0.0  ;;  %v10179_v47 = vld [vmem:[#allocation53_spill] sm:$0xff] }
 0x710   :  { %v9484_v1 = vmax.f32 %v4029_v44, %v4031_v4  ;;  %v10174_v44 = vld [vmem:[#allocation17_spill] sm:$0xff]  ;;  %v10175_v4 = vld [vmem:[#allocation43_spill] sm:$0xff] }
 0x711   :  { %v3779_v34 = vpop.f32.mrf.mxu1  ;;  %v9486_v45 = vpop.f32.mrf.mxu2  ;;  %v1920_v33 = vadd.f32 %v10175_v4, %v10174_v44  ;;  %v2130_v13 = vadd.f32 %v10177_v6, %v2065_v48  ;;  %v1929_v28 = vadd.f32 %v10180_v10, %v10174_v44  ;;  %v1932_v20 = vadd.f32 %v10181_v63, %v10174_v44  ;;  %v10183_v4 = vld [vmem:[#allocation31_spill] sm:$0xff]  ;;  %v10185_v6 = vld [vmem:[#allocation46_spill] sm:$0xff]  ;;  %v10189_v63 = vld [vmem:[#allocation60_spill] sm:$0xff] }
 0x712   :  { %10169 = vst [vmem:[#allocation163_spill] sm:$0xff] %v9484_v1  ;;  %v3780_v9 = vadd.f32 %v3779_v34, %v3714_v16  ;;  %v10176_v16 = vld [vmem:[#allocation48_spill] sm:$0xff]  ;;  %v10178_v34 = vld [vmem:[#allocation123_spill] sm:$0xff]  ;;  %v1808_v48 = vadd.f32 %v10183_v4, %v9091_v21  ;;  %v10238_v1 = vld [vmem:[#allocation125_spill] sm:$0xff] }
 0x713   :  { %v3717_v52 = vpop.f32.mrf.mxu0  ;;  %v1923_v51 = vadd.f32 %v10176_v16, %v10174_v44  ;;  %v3114_v41 = vadd.f32 %v10178_v34, %v1870_v46  ;;  %v10184_v16 = vld [vmem:[#allocation158_spill] sm:$0xff]  ;;  %v9518_v34 = vadd.f32 %v10185_v6, %v1920_v33  ;;  %v10188_v10 = vld [vmem:[#allocation55_spill] sm:$0xff]  ;;  %v1994_v53 = vadd.f32 %v10189_v63, %v1929_v28  ;;  %v10197_v6 = vld [vmem:[#allocation85_spill] sm:$0xff] }
 0x714   :  { %v3971_v14 = vadd.f32 %v3780_v9, %v3112_v29  ;;  %v1926_v9 = vadd.f32 %v10179_v47, %v10174_v44  ;;  %v3116_v46 = vadd.f32 %v10184_v16, %v2130_v13  ;;  %v10187_v47 = vld [vmem:[#allocation50_spill] sm:$0xff]  ;;  %v1873_v13 = vadd.f32 %v10192_v56, %v1808_v48  ;;  %v10201_v63 = vld [vmem:[#allocation103_spill] sm:$0xff] }
 0x715   :  { %10186 = vst [vmem:[#allocation165_spill] sm:$0xff] %v9518_v34  ;;  %v1988_v11 = vadd.f32 %v10187_v47, %v1923_v51  ;;  %v10196_v28 = vld [vmem:[#allocation102_spill] sm:$0xff] }
 0x716   :  { %v4035_v24 = vmax.f32 %v3971_v14, 0.0  ;;  %v10182_v14 = vld [vmem:[#allocation66_spill] sm:$0xff]  ;;  %v9522_v57 = vadd.f32 %v10188_v10, %v1926_v9  ;;  %v10195_v9 = vld [vmem:[#allocation75_spill] sm:$0xff]  ;;  %v2180_v16 = vadd.f32 %v10196_v28, %v9326_v7 }
 0x717   :  { %v9498_v22 = vpop.f32.mrf.mxu3  ;;  %v1935_v32 = vadd.f32 %v10182_v14, %v10174_v44  ;;  %v10190_v14 = vld [vmem:[#allocation64_spill] sm:$0xff]  ;;  %v10200_v10 = vld [vmem:[#allocation78_spill] sm:$0xff] }
 0x718   :  { %v9504_v29 = vmax.f32 %v4033_v62, %v4035_v24  ;;  %v3973_v62 = vadd.f32 %v3523_v50, %v3114_v41  ;;  %v1997_v0 = vadd.f32 %v10190_v14, %v1932_v20  ;;  %v10194_v41 = vld [vmem:[#allocation16_spill] sm:$0xff]  ;;  %v2068_v20 = vadd.f32 %v10197_v6, %v9294_v36 }
 0x719   :  { %v3782_v19 = vpop.f32.mrf.mxu1  ;;  %v9525_v37 = vpop.f32.mrf.mxu2  ;;  %v2000_v4 = vadd.f32 %v10191_v8, %v1935_v32  ;;  %v1811_v51 = vadd.f32 %v10194_v41, %v9091_v21  ;;  %v3526_v8 = vadd.f32 %v9277_v27, %v9269_v61  ;;  %v10198_v32 = vld [vmem:[#allocation73_spill] sm:$0xff]  ;;  %v9546_v14 = vadd.f32 %v10201_v63, %v2180_v16  ;;  %v10203_v41 = vld [vmem:[#allocation104_spill] sm:$0xff]  ;;  %v10208_v16 = vld [vmem:[#allocation110_spill] sm:$0xff] }
 0x71a   :  { %v3783_v24 = vadd.f32 %v3782_v19, %v3717_v52  ;;  %v10193_v52 = vld [vmem:[#allocation71_spill] sm:$0xff]  ;;  %v1941_v19 = vadd.f32 %v10195_v9, %v10174_v44  ;;  %v4037_v47 = vmax.f32 %v3973_v62, 0.0  ;;  %v2183_v9 = vadd.f32 %v10203_v41, %v9326_v7  ;;  %v10205_v6 = vld [vmem:[#allocation124_spill] sm:$0xff]  ;;  %v10210_v41 = vld [vmem:[#allocation105_spill] sm:$0xff] }
 0x71b   :  { %v1938_v33 = vadd.f32 %v10193_v52, %v10174_v44  ;;  %10202 = vst [vmem:[#allocation49_spill] sm:$0xff] %v9546_v14  ;;  %v3720_v44 = vpop.f32.mrf.mxu0  ;;  %v10204_v62 = vld [vmem:[#allocation87_spill] sm:$0xff]  ;;  %v3118_v61 = vadd.f32 %v10205_v6, %v1873_v13 }
 0x71c   :  { %v3975_v50 = vadd.f32 %v3783_v24, %v3116_v46  ;;  %v10199_v46 = vld [vmem:[#allocation37_spill] sm:$0xff]  ;;  %v2006_v21 = vadd.f32 %v10200_v10, %v1941_v19  ;;  %v2133_v28 = vadd.f32 %v10204_v62, %v2068_v20  ;;  %v9565_v18 = vadd.f32 %v10210_v41, %v2183_v9  ;;  %v10212_v62 = vld [vmem:[#allocation107_spill] sm:$0xff]  ;;  %v10217_v9 = vld [vmem:[#allocation88_spill] sm:$0xff] }
 0x71d   :  { %v2003_v48 = vadd.f32 %v10198_v32, %v1938_v33  ;;  %v1876_v24 = vadd.f32 %v10199_v46, %v1811_v51  ;;  %v10207_v51 = vld [vmem:[#allocation108_spill] sm:$0xff]  ;;  %v2192_v32 = vadd.f32 %v10208_v16, %v9326_v7  ;;  %v10211_v20 = vld [vmem:[#allocation161_spill] sm:$0xff]  ;;  %v2071_v41 = vadd.f32 %v10217_v9, %v9294_v36 }
 0x71e   :  { %v4039_v56 = vmax.f32 %v3975_v50, 0.0  ;;  %v10206_v50 = vld [vmem:[#allocation106_spill] sm:$0xff]  ;;  %v2189_v19 = vadd.f32 %v10207_v51, %v9326_v7  ;;  %v10209_v46 = vld [vmem:[#allocation112_spill] sm:$0xff]  ;;  %v3120_v13 = vadd.f32 %v10211_v20, %v2133_v28  ;;  %v10214_v51 = vld [vmem:[#allocation111_spill] sm:$0xff] }
 0x71f   :  { %v9548_v52 = vpop.f32.mrf.mxu3  ;;  %v2186_v33 = vadd.f32 %v10206_v50, %v9326_v7  ;;  %v2195_v10 = vadd.f32 %v10209_v46, %v9326_v7  ;;  %v10213_v50 = vld [vmem:[#allocation109_spill] sm:$0xff]  ;;  %v2257_v15 = vadd.f32 %v10214_v51, %v2192_v32  ;;  %v10216_v46 = vld [vmem:[#allocation114_spill] sm:$0xff] }
 0x720   :  { %v9554_v27 = vmax.f32 %v4037_v47, %v4039_v56  ;;  %v3977_v47 = vadd.f32 %v3526_v8, %v3118_v61  ;;  %v9572_v26 = vadd.f32 %v10213_v50, %v2189_v19  ;;  %v10215_v16 = vld [vmem:[#allocation113_spill] sm:$0xff]  ;;  %v2198_v60 = vadd.f32 %v10216_v46, %v9326_v7  ;;  %v10220_v61 = vld [vmem:[#allocation116_spill] sm:$0xff]  ;;  %v10222_v19 = vld [vmem:[#allocation139_spill] sm:$0xff] }
 0x721   :  { %v3785_v63 = vpop.f32.mrf.mxu1  ;;  %v9569_v6 = vadd.f32 %v10212_v62, %v2186_v33  ;;  %v2260_v43 = vadd.f32 %v10215_v16, %v2195_v10  ;;  %v10219_v28 = vld [vmem:[#allocation133_spill] sm:$0xff]  ;;  %v2201_v33 = vadd.f32 %v10220_v61, %v9326_v7  ;;  %v10224_v32 = vld [vmem:[#allocation142_spill] sm:$0xff]  ;;  %v10225_v10 = vld [vmem:[#allocation144_spill] sm:$0xff]  ;;  %v3850_v46 = vpop.f32.mrf.mxu2 }
 0x722   :  { %v3786_v56 = vadd.f32 %v3785_v63, %v3720_v44  ;;  %v2782_v8 = vadd.f32 %v10219_v28, %v10218_v23  ;;  %v10221_v63 = vld [vmem:[#allocation137_spill] sm:$0xff]  ;;  %v10226_v51 = vld [vmem:[#allocation146_spill] sm:$0xff]  ;;  %v2263_v58 = vadd.f32 %v10227_v38, %v2198_v60  ;;  %v4041_v36 = vmax.f32 %v3977_v47, 0.0  ;;  %v10230_v7 = vld [vmem:[#allocation128_spill] sm:$0xff] }
 0x723   :  { %v2788_v20 = vadd.f32 %v10222_v19, %v10221_v63  ;;  %v10223_v62 = vld [vmem:[#allocation141_spill] sm:$0xff]  ;;  %v2794_v16 = vadd.f32 %v10226_v51, %v10225_v10  ;;  %v3529_v23 = vadd.f32 %v9289_v30, %v9281_v31  ;;  %v10236_v60 = vld [vmem:[#allocation150_spill] sm:$0xff]  ;;  %v10237_v38 = vld [vmem:[#allocation152_spill] sm:$0xff]  ;;  %v3122_v31 = vadd.f32 %v10238_v1, %v1876_v24 }
 0x724   :  { %v3979_v44 = vadd.f32 %v3786_v56, %v3120_v13  ;;  %v2791_v50 = vadd.f32 %v10224_v32, %v10223_v62  ;;  %v10228_v56 = vld [vmem:[#allocation90_spill] sm:$0xff]  ;;  %v10229_v28 = vld [vmem:[#allocation117_spill] sm:$0xff]  ;;  %v10233_v62 = vld [vmem:[#allocation147_spill] sm:$0xff]  ;;  %v9601_v51 = vadd.f32 %v2782_v8, %v1988_v11  ;;  %v2800_v47 = vadd.f32 %v10237_v38, %v10236_v60 }
 0x725   :  { %v2136_v9 = vadd.f32 %v10228_v56, %v2071_v41  ;;  %v2266_v61 = vadd.f32 %v10229_v28, %v2201_v33  ;;  %v10231_v63 = vld [vmem:[#allocation129_spill] sm:$0xff]  ;;  %v10240_v41 = vld [vmem:[#allocation136_spill] sm:$0xff]  ;;  %v9610_v33 = vadd.f32 %v2788_v20, %v1994_v53  ;;  %v3115_v28 = vadd.f32 %v2794_v16, %v2000_v4  ;;  %v10248_v4 = vld [vmem:[#allocation174_spill] sm:$0xff] }
 0x726   :  { %v4043_v13 = vmax.f32 %v3979_v44, 0.0  ;;  %v9597_v19 = vadd.f32 %v10231_v63, %v10230_v7  ;;  %v10234_v32 = vld [vmem:[#allocation149_spill] sm:$0xff]  ;;  %10235 = vst [vmem:[#allocation51_spill] sm:$0xff] %v9601_v51  ;;  %v10239_v44 = vld [vmem:[#allocation134_spill] sm:$0xff]  ;;  %v3111_v7 = vadd.f32 %v2791_v50, %v1997_v0  ;;  %v3723_v63 = vpop.f32.mrf.mxu0  ;;  %v10243_v8 = vld [vmem:[#allocation164_spill] sm:$0xff]  ;;  %v3981_v14 = vadd.f32 %v3529_v23, %v3122_v31 }
 0x727   :  { %v2797_v34 = vadd.f32 %v10234_v32, %v10233_v62  ;;  %v3915_v10 = vpop.f32.mrf.mxu3  ;;  %v9608_v56 = vadd.f32 %v10240_v41, %v10239_v44  ;;  %v10241_v62 = vld [vmem:[#allocation187_spill] sm:$0xff]  ;;  %v10242_v32 = vld [vmem:[#allocation190_spill] sm:$0xff]  ;;  %v3124_v51 = vadd.f32 %v10243_v8, %v2136_v9  ;;  %v10244_v1 = vld [vmem:[#allocation184_spill] sm:$0xff]  ;;  %v3659_v53 = vadd.f32 %v9300_v5, %v9291_v39 }
 0x728   :  { %10232 = vst [vmem:[#allocation93_spill] sm:$0xff] %v9597_v19  ;;  %v4077_v30 = vmax.f32 %v4041_v36, %v4043_v13  ;;  %v3057_v11 = vadd.f32 %v10242_v32, %v10241_v62  ;;  %v10245_v24 = vld [vmem:[#allocation185_spill] sm:$0xff]  ;;  %v10246_v13 = vld [vmem:[#allocation191_spill] sm:$0xff]  ;;  %v10247_v44 = vld [vmem:[#allocation194_spill] sm:$0xff]  ;;  %v3123_v0 = vadd.f32 %v2800_v47, %v2006_v21  ;;  %v3916_v16 = vadd.f32 %v3915_v10, %v3850_v46 }
 0x729   :  { %v3788_v19 = vpop.f32.mrf.mxu1  ;;  %v3119_v38 = vadd.f32 %v2797_v34, %v2003_v48  ;;  %v3054_v36 = vadd.f32 %v10245_v24, %v10244_v1  ;;  %v3060_v41 = vadd.f32 %v10247_v44, %v10246_v13  ;;  %v10249_v20 = vld [vmem:[#allocation175_spill] sm:$0xff]  ;;  %v10250_v32 = vld [vmem:[#allocation176_spill] sm:$0xff]  ;;  %v10251_v9 = vld [vmem:[#allocation177_spill] sm:$0xff]  ;;  %v3656_v1 = vadd.f32 %v9287_v17, %v9279_v12 }
 0x72a   :  { %v3789_v60 = vadd.f32 %v3788_v19, %v3723_v63  ;;  %v3039_v50 = vadd.f32 %v10249_v20, %v10248_v4  ;;  %v3042_v23 = vadd.f32 %v10251_v9, %v10250_v32  ;;  %v10252_v19 = vld [vmem:[#allocation180_spill] sm:$0xff]  ;;  %v10253_v34 = vld [vmem:[#allocation181_spill] sm:$0xff]  ;;  %v10254_v31 = vld [vmem:[#allocation182_spill] sm:$0xff]  ;;  %v3121_v24 = vadd.f32 %v3057_v11, %v2263_v58 }
 0x72b   :  { %v3048_v48 = vadd.f32 %v10253_v34, %v10252_v19  ;;  %v10255_v63 = vld [vmem:[#allocation183_spill] sm:$0xff]  ;;  %v4045_v39 = vmax.f32 %v3981_v14, 0.0  ;;  %v3913_v5 = vadd.f32 %v9548_v52, %v9525_v37  ;;  %v3117_v46 = vadd.f32 %v3054_v36, %v2260_v43  ;;  %v10256_v17 = vld [vmem:[#allocation178_spill] sm:$0xff] }
 0x72c   :  { %v3983_v62 = vadd.f32 %v3789_v60, %v3124_v51  ;;  %v3051_v8 = vadd.f32 %v10255_v63, %v10254_v31  ;;  %v3125_v10 = vadd.f32 %v3060_v41, %v2266_v61  ;;  %v3653_v51 = vadd.f32 %v9275_v54, %v9267_v55  ;;  %v3853_v60 = vpop.f32.mrf.mxu2  ;;  %v10257_v58 = vld [vmem:[#allocation179_spill] sm:$0xff]  ;;  %v10259_v61 = vld [vmem:[#allocation200_spill] sm:$0xff]  ;;  %v10264_v63 = vld [vmem:[#allocation49_spill] sm:$0xff] }
 0x72d   :  { %v3982_v47 = vadd.f32 %v3659_v53, %v3123_v0  ;;  %v3910_v44 = vadd.f32 %v9498_v22, %v9486_v45  ;;  %v3980_v4 = vadd.f32 %v3916_v16, %v3121_v24  ;;  %v3045_v14 = vadd.f32 %v10257_v58, %v10256_v17  ;;  %v10258_v22 = vld [vmem:[#allocation199_spill] sm:$0xff]  ;;  %v10273_v17 = vld [vmem:[#allocation132_spill] sm:$0xff] }
 0x72e   :  { %v4047_v21 = vmax.f32 %v3983_v62, 0.0  ;;  %v3113_v11 = vadd.f32 %v3051_v8, %v2257_v15  ;;  %v3650_v37 = vadd.f32 %v9263_v25, %v9255_v3  ;;  %v3978_v43 = vadd.f32 %v3656_v1, %v3119_v38  ;;  %v10261_v38 = vld [vmem:[#allocation198_spill] sm:$0xff]  ;;  %v10266_v1 = vld [vmem:[#allocation29_spill] sm:$0xff] }
 0x72f   :  { %v3918_v13 = vpop.f32.mrf.mxu3  ;;  %v3907_v55 = vadd.f32 %v9480_v2, %v9470_v49  ;;  %v3976_v54 = vadd.f32 %v3913_v5, %v3117_v46  ;;  %v3109_v45 = vadd.f32 %v3048_v48, %v9572_v26  ;;  %v3647_v36 = vadd.f32 %v10259_v61, %v10258_v22  ;;  %v10260_v2 = vld [vmem:[#allocation24_spill] sm:$0xff]  ;;  %v10268_v5 = vld [vmem:[#allocation165_spill] sm:$0xff] }
 0x730   :  { %v4079_v20 = vmax.f32 %v4045_v39, %v4047_v21  ;;  %v3919_v12 = vadd.f32 %v3918_v13, %v3853_v60  ;;  %v3974_v41 = vadd.f32 %v3653_v51, %v3115_v28  ;;  %v4046_v53 = vmax.f32 %v3982_v47, 0.0  ;;  %v10269_v21 = vld [vmem:[#allocation93_spill] sm:$0xff]  ;;  %v10271_v47 = vld [vmem:[#allocation91_spill] sm:$0xff]  ;;  %v10272_v13 = vld [vmem:[#allocation92_spill] sm:$0xff] }
 0x731   :  { %v3904_v15 = vadd.f32 %v9464_v59, %v9454_v42  ;;  %v3972_v0 = vadd.f32 %v3910_v44, %v3113_v11  ;;  %v4044_v3 = vmax.f32 %v3980_v4, 0.0  ;;  %v3105_v49 = vadd.f32 %v3045_v14, %v9569_v6  ;;  %v10262_v6 = vld [vmem:[#allocation26_spill] sm:$0xff]  ;;  %v10277_v22 = vld [vmem:[#allocation84_spill] sm:$0xff] }
 0x732   :  { %v3984_v52 = vadd.f32 %v3919_v12, %v3125_v10  ;;  %4088 = vmatpush.msra.mxu0 %v4079_v20  ;;  %4171 = vmatpush.msra.mxu2 %v4079_v20  ;;  %v3644_v16 = vadd.f32 %v10261_v38, %v10260_v2  ;;  %v3970_v62 = vadd.f32 %v3650_v37, %v3111_v7  ;;  %v4042_v26 = vmax.f32 %v3978_v43, 0.0  ;;  %v10270_v10 = vld [vmem:[#allocation51_spill] sm:$0xff]  ;;  %v10283_v38 = vld [vmem:[#allocation154_spill] sm:$0xff] }
 0x733   :  { %v3901_v32 = vadd.f32 %v9448_v35, %v9438_v40  ;;  %v3968_v28 = vadd.f32 %v3907_v55, %v3109_v45  ;;  %v4040_v9 = vmax.f32 %v3976_v54, 0.0  ;;  %v3103_v42 = vadd.f32 %v9608_v56, %v9522_v57  ;;  %v10274_v37 = vld [vmem:[#allocation47_spill] sm:$0xff]  ;;  %v10275_v54 = vld [vmem:[#allocation162_spill] sm:$0xff] }
 0x734   :  { %v4048_v25 = vmax.f32 %v3984_v52, 0.0  ;;  %4089 = vmatpush.msra.mxu0 %v4077_v30  ;;  %4172 = vmatpush.msra.mxu2 %v4077_v30  ;;  %v3101_v59 = vadd.f32 %v3042_v23, %v9565_v18  ;;  %v10263_v30 = vld [vmem:[#allocation27_spill] sm:$0xff]  ;;  %v3966_v7 = vadd.f32 %v3647_v36, %v9610_v33  ;;  %v4038_v48 = vmax.f32 %v3974_v41, 0.0  ;;  %v10276_v45 = vld [vmem:[#allocation38_spill] sm:$0xff]  ;;  %v10278_v36 = vld [vmem:[#allocation157_spill] sm:$0xff] }
 0x735   :  { %v3641_v34 = vadd.f32 %v10263_v30, %v10262_v6  ;;  %v3964_v31 = vadd.f32 %v3904_v15, %v3105_v49  ;;  %v4036_v40 = vmax.f32 %v3972_v0, 0.0  ;;  %v4078_v35 = vmax.f32 %v4042_v26, %v4044_v3  ;;  %v10267_v33 = vld [vmem:[#allocation163_spill] sm:$0xff]  ;;  %v10280_v15 = vld [vmem:[#allocation89_spill] sm:$0xff]  ;;  %v10282_v49 = vld [vmem:[#allocation86_spill] sm:$0xff] }
 0x736   :  { %v4080_v19 = vmax.f32 %v4046_v53, %v4048_v25  ;;  %4090 = vmatpush.msra.mxu0 %v9554_v27  ;;  %4173 = vmatpush.msra.mxu2 %v9554_v27  ;;  %v3097_v8 = vadd.f32 %v3039_v50, %v10264_v63  ;;  %v10265_v27 = vld [vmem:[#allocation28_spill] sm:$0xff]  ;;  %v3962_v57 = vadd.f32 %v3644_v16, %v3103_v42  ;;  %v4034_v18 = vmax.f32 %v3970_v62, 0.0  ;;  %v10279_v41 = vld [vmem:[#allocation159_spill] sm:$0xff]  ;;  %v10289_v6 = vld [vmem:[#allocation186_spill] sm:$0xff] }
 0x737   :  { %v3638_v24 = vadd.f32 %v10266_v1, %v10265_v27  ;;  %v3960_v56 = vadd.f32 %v3901_v32, %v3101_v59  ;;  %v4032_v23 = vmax.f32 %v3968_v28, 0.0  ;;  %v4076_v39 = vmax.f32 %v4038_v48, %v4040_v9  ;;  %v10281_v3 = vld [vmem:[#allocation79_spill] sm:$0xff]  ;;  %v10285_v26 = vld [vmem:[#allocation192_spill] sm:$0xff]  ;;  %v10286_v32 = vld [vmem:[#allocation193_spill] sm:$0xff] }
 0x738   :  { %4091 = vmatpush.msra.mxu0 %v9504_v29  ;;  %4126 = vmatpush.msra.mxu1 %v4080_v19  ;;  %v3095_v46 = vadd.f32 %v10269_v21, %v10268_v5  ;;  %v3958_v51 = vadd.f32 %v3641_v34, %v10270_v10  ;;  %v4030_v50 = vmax.f32 %v3966_v7, 0.0  ;;  %v3956_v60 = vadd.f32 %v10271_v47, %v3097_v8  ;;  %v10284_v16 = vld [vmem:[#allocation155_spill] sm:$0xff]  ;;  %v10287_v9 = vld [vmem:[#allocation44_spill] sm:$0xff]  ;;  %v10292_v48 = vld [vmem:[#allocation45_spill] sm:$0xff] }
 0x739   :  { %4174 = vmatpush.msra.mxu2 %v9504_v29  ;;  %4209 = vmatpush.msra.mxu3 %v4080_v19  ;;  %v4028_v29 = vmax.f32 %v3964_v31, 0.0  ;;  %v4074_v44 = vmax.f32 %v4034_v18, %v4036_v40  ;;  %v4026_v20 = vmax.f32 %v3962_v57, 0.0  ;;  %v4024_v12 = vmax.f32 %v3960_v56, 0.0  ;;  %v10288_v19 = vld [vmem:[#allocation82_spill] sm:$0xff]  ;;  %v10290_v30 = vld [vmem:[#allocation188_spill] sm:$0xff]  ;;  %v10291_v7 = vld [vmem:[#allocation127_spill] sm:$0xff] }
 0x73a   :  { %4092 = vmatpush.msra.mxu0 %v10267_v33  ;;  %4127 = vmatpush.msra.mxu1 %v4078_v35  ;;  %v3954_v4 = vadd.f32 %v3638_v24, %v3095_v46  ;;  %v4072_v58 = vmax.f32 %v4030_v50, %v4032_v23  ;;  %v4022_v14 = vmax.f32 %v3958_v51, 0.0  ;;  %v4020_v11 = vmax.f32 %v3956_v60, 0.0  ;;  %v10294_v63 = vld [vmem:[#allocation160_spill] sm:$0xff]  ;;  %v10295_v27 = vld [vmem:[#allocation39_spill] sm:$0xff]  ;;  %v10296_v1 = vld [vmem:[#allocation130_spill] sm:$0xff] }
 0x73b   :  { %4175 = vmatpush.msra.mxu2 %v10267_v33  ;;  %4210 = vmatpush.msra.mxu3 %v4078_v35  ;;  %v4070_v43 = vmax.f32 %v4026_v20, %v4028_v29  ;;  %v2159_v61 = vadd.f32 %v10277_v22, %v10276_v45  ;;  %v3018_v53 = vadd.f32 %v10279_v41, %v10278_v36  ;;  %v10293_v35 = vld [vmem:[#allocation40_spill] sm:$0xff]  ;;  %v10297_v57 = vld [vmem:[#allocation195_spill] sm:$0xff]  ;;  %v10298_v18 = vld [vmem:[#allocation42_spill] sm:$0xff] }
 0x73c   :  { %4093 = vmatpush.msra.mxu0 %v10272_v13  ;;  %4128 = vmatpush.msra.mxu1 %v4076_v39  ;;  %v4018_v55 = vmax.f32 %v3954_v4, 0.0  ;;  %v4068_v52 = vmax.f32 %v4022_v14, %v4024_v12  ;;  %v2156_v25 = vadd.f32 %v10281_v3, %v10276_v45  ;;  %v3015_v62 = vadd.f32 %v10284_v16, %v10283_v38  ;;  %v4164_v56 = vld [vmem:[#allocation7] sm:$0xff]  ;;  %v4081_v46 = vld [vmem:[#allocation6] sm:$0xff]  ;;  %v10302_v10 = vld [vmem:[#allocation196_spill] sm:$0xff] }
 0x73d   :  { %4176 = vmatpush.msra.mxu2 %v10272_v13  ;;  %4211 = vmatpush.msra.mxu3 %v4076_v39  ;;  %v2224_v2 = vadd.f32 %v10282_v49, %v2159_v61  ;;  %v3877_v28 = vadd.f32 %v10286_v32, %v10285_v26  ;;  %v3874_v34 = vadd.f32 %v10290_v30, %v10289_v6  ;;  %v10299_v23 = vld [vmem:[#allocation197_spill] sm:$0xff]  ;;  %v3986_v51 = vmax.f32 %v10302_v10, 0.0  ;;  %v10303_v50 = vld [vmem:[#allocation126_spill] sm:$0xff]  ;;  %v4082_v13 = vld [vmem:[#allocation6 + $0x8] sm:$0xff] }
 0x73e   :  { %4094 = vmatpush.msra.mxu0 %v10273_v17  ;;  %4129 = vmatpush.msra.mxu1 %v4074_v44  ;;  %v4066_v0 = vmax.f32 %v4018_v55, %v4020_v11  ;;  %v2221_v42 = vadd.f32 %v10288_v19, %v2156_v25  ;;  %v3990_v33 = vmax.f32 %v10299_v23, 0.0  ;;  %v10300_v5 = vld [vmem:[#allocation189_spill] sm:$0xff]  ;;  %v4165_v29 = vld [vmem:[#allocation7 + $0x8] sm:$0xff]  ;;  %v4083_v4 = vld [vmem:[#allocation6 + $0x10] sm:$0xff] }
 0x73f   :  { %4177 = vmatpush.msra.mxu2 %v10273_v17  ;;  %4212 = vmatpush.msra.mxu3 %v4074_v44  ;;  %v3069_v59 = vadd.f32 %v3018_v53, %v2224_v2  ;;  %v10301_v21 = vld [vmem:[#allocation41_spill] sm:$0xff]  ;;  %v4166_v44 = vld [vmem:[#allocation7 + $0x10] sm:$0xff]  ;;  %v4167_v20 = vld [vmem:[#allocation7 + $0x18] sm:$0xff] }
 0x740   :  { %4095 = vmatpush.msra.mxu0 %v10274_v37  ;;  %4130 = vmatpush.msra.mxu1 %v4072_v58  ;;  %v3065_v31 = vadd.f32 %v3015_v62, %v2221_v42  ;;  %v4084_v12 = vld [vmem:[#allocation6 + $0x18] sm:$0xff]  ;;  %v4276_v17 = vld [vmem:[#allocation9 + $0x78] sm:$0xff]  ;;  %v4275_v14 = vld [vmem:[#allocation9 + $0x70] sm:$0xff] }
 0x741   :  { %4178 = vmatpush.msra.mxu2 %v10274_v37  ;;  %4213 = vmatpush.msra.mxu3 %v4072_v58  ;;  %v3928_v40 = vadd.f32 %v3877_v28, %v3069_v59  ;;  %v4292_v58 = vld [vmem:[#allocation9 + $0xf8] sm:$0xff]  ;;  %v4291_v11 = vld [vmem:[#allocation9 + $0xf0] sm:$0xff]  ;;  %v4290_v37 = vld [vmem:[#allocation9 + $0xe8] sm:$0xff] }
 0x742   :  { %4096 = vmatpush.msra.mxu0 %v10275_v54  ;;  %4131 = vmatpush.msra.mxu1 %v4070_v43  ;;  %v3924_v8 = vadd.f32 %v3874_v34, %v3065_v31  ;;  %v4273_v55 = vld [vmem:[#allocation9 + $0x60] sm:$0xff]  ;;  %v4272_v45 = vld [vmem:[#allocation9 + $0x58] sm:$0xff]  ;;  %v4085_v22 = vld [vmem:[#allocation6 + $0x20] sm:$0xff] }
 0x743   :  { %4179 = vmatpush.msra.mxu2 %v10275_v54  ;;  %4214 = vmatpush.msra.mxu3 %v4070_v43  ;;  %v3992_v24 = vmax.f32 %v3928_v40, 0.0  ;;  %v4274_v43 = vld [vmem:[#allocation9 + $0x68] sm:$0xff]  ;;  %v4289_v54 = vld [vmem:[#allocation9 + $0xe0] sm:$0xff]  ;;  %v4288_v61 = vld [vmem:[#allocation9 + $0xd8] sm:$0xff] }
 0x744   :  { %4097 = vmatpush.msra.mxu0 %v10280_v15  ;;  %4132 = vmatpush.msra.mxu1 %v4068_v52  ;;  %v3988_v39 = vmax.f32 %v3924_v8, 0.0  ;;  %v4353_v36 = vld [vmem:[#allocation9 + $0x178] sm:$0xff]  ;;  %v4271_v41 = vld [vmem:[#allocation9 + $0x50] sm:$0xff]  ;;  %v4270_v3 = vld [vmem:[#allocation9 + $0x48] sm:$0xff] }
 0x745   :  { %4180 = vmatpush.msra.mxu2 %v10280_v15  ;;  %4215 = vmatpush.msra.mxu3 %v4068_v52  ;;  %v4052_v47 = vmax.f32 %v3990_v33, %v3992_v24  ;;  %v4168_v52 = vld [vmem:[#allocation7 + $0x20] sm:$0xff]  ;;  %v4369_v53 = vld [vmem:[#allocation9 + $0x1f8] sm:$0xff]  ;;  %v4287_v15 = vld [vmem:[#allocation9 + $0xd0] sm:$0xff] }
 0x746   :  { %4098 = vmatpush.msra.mxu0 %v10287_v9  ;;  %4133 = vmatpush.msra.mxu1 %v4066_v0  ;;  %v4050_v60 = vmax.f32 %v3986_v51, %v3988_v39  ;;  %v4368_v25 = vld [vmem:[#allocation9 + $0x1f0] sm:$0xff]  ;;  %v4351_v49 = vld [vmem:[#allocation9 + $0x168] sm:$0xff]  ;;  %v4269_v38 = vld [vmem:[#allocation9 + $0x40] sm:$0xff] }
 0x747   :  { %4181 = vmatpush.msra.mxu2 %v10287_v9  ;;  %4216 = vmatpush.msra.mxu3 %v4066_v0  ;;  %v4352_v0 = vld [vmem:[#allocation9 + $0x170] sm:$0xff]  ;;  %v4286_v2 = vld [vmem:[#allocation9 + $0xc8] sm:$0xff]  ;;  %v4285_v26 = vld [vmem:[#allocation9 + $0xc0] sm:$0xff] }
 0x748   :  { %4099 = vmatpush.msra.mxu0 %v10291_v7  ;;  %4134 = vmatpush.msra.mxu1 %v10292_v48  ;;  %v4367_v16 = vld [vmem:[#allocation9 + $0x1e8] sm:$0xff]  ;;  %v4169_v62 = vld [vmem:[#allocation7 + $0x28] sm:$0xff]  ;;  %v4086_v32 = vld [vmem:[#allocation6 + $0x28] sm:$0xff] }
 0x749   :  { %4182 = vmatpush.msra.mxu2 %v10291_v7  ;;  %4217 = vmatpush.msra.mxu3 %v10292_v48  ;;  %v4350_v28 = vld [vmem:[#allocation9 + $0x160] sm:$0xff]  ;;  %v4268_v9 = vld [vmem:[#allocation9 + $0x38] sm:$0xff]  ;;  %v4267_v6 = vld [vmem:[#allocation9 + $0x30] sm:$0xff] }
 0x74a   :  { %4100 = vmatpush.msra.mxu0 %v10293_v35  ;;  %4135 = vmatpush.msra.mxu1 %v10294_v63  ;;  %v4284_v19 = vld [vmem:[#allocation9 + $0xb8] sm:$0xff]  ;;  %v4366_v42 = vld [vmem:[#allocation9 + $0x1e0] sm:$0xff]  ;;  %v4283_v30 = vld [vmem:[#allocation9 + $0xb0] sm:$0xff] }
 0x74b   :  { %4183 = vmatpush.msra.mxu2 %v10293_v35  ;;  %4218 = vmatpush.msra.mxu3 %v10294_v63  ;;  %v4349_v59 = vld [vmem:[#allocation9 + $0x158] sm:$0xff]  ;;  %v4266_v7 = vld [vmem:[#allocation9 + $0x28] sm:$0xff]  ;;  %v4348_v31 = vld [vmem:[#allocation9 + $0x150] sm:$0xff] }
 0x74c   :  { %4101 = vmatpush.msra.mxu0 %v10295_v27  ;;  %4136 = vmatpush.msra.mxu1 %v10296_v1  ;;  %v4365_v34 = vld [vmem:[#allocation9 + $0x1d8] sm:$0xff]  ;;  %v4282_v48 = vld [vmem:[#allocation9 + $0xa8] sm:$0xff]  ;;  %v4265_v35 = vld [vmem:[#allocation9 + $0x20] sm:$0xff] }
 0x74d   :  { %4184 = vmatpush.msra.mxu2 %v10295_v27  ;;  %4219 = vmatpush.msra.mxu3 %v10296_v1  ;;  %v4170_v40 = vld [vmem:[#allocation7 + $0x30] sm:$0xff]  ;;  %v4087_v63 = vld [vmem:[#allocation6 + $0x30] sm:$0xff]  ;;  %v4364_v1 = vld [vmem:[#allocation9 + $0x1d0] sm:$0xff] }
 0x74e   :  { %4102 = vmatpush.msra.mxu0 %v10297_v57  ;;  %4137 = vmatpush.msra.mxu1 %v10298_v18  ;;  %v4281_v8 = vld [vmem:[#allocation9 + $0xa0] sm:$0xff]  ;;  %v4264_v27 = vld [vmem:[#allocation9 + $0x18] sm:$0xff]  ;;  %v4279_v33 = vld [vmem:[#allocation9 + $0x90] sm:$0xff] }
 0x74f   :  { %4185 = vmatpush.msra.mxu2 %v10297_v57  ;;  %4220 = vmatpush.msra.mxu3 %v10298_v18  ;;  %v4280_v24 = vld [vmem:[#allocation9 + $0x98] sm:$0xff]  ;;  %v4347_v57 = vld [vmem:[#allocation9 + $0x148] sm:$0xff]  ;;  %v4263_v18 = vld [vmem:[#allocation9 + $0x10] sm:$0xff] }
 0x750   :  { %4103 = vmatpush.msra.mxu0 %v10300_v5  ;;  %4138 = vmatpush.msra.mxu1 %v10301_v21  ;;  %v4346_v23 = vld [vmem:[#allocation9 + $0x140] sm:$0xff]  ;;  %v4262_v39 = vld [vmem:[#allocation9 + $0x8] sm:$0xff]  ;;  %v4361_v51 = vld [vmem:[#allocation9 + $0x1b8] sm:$0xff] }
 0x751   :  { %4186 = vmatpush.msra.mxu2 %v10300_v5  ;;  %4221 = vmatpush.msra.mxu3 %v10301_v21  ;;  %v4362_v5 = vld [vmem:[#allocation9 + $0x1c0] sm:$0xff]  ;;  %v4278_v21 = vld [vmem:[#allocation9 + $0x88] sm:$0xff] }
 0x752   :  { %4139 = vmatpush.msra.mxu1 %v10303_v50  ;;  %4187 = vmatmul.f32.vlgmr.msra.gmra.mxu2 %v4164_v56  ;;  %v4261_v10 = vld [vmem:[#allocation9] sm:$0xff] }
 0x753   :  { %4222 = vmatpush.msra.mxu3 %v10303_v50  ;;  %4104 = vmatmul.f32.vlgmr.msra.gmra.mxu0 %v4081_v46  ;;  %v4277_v50 = vld [vmem:[#allocation9 + $0x80] sm:$0xff] }
 0x754   :  { %4140 = vmatpush.msra.mxu1 %v4052_v47  ;;  %4297 = vmatpush.msrb.mxu0 %v4276_v17  ;;  %v4359_v17 = vld [vmem:[#allocation9 + $0x1a8] sm:$0xff] }
 0x755   :  { %4223 = vmatpush.msra.mxu3 %v4052_v47  ;;  %4370 = vmatpush.msrb.mxu2 %v4353_v36  ;;  %v4427_v47 = vld [vmem:[#allocation9 + $0x278] sm:$0xff]  ;;  %v4356_v36 = vld [vmem:[#allocation9 + $0x190] sm:$0xff] }
 0x756   :  { %4141 = vmatpush.msra.mxu1 %v4050_v60  ;;  %4298 = vmatpush.msrb.mxu0 %v4275_v14  ;;  %v4342_v14 = vld [vmem:[#allocation9 + $0x120] sm:$0xff] }
 0x757   :  { %4224 = vmatpush.msra.mxu3 %v4050_v60  ;;  %4142 = vmatmul.f32.vlgmr.msra.gmra.mxu1 %v4081_v46  ;;  %v4345_v46 = vld [vmem:[#allocation9 + $0x138] sm:$0xff] }
 0x758   :  { %4225 = vmatmul.f32.vlgmr.msra.gmra.mxu3 %v4164_v56  ;;  %4317 = vmatpush.msrb.mxu1 %v4292_v58  ;;  %v4363_v56 = vld [vmem:[#allocation9 + $0x1c8] sm:$0xff]  ;;  %v4443_v60 = vld [vmem:[#allocation9 + $0x2f8] sm:$0xff] }
 0x759   :  { %4299 = vmatpush.msrb.mxu0 %v4274_v43  ;;  %4390 = vmatpush.msrb.mxu3 %v4369_v53  ;;  %v4441_v58 = vld [vmem:[#allocation9 + $0x2e8] sm:$0xff]  ;;  %v4440_v43 = vld [vmem:[#allocation9 + $0x2e0] sm:$0xff] }
 0x75a   :  { %4190 = vmatmul.f32.gmra.mxu2 %v4165_v29  ;;  %4318 = vmatpush.msrb.mxu1 %v4291_v11  ;;  %v4424_v11 = vld [vmem:[#allocation9 + $0x260] sm:$0xff]  ;;  %v4339_v53 = vld [vmem:[#allocation9 + $0x108] sm:$0xff] }
 0x75b   :  { %4107 = vmatmul.f32.gmra.mxu0 %v4082_v13  ;;  %4371 = vmatpush.msrb.mxu2 %v4352_v0  ;;  %v4355_v0 = vld [vmem:[#allocation9 + $0x188] sm:$0xff] }
 0x75c   :  { %4319 = vmatpush.msrb.mxu1 %v4290_v37  ;;  %4300 = vmatpush.msrb.mxu0 %v4273_v55  ;;  %v4358_v37 = vld [vmem:[#allocation9 + $0x1a0] sm:$0xff]  ;;  %v4341_v55 = vld [vmem:[#allocation9 + $0x118] sm:$0xff] }
 0x75d   :  { %4391 = vmatpush.msrb.mxu3 %v4368_v25  ;;  %4372 = vmatpush.msrb.mxu2 %v4351_v49  ;;  %v4338_v25 = vld [vmem:[#allocation9 + $0x100] sm:$0xff] }
 0x75e   :  { %4320 = vmatpush.msrb.mxu1 %v4289_v54  ;;  %4301 = vmatpush.msrb.mxu0 %v4272_v45  ;;  %v4423_v54 = vld [vmem:[#allocation9 + $0x258] sm:$0xff]  ;;  %v4420_v49 = vld [vmem:[#allocation9 + $0x240] sm:$0xff] }
 0x75f   :  { %4145 = vmatmul.f32.gmra.mxu1 %v4082_v13  ;;  %4392 = vmatpush.msrb.mxu3 %v4367_v16  ;;  %v4426_v13 = vld [vmem:[#allocation9 + $0x270] sm:$0xff]  ;;  %v4439_v45 = vld [vmem:[#allocation9 + $0x2d8] sm:$0xff] }
 0x760   :  { %4228 = vmatmul.f32.gmra.mxu3 %v4165_v29  ;;  %4321 = vmatpush.msrb.mxu1 %v4288_v61  ;;  %v4344_v29 = vld [vmem:[#allocation9 + $0x130] sm:$0xff]  ;;  %v4501_v16 = vld [vmem:[#allocation9 + $0x378] sm:$0xff] }
 0x761   :  { %4302 = vmatpush.msrb.mxu0 %v4271_v41  ;;  %4373 = vmatpush.msrb.mxu2 %v4350_v28  ;;  %v4422_v61 = vld [vmem:[#allocation9 + $0x250] sm:$0xff] }
 0x762   :  { %4193 = vmatmul.f32.gmra.mxu2 %v4166_v44  ;;  %4322 = vmatpush.msrb.mxu1 %v4287_v15  ;;  %v4438_v41 = vld [vmem:[#allocation9 + $0x2d0] sm:$0xff]  ;;  %v4421_v15 = vld [vmem:[#allocation9 + $0x248] sm:$0xff] }
 0x763   :  { %4110 = vmatmul.f32.gmra.mxu0 %v4083_v4  ;;  %4393 = vmatpush.msrb.mxu3 %v4366_v42  ;;  %v4500_v28 = vld [vmem:[#allocation9 + $0x370] sm:$0xff] }
 0x764   :  { %4303 = vmatpush.msrb.mxu0 %v4270_v3  ;;  %4323 = vmatpush.msrb.mxu1 %v4286_v2  ;;  %v4437_v3 = vld [vmem:[#allocation9 + $0x2c8] sm:$0xff]  ;;  %v4354_v2 = vld [vmem:[#allocation9 + $0x180] sm:$0xff]  ;;  %v4434_v42 = vld [vmem:[#allocation9 + $0x2b0] sm:$0xff] }
 0x765   :  { %4374 = vmatpush.msrb.mxu2 %v4349_v59  ;;  %4394 = vmatpush.msrb.mxu3 %v4365_v34  ;;  %v4499_v59 = vld [vmem:[#allocation9 + $0x368] sm:$0xff] }
 0x766   :  { %4304 = vmatpush.msrb.mxu0 %v4269_v38  ;;  %4324 = vmatpush.msrb.mxu1 %v4285_v26  ;;  %v4436_v38 = vld [vmem:[#allocation9 + $0x2c0] sm:$0xff]  ;;  %v4517_v26 = vld [vmem:[#allocation9 + $0x3f8] sm:$0xff]  ;;  %v4433_v34 = vld [vmem:[#allocation9 + $0x2a8] sm:$0xff] }
 0x767   :  { %4148 = vmatmul.f32.gmra.mxu1 %v4083_v4  ;;  %4375 = vmatpush.msrb.mxu2 %v4348_v31  ;;  %v4442_v4 = vld [vmem:[#allocation9 + $0x2f0] sm:$0xff]  ;;  %v4415_v31 = vld [vmem:[#allocation9 + $0x218] sm:$0xff] }
 0x768   :  { %4231 = vmatmul.f32.gmra.mxu3 %v4166_v44  ;;  %4305 = vmatpush.msrb.mxu0 %v4268_v9  ;;  %v4360_v44 = vld [vmem:[#allocation9 + $0x1b0] sm:$0xff] }
 0x769   :  { %4325 = vmatpush.msrb.mxu1 %v4284_v19  ;;  %4395 = vmatpush.msrb.mxu3 %v4364_v1  ;;  %v4418_v9 = vld [vmem:[#allocation9 + $0x230] sm:$0xff]  ;;  %v4497_v1 = vld [vmem:[#allocation9 + $0x358] sm:$0xff] }
 0x76a   :  { %4196 = vmatmul.f32.gmra.mxu2 %v4167_v20  ;;  %4306 = vmatpush.msrb.mxu0 %v4267_v6  ;;  %v4516_v19 = vld [vmem:[#allocation9 + $0x3f0] sm:$0xff]  ;;  %v4417_v6 = vld [vmem:[#allocation9 + $0x228] sm:$0xff] }
 0x76b   :  { %4113 = vmatmul.f32.gmra.mxu0 %v4084_v12  ;;  %4326 = vmatpush.msrb.mxu1 %v4283_v30  ;;  %v4515_v30 = vld [vmem:[#allocation9 + $0x3e8] sm:$0xff] }
 0x76c   :  { %4307 = vmatpush.msrb.mxu0 %v4266_v7  ;;  %4376 = vmatpush.msrb.mxu2 %v4347_v57  ;;  %v4416_v7 = vld [vmem:[#allocation9 + $0x220] sm:$0xff]  ;;  %v4496_v57 = vld [vmem:[#allocation9 + $0x350] sm:$0xff] }
 0x76d   :  { %4327 = vmatpush.msrb.mxu1 %v4282_v48  ;;  %4396 = vmatpush.msrb.mxu3 %v4363_v56  ;;  %v4432_v48 = vld [vmem:[#allocation9 + $0x2a0] sm:$0xff]  ;;  %v4495_v56 = vld [vmem:[#allocation9 + $0x348] sm:$0xff] }
 0x76e   :  { %4308 = vmatpush.msrb.mxu0 %v4265_v35  ;;  %4377 = vmatpush.msrb.mxu2 %v4346_v23  ;;  %v4414_v35 = vld [vmem:[#allocation9 + $0x210] sm:$0xff]  ;;  %v4511_v23 = vld [vmem:[#allocation9 + $0x3c8] sm:$0xff] }
 0x76f   :  { %4151 = vmatmul.f32.gmra.mxu1 %v4084_v12  ;;  %4397 = vmatpush.msrb.mxu3 %v4362_v5  ;;  %v4425_v12 = vld [vmem:[#allocation9 + $0x268] sm:$0xff]  ;;  %v4493_v5 = vld [vmem:[#allocation9 + $0x338] sm:$0xff] }
 0x770   :  { %4234 = vmatmul.f32.gmra.mxu3 %v4167_v20  ;;  %4328 = vmatpush.msrb.mxu1 %v4281_v8  ;;  %v4343_v20 = vld [vmem:[#allocation9 + $0x128] sm:$0xff]  ;;  %v4498_v8 = vld [vmem:[#allocation9 + $0x360] sm:$0xff] }
 0x771   :  { %4309 = vmatpush.msrb.mxu0 %v4264_v27  ;;  %4378 = vmatpush.msrb.mxu2 %v4345_v46  ;;  %v4514_v27 = vld [vmem:[#allocation9 + $0x3e0] sm:$0xff]  ;;  %v4413_v46 = vld [vmem:[#allocation9 + $0x208] sm:$0xff] }
 0x772   :  { %4199 = vmatmul.f32.gmra.mxu2 %v4168_v52  ;;  %4329 = vmatpush.msrb.mxu1 %v4280_v24  ;;  %v4513_v24 = vld [vmem:[#allocation9 + $0x3d8] sm:$0xff] }
 0x773   :  { %4116 = vmatmul.f32.gmra.mxu0 %v4085_v22  ;;  %4398 = vmatpush.msrb.mxu3 %v4361_v51  ;;  %v4492_v51 = vld [vmem:[#allocation9 + $0x330] sm:$0xff] }
 0x774   :  { %4310 = vmatpush.msrb.mxu0 %v4263_v18  ;;  %4330 = vmatpush.msrb.mxu1 %v4279_v33  ;;  %v4512_v18 = vld [vmem:[#allocation9 + $0x3d0] sm:$0xff]  ;;  %v4494_v33 = vld [vmem:[#allocation9 + $0x340] sm:$0xff] }
 0x775   :  { %4379 = vmatpush.msrb.mxu2 %v4344_v29  ;;  %4399 = vmatpush.msrb.mxu3 %v4360_v44  ;;  %v4491_v29 = vld [vmem:[#allocation9 + $0x328] sm:$0xff]  ;;  %v4490_v44 = vld [vmem:[#allocation9 + $0x320] sm:$0xff] }
 0x776   :  { %4311 = vmatpush.msrb.mxu0 %v4262_v39  ;;  %4331 = vmatpush.msrb.mxu1 %v4278_v21  ;;  %v4510_v39 = vld [vmem:[#allocation9 + $0x3c0] sm:$0xff]  ;;  %v4509_v21 = vld [vmem:[#allocation9 + $0x3b8] sm:$0xff] }
 0x777   :  { %4154 = vmatmul.f32.gmra.mxu1 %v4085_v22  ;;  %4380 = vmatpush.msrb.mxu2 %v4343_v20  ;;  %v4340_v22 = vld [vmem:[#allocation9 + $0x110] sm:$0xff]  ;;  %v4489_v20 = vld [vmem:[#allocation9 + $0x318] sm:$0xff] }
 0x778   :  { %4237 = vmatmul.f32.gmra.mxu3 %v4168_v52  ;;  %4312 = vmatpush.msrb.mxu0 %v4261_v10  ;;  %v4357_v52 = vld [vmem:[#allocation9 + $0x198] sm:$0xff]  ;;  %v4429_v10 = vld [vmem:[#allocation9 + $0x288] sm:$0xff] }
 0x779   :  { %4332 = vmatpush.msrb.mxu1 %v4277_v50  ;;  %4400 = vmatpush.msrb.mxu3 %v4359_v17  ;;  %v4508_v50 = vld [vmem:[#allocation9 + $0x3b0] sm:$0xff] }
 0x77a   :  { %4202 = vmatmul.f32.gmra.mxu2 %v4169_v62  ;;  %4444 = vmatpush.msra.mxu0 %v4427_v47  ;;  %v4412_v47 = vld [vmem:[#allocation9 + $0x200] sm:$0xff]  ;;  %v4488_v17 = vld [vmem:[#allocation9 + $0x310] sm:$0xff] }
 0x77b   :  { %4119 = vmatmul.f32.gmra.mxu0 %v4086_v32  ;;  %4464 = vmatpush.msra.mxu1 %v4443_v60  ;;  %v4428_v60 = vld [vmem:[#allocation9 + $0x280] sm:$0xff] }
 0x77c   :  { %4445 = vmatpush.msra.mxu0 %v4426_v13  ;;  %4381 = vmatpush.msrb.mxu2 %v4342_v14  ;;  %v4507_v13 = vld [vmem:[#allocation9 + $0x3a8] sm:$0xff] }
 0x77d   :  { %4465 = vmatpush.msra.mxu1 %v4442_v4  ;;  %4401 = vmatpush.msrb.mxu3 %v4358_v37  ;;  %v4506_v4 = vld [vmem:[#allocation9 + $0x3a0] sm:$0xff]  ;;  %v4487_v14 = vld [vmem:[#allocation9 + $0x308] sm:$0xff] }
 0x77e   :  { %4446 = vmatpush.msra.mxu0 %v4425_v12  ;;  %4382 = vmatpush.msrb.mxu2 %v4341_v55  ;;  %v4505_v12 = vld [vmem:[#allocation9 + $0x398] sm:$0xff]  ;;  %v4486_v37 = vld [vmem:[#allocation9 + $0x300] sm:$0xff] }
 0x77f   :  { %4157 = vmatmul.f32.gmra.mxu1 %v4086_v32  ;;  %4402 = vmatpush.msrb.mxu3 %v4357_v52  ;;  %v4435_v32 = vld [vmem:[#allocation9 + $0x2b8] sm:$0xff] }
 0x780   :  { %4240 = vmatmul.f32.gmra.mxu3 %v4169_v62  ;;  %4466 = vmatpush.msra.mxu1 %v4441_v58  ;;  %v4419_v62 = vld [vmem:[#allocation9 + $0x238] sm:$0xff]  ;;  %v4504_v58 = vld [vmem:[#allocation9 + $0x390] sm:$0xff] }
 0x781   :  { %4447 = vmatpush.msra.mxu0 %v4424_v11  ;;  %4383 = vmatpush.msrb.mxu2 %v4340_v22  ;;  %v4503_v11 = vld [vmem:[#allocation9 + $0x388] sm:$0xff]  ;;  %v4575_v22 = vld [vmem:[#allocation9 + $0x478] sm:$0xff] }
 0x782   :  { %4205 = vmatmul.f32.gmra.mxu2 %v4170_v40  ;;  %4467 = vmatpush.msra.mxu1 %v4440_v43  ;;  %v4502_v43 = vld [vmem:[#allocation9 + $0x380] sm:$0xff] }
 0x783   :  { %4122 = vmatmul.f32.gmra.mxu0 %v4087_v63  ;;  %4403 = vmatpush.msrb.mxu3 %v4356_v36 }
 0x784   :  { %4448 = vmatpush.msra.mxu0 %v4423_v54  ;;  %4468 = vmatpush.msra.mxu1 %v4439_v45 }
 0x785   :  { %4384 = vmatpush.msrb.mxu2 %v4339_v53  ;;  %4404 = vmatpush.msrb.mxu3 %v4355_v0  ;;  %v4591_v0 = vld [vmem:[#allocation9 + $0x4f8] sm:$0xff] }
 0x786   :  { %4449 = vmatpush.msra.mxu0 %v4422_v61  ;;  %4469 = vmatpush.msra.mxu1 %v4438_v41  ;;  %v4574_v61 = vld [vmem:[#allocation9 + $0x470] sm:$0xff]  ;;  %v4573_v41 = vld [vmem:[#allocation9 + $0x468] sm:$0xff] }
 0x787   :  { %4160 = vmatmul.f32.gmra.mxu1 %v4087_v63  ;;  %4385 = vmatpush.msrb.mxu2 %v4338_v25  ;;  %v4430_v63 = vld [vmem:[#allocation9 + $0x290] sm:$0xff] }
 0x788   :  { %4243 = vmatmul.f32.gmra.mxu3 %v4170_v40  ;;  %4450 = vmatpush.msra.mxu0 %v4421_v15  ;;  %v4431_v40 = vld [vmem:[#allocation9 + $0x298] sm:$0xff] }
 0x789   :  { %4470 = vmatpush.msra.mxu1 %v4437_v3  ;;  %4405 = vmatpush.msrb.mxu3 %v4354_v2  ;;  %v4572_v3 = vld [vmem:[#allocation9 + $0x460] sm:$0xff]  ;;  %v4571_v2 = vld [vmem:[#allocation9 + $0x458] sm:$0xff] }
 0x78a   :  { %4451 = vmatpush.msra.mxu0 %v4420_v49  ;;  %4518 = vmatpush.msra.mxu2 %v4501_v16  ;;  %v4590_v49 = vld [vmem:[#allocation9 + $0x4f0] sm:$0xff] }
 0x78b   :  { %4471 = vmatpush.msra.mxu1 %v4436_v38  ;;  %4538 = vmatpush.msra.mxu3 %v4517_v26  ;;  %v4589_v26 = vld [vmem:[#allocation9 + $0x4e8] sm:$0xff] }
 0x78c   :  { %4452 = vmatpush.msra.mxu0 %v4419_v62  ;;  %4519 = vmatpush.msra.mxu2 %v4500_v28  ;;  %v4649_v62 = vld [vmem:[#allocation9 + $0x578] sm:$0xff]  ;;  %v4648_v28 = vld [vmem:[#allocation9 + $0x570] sm:$0xff] }
 0x78d   :  { %4472 = vmatpush.msra.mxu1 %v4435_v32  ;;  %4539 = vmatpush.msra.mxu3 %v4516_v19  ;;  %v4570_v32 = vld [vmem:[#allocation9 + $0x450] sm:$0xff]  ;;  %v4569_v19 = vld [vmem:[#allocation9 + $0x448] sm:$0xff] }
 0x78e   :  { %4453 = vmatpush.msra.mxu0 %v4418_v9  ;;  %4520 = vmatpush.msra.mxu2 %v4499_v59  ;;  %v4588_v9 = vld [vmem:[#allocation9 + $0x4e0] sm:$0xff] }
 0x78f   :  { %4473 = vmatpush.msra.mxu1 %v4434_v42  ;;  %4540 = vmatpush.msra.mxu3 %v4515_v30  ;;  %v4587_v30 = vld [vmem:[#allocation9 + $0x4d8] sm:$0xff] }
 0x790   :  { %4454 = vmatpush.msra.mxu0 %v4417_v6  ;;  %4521 = vmatpush.msra.mxu2 %v4498_v8  ;;  %v4647_v6 = vld [vmem:[#allocation9 + $0x568] sm:$0xff] }
 0x791   :  { %4474 = vmatpush.msra.mxu1 %v4433_v34  ;;  %4541 = vmatpush.msra.mxu3 %v4514_v27  ;;  %v4568_v34 = vld [vmem:[#allocation9 + $0x440] sm:$0xff]  ;;  %v4664_v27 = vld [vmem:[#allocation9 + $0x5f0] sm:$0xff] }
 0x792   :  { %4455 = vmatpush.msra.mxu0 %v4416_v7  ;;  %4522 = vmatpush.msra.mxu2 %v4497_v1  ;;  %v4585_v1 = vld [vmem:[#allocation9 + $0x4c8] sm:$0xff] }
 0x793   :  { %4475 = vmatpush.msra.mxu1 %v4432_v48  ;;  %4542 = vmatpush.msra.mxu3 %v4513_v24  ;;  %v4665_v48 = vld [vmem:[#allocation9 + $0x5f8] sm:$0xff]  ;;  %v4566_v24 = vld [vmem:[#allocation9 + $0x430] sm:$0xff] }
 0x794   :  { %4456 = vmatpush.msra.mxu0 %v4415_v31  ;;  %4523 = vmatpush.msra.mxu2 %v4496_v57 }
 0x795   :  { %4476 = vmatpush.msra.mxu1 %v4431_v40  ;;  %4543 = vmatpush.msra.mxu3 %v4512_v18  ;;  %v4646_v40 = vld [vmem:[#allocation9 + $0x560] sm:$0xff]  ;;  %v4663_v18 = vld [vmem:[#allocation9 + $0x5e8] sm:$0xff] }
 0x796   :  { %4457 = vmatpush.msra.mxu0 %v4414_v35  ;;  %4524 = vmatpush.msra.mxu2 %v4495_v56  ;;  %v4586_v35 = vld [vmem:[#allocation9 + $0x4d0] sm:$0xff]  ;;  %v4645_v56 = vld [vmem:[#allocation9 + $0x558] sm:$0xff] }
 0x797   :  { %4477 = vmatpush.msra.mxu1 %v4430_v63  ;;  %4544 = vmatpush.msra.mxu3 %v4511_v23  ;;  %v4567_v63 = vld [vmem:[#allocation9 + $0x438] sm:$0xff]  ;;  %v4584_v23 = vld [vmem:[#allocation9 + $0x4c0] sm:$0xff] }
 0x798   :  { %4525 = vmatpush.msra.mxu2 %v4494_v33  ;;  %4458 = vmatpush.msra.mxu0 %v4413_v46  ;;  %v4565_v33 = vld [vmem:[#allocation9 + $0x428] sm:$0xff]  ;;  %v4564_v46 = vld [vmem:[#allocation9 + $0x420] sm:$0xff] }
 0x799   :  { %4545 = vmatpush.msra.mxu3 %v4510_v39  ;;  %4478 = vmatpush.msra.mxu1 %v4429_v10 }
 0x79a   :  { %4526 = vmatpush.msra.mxu2 %v4493_v5  ;;  %4459 = vmatpush.msra.mxu0 %v4412_v47  ;;  %v4662_v5 = vld [vmem:[#allocation9 + $0x5e0] sm:$0xff]  ;;  %v4582_v47 = vld [vmem:[#allocation9 + $0x4b0] sm:$0xff] }
 0x79b   :  { %4546 = vmatpush.msra.mxu3 %v4509_v21  ;;  %4479 = vmatpush.msra.mxu1 %v4428_v60  ;;  %v4583_v21 = vld [vmem:[#allocation9 + $0x4b8] sm:$0xff] }
 0x79c   :  { %4527 = vmatpush.msra.mxu2 %v4492_v51  ;;  %v4661_v51 = vld [vmem:[#allocation9 + $0x5d8] sm:$0xff] }
 0x79d   :  { %4547 = vmatpush.msra.mxu3 %v4508_v50  ;;  %v4644_v50 = vld [vmem:[#allocation9 + $0x550] sm:$0xff]  ;;  %v4563_v60 = vld [vmem:[#allocation9 + $0x418] sm:$0xff] }
 0x79e   :  { %4528 = vmatpush.msra.mxu2 %v4491_v29  ;;  %v4660_v29 = vld [vmem:[#allocation9 + $0x5d0] sm:$0xff] }
 0x79f   :  { %4548 = vmatpush.msra.mxu3 %v4507_v13  ;;  %v4643_v13 = vld [vmem:[#allocation9 + $0x548] sm:$0xff] }
 0x7a0   :  { %4529 = vmatpush.msra.mxu2 %v4490_v44  ;;  %v4581_v44 = vld [vmem:[#allocation9 + $0x4a8] sm:$0xff] }
 0x7a1   :  { %4549 = vmatpush.msra.mxu3 %v4506_v4  ;;  %v4562_v4 = vld [vmem:[#allocation9 + $0x410] sm:$0xff] }
 0x7a2   :  { %4530 = vmatpush.msra.mxu2 %v4489_v20 }
 0x7a3   :  { %4550 = vmatpush.msra.mxu3 %v4505_v12 }
 0x7a4   :  { %4531 = vmatpush.msra.mxu2 %v4488_v17  ;;  %v4659_v17 = vld [vmem:[#allocation9 + $0x5c8] sm:$0xff] }
 0x7a5   :  { %4551 = vmatpush.msra.mxu3 %v4504_v58  ;;  %v4642_v58 = vld [vmem:[#allocation9 + $0x540] sm:$0xff] }
 0x7a6   :  { %4532 = vmatpush.msra.mxu2 %v4487_v14  ;;  %v4580_v14 = vld [vmem:[#allocation9 + $0x4a0] sm:$0xff] }
 0x7a7   :  { %4552 = vmatpush.msra.mxu3 %v4503_v11  ;;  %v4561_v11 = vld [vmem:[#allocation9 + $0x408] sm:$0xff] }
 0x7a8   :  { %4533 = vmatpush.msra.mxu2 %v4486_v37 }
 0x7a9   :  { %4553 = vmatpush.msra.mxu3 %v4502_v43 }
 0x7d0   :  { %v4105_v55 = vpop.f32.mrf.mxu0 }
 0x7d4   :  { %v4143_v54 = vpop.f32.mrf.mxu1 }
 0x7d5   :  { %v4188_v52 = vpop.f32.mrf.mxu2 }
 0x7d6   :  { %v4247_v45 = vmax.f32 %v4105_v55, %v4188_v52  ;;  %v4658_v55 = vld [vmem:[#allocation9 + $0x5c0] sm:$0xff]  ;;  %v4579_v52 = vld [vmem:[#allocation9 + $0x498] sm:$0xff] }
 0x7d8   :  { %4313 = vmatmul.f32.vlgmr.msrb.gmra.mxu0 %v4247_v45  ;;  %v4108_v36 = vpop.f32.mrf.mxu0  ;;  %v4560_v45 = vld [vmem:[#allocation9 + $0x400] sm:$0xff] }
 0x7d9   :  { %4592 = vmatpush.msrb.mxu0 %v4575_v22  ;;  %v4723_v22 = vld [vmem:[#allocation9 + $0x678] sm:$0xff] }
 0x7db   :  { %v4226_v53 = vpop.f32.mrf.mxu3  ;;  %4593 = vmatpush.msrb.mxu0 %v4574_v61  ;;  %v4657_v61 = vld [vmem:[#allocation9 + $0x5b8] sm:$0xff] }
 0x7dc   :  { %v4248_v15 = vmax.f32 %v4143_v54, %v4226_v53  ;;  %v4146_v38 = vpop.f32.mrf.mxu1  ;;  %v4641_v54 = vld [vmem:[#allocation9 + $0x538] sm:$0xff]  ;;  %v4722_v53 = vld [vmem:[#allocation9 + $0x670] sm:$0xff] }
 0x7dd   :  { %4594 = vmatpush.msrb.mxu0 %v4573_v41  ;;  %v4191_v25 = vpop.f32.mrf.mxu2  ;;  %v4640_v41 = vld [vmem:[#allocation9 + $0x530] sm:$0xff] }
 0x7de   :  { %4333 = vmatmul.f32.vlgmr.msrb.gmra.mxu1 %v4248_v15  ;;  %v4249_v16 = vmax.f32 %v4108_v36, %v4191_v25  ;;  %v4578_v36 = vld [vmem:[#allocation9 + $0x490] sm:$0xff]  ;;  %v4721_v25 = vld [vmem:[#allocation9 + $0x668] sm:$0xff] }
 0x7df   :  { %4612 = vmatpush.msrb.mxu1 %v4591_v0  ;;  %4595 = vmatpush.msrb.mxu0 %v4572_v3  ;;  %v4656_v15 = vld [vmem:[#allocation9 + $0x5b0] sm:$0xff]  ;;  %v4577_v0 = vld [vmem:[#allocation9 + $0x488] sm:$0xff] }
 0x7e0   :  { %4386 = vmatmul.f32.vlgmr.msrb.gmra.mxu2 %v4249_v16  ;;  %v4111_v59 = vpop.f32.mrf.mxu0  ;;  %v4639_v3 = vld [vmem:[#allocation9 + $0x528] sm:$0xff] }
 0x7e1   :  { %4613 = vmatpush.msrb.mxu1 %v4590_v49  ;;  %4596 = vmatpush.msrb.mxu0 %v4571_v2  ;;  %v4655_v49 = vld [vmem:[#allocation9 + $0x5a8] sm:$0xff]  ;;  %v4576_v2 = vld [vmem:[#allocation9 + $0x480] sm:$0xff] }
 0x7e2   :  { %4666 = vmatpush.msrb.mxu2 %v4649_v62  ;;  %v4638_v62 = vld [vmem:[#allocation9 + $0x520] sm:$0xff] }
 0x7e3   :  { %4614 = vmatpush.msrb.mxu1 %v4589_v26  ;;  %4597 = vmatpush.msrb.mxu0 %v4570_v32  ;;  %v4229_v42 = vpop.f32.mrf.mxu3  ;;  %v4739_v26 = vld [vmem:[#allocation9 + $0x6f8] sm:$0xff] }
 0x7e4   :  { %v4250_v7 = vmax.f32 %v4146_v38, %v4229_v42  ;;  %4667 = vmatpush.msrb.mxu2 %v4648_v28  ;;  %v4149_v57 = vpop.f32.mrf.mxu1  ;;  %v4720_v28 = vld [vmem:[#allocation9 + $0x660] sm:$0xff] }
 0x7e5   :  { %4615 = vmatpush.msrb.mxu1 %v4588_v9  ;;  %4598 = vmatpush.msrb.mxu0 %v4569_v19  ;;  %v4194_v31 = vpop.f32.mrf.mxu2  ;;  %v4654_v42 = vld [vmem:[#allocation9 + $0x5a0] sm:$0xff] }
 0x7e6   :  { %4406 = vmatmul.f32.vlgmr.msrb.gmra.mxu3 %v4250_v7  ;;  %v4251_v8 = vmax.f32 %v4111_v59, %v4194_v31  ;;  %4668 = vmatpush.msrb.mxu2 %v4647_v6  ;;  %v4738_v59 = vld [vmem:[#allocation9 + $0x6f0] sm:$0xff]  ;;  %v4737_v7 = vld [vmem:[#allocation9 + $0x6e8] sm:$0xff]  ;;  %v4653_v31 = vld [vmem:[#allocation9 + $0x598] sm:$0xff] }
 0x7e7   :  { %4616 = vmatpush.msrb.mxu1 %v4587_v30  ;;  %4599 = vmatpush.msrb.mxu0 %v4568_v34  ;;  %v4719_v30 = vld [vmem:[#allocation9 + $0x658] sm:$0xff] }
 0x7e8   :  { %4686 = vmatpush.msrb.mxu3 %v4665_v48  ;;  %4669 = vmatpush.msrb.mxu2 %v4646_v40  ;;  %v9722_v20 = vpop.f32.mrf.mxu0  ;;  %v4637_v34 = vld [vmem:[#allocation9 + $0x518] sm:$0xff]  ;;  %v4718_v48 = vld [vmem:[#allocation9 + $0x650] sm:$0xff] }
 0x7e9   :  { %4617 = vmatpush.msrb.mxu1 %v4586_v35  ;;  %4600 = vmatpush.msrb.mxu0 %v4567_v63  ;;  %v4636_v40 = vld [vmem:[#allocation9 + $0x510] sm:$0xff]  ;;  %v4736_v35 = vld [vmem:[#allocation9 + $0x6e0] sm:$0xff]  ;;  %v4717_v63 = vld [vmem:[#allocation9 + $0x648] sm:$0xff] }
 0x7ea   :  { %4687 = vmatpush.msrb.mxu3 %v4664_v27  ;;  %4460 = vmatmul.f32.vlgmr.msra.gmra.mxu0 %v4251_v8  ;;  %v4652_v8 = vld [vmem:[#allocation9 + $0x590] sm:$0xff]  ;;  %v4635_v27 = vld [vmem:[#allocation9 + $0x508] sm:$0xff] }
 0x7eb   :  { %4618 = vmatpush.msrb.mxu1 %v4585_v1  ;;  %4601 = vmatpush.msrb.mxu0 %v4566_v24  ;;  %v4232_v39 = vpop.f32.mrf.mxu3  ;;  %v4735_v1 = vld [vmem:[#allocation9 + $0x6d8] sm:$0xff]  ;;  %v4716_v24 = vld [vmem:[#allocation9 + $0x640] sm:$0xff] }
 0x7ec   :  { %v4252_v10 = vmax.f32 %v4149_v57, %v4232_v39  ;;  %4688 = vmatpush.msrb.mxu3 %v4663_v18  ;;  %4670 = vmatpush.msrb.mxu2 %v4645_v56  ;;  %v9726_v37 = vpop.f32.mrf.mxu1  ;;  %v4651_v56 = vld [vmem:[#allocation9 + $0x588] sm:$0xff] }
 0x7ed   :  { %4619 = vmatpush.msrb.mxu1 %v4584_v23  ;;  %4602 = vmatpush.msrb.mxu0 %v4565_v33  ;;  %v9724_v12 = vpop.f32.mrf.mxu2  ;;  %v4634_v23 = vld [vmem:[#allocation9 + $0x500] sm:$0xff]  ;;  %v4734_v33 = vld [vmem:[#allocation9 + $0x6d0] sm:$0xff] }
 0x7ee   :  { %4689 = vmatpush.msrb.mxu3 %v4662_v5  ;;  %4480 = vmatmul.f32.vlgmr.msra.gmra.mxu1 %v4252_v10  ;;  %v4253_v32 = vmax.f32 %v9722_v20, %v9724_v12  ;;  %v4715_v5 = vld [vmem:[#allocation9 + $0x638] sm:$0xff]  ;;  %v4650_v10 = vld [vmem:[#allocation9 + $0x580] sm:$0xff]  ;;  %v4730_v12 = vld [vmem:[#allocation9 + $0x6b0] sm:$0xff] }
 0x7ef   :  { %4620 = vmatpush.msrb.mxu1 %v4583_v21  ;;  %4603 = vmatpush.msrb.mxu0 %v4564_v46  ;;  %v4712_v20 = vld [vmem:[#allocation9 + $0x620] sm:$0xff] }
 0x7f0   :  { %4690 = vmatpush.msrb.mxu3 %v4661_v51  ;;  %4671 = vmatpush.msrb.mxu2 %v4644_v50  ;;  %v9728_v38 = vpop.f32.mrf.mxu0  ;;  %v4733_v50 = vld [vmem:[#allocation9 + $0x6c8] sm:$0xff] }
 0x7f1   :  { %4621 = vmatpush.msrb.mxu1 %v4582_v47  ;;  %4604 = vmatpush.msrb.mxu0 %v4563_v60  ;;  %v4714_v47 = vld [vmem:[#allocation9 + $0x630] sm:$0xff] }
 0x7f2   :  { %4691 = vmatpush.msrb.mxu3 %v4660_v29  ;;  %4672 = vmatpush.msrb.mxu2 %v4643_v13  ;;  %v4732_v29 = vld [vmem:[#allocation9 + $0x6c0] sm:$0xff] }
 0x7f3   :  { %4622 = vmatpush.msrb.mxu1 %v4581_v44  ;;  %4605 = vmatpush.msrb.mxu0 %v4562_v4  ;;  %v4235_v43 = vpop.f32.mrf.mxu3  ;;  %v4713_v44 = vld [vmem:[#allocation9 + $0x628] sm:$0xff]  ;;  %v4731_v4 = vld [vmem:[#allocation9 + $0x6b8] sm:$0xff] }
 0x7f4   :  { %4692 = vmatpush.msrb.mxu3 %v4659_v17  ;;  %4673 = vmatpush.msrb.mxu2 %v4642_v58  ;;  %v9734_v9 = vpop.f32.mrf.mxu1  ;;  %v4254_v6 = vmax.f32 %v9726_v37, %v4235_v43  ;;  %v4711_v17 = vld [vmem:[#allocation9 + $0x618] sm:$0xff]  ;;  %v4729_v58 = vld [vmem:[#allocation9 + $0x6a8] sm:$0xff]  ;;  %v4728_v43 = vld [vmem:[#allocation9 + $0x6a0] sm:$0xff] }
 0x7f5   :  { %4623 = vmatpush.msrb.mxu1 %v4580_v14  ;;  %4606 = vmatpush.msrb.mxu0 %v4561_v11  ;;  %v9730_v16 = vpop.f32.mrf.mxu2  ;;  %v4710_v14 = vld [vmem:[#allocation9 + $0x610] sm:$0xff] }
 0x7f6   :  { %4693 = vmatpush.msrb.mxu3 %v4658_v55  ;;  %4674 = vmatpush.msrb.mxu2 %v4641_v54  ;;  %v4255_v39 = vmax.f32 %v9728_v38, %v9730_v16  ;;  %v4709_v55 = vld [vmem:[#allocation9 + $0x608] sm:$0xff]  ;;  %v4727_v54 = vld [vmem:[#allocation9 + $0x698] sm:$0xff]  ;;  %v4792_v38 = vld [vmem:[#allocation10 + $0x50] sm:$0xff] }
 0x7f7   :  { %4624 = vmatpush.msrb.mxu1 %v4579_v52  ;;  %4607 = vmatpush.msrb.mxu0 %v4560_v45  ;;  %v4708_v45 = vld [vmem:[#allocation9 + $0x600] sm:$0xff]  ;;  %v4791_v16 = vld [vmem:[#allocation10 + $0x48] sm:$0xff] }
 0x7f8   :  { %4694 = vmatpush.msrb.mxu3 %v4657_v61  ;;  %4675 = vmatpush.msrb.mxu2 %v4640_v41  ;;  %v4120_v57 = vpop.f32.mrf.mxu0  ;;  %v4725_v41 = vld [vmem:[#allocation9 + $0x688] sm:$0xff] }
 0x7f9   :  { %4740 = vmatpush.msra.mxu0 %v4723_v22  ;;  %4625 = vmatpush.msrb.mxu1 %v4578_v36  ;;  %v4726_v22 = vld [vmem:[#allocation9 + $0x690] sm:$0xff] }
 0x7fa   :  { %4695 = vmatpush.msrb.mxu3 %v4656_v15  ;;  %4676 = vmatpush.msrb.mxu2 %v4639_v3  ;;  %v4724_v15 = vld [vmem:[#allocation9 + $0x680] sm:$0xff]  ;;  %v4796_v3 = vld [vmem:[#allocation10 + $0x70] sm:$0xff] }
 0x7fb   :  { %4741 = vmatpush.msra.mxu0 %v4722_v53  ;;  %4626 = vmatpush.msrb.mxu1 %v4577_v0  ;;  %v9736_v19 = vpop.f32.mrf.mxu3  ;;  %v4797_v0 = vld [vmem:[#allocation10 + $0x78] sm:$0xff] }
 0x7fc   :  { %4696 = vmatpush.msrb.mxu3 %v4655_v49  ;;  %4677 = vmatpush.msrb.mxu2 %v4638_v62  ;;  %v4158_v21 = vpop.f32.mrf.mxu1  ;;  %v4256_v51 = vmax.f32 %v9734_v9, %v9736_v19  ;;  %v4794_v49 = vld [vmem:[#allocation10 + $0x60] sm:$0xff]  ;;  %v4785_v19 = vld [vmem:[#allocation10 + $0x18] sm:$0xff] }
 0x7fd   :  { %4742 = vmatpush.msra.mxu0 %v4721_v25  ;;  %4627 = vmatpush.msrb.mxu1 %v4576_v2  ;;  %v4203_v18 = vpop.f32.mrf.mxu2  ;;  %v4795_v25 = vld [vmem:[#allocation10 + $0x68] sm:$0xff]  ;;  %v4793_v2 = vld [vmem:[#allocation10 + $0x58] sm:$0xff]  ;;  %v4790_v62 = vld [vmem:[#allocation10 + $0x40] sm:$0xff] }
 0x7fe   :  { %4697 = vmatpush.msrb.mxu3 %v4654_v42  ;;  %4534 = vmatmul.f32.vlgmr.msra.gmra.mxu2 %v4253_v32  ;;  %v4257_v60 = vmax.f32 %v4120_v57, %v4203_v18  ;;  %v4788_v32 = vld [vmem:[#allocation10 + $0x30] sm:$0xff]  ;;  %v4786_v9 = vld [vmem:[#allocation10 + $0x20] sm:$0xff] }
 0x7ff   :  { %4760 = vmatpush.msra.mxu1 %v4739_v26  ;;  %4743 = vmatpush.msra.mxu0 %v4720_v28  ;;  %v4789_v26 = vld [vmem:[#allocation10 + $0x38] sm:$0xff]  ;;  %v4787_v28 = vld [vmem:[#allocation10 + $0x28] sm:$0xff]  ;;  %v4784_v42 = vld [vmem:[#allocation10 + $0x10] sm:$0xff] }
 0x800   :  { %4554 = vmatmul.f32.vlgmr.msra.gmra.mxu3 %v4254_v6  ;;  %4678 = vmatpush.msrb.mxu2 %v4637_v34  ;;  %v4123_v11 = vpop.f32.mrf.mxu0  ;;  %v4783_v6 = vld [vmem:[#allocation10 + $0x8] sm:$0xff]  ;;  %v4782_v34 = vld [vmem:[#allocation10] sm:$0xff] }
 0x801   :  { %4761 = vmatpush.msra.mxu1 %v4738_v59  ;;  %4744 = vmatpush.msra.mxu0 %v4719_v30 }
 0x802   :  { %4698 = vmatpush.msrb.mxu3 %v4653_v31  ;;  %4679 = vmatpush.msrb.mxu2 %v4636_v40  ;;  %v5275_v31 = vld [vmem:[%s9764_s12] ss:$0 sm:$0xff] }
 0x803   :  { %4762 = vmatpush.msra.mxu1 %v4737_v7  ;;  %4745 = vmatpush.msra.mxu0 %v4718_v48  ;;  %v4241_v46 = vpop.f32.mrf.mxu3 }
 0x804   :  { %4699 = vmatpush.msrb.mxu3 %v4652_v8  ;;  %4680 = vmatpush.msrb.mxu2 %v4635_v27  ;;  %v4258_v13 = vmax.f32 %v4158_v21, %v4241_v46  ;;  %v4161_v61 = vpop.f32.mrf.mxu1 }
 0x805   :  { %4763 = vmatpush.msra.mxu1 %v4736_v35  ;;  %4746 = vmatpush.msra.mxu0 %v4717_v63  ;;  %v4206_v37 = vpop.f32.mrf.mxu2 }
 0x806   :  { %4700 = vmatpush.msrb.mxu3 %v4651_v56  ;;  %4681 = vmatpush.msrb.mxu2 %v4634_v23  ;;  %v4259_v52 = vmax.f32 %v4123_v11, %v4206_v37 }
 0x807   :  { %4764 = vmatpush.msra.mxu1 %v4735_v1  ;;  %4747 = vmatpush.msra.mxu0 %v4716_v24 }
 0x808   :  { %4701 = vmatpush.msrb.mxu3 %v4650_v10  ;;  %4608 = vmatmul.f32.vlgmr.msrb.gmra.mxu0 %v4255_v39 }
 0x809   :  { %4765 = vmatpush.msra.mxu1 %v4734_v33  ;;  %4748 = vmatpush.msra.mxu0 %v4715_v5 }
 0x80a   :  { %4628 = vmatmul.f32.vlgmr.msrb.gmra.mxu1 %v4256_v51  ;;  %4682 = vmatmul.f32.vlgmr.msrb.gmra.mxu2 %v4257_v60 }
 0x80b   :  { %4766 = vmatpush.msra.mxu1 %v4733_v50  ;;  %4749 = vmatpush.msra.mxu0 %v4714_v47  ;;  %v4244_v36 = vpop.f32.mrf.mxu3 }
 0x80c   :  { %4702 = vmatmul.f32.vlgmr.msrb.gmra.mxu3 %v4258_v13  ;;  %v4260_v53 = vmax.f32 %v4161_v61, %v4244_v36  ;;  %4802 = vmatpush.msra.mxu2 %v4797_v0 }
 0x80d   :  { %4767 = vmatpush.msra.mxu1 %v4732_v29  ;;  %4750 = vmatpush.msra.mxu0 %v4713_v44 }
 0x80e   :  { %4803 = vmatpush.msra.mxu2 %v4796_v3 }
 0x80f   :  { %4768 = vmatpush.msra.mxu1 %v4731_v4  ;;  %4751 = vmatpush.msra.mxu0 %v4712_v20  ;;  %v5276_v20 = vld [vmem:[%s9766_s14] ss:$0 sm:$0xff] }
 0x810   :  { %4804 = vmatpush.msra.mxu2 %v4795_v25 }
 0x811   :  { %4769 = vmatpush.msra.mxu1 %v4730_v12  ;;  %4752 = vmatpush.msra.mxu0 %v4711_v17 }
 0x812   :  { %4805 = vmatpush.msra.mxu2 %v4794_v49 }
 0x813   :  { %4770 = vmatpush.msra.mxu1 %v4729_v58  ;;  %4753 = vmatpush.msra.mxu0 %v4710_v14 }
 0x814   :  { %4806 = vmatpush.msra.mxu2 %v4793_v2 }
 0x815   :  { %4771 = vmatpush.msra.mxu1 %v4728_v43  ;;  %4754 = vmatpush.msra.mxu0 %v4709_v55 }
 0x816   :  { %4807 = vmatpush.msra.mxu2 %v4792_v38 }
 0x817   :  { %4772 = vmatpush.msra.mxu1 %v4727_v54  ;;  %4755 = vmatpush.msra.mxu0 %v4708_v45 }
 0x818   :  { %4756 = vmatmul.f32.vlgmr.msra.gmra.mxu0 %v4259_v52  ;;  %4808 = vmatpush.msra.mxu2 %v4791_v16 }
 0x819   :  { %4773 = vmatpush.msra.mxu1 %v4726_v22 }
 0x81a   :  { %4809 = vmatpush.msra.mxu2 %v4790_v62 }
 0x81b   :  { %4774 = vmatpush.msra.mxu1 %v4725_v41 }
 0x81c   :  { %4810 = vmatpush.msra.mxu2 %v4789_v26 }
 0x81d   :  { %4775 = vmatpush.msra.mxu1 %v4724_v15 }
 0x81e   :  { %4776 = vmatmul.f32.vlgmr.msra.gmra.mxu1 %v4260_v53  ;;  %4811 = vmatpush.msra.mxu2 %v4788_v32 }
 0x820   :  { %4812 = vmatpush.msra.mxu2 %v4787_v28 }
 0x822   :  { %4813 = vmatpush.msra.mxu2 %v4786_v9 }
 0x824   :  { %4814 = vmatpush.msra.mxu2 %v4785_v19 }
 0x826   :  { %4815 = vmatpush.msra.mxu2 %v4784_v42 }
 0x828   :  { %4816 = vmatpush.msra.mxu2 %v4783_v6 }
 0x82a   :  { %4817 = vmatpush.msra.mxu2 %v4782_v34 }
 0x855   :  { %v4314_v59 = vpop.f32.mrf.mxu0 }
 0x856   :  { %v4315_v35 = vadd.f32 %v5275_v31, %v4314_v59 }
 0x85b   :  { %v4334_v30 = vpop.f32.mrf.mxu1 }
 0x85c   :  { %v4335_v24 = vadd.f32 %v4334_v30, %v4315_v35 }
 0x863   :  { %v4387_v7 = vpop.f32.mrf.mxu2 }
 0x867   :  { %v4461_v40 = vpop.f32.mrf.mxu0 }
 0x869   :  { %v4407_v48 = vpop.f32.mrf.mxu3 }
 0x86a   :  { %v4408_v8 = vadd.f32 %v4407_v48, %v4387_v7 }
 0x86b   :  { %v4481_v63 = vpop.f32.mrf.mxu1 }
 0x86c   :  { %v4410_v57 = vadd.f32 %v4408_v8, %v4335_v24  ;;  %v4482_v18 = vadd.f32 %v4481_v63, %v4461_v40 }
 0x86e   :  { %v4484_v39 = vadd.f32 %v4482_v18, %v4410_v57 }
 0x881   :  { %v4535_v27 = vpop.f32.mrf.mxu2 }
 0x883   :  { %v4555_v1 = vpop.f32.mrf.mxu3 }
 0x884   :  { %v4556_v23 = vadd.f32 %v4555_v1, %v4535_v27 }
 0x885   :  { %v4609_v56 = vpop.f32.mrf.mxu0 }
 0x886   :  { %v4558_v46 = vadd.f32 %v4556_v23, %v4484_v39 }
 0x887   :  { %v4629_v33 = vpop.f32.mrf.mxu1 }
 0x888   :  { %v4630_v10 = vadd.f32 %v4629_v33, %v4609_v56 }
 0x88a   :  { %v4632_v47 = vadd.f32 %v4630_v10, %v4558_v46 }
 0x88d   :  { %v4683_v5 = vpop.f32.mrf.mxu2 }
 0x88f   :  { %v4703_v21 = vpop.f32.mrf.mxu3 }
 0x890   :  { %v4704_v51 = vadd.f32 %v4703_v21, %v4683_v5 }
 0x892   :  { %v4706_v29 = vadd.f32 %v4704_v51, %v4632_v47 }
 0x895   :  { %v4757_v50 = vpop.f32.mrf.mxu0 }
 0x89b   :  { %v4777_v60 = vpop.f32.mrf.mxu1 }
 0x89c   :  { %v4778_v13 = vadd.f32 %v4777_v60, %v4757_v50 }
 0x89e   :  { %v4780_v44 = vadd.f32 %v4778_v13, %v4706_v29 }
 0x8a0   :  { %v4781_v4 = vmax.f32 %v4780_v44, 0.0 }
 0x8a2   :  { %4818 = vmatmul.f32.vlgmr.msra.gmra.mxu2 %v4781_v4 }
 0x925   :  { %v4819_v12 = vpop.f32.mrf.mxu2 }
 0x926   :  { %v4820_v17 = vadd.f32 %v5276_v20, %v4819_v12 }
 0x928   :  { %4822 = vst [vmem:[%s9767_s15] sm:$0xff] %v4820_v17 }
 0x929   :  { %4827 = vsyncpa [#allocation3], 1 }
 0x92a   :  { %4828 = vsyncpa [#allocation5], 1 }
 0x92b   :  { %4829 = vsyncpa [#allocation8], 1 }
 0x92c   :  { %4830 = vsyncpa [#allocation11], 1 }

</bundles_post_ra>
